<compile_context>
chip_gen: v7x
topology: tpu7x:2x2x1
jax: 0.10.0
libtpu: 0.0.40
codegen_flags: <defaults>
</compile_context>

<pallas_src>
import functools
import math

import jax
import jax.numpy as jnp
import numpy as np
from jax.experimental import pallas as pl
from jax.experimental.pallas import tpu as pltpu

# ---------------------------------------------------------------------------
# RegNet-Y 400MF architecture constants (torchvision BlockParams for y_400mf)
# ---------------------------------------------------------------------------
STEM_WIDTH = 32
STAGE_WIDTHS = [48, 104, 208, 440]
STAGE_DEPTHS = [1, 3, 6, 6]
GROUP_WIDTH = 8
SE_RATIO = 0.25
BN_EPS = 1e-5
NUM_CLASSES = 5

VMEM_LIMIT = 32 * 1024 * 1024


def _ceil_to(x, m):
    return ((x + m - 1) // m) * m


# ---------------------------------------------------------------------------
# Pallas kernels
# ---------------------------------------------------------------------------
def _mm_kernel(a_ref, b_ref, bias_ref, o_ref, acc_ref, *, activation):
    k = pl.program_id(2)

    @pl.when(k == 0)
    def _():
        acc_ref[...] = jnp.zeros_like(acc_ref)

    acc_ref[...] += jnp.dot(a_ref[...], b_ref[...],
                            preferred_element_type=jnp.float32)

    @pl.when(k == pl.num_programs(2) - 1)
    def _():
        y = acc_ref[...] + bias_ref[...]
        if activation == "relu":
            y = jnp.maximum(y, 0.0)
        o_ref[...] = y.astype(o_ref.dtype)


def _mm_res_kernel(a_ref, b_ref, bias_ref, res_ref, o_ref, acc_ref):
    # epilogue: relu(acc + bias + residual)  (folded-BN 'c' conv + skip + ReLU)
    k = pl.program_id(2)

    @pl.when(k == 0)
    def _():
        acc_ref[...] = jnp.zeros_like(acc_ref)

    acc_ref[...] += jnp.dot(a_ref[...], b_ref[...],
                            preferred_element_type=jnp.float32)

    @pl.when(k == pl.num_programs(2) - 1)
    def _():
        y = acc_ref[...] + bias_ref[...] + res_ref[...].astype(jnp.float32)
        o_ref[...] = jnp.maximum(y, 0.0).astype(o_ref.dtype)


def _se_kernel(x_ref, w1_ref, b1_ref, w2_ref, b2_ref, o_ref, *, inv_hw):
    # Fused SqueezeExcitation: avgpool + FC1/ReLU + FC2/sigmoid + rescale.
    x = x_ref[...].astype(jnp.float32)                       # (1, HWp, Cp)
    pooled = jnp.sum(x, axis=1) * inv_hw                     # (1, Cp)
    pooled8 = jnp.broadcast_to(pooled, (8, pooled.shape[1]))
    h = jnp.dot(pooled8.astype(jnp.bfloat16), w1_ref[...],
                preferred_element_type=jnp.float32) + b1_ref[...]
    h = jnp.maximum(h, 0.0)
    s = jnp.dot(h.astype(jnp.bfloat16), w2_ref[...],
                preferred_element_type=jnp.float32) + b2_ref[...]
    s = 1.0 / (1.0 + jnp.exp(-s))                            # (8, Cp)
    o_ref[...] = (x * s[0:1, None, :]).astype(o_ref.dtype)


def _avgpool_kernel(x_ref, o_ref, *, inv_hw):
    o_ref[...] = jnp.sum(x_ref[...].astype(jnp.float32), axis=1) * inv_hw


_MM_COMPILER_PARAMS = pltpu.CompilerParams(
    dimension_semantics=("parallel", "parallel", "arbitrary"),
    vmem_limit_bytes=VMEM_LIMIT)
_VMEM = pl.BlockSpec(memory_space=pltpu.MemorySpace.VMEM)


def _pick_tm(m):
    # Clamp tile M to the real M (late-stage layers have M as small as 2).
    return min(256, _ceil_to(m, 8))


# ---------------------------------------------------------------------------
# Matmul wrappers (bf16 MXU inputs, f32 accumulation, fused epilogues)
# ---------------------------------------------------------------------------
def matmul_fused(a, b, bias, *, activation=None, residual=None,
                 out_dtype=jnp.bfloat16, tn=128, tk=128):
    """act(A @ B + bias [+ residual, then ReLU]).

    A:(M,K) with K <= Kp; B:(Kp,Np) pre-packed bf16; bias:(1,Np) f32.
    Output (M, Np) — Np stays channel-padded.
    """
    M, K = a.shape
    Kp, Np = b.shape
    a = a.astype(jnp.bfloat16)
    if K < Kp:
        a = jnp.pad(a, ((0, 0), (0, Kp - K)))
    tm = _pick_tm(M)
    Mp = _ceil_to(M, tm)
    if Mp != M:
        a = jnp.pad(a, ((0, Mp - M), (0, 0)))

    grid = (Mp // tm, Np // tn, Kp // tk)
    in_specs = [
        pl.BlockSpec((tm, tk), lambda i, j, k: (i, k)),
        pl.BlockSpec((tk, tn), lambda i, j, k: (k, j)),
        pl.BlockSpec((1, tn), lambda i, j, k: (0, j)),
    ]
    inputs = [a, b, bias]
    if residual is None:
        kernel = functools.partial(_mm_kernel, activation=activation)
    else:
        res = residual.astype(jnp.bfloat16)
        if Mp != M:
            res = jnp.pad(res, ((0, Mp - M), (0, 0)))
        in_specs.append(pl.BlockSpec((tm, tn), lambda i, j, k: (i, j)))
        inputs.append(res)
        kernel = _mm_res_kernel

    out = pl.pallas_call(
        kernel,
        out_shape=jax.ShapeDtypeStruct((Mp, Np), out_dtype),
        grid_spec=pltpu.PrefetchScalarGridSpec(
            num_scalar_prefetch=0,
            grid=grid,
            in_specs=in_specs,
            out_specs=pl.BlockSpec((tm, tn), lambda i, j, k: (i, j)),
            scratch_shapes=[pltpu.VMEM((tm, tn), jnp.float32)],
        ),
        compiler_params=_MM_COMPILER_PARAMS,
    )(*inputs)
    return out[:M] if Mp != M else out


def matmul_grouped_banded(a, b, bias, *, out_dtype=jnp.bfloat16):
    """Grouped 3x3 conv as a banded (block-sparse) matmul + folded-BN ReLU.

    A:(M, Cp*9) channel-major im2col patches (K index = c*9 + tap).
    B:(Cp*9, Cp) block-diagonal folded weight. For output tile j (128 channels
    = 16 groups of width 8) only the contiguous K band [j*1152, (j+1)*1152)
    is read/contracted, skipping every off-band all-zero K tile.
    """
    M, K = a.shape
    Kp, Np = b.shape
    assert K == Kp == Np * 9
    a = a.astype(jnp.bfloat16)
    tm = _pick_tm(M)
    Mp = _ceil_to(M, tm)
    if Mp != M:
        a = jnp.pad(a, ((0, Mp - M), (0, 0)))
    tn = tk = 128
    grid = (Mp // tm, Np // tn, 9)
    out = pl.pallas_call(
        functools.partial(_mm_kernel, activation="relu"),
        out_shape=jax.ShapeDtypeStruct((Mp, Np), out_dtype),
        grid_spec=pltpu.PrefetchScalarGridSpec(
            num_scalar_prefetch=0,
            grid=grid,
            in_specs=[
                pl.BlockSpec((tm, tk), lambda i, j, k: (i, j * 9 + k)),
                pl.BlockSpec((tk, tn), lambda i, j, k: (j * 9 + k, j)),
                pl.BlockSpec((1, tn), lambda i, j, k: (0, j)),
            ],
            out_specs=pl.BlockSpec((tm, tn), lambda i, j, k: (i, j)),
            scratch_shapes=[pltpu.VMEM((tm, tn), jnp.float32)],
        ),
        compiler_params=_MM_COMPILER_PARAMS,
    )(a, b, bias)
    return out[:M] if Mp != M else out


# ---------------------------------------------------------------------------
# Conv / SE / pooling wrappers
# ---------------------------------------------------------------------------
def conv1x1(x_nhwc, w, bias, *, stride=1, activation=None, residual=None):
    if stride > 1:
        x_nhwc = x_nhwc[:, ::stride, ::stride, :]
    N, H, W, Cp = x_nhwc.shape
    a = x_nhwc.reshape(N * H * W, Cp)
    res = None
    if residual is not None:
        res = residual.reshape(N * H * W, residual.shape[-1])
    out = matmul_fused(a, w, bias, activation=activation, residual=res)
    return out.reshape(N, H, W, w.shape[1])


def _im2col_3x3(x_nhwc, stride):
    # TODO(synk): replace the im2col materialization with in-kernel tap
    # accumulation over a haloed VMEM block to avoid the 9x activation traffic.
    N, H, W, C = x_nhwc.shape
    xp = jnp.pad(x_nhwc, ((0, 0), (1, 1), (1, 1), (0, 0)))
    Ho = (H + 2 - 3) // stride + 1
    Wo = (W + 2 - 3) // stride + 1
    taps = [xp[:, i:i + stride * Ho:stride, j:j + stride * Wo:stride, :]
            for i in range(3) for j in range(3)]
    # channel-major tap layout: K index = c*9 + tap  (matches packed weights)
    pat = jnp.stack(taps, axis=-1).reshape(N * Ho * Wo, C * 9)
    return pat, (N, Ho, Wo)


def conv3x3_dense(x_nhwc, w, bias, *, stride, activation=None):
    a, (N, Ho, Wo) = _im2col_3x3(x_nhwc, stride)
    out = matmul_fused(a, w, bias, activation=activation)
    return out.reshape(N, Ho, Wo, w.shape[1])


def conv3x3_grouped(x_nhwc, w, bias, *, stride):
    a, (N, Ho, Wo) = _im2col_3x3(x_nhwc, stride)
    out = matmul_grouped_banded(a, w, bias)
    return out.reshape(N, Ho, Wo, w.shape[1])


def se_apply(x_nhwc, p):
    """Fused SE block: one pallas_call per batch element."""
    N, H, W, Cp = x_nhwc.shape
    HW = H * W
    HWp = _ceil_to(max(HW, 8), 8)
    x = x_nhwc.reshape(N, HW, Cp).astype(jnp.bfloat16)
    if HWp != HW:
        x = jnp.pad(x, ((0, 0), (0, HWp - HW), (0, 0)))
    sp = p["b1"].shape[1]
    out = pl.pallas_call(
        functools.partial(_se_kernel, inv_hw=1.0 / HW),
        out_shape=jax.ShapeDtypeStruct((N, HWp, Cp), jnp.bfloat16),
        grid_spec=pltpu.PrefetchScalarGridSpec(
            num_scalar_prefetch=0,
            grid=(N,),
            in_specs=[
                pl.BlockSpec((1, HWp, Cp), lambda n: (n, 0, 0)),
                pl.BlockSpec((Cp, sp), lambda n: (0, 0)),
                pl.BlockSpec((1, sp), lambda n: (0, 0)),
                pl.BlockSpec((sp, Cp), lambda n: (0, 0)),
                pl.BlockSpec((1, Cp), lambda n: (0, 0)),
            ],
            out_specs=pl.BlockSpec((1, HWp, Cp), lambda n: (n, 0, 0)),
        ),
        compiler_params=pltpu.CompilerParams(
            dimension_semantics=("parallel",), vmem_limit_bytes=VMEM_LIMIT),
    )(x, p["w1"], p["b1"], p["w2"], p["b2"])
    if HWp != HW:
        out = out[:, :HW, :]
    return out.reshape(N, H, W, Cp)


def global_avgpool(x_nhwc):
    """AdaptiveAvgPool2d(1): (N,H,W,Cp) -> (N,Cp)."""
    N, H, W, Cp = x_nhwc.shape
    HW = H * W
    HWp = _ceil_to(max(HW, 8), 8)
    x = x_nhwc.reshape(N, HW, Cp)
    if HWp != HW:
        x = jnp.pad(x, ((0, 0), (0, HWp - HW), (0, 0)))
    return pl.pallas_call(
        functools.partial(_avgpool_kernel, inv_hw=1.0 / HW),
        out_shape=jax.ShapeDtypeStruct((N, Cp), jnp.float32),
        in_specs=[_VMEM],
        out_specs=_VMEM,
        compiler_params=pltpu.CompilerParams(vmem_limit_bytes=VMEM_LIMIT),
    )(x)


# ---------------------------------------------------------------------------
# Raw parameter init (torch-like) — deterministic, synthetic
# ---------------------------------------------------------------------------
class ParamGen:
    def __init__(self, key):
        self.key = key

    def normal(self, shape, scale=1.0):
        self.key, sub = jax.random.split(self.key)
        return scale * jax.random.normal(sub, shape, jnp.float32)


def _bn_params(gen, c):
    return {
        "gamma": 1.0 + 0.1 * gen.normal((c,)),
        "beta": 0.1 * gen.normal((c,)),
        "mean": 0.1 * gen.normal((c,)),
        "var": 1.0 + 0.1 * jnp.abs(gen.normal((c,))),
    }


def init_raw_params(key, num_classes=NUM_CLASSES):
    gen = ParamGen(key)
    raw = {
        "stem": {"w": gen.normal((3, 3, 3, STEM_WIDTH), 1.0 / math.sqrt(27)),
                 "bn": _bn_params(gen, STEM_WIDTH)},
        "stages": [],
    }
    cin = STEM_WIDTH
    for w_out, depth in zip(STAGE_WIDTHS, STAGE_DEPTHS):
        blocks = []
        for bi in range(depth):
            stride = 2 if bi == 0 else 1
            w_b = w_out                      # bottleneck multiplier = 1.0
            groups = w_b // GROUP_WIDTH
            w_se = int(round(SE_RATIO * cin))
            blk = {
                "a": {"w": gen.normal((1, 1, cin, w_b), 1.0 / math.sqrt(cin)),
                      "bn": _bn_params(gen, w_b)},
                "b": {"w": gen.normal((groups, 3, 3, GROUP_WIDTH, GROUP_WIDTH),
                                      1.0 / math.sqrt(9 * GROUP_WIDTH)),
                      "bn": _bn_params(gen, w_b)},
                "se": {"w1": gen.normal((w_b, w_se), 1.0 / math.sqrt(w_b)),
                       "b1": 0.1 * gen.normal((w_se,)),
                       "w2": gen.normal((w_se, w_b), 1.0 / math.sqrt(w_se)),
                       "b2": 0.1 * gen.normal((w_b,))},
                "c": {"w": gen.normal((1, 1, w_b, w_out), 1.0 / math.sqrt(w_b)),
                      "bn": _bn_params(gen, w_out)},
            }
            if stride != 1 or cin != w_out:
                blk["proj"] = {"w": gen.normal((1, 1, cin, w_out),
                                               1.0 / math.sqrt(cin)),
                               "bn": _bn_params(gen, w_out)}
            blocks.append(blk)
            cin = w_out
        raw["stages"].append(blocks)
    raw["fc"] = {"w": gen.normal((cin, num_classes), 1.0 / math.sqrt(cin)),
                 "b": 0.1 * gen.normal((num_classes,))}
    return raw


# ---------------------------------------------------------------------------
# BN folding + weight packing (done ONCE at init, in numpy)
# ---------------------------------------------------------------------------
def _np(x):
    return np.asarray(jax.device_get(x), np.float32)


def _fold_bn_np(bn):
    scale = _np(bn["gamma"]) / np.sqrt(_np(bn["var"]) + BN_EPS)
    shift = _np(bn["beta"]) - _np(bn["mean"]) * scale
    return scale, shift


def _pack_w(w2d, kp, npad):
    out = np.zeros((kp, npad), np.float32)
    out[: w2d.shape[0], : w2d.shape[1]] = w2d
    return jnp.asarray(out, jnp.bfloat16)


def _pack_b(b, npad):
    out = np.zeros((1, npad), np.float32)
    out[0, : b.shape[0]] = b
    return jnp.asarray(out, jnp.float32)


def _pack_conv1x1(w, bn):
    scale, shift = _fold_bn_np(bn)
    cin, cout = w.shape[2], w.shape[3]
    w2d = _np(w).reshape(cin, cout) * scale[None, :]
    return {"w": _pack_w(w2d, _ceil_to(cin, 128), _ceil_to(cout, 128)),
            "b": _pack_b(shift, _ceil_to(cout, 128))}


def _pack_conv3x3_dense(w, bn):
    scale, shift = _fold_bn_np(bn)
    kh, kw, cin, cout = w.shape
    # channel-major tap layout: row = c*9 + (i*3 + j)
    w2d = np.transpose(_np(w), (2, 0, 1, 3)).reshape(cin * 9, cout) * scale[None, :]
    return {"w": _pack_w(w2d, _ceil_to(cin * 9, 128), _ceil_to(cout, 128)),
            "b": _pack_b(shift, _ceil_to(cout, 128))}


def _pack_conv3x3_grouped(wg, bn):
    scale, shift = _fold_bn_np(bn)
    g, _, _, cg, _ = wg.shape
    c = g * cg
    cp = _ceil_to(c, 128)
    wg_np = _np(wg)
    band = np.zeros((c * 9, c), np.float32)
    for gi in range(g):
        w2d = np.transpose(wg_np[gi], (2, 0, 1, 3)).reshape(cg * 9, cg)
        band[gi * cg * 9:(gi + 1) * cg * 9, gi * cg:(gi + 1) * cg] = w2d
    band *= scale[None, :]
    wp = np.zeros((cp * 9, cp), np.float32)
    wp[: c * 9, : c] = band
    return {"w": jnp.asarray(wp, jnp.bfloat16), "b": _pack_b(shift, cp)}


def _pack_se(se, c):
    cp = _ceil_to(c, 128)
    sp = _ceil_to(se["w1"].shape[1], 128)
    return {"w1": _pack_w(_np(se["w1"]), cp, sp),
            "b1": _pack_b(_np(se["b1"]), sp),
            "w2": _pack_w(_np(se["w2"]), sp, cp),
            "b2": _pack_b(_np(se["b2"]), cp)}


def pack_params(raw):
    packed = {"stem": _pack_conv3x3_dense(raw["stem"]["w"], raw["stem"]["bn"]),
              "stages": []}
    for stage in raw["stages"]:
        blocks = []
        for blk in stage:
            w_b = blk["c"]["w"].shape[2]
            pb = {
                "a": _pack_conv1x1(blk["a"]["w"], blk["a"]["bn"]),
                "b": _pack_conv3x3_grouped(blk["b"]["w"], blk["b"]["bn"]),
                "se": _pack_se(blk["se"], w_b),
                "c": _pack_conv1x1(blk["c"]["w"], blk["c"]["bn"]),
            }
            if "proj" in blk:
                pb["proj"] = _pack_conv1x1(blk["proj"]["w"], blk["proj"]["bn"])
            blocks.append(pb)
        packed["stages"].append(blocks)
    cin = raw["fc"]["w"].shape[0]
    packed["fc"] = {"w": _pack_w(_np(raw["fc"]["w"]), _ceil_to(cin, 128), 128),
                    "b": _pack_b(_np(raw["fc"]["b"]), 128)}
    return packed


# ---------------------------------------------------------------------------
# RegNet-Y forward (ResBottleneckBlock with SE, matching torchvision)
# ---------------------------------------------------------------------------
def res_bottleneck_block(x, p, stride):
    if "proj" in p:
        identity = conv1x1(x, p["proj"]["w"], p["proj"]["b"], stride=stride)
    else:
        identity = x
    out = conv1x1(x, p["a"]["w"], p["a"]["b"], activation="relu")
    out = conv3x3_grouped(out, p["b"]["w"], p["b"]["b"], stride=stride)
    out = se_apply(out, p["se"])
    # 'c' 1x1 conv (folded BN) with residual add + ReLU fused in the epilogue
    return conv1x1(out, p["c"]["w"], p["c"]["b"], residual=identity)


def regnet_forward(params, x_nchw):
    x = jnp.transpose(x_nchw.astype(jnp.float32), (0, 2, 3, 1))   # NCHW -> NHWC
    # stem: 3x3 s2 conv with folded BN + ReLU
    x = conv3x3_dense(x, params["stem"]["w"], params["stem"]["b"],
                      stride=2, activation="relu")
    # 4 stages
    for stage in params["stages"]:
        for bi, blk in enumerate(stage):
            x = res_bottleneck_block(x, blk, stride=2 if bi == 0 else 1)
    # head: global average pool + fc
    pooled = global_avgpool(x)                                    # (N, 512 padded)
    logits = matmul_fused(pooled, params["fc"]["w"], params["fc"]["b"],
                          out_dtype=jnp.float32)
    return logits[:, :NUM_CLASSES]


# ---------------------------------------------------------------------------
if __name__ == "__main__":
    key = jax.random.PRNGKey(0)
    pkey, xkey = jax.random.split(key)
    raw_params = init_raw_params(pkey, NUM_CLASSES)
    params = pack_params(raw_params)      # BN-folded, padded, bf16 — done once

    # Small, architecture-consistent input: batch=2, RGB, 32x32 spatial.
    x = jax.random.normal(xkey, (2, 3, 32, 32), jnp.float32)

    fwd = jax.jit(regnet_forward)
    logits = fwd(params, x)
    logits = jax.block_until_ready(logits)

    assert logits.shape == (2, NUM_CLASSES), logits.shape
    assert bool(jnp.all(jnp.isfinite(logits)))
    print("KERNEL_OK")
</pallas_src>

<mosaic_0001>
module attributes {stable_mosaic.version = 11 : i64} {
  func.func @_mm_kernel(%arg0: i32, %arg1: i32, %arg2: i32, %arg3: memref<256x128xbf16, #tpu.memory_space<vmem>>, %arg4: memref<128x128xbf16, #tpu.memory_space<vmem>>, %arg5: memref<1x128xf32, #tpu.memory_space<vmem>>, %arg6: memref<256x128xbf16, #tpu.memory_space<vmem>>, %arg7: memref<256x128xf32, #tpu.memory_space<vmem>>) attributes {dimension_semantics = [#tpu.dimension_semantics<parallel>, #tpu.dimension_semantics<parallel>, #tpu.dimension_semantics<arbitrary>], iteration_bounds = array<i64: 2, 1, 1>, scalar_prefetch = 0 : i64, scratch_operands = 1 : i64, tpu.core_type = #tpu.core_type<tc>, window_params = [{transform_indices = @transform_0, window_bounds = array<i64: 256, 128>}, {transform_indices = @transform_1, window_bounds = array<i64: 128, 128>}, {transform_indices = @transform_2, window_bounds = array<i64: 1, 128>}, {transform_indices = @transform_3, window_bounds = array<i64: 256, 128>}]} {
    %c0_i32 = arith.constant 0 : i32
    %0 = arith.cmpi eq, %arg2, %c0_i32 : i32
    %1 = arith.extui %0 : i1 to i32
    %c0_i32_0 = arith.constant 0 : i32
    %2 = arith.cmpi ne, %1, %c0_i32_0 : i32
    scf.if %2 {
      %cst_10 = arith.constant 0.000000e+00 : f32
      %12 = vector.broadcast %cst_10 : f32 to vector<256x128xf32>
      %c0_11 = arith.constant 0 : index
      %c0_12 = arith.constant 0 : index
      %13 = vector.load %arg7[%c0_11, %c0_12] : memref<256x128xf32, #tpu.memory_space<vmem>>, vector<256x128xf32>
      tpu.vector_store %arg7[%c0_11, %c0_12], %12 {strides = array<i32>} : memref<256x128xf32, #tpu.memory_space<vmem>>, vector<256x128xf32>,
    } else {
    }
    %c0 = arith.constant 0 : index
    %c0_1 = arith.constant 0 : index
    %3 = vector.load %arg7[%c0, %c0_1] : memref<256x128xf32, #tpu.memory_space<vmem>>, vector<256x128xf32>
    %c0_2 = arith.constant 0 : index
    %c0_3 = arith.constant 0 : index
    %4 = vector.load %arg3[%c0_2, %c0_3] : memref<256x128xbf16, #tpu.memory_space<vmem>>, vector<256x128xbf16>
    %c0_4 = arith.constant 0 : index
    %c0_5 = arith.constant 0 : index
    %5 = vector.load %arg4[%c0_4, %c0_5] : memref<128x128xbf16, #tpu.memory_space<vmem>>, vector<128x128xbf16>
    %cst = arith.constant dense<0.000000e+00> : vector<256x128xf32>
    %6 = tpu.matmul %4, %5, %cst {dimension_numbers = #tpu.dot_dimension_numbers<[1], [0], [0], [1], [0, 0, 1, 1], [], []>} : vector<256x128xbf16>, vector<128x128xbf16>, vector<256x128xf32> -> vector<256x128xf32>
    %7 = arith.addf %3, %6 : vector<256x128xf32>
    %c0_6 = arith.constant 0 : index
    %c0_7 = arith.constant 0 : index
    %8 = vector.load %arg7[%c0_6, %c0_7] : memref<256x128xf32, #tpu.memory_space<vmem>>, vector<256x128xf32>
    tpu.vector_store %arg7[%c0_6, %c0_7], %7 {strides = array<i32>} : memref<256x128xf32, #tpu.memory_space<vmem>>, vector<256x128xf32>,
    %c0_i32_8 = arith.constant 0 : i32
    %9 = arith.cmpi eq, %arg2, %c0_i32_8 : i32
    %10 = arith.extui %9 : i1 to i32
    %c0_i32_9 = arith.constant 0 : i32
    %11 = arith.cmpi ne, %10, %c0_i32_9 : i32
    scf.if %11 {
      %c0_10 = arith.constant 0 : index
      %c0_11 = arith.constant 0 : index
      %12 = vector.load %arg7[%c0_10, %c0_11] : memref<256x128xf32, #tpu.memory_space<vmem>>, vector<256x128xf32>
      %c0_12 = arith.constant 0 : index
      %c0_13 = arith.constant 0 : index
      %13 = vector.load %arg5[%c0_12, %c0_13] : memref<1x128xf32, #tpu.memory_space<vmem>>, vector<1x128xf32>
      %14 = vector.broadcast %13 : vector<1x128xf32> to vector<256x128xf32>
      %15 = arith.addf %12, %14 : vector<256x128xf32>
      %cst_14 = arith.constant 0.000000e+00 : f32
      %16 = vector.broadcast %cst_14 : f32 to vector<256x128xf32>
      %17 = arith.maximumf %15, %16 : vector<256x128xf32>
      %18 = arith.truncf %17 : vector<256x128xf32> to vector<256x128xbf16>
      %c0_15 = arith.constant 0 : index
      %c0_16 = arith.constant 0 : index
      %19 = vector.load %arg6[%c0_15, %c0_16] : memref<256x128xbf16, #tpu.memory_space<vmem>>, vector<256x128xbf16>
      tpu.vector_store %arg6[%c0_15, %c0_16], %18 {strides = array<i32>} : memref<256x128xbf16, #tpu.memory_space<vmem>>, vector<256x128xbf16>,
    } else {
    }
    return
  }
  func.func @transform_0(%arg0: i32, %arg1: i32, %arg2: i32) -> (i32, i32) {
    %c0_i32 = arith.constant 0 : i32
    return %arg0, %arg2 : i32, i32
  }
  func.func @transform_1(%arg0: i32, %arg1: i32, %arg2: i32) -> (i32, i32) {
    %c0_i32 = arith.constant 0 : i32
    return %arg2, %arg1 : i32, i32
  }
  func.func @transform_2(%arg0: i32, %arg1: i32, %arg2: i32) -> (i32, i32) {
    %c0_i32 = arith.constant 0 : i32
    %c0_i32_0 = arith.constant 0 : i32
    return %c0_i32, %arg1 : i32, i32
  }
  func.func @transform_3(%arg0: i32, %arg1: i32, %arg2: i32) -> (i32, i32) {
    %c0_i32 = arith.constant 0 : i32
    return %arg0, %arg1 : i32, i32
  }
}

module attributes {stable_mosaic.version = 11 : i64} {
  func.func @_mm_kernel(%arg0: i32, %arg1: i32, %arg2: i32, %arg3: memref<128x128xbf16, #tpu.memory_space<vmem>>, %arg4: memref<128x128xbf16, #tpu.memory_space<vmem>>, %arg5: memref<1x128xf32, #tpu.memory_space<vmem>>, %arg6: memref<128x128xbf16, #tpu.memory_space<vmem>>, %arg7: memref<128x128xf32, #tpu.memory_space<vmem>>) attributes {dimension_semantics = [#tpu.dimension_semantics<parallel>, #tpu.dimension_semantics<parallel>, #tpu.dimension_semantics<arbitrary>], iteration_bounds = array<i64: 1, 1, 9>, scalar_prefetch = 0 : i64, scratch_operands = 1 : i64, tpu.core_type = #tpu.core_type<tc>, window_params = [{transform_indices = @transform_0, window_bounds = array<i64: 128, 128>}, {transform_indices = @transform_1, window_bounds = array<i64: 128, 128>}, {transform_indices = @transform_2, window_bounds = array<i64: 1, 128>}, {transform_indices = @transform_3, window_bounds = array<i64: 128, 128>}]} {
    %c0_i32 = arith.constant 0 : i32
    %0 = arith.cmpi eq, %arg2, %c0_i32 : i32
    %1 = arith.extui %0 : i1 to i32
    %c0_i32_0 = arith.constant 0 : i32
    %2 = arith.cmpi ne, %1, %c0_i32_0 : i32
    scf.if %2 {
      %cst_9 = arith.constant 0.000000e+00 : f32
      %12 = vector.broadcast %cst_9 : f32 to vector<128x128xf32>
      %c0_10 = arith.constant 0 : index
      %c0_11 = arith.constant 0 : index
      %13 = vector.load %arg7[%c0_10, %c0_11] : memref<128x128xf32, #tpu.memory_space<vmem>>, vector<128x128xf32>
      tpu.vector_store %arg7[%c0_10, %c0_11], %12 {strides = array<i32>} : memref<128x128xf32, #tpu.memory_space<vmem>>, vector<128x128xf32>,
    } else {
    }
    %c0 = arith.constant 0 : index
    %c0_1 = arith.constant 0 : index
    %3 = vector.load %arg7[%c0, %c0_1] : memref<128x128xf32, #tpu.memory_space<vmem>>, vector<128x128xf32>
    %c0_2 = arith.constant 0 : index
    %c0_3 = arith.constant 0 : index
    %4 = vector.load %arg3[%c0_2, %c0_3] : memref<128x128xbf16, #tpu.memory_space<vmem>>, vector<128x128xbf16>
    %c0_4 = arith.constant 0 : index
    %c0_5 = arith.constant 0 : index
    %5 = vector.load %arg4[%c0_4, %c0_5] : memref<128x128xbf16, #tpu.memory_space<vmem>>, vector<128x128xbf16>
    %cst = arith.constant dense<0.000000e+00> : vector<128x128xf32>
    %6 = tpu.matmul %4, %5, %cst {dimension_numbers = #tpu.dot_dimension_numbers<[1], [0], [0], [1], [0, 0, 1, 1], [], []>} : vector<128x128xbf16>, vector<128x128xbf16>, vector<128x128xf32> -> vector<128x128xf32>
    %7 = arith.addf %3, %6 : vector<128x128xf32>
    %c0_6 = arith.constant 0 : index
    %c0_7 = arith.constant 0 : index
    %8 = vector.load %arg7[%c0_6, %c0_7] : memref<128x128xf32, #tpu.memory_space<vmem>>, vector<128x128xf32>
    tpu.vector_store %arg7[%c0_6, %c0_7], %7 {strides = array<i32>} : memref<128x128xf32, #tpu.memory_space<vmem>>, vector<128x128xf32>,
    %c8_i32 = arith.constant 8 : i32
    %9 = arith.cmpi eq, %arg2, %c8_i32 : i32
    %10 = arith.extui %9 : i1 to i32
    %c0_i32_8 = arith.constant 0 : i32
    %11 = arith.cmpi ne, %10, %c0_i32_8 : i32
    scf.if %11 {
      %c0_9 = arith.constant 0 : index
      %c0_10 = arith.constant 0 : index
      %12 = vector.load %arg7[%c0_9, %c0_10] : memref<128x128xf32, #tpu.memory_space<vmem>>, vector<128x128xf32>
      %c0_11 = arith.constant 0 : index
      %c0_12 = arith.constant 0 : index
      %13 = vector.load %arg5[%c0_11, %c0_12] : memref<1x128xf32, #tpu.memory_space<vmem>>, vector<1x128xf32>
      %14 = vector.broadcast %13 : vector<1x128xf32> to vector<128x128xf32>
      %15 = arith.addf %12, %14 : vector<128x128xf32>
      %cst_13 = arith.constant 0.000000e+00 : f32
      %16 = vector.broadcast %cst_13 : f32 to vector<128x128xf32>
      %17 = arith.maximumf %15, %16 : vector<128x128xf32>
      %18 = arith.truncf %17 : vector<128x128xf32> to vector<128x128xbf16>
      %c0_14 = arith.constant 0 : index
      %c0_15 = arith.constant 0 : index
      %19 = vector.load %arg6[%c0_14, %c0_15] : memref<128x128xbf16, #tpu.memory_space<vmem>>, vector<128x128xbf16>
      tpu.vector_store %arg6[%c0_14, %c0_15], %18 {strides = array<i32>} : memref<128x128xbf16, #tpu.memory_space<vmem>>, vector<128x128xbf16>,
    } else {
    }
    return
  }
  func.func @transform_0(%arg0: i32, %arg1: i32, %arg2: i32) -> (i32, i32) {
    %c9_i32 = arith.constant 9 : i32
    %0 = arith.muli %arg1, %c9_i32 : i32
    %1 = arith.addi %0, %arg2 : i32
    %c0_i32 = arith.constant 0 : i32
    return %arg0, %1 : i32, i32
  }
  func.func @transform_1(%arg0: i32, %arg1: i32, %arg2: i32) -> (i32, i32) {
    %c9_i32 = arith.constant 9 : i32
    %0 = arith.muli %arg1, %c9_i32 : i32
    %1 = arith.addi %0, %arg2 : i32
    %c0_i32 = arith.constant 0 : i32
    return %1, %arg1 : i32, i32
  }
  func.func @transform_2(%arg0: i32, %arg1: i32, %arg2: i32) -> (i32, i32) {
    %c0_i32 = arith.constant 0 : i32
    %c0_i32_0 = arith.constant 0 : i32
    return %c0_i32, %arg1 : i32, i32
  }
  func.func @transform_3(%arg0: i32, %arg1: i32, %arg2: i32) -> (i32, i32) {
    %c0_i32 = arith.constant 0 : i32
    return %arg0, %arg1 : i32, i32
  }
}

module attributes {stable_mosaic.version = 11 : i64} {
  func.func @_se_kernel(%arg0: i32, %arg1: memref<1x64x128xbf16, #tpu.memory_space<vmem>>, %arg2: memref<128x128xbf16, #tpu.memory_space<vmem>>, %arg3: memref<1x128xf32, #tpu.memory_space<vmem>>, %arg4: memref<128x128xbf16, #tpu.memory_space<vmem>>, %arg5: memref<1x128xf32, #tpu.memory_space<vmem>>, %arg6: memref<1x64x128xbf16, #tpu.memory_space<vmem>>) attributes {dimension_semantics = [#tpu.dimension_semantics<parallel>], iteration_bounds = array<i64: 2>, scalar_prefetch = 0 : i64, scratch_operands = 0 : i64, tpu.core_type = #tpu.core_type<tc>, window_params = [{transform_indices = @transform_0, window_bounds = array<i64: 1, 64, 128>}, {pipeline_mode = #tpu.pipeline_mode<synchronous>, transform_indices = @transform_1, window_bounds = array<i64: 128, 128>}, {pipeline_mode = #tpu.pipeline_mode<synchronous>, transform_indices = @transform_2, window_bounds = array<i64: 1, 128>}, {pipeline_mode = #tpu.pipeline_mode<synchronous>, transform_indices = @transform_3, window_bounds = array<i64: 128, 128>}, {pipeline_mode = #tpu.pipeline_mode<synchronous>, transform_indices = @transform_4, window_bounds = array<i64: 1, 128>}, {transform_indices = @transform_5, window_bounds = array<i64: 1, 64, 128>}]} {
    %c0 = arith.constant 0 : index
    %c0_0 = arith.constant 0 : index
    %c0_1 = arith.constant 0 : index
    %0 = vector.load %arg1[%c0, %c0_0, %c0_1] : memref<1x64x128xbf16, #tpu.memory_space<vmem>>, vector<1x64x128xbf16>
    %1 = arith.extf %0 : vector<1x64x128xbf16> to vector<1x64x128xf32>
    %cst = arith.constant dense<0.000000e+00> : vector<1x128xf32>
    %2 = vector.multi_reduction <add>, %1, %cst [1] : vector<1x64x128xf32> to vector<1x128xf32>
    %cst_2 = arith.constant 1.562500e-02 : f32
    %3 = vector.broadcast %cst_2 : f32 to vector<1x128xf32>
    %4 = arith.mulf %2, %3 : vector<1x128xf32>
    %5 = vector.shape_cast %4 : vector<1x128xf32> to vector<1x128xf32>
    %6 = vector.broadcast %5 : vector<1x128xf32> to vector<8x128xf32>
    %7 = arith.truncf %6 : vector<8x128xf32> to vector<8x128xbf16>
    %c0_3 = arith.constant 0 : index
    %c0_4 = arith.constant 0 : index
    %8 = vector.load %arg2[%c0_3, %c0_4] : memref<128x128xbf16, #tpu.memory_space<vmem>>, vector<128x128xbf16>
    %cst_5 = arith.constant dense<0.000000e+00> : vector<8x128xf32>
    %9 = tpu.matmul %7, %8, %cst_5 {dimension_numbers = #tpu.dot_dimension_numbers<[1], [0], [0], [1], [0, 0, 1, 1], [], []>} : vector<8x128xbf16>, vector<128x128xbf16>, vector<8x128xf32> -> vector<8x128xf32>
    %c0_6 = arith.constant 0 : index
    %c0_7 = arith.constant 0 : index
    %10 = vector.load %arg3[%c0_6, %c0_7] : memref<1x128xf32, #tpu.memory_space<vmem>>, vector<1x128xf32>
    %11 = vector.broadcast %10 : vector<1x128xf32> to vector<8x128xf32>
    %12 = arith.addf %9, %11 : vector<8x128xf32>
    %cst_8 = arith.constant 0.000000e+00 : f32
    %13 = vector.broadcast %cst_8 : f32 to vector<8x128xf32>
    %14 = arith.maximumf %12, %13 : vector<8x128xf32>
    %15 = arith.truncf %14 : vector<8x128xf32> to vector<8x128xbf16>
    %c0_9 = arith.constant 0 : index
    %c0_10 = arith.constant 0 : index
    %16 = vector.load %arg4[%c0_9, %c0_10] : memref<128x128xbf16, #tpu.memory_space<vmem>>, vector<128x128xbf16>
    %cst_11 = arith.constant dense<0.000000e+00> : vector<8x128xf32>
    %17 = tpu.matmul %15, %16, %cst_11 {dimension_numbers = #tpu.dot_dimension_numbers<[1], [0], [0], [1], [0, 0, 1, 1], [], []>} : vector<8x128xbf16>, vector<128x128xbf16>, vector<8x128xf32> -> vector<8x128xf32>
    %c0_12 = arith.constant 0 : index
    %c0_13 = arith.constant 0 : index
    %18 = vector.load %arg5[%c0_12, %c0_13] : memref<1x128xf32, #tpu.memory_space<vmem>>, vector<1x128xf32>
    %19 = vector.broadcast %18 : vector<1x128xf32> to vector<8x128xf32>
    %20 = arith.addf %17, %19 : vector<8x128xf32>
    %cst_14 = arith.constant 0.000000e+00 : f32
    %21 = vector.broadcast %cst_14 : f32 to vector<8x128xf32>
    %22 = arith.subf %21, %20 : vector<8x128xf32>
    %23 = math.exp %22 : vector<8x128xf32>
    %cst_15 = arith.constant 1.000000e+00 : f32
    %24 = vector.broadcast %cst_15 : f32 to vector<8x128xf32>
    %25 = arith.addf %24, %23 : vector<8x128xf32>
    %cst_16 = arith.constant 1.000000e+00 : f32
    %26 = vector.broadcast %cst_16 : f32 to vector<8x128xf32>
    %27 = arith.divf %26, %25 : vector<8x128xf32>
    %28 = vector.extract_strided_slice %27 {offsets = [0, 0], sizes = [1, 128], strides = [1, 1]} : vector<8x128xf32> to vector<1x128xf32>
    %29 = vector.shape_cast %28 : vector<1x128xf32> to vector<1x1x128xf32>
    %30 = vector.broadcast %29 : vector<1x1x128xf32> to vector<1x64x128xf32>
    %31 = arith.mulf %1, %30 : vector<1x64x128xf32>
    %32 = arith.truncf %31 : vector<1x64x128xf32> to vector<1x64x128xbf16>
    %c0_17 = arith.constant 0 : index
    %c0_18 = arith.constant 0 : index
    %c0_19 = arith.constant 0 : index
    %33 = vector.load %arg6[%c0_17, %c0_18, %c0_19] : memref<1x64x128xbf16, #tpu.memory_space<vmem>>, vector<1x64x128xbf16>
    tpu.vector_store %arg6[%c0_17, %c0_18, %c0_19], %32 {strides = array<i32>} : memref<1x64x128xbf16, #tpu.memory_space<vmem>>, vector<1x64x128xbf16>,
    return
  }
  func.func @transform_0(%arg0: i32) -> (i32, i32, i32) {
    %c0_i32 = arith.constant 0 : i32
    %c0_i32_0 = arith.constant 0 : i32
    %c0_i32_1 = arith.constant 0 : i32
    return %arg0, %c0_i32, %c0_i32_0 : i32, i32, i32
  }
  func.func @transform_1(%arg0: i32) -> (i32, i32) {
    %c0_i32 = arith.constant 0 : i32
    %c0_i32_0 = arith.constant 0 : i32
    %c0_i32_1 = arith.constant 0 : i32
    return %c0_i32, %c0_i32_0 : i32, i32
  }
  func.func @transform_2(%arg0: i32) -> (i32, i32) {
    %c0_i32 = arith.constant 0 : i32
    %c0_i32_0 = arith.constant 0 : i32
    %c0_i32_1 = arith.constant 0 : i32
    return %c0_i32, %c0_i32_0 : i32, i32
  }
  func.func @transform_3(%arg0: i32) -> (i32, i32) {
    %c0_i32 = arith.constant 0 : i32
    %c0_i32_0 = arith.constant 0 : i32
    %c0_i32_1 = arith.constant 0 : i32
    return %c0_i32, %c0_i32_0 : i32, i32
  }
  func.func @transform_4(%arg0: i32) -> (i32, i32) {
    %c0_i32 = arith.constant 0 : i32
    %c0_i32_0 = arith.constant 0 : i32
    %c0_i32_1 = arith.constant 0 : i32
    return %c0_i32, %c0_i32_0 : i32, i32
  }
  func.func @transform_5(%arg0: i32) -> (i32, i32, i32) {
    %c0_i32 = arith.constant 0 : i32
    %c0_i32_0 = arith.constant 0 : i32
    %c0_i32_1 = arith.constant 0 : i32
    return %arg0, %c0_i32, %c0_i32_0 : i32, i32, i32
  }
}

module attributes {stable_mosaic.version = 11 : i64} {
  func.func @_mm_kernel(%arg0: i32, %arg1: i32, %arg2: i32, %arg3: memref<128x128xbf16, #tpu.memory_space<vmem>>, %arg4: memref<128x128xbf16, #tpu.memory_space<vmem>>, %arg5: memref<1x128xf32, #tpu.memory_space<vmem>>, %arg6: memref<128x128xbf16, #tpu.memory_space<vmem>>, %arg7: memref<128x128xf32, #tpu.memory_space<vmem>>) attributes {dimension_semantics = [#tpu.dimension_semantics<parallel>, #tpu.dimension_semantics<parallel>, #tpu.dimension_semantics<arbitrary>], iteration_bounds = array<i64: 1, 1, 1>, scalar_prefetch = 0 : i64, scratch_operands = 1 : i64, tpu.core_type = #tpu.core_type<tc>, window_params = [{transform_indices = @transform_0, window_bounds = array<i64: 128, 128>}, {transform_indices = @transform_1, window_bounds = array<i64: 128, 128>}, {transform_indices = @transform_2, window_bounds = array<i64: 1, 128>}, {transform_indices = @transform_3, window_bounds = array<i64: 128, 128>}]} {
    %c0_i32 = arith.constant 0 : i32
    %0 = arith.cmpi eq, %arg2, %c0_i32 : i32
    %1 = arith.extui %0 : i1 to i32
    %c0_i32_0 = arith.constant 0 : i32
    %2 = arith.cmpi ne, %1, %c0_i32_0 : i32
    scf.if %2 {
      %cst_10 = arith.constant 0.000000e+00 : f32
      %12 = vector.broadcast %cst_10 : f32 to vector<128x128xf32>
      %c0_11 = arith.constant 0 : index
      %c0_12 = arith.constant 0 : index
      %13 = vector.load %arg7[%c0_11, %c0_12] : memref<128x128xf32, #tpu.memory_space<vmem>>, vector<128x128xf32>
      tpu.vector_store %arg7[%c0_11, %c0_12], %12 {strides = array<i32>} : memref<128x128xf32, #tpu.memory_space<vmem>>, vector<128x128xf32>,
    } else {
    }
    %c0 = arith.constant 0 : index
    %c0_1 = arith.constant 0 : index
    %3 = vector.load %arg7[%c0, %c0_1] : memref<128x128xf32, #tpu.memory_space<vmem>>, vector<128x128xf32>
    %c0_2 = arith.constant 0 : index
    %c0_3 = arith.constant 0 : index
    %4 = vector.load %arg3[%c0_2, %c0_3] : memref<128x128xbf16, #tpu.memory_space<vmem>>, vector<128x128xbf16>
    %c0_4 = arith.constant 0 : index
    %c0_5 = arith.constant 0 : index
    %5 = vector.load %arg4[%c0_4, %c0_5] : memref<128x128xbf16, #tpu.memory_space<vmem>>, vector<128x128xbf16>
    %cst = arith.constant dense<0.000000e+00> : vector<128x128xf32>
    %6 = tpu.matmul %4, %5, %cst {dimension_numbers = #tpu.dot_dimension_numbers<[1], [0], [0], [1], [0, 0, 1, 1], [], []>} : vector<128x128xbf16>, vector<128x128xbf16>, vector<128x128xf32> -> vector<128x128xf32>
    %7 = arith.addf %3, %6 : vector<128x128xf32>
    %c0_6 = arith.constant 0 : index
    %c0_7 = arith.constant 0 : index
    %8 = vector.load %arg7[%c0_6, %c0_7] : memref<128x128xf32, #tpu.memory_space<vmem>>, vector<128x128xf32>
    tpu.vector_store %arg7[%c0_6, %c0_7], %7 {strides = array<i32>} : memref<128x128xf32, #tpu.memory_space<vmem>>, vector<128x128xf32>,
    %c0_i32_8 = arith.constant 0 : i32
    %9 = arith.cmpi eq, %arg2, %c0_i32_8 : i32
    %10 = arith.extui %9 : i1 to i32
    %c0_i32_9 = arith.constant 0 : i32
    %11 = arith.cmpi ne, %10, %c0_i32_9 : i32
    scf.if %11 {
      %c0_10 = arith.constant 0 : index
      %c0_11 = arith.constant 0 : index
      %12 = vector.load %arg7[%c0_10, %c0_11] : memref<128x128xf32, #tpu.memory_space<vmem>>, vector<128x128xf32>
      %c0_12 = arith.constant 0 : index
      %c0_13 = arith.constant 0 : index
      %13 = vector.load %arg5[%c0_12, %c0_13] : memref<1x128xf32, #tpu.memory_space<vmem>>, vector<1x128xf32>
      %14 = vector.broadcast %13 : vector<1x128xf32> to vector<128x128xf32>
      %15 = arith.addf %12, %14 : vector<128x128xf32>
      %16 = arith.truncf %15 : vector<128x128xf32> to vector<128x128xbf16>
      %c0_14 = arith.constant 0 : index
      %c0_15 = arith.constant 0 : index
      %17 = vector.load %arg6[%c0_14, %c0_15] : memref<128x128xbf16, #tpu.memory_space<vmem>>, vector<128x128xbf16>
      tpu.vector_store %arg6[%c0_14, %c0_15], %16 {strides = array<i32>} : memref<128x128xbf16, #tpu.memory_space<vmem>>, vector<128x128xbf16>,
    } else {
    }
    return
  }
  func.func @transform_0(%arg0: i32, %arg1: i32, %arg2: i32) -> (i32, i32) {
    %c0_i32 = arith.constant 0 : i32
    return %arg0, %arg2 : i32, i32
  }
  func.func @transform_1(%arg0: i32, %arg1: i32, %arg2: i32) -> (i32, i32) {
    %c0_i32 = arith.constant 0 : i32
    return %arg2, %arg1 : i32, i32
  }
  func.func @transform_2(%arg0: i32, %arg1: i32, %arg2: i32) -> (i32, i32) {
    %c0_i32 = arith.constant 0 : i32
    %c0_i32_0 = arith.constant 0 : i32
    return %c0_i32, %arg1 : i32, i32
  }
  func.func @transform_3(%arg0: i32, %arg1: i32, %arg2: i32) -> (i32, i32) {
    %c0_i32 = arith.constant 0 : i32
    return %arg0, %arg1 : i32, i32
  }
}

module attributes {stable_mosaic.version = 11 : i64} {
  func.func @_mm_res_kernel(%arg0: i32, %arg1: i32, %arg2: i32, %arg3: memref<128x128xbf16, #tpu.memory_space<vmem>>, %arg4: memref<128x128xbf16, #tpu.memory_space<vmem>>, %arg5: memref<1x128xf32, #tpu.memory_space<vmem>>, %arg6: memref<128x128xbf16, #tpu.memory_space<vmem>>, %arg7: memref<128x128xbf16, #tpu.memory_space<vmem>>, %arg8: memref<128x128xf32, #tpu.memory_space<vmem>>) attributes {dimension_semantics = [#tpu.dimension_semantics<parallel>, #tpu.dimension_semantics<parallel>, #tpu.dimension_semantics<arbitrary>], iteration_bounds = array<i64: 1, 1, 1>, scalar_prefetch = 0 : i64, scratch_operands = 1 : i64, tpu.core_type = #tpu.core_type<tc>, window_params = [{transform_indices = @transform_0, window_bounds = array<i64: 128, 128>}, {transform_indices = @transform_1, window_bounds = array<i64: 128, 128>}, {transform_indices = @transform_2, window_bounds = array<i64: 1, 128>}, {transform_indices = @transform_3, window_bounds = array<i64: 128, 128>}, {transform_indices = @transform_4, window_bounds = array<i64: 128, 128>}]} {
    %c0_i32 = arith.constant 0 : i32
    %0 = arith.cmpi eq, %arg2, %c0_i32 : i32
    %1 = arith.extui %0 : i1 to i32
    %c0_i32_0 = arith.constant 0 : i32
    %2 = arith.cmpi ne, %1, %c0_i32_0 : i32
    scf.if %2 {
      %cst_10 = arith.constant 0.000000e+00 : f32
      %12 = vector.broadcast %cst_10 : f32 to vector<128x128xf32>
      %c0_11 = arith.constant 0 : index
      %c0_12 = arith.constant 0 : index
      %13 = vector.load %arg8[%c0_11, %c0_12] : memref<128x128xf32, #tpu.memory_space<vmem>>, vector<128x128xf32>
      tpu.vector_store %arg8[%c0_11, %c0_12], %12 {strides = array<i32>} : memref<128x128xf32, #tpu.memory_space<vmem>>, vector<128x128xf32>,
    } else {
    }
    %c0 = arith.constant 0 : index
    %c0_1 = arith.constant 0 : index
    %3 = vector.load %arg8[%c0, %c0_1] : memref<128x128xf32, #tpu.memory_space<vmem>>, vector<128x128xf32>
    %c0_2 = arith.constant 0 : index
    %c0_3 = arith.constant 0 : index
    %4 = vector.load %arg3[%c0_2, %c0_3] : memref<128x128xbf16, #tpu.memory_space<vmem>>, vector<128x128xbf16>
    %c0_4 = arith.constant 0 : index
    %c0_5 = arith.constant 0 : index
    %5 = vector.load %arg4[%c0_4, %c0_5] : memref<128x128xbf16, #tpu.memory_space<vmem>>, vector<128x128xbf16>
    %cst = arith.constant dense<0.000000e+00> : vector<128x128xf32>
    %6 = tpu.matmul %4, %5, %cst {dimension_numbers = #tpu.dot_dimension_numbers<[1], [0], [0], [1], [0, 0, 1, 1], [], []>} : vector<128x128xbf16>, vector<128x128xbf16>, vector<128x128xf32> -> vector<128x128xf32>
    %7 = arith.addf %3, %6 : vector<128x128xf32>
    %c0_6 = arith.constant 0 : index
    %c0_7 = arith.constant 0 : index
    %8 = vector.load %arg8[%c0_6, %c0_7] : memref<128x128xf32, #tpu.memory_space<vmem>>, vector<128x128xf32>
    tpu.vector_store %arg8[%c0_6, %c0_7], %7 {strides = array<i32>} : memref<128x128xf32, #tpu.memory_space<vmem>>, vector<128x128xf32>,
    %c0_i32_8 = arith.constant 0 : i32
    %9 = arith.cmpi eq, %arg2, %c0_i32_8 : i32
    %10 = arith.extui %9 : i1 to i32
    %c0_i32_9 = arith.constant 0 : i32
    %11 = arith.cmpi ne, %10, %c0_i32_9 : i32
    scf.if %11 {
      %c0_10 = arith.constant 0 : index
      %c0_11 = arith.constant 0 : index
      %12 = vector.load %arg8[%c0_10, %c0_11] : memref<128x128xf32, #tpu.memory_space<vmem>>, vector<128x128xf32>
      %c0_12 = arith.constant 0 : index
      %c0_13 = arith.constant 0 : index
      %13 = vector.load %arg5[%c0_12, %c0_13] : memref<1x128xf32, #tpu.memory_space<vmem>>, vector<1x128xf32>
      %14 = vector.broadcast %13 : vector<1x128xf32> to vector<128x128xf32>
      %15 = arith.addf %12, %14 : vector<128x128xf32>
      %c0_14 = arith.constant 0 : index
      %c0_15 = arith.constant 0 : index
      %16 = vector.load %arg6[%c0_14, %c0_15] : memref<128x128xbf16, #tpu.memory_space<vmem>>, vector<128x128xbf16>
      %17 = arith.extf %16 : vector<128x128xbf16> to vector<128x128xf32>
      %18 = arith.addf %15, %17 : vector<128x128xf32>
      %cst_16 = arith.constant 0.000000e+00 : f32
      %19 = vector.broadcast %cst_16 : f32 to vector<128x128xf32>
      %20 = arith.maximumf %18, %19 : vector<128x128xf32>
      %21 = arith.truncf %20 : vector<128x128xf32> to vector<128x128xbf16>
      %c0_17 = arith.constant 0 : index
      %c0_18 = arith.constant 0 : index
      %22 = vector.load %arg7[%c0_17, %c0_18] : memref<128x128xbf16, #tpu.memory_space<vmem>>, vector<128x128xbf16>
      tpu.vector_store %arg7[%c0_17, %c0_18], %21 {strides = array<i32>} : memref<128x128xbf16, #tpu.memory_space<vmem>>, vector<128x128xbf16>,
    } else {
    }
    return
  }
  func.func @transform_0(%arg0: i32, %arg1: i32, %arg2: i32) -> (i32, i32) {
    %c0_i32 = arith.constant 0 : i32
    return %arg0, %arg2 : i32, i32
  }
  func.func @transform_1(%arg0: i32, %arg1: i32, %arg2: i32) -> (i32, i32) {
    %c0_i32 = arith.constant 0 : i32
    return %arg2, %arg1 : i32, i32
  }
  func.func @transform_2(%arg0: i32, %arg1: i32, %arg2: i32) -> (i32, i32) {
    %c0_i32 = arith.constant 0 : i32
    %c0_i32_0 = arith.constant 0 : i32
    return %c0_i32, %arg1 : i32, i32
  }
  func.func @transform_3(%arg0: i32, %arg1: i32, %arg2: i32) -> (i32, i32) {
    %c0_i32 = arith.constant 0 : i32
    return %arg0, %arg1 : i32, i32
  }
  func.func @transform_4(%arg0: i32, %arg1: i32, %arg2: i32) -> (i32, i32) {
    %c0_i32 = arith.constant 0 : i32
    return %arg0, %arg1 : i32, i32
  }
}

module attributes {stable_mosaic.version = 11 : i64} {
  func.func @_mm_kernel(%arg0: i32, %arg1: i32, %arg2: i32, %arg3: memref<128x128xbf16, #tpu.memory_space<vmem>>, %arg4: memref<128x128xbf16, #tpu.memory_space<vmem>>, %arg5: memref<1x128xf32, #tpu.memory_space<vmem>>, %arg6: memref<128x128xbf16, #tpu.memory_space<vmem>>, %arg7: memref<128x128xf32, #tpu.memory_space<vmem>>) attributes {dimension_semantics = [#tpu.dimension_semantics<parallel>, #tpu.dimension_semantics<parallel>, #tpu.dimension_semantics<arbitrary>], iteration_bounds = array<i64: 1, 1, 1>, scalar_prefetch = 0 : i64, scratch_operands = 1 : i64, tpu.core_type = #tpu.core_type<tc>, window_params = [{transform_indices = @transform_0, window_bounds = array<i64: 128, 128>}, {transform_indices = @transform_1, window_bounds = array<i64: 128, 128>}, {transform_indices = @transform_2, window_bounds = array<i64: 1, 128>}, {transform_indices = @transform_3, window_bounds = array<i64: 128, 128>}]} {
    %c0_i32 = arith.constant 0 : i32
    %0 = arith.cmpi eq, %arg2, %c0_i32 : i32
    %1 = arith.extui %0 : i1 to i32
    %c0_i32_0 = arith.constant 0 : i32
    %2 = arith.cmpi ne, %1, %c0_i32_0 : i32
    scf.if %2 {
      %cst_10 = arith.constant 0.000000e+00 : f32
      %12 = vector.broadcast %cst_10 : f32 to vector<128x128xf32>
      %c0_11 = arith.constant 0 : index
      %c0_12 = arith.constant 0 : index
      %13 = vector.load %arg7[%c0_11, %c0_12] : memref<128x128xf32, #tpu.memory_space<vmem>>, vector<128x128xf32>
      tpu.vector_store %arg7[%c0_11, %c0_12], %12 {strides = array<i32>} : memref<128x128xf32, #tpu.memory_space<vmem>>, vector<128x128xf32>,
    } else {
    }
    %c0 = arith.constant 0 : index
    %c0_1 = arith.constant 0 : index
    %3 = vector.load %arg7[%c0, %c0_1] : memref<128x128xf32, #tpu.memory_space<vmem>>, vector<128x128xf32>
    %c0_2 = arith.constant 0 : index
    %c0_3 = arith.constant 0 : index
    %4 = vector.load %arg3[%c0_2, %c0_3] : memref<128x128xbf16, #tpu.memory_space<vmem>>, vector<128x128xbf16>
    %c0_4 = arith.constant 0 : index
    %c0_5 = arith.constant 0 : index
    %5 = vector.load %arg4[%c0_4, %c0_5] : memref<128x128xbf16, #tpu.memory_space<vmem>>, vector<128x128xbf16>
    %cst = arith.constant dense<0.000000e+00> : vector<128x128xf32>
    %6 = tpu.matmul %4, %5, %cst {dimension_numbers = #tpu.dot_dimension_numbers<[1], [0], [0], [1], [0, 0, 1, 1], [], []>} : vector<128x128xbf16>, vector<128x128xbf16>, vector<128x128xf32> -> vector<128x128xf32>
    %7 = arith.addf %3, %6 : vector<128x128xf32>
    %c0_6 = arith.constant 0 : index
    %c0_7 = arith.constant 0 : index
    %8 = vector.load %arg7[%c0_6, %c0_7] : memref<128x128xf32, #tpu.memory_space<vmem>>, vector<128x128xf32>
    tpu.vector_store %arg7[%c0_6, %c0_7], %7 {strides = array<i32>} : memref<128x128xf32, #tpu.memory_space<vmem>>, vector<128x128xf32>,
    %c0_i32_8 = arith.constant 0 : i32
    %9 = arith.cmpi eq, %arg2, %c0_i32_8 : i32
    %10 = arith.extui %9 : i1 to i32
    %c0_i32_9 = arith.constant 0 : i32
    %11 = arith.cmpi ne, %10, %c0_i32_9 : i32
    scf.if %11 {
      %c0_10 = arith.constant 0 : index
      %c0_11 = arith.constant 0 : index
      %12 = vector.load %arg7[%c0_10, %c0_11] : memref<128x128xf32, #tpu.memory_space<vmem>>, vector<128x128xf32>
      %c0_12 = arith.constant 0 : index
      %c0_13 = arith.constant 0 : index
      %13 = vector.load %arg5[%c0_12, %c0_13] : memref<1x128xf32, #tpu.memory_space<vmem>>, vector<1x128xf32>
      %14 = vector.broadcast %13 : vector<1x128xf32> to vector<128x128xf32>
      %15 = arith.addf %12, %14 : vector<128x128xf32>
      %cst_14 = arith.constant 0.000000e+00 : f32
      %16 = vector.broadcast %cst_14 : f32 to vector<128x128xf32>
      %17 = arith.maximumf %15, %16 : vector<128x128xf32>
      %18 = arith.truncf %17 : vector<128x128xf32> to vector<128x128xbf16>
      %c0_15 = arith.constant 0 : index
      %c0_16 = arith.constant 0 : index
      %19 = vector.load %arg6[%c0_15, %c0_16] : memref<128x128xbf16, #tpu.memory_space<vmem>>, vector<128x128xbf16>
      tpu.vector_store %arg6[%c0_15, %c0_16], %18 {strides = array<i32>} : memref<128x128xbf16, #tpu.memory_space<vmem>>, vector<128x128xbf16>,
    } else {
    }
    return
  }
  func.func @transform_0(%arg0: i32, %arg1: i32, %arg2: i32) -> (i32, i32) {
    %c0_i32 = arith.constant 0 : i32
    return %arg0, %arg2 : i32, i32
  }
  func.func @transform_1(%arg0: i32, %arg1: i32, %arg2: i32) -> (i32, i32) {
    %c0_i32 = arith.constant 0 : i32
    return %arg2, %arg1 : i32, i32
  }
  func.func @transform_2(%arg0: i32, %arg1: i32, %arg2: i32) -> (i32, i32) {
    %c0_i32 = arith.constant 0 : i32
    %c0_i32_0 = arith.constant 0 : i32
    return %c0_i32, %arg1 : i32, i32
  }
  func.func @transform_3(%arg0: i32, %arg1: i32, %arg2: i32) -> (i32, i32) {
    %c0_i32 = arith.constant 0 : i32
    return %arg0, %arg1 : i32, i32
  }
}

module attributes {stable_mosaic.version = 11 : i64} {
  func.func @_mm_kernel(%arg0: i32, %arg1: i32, %arg2: i32, %arg3: memref<32x128xbf16, #tpu.memory_space<vmem>>, %arg4: memref<128x128xbf16, #tpu.memory_space<vmem>>, %arg5: memref<1x128xf32, #tpu.memory_space<vmem>>, %arg6: memref<32x128xbf16, #tpu.memory_space<vmem>>, %arg7: memref<32x128xf32, #tpu.memory_space<vmem>>) attributes {dimension_semantics = [#tpu.dimension_semantics<parallel>, #tpu.dimension_semantics<parallel>, #tpu.dimension_semantics<arbitrary>], iteration_bounds = array<i64: 1, 1, 9>, scalar_prefetch = 0 : i64, scratch_operands = 1 : i64, tpu.core_type = #tpu.core_type<tc>, window_params = [{transform_indices = @transform_0, window_bounds = array<i64: 32, 128>}, {transform_indices = @transform_1, window_bounds = array<i64: 128, 128>}, {transform_indices = @transform_2, window_bounds = array<i64: 1, 128>}, {transform_indices = @transform_3, window_bounds = array<i64: 32, 128>}]} {
    %c0_i32 = arith.constant 0 : i32
    %0 = arith.cmpi eq, %arg2, %c0_i32 : i32
    %1 = arith.extui %0 : i1 to i32
    %c0_i32_0 = arith.constant 0 : i32
    %2 = arith.cmpi ne, %1, %c0_i32_0 : i32
    scf.if %2 {
      %cst_9 = arith.constant 0.000000e+00 : f32
      %12 = vector.broadcast %cst_9 : f32 to vector<32x128xf32>
      %c0_10 = arith.constant 0 : index
      %c0_11 = arith.constant 0 : index
      %13 = vector.load %arg7[%c0_10, %c0_11] : memref<32x128xf32, #tpu.memory_space<vmem>>, vector<32x128xf32>
      tpu.vector_store %arg7[%c0_10, %c0_11], %12 {strides = array<i32>} : memref<32x128xf32, #tpu.memory_space<vmem>>, vector<32x128xf32>,
    } else {
    }
    %c0 = arith.constant 0 : index
    %c0_1 = arith.constant 0 : index
    %3 = vector.load %arg7[%c0, %c0_1] : memref<32x128xf32, #tpu.memory_space<vmem>>, vector<32x128xf32>
    %c0_2 = arith.constant 0 : index
    %c0_3 = arith.constant 0 : index
    %4 = vector.load %arg3[%c0_2, %c0_3] : memref<32x128xbf16, #tpu.memory_space<vmem>>, vector<32x128xbf16>
    %c0_4 = arith.constant 0 : index
    %c0_5 = arith.constant 0 : index
    %5 = vector.load %arg4[%c0_4, %c0_5] : memref<128x128xbf16, #tpu.memory_space<vmem>>, vector<128x128xbf16>
    %cst = arith.constant dense<0.000000e+00> : vector<32x128xf32>
    %6 = tpu.matmul %4, %5, %cst {dimension_numbers = #tpu.dot_dimension_numbers<[1], [0], [0], [1], [0, 0, 1, 1], [], []>} : vector<32x128xbf16>, vector<128x128xbf16>, vector<32x128xf32> -> vector<32x128xf32>
    %7 = arith.addf %3, %6 : vector<32x128xf32>
    %c0_6 = arith.constant 0 : index
    %c0_7 = arith.constant 0 : index
    %8 = vector.load %arg7[%c0_6, %c0_7] : memref<32x128xf32, #tpu.memory_space<vmem>>, vector<32x128xf32>
    tpu.vector_store %arg7[%c0_6, %c0_7], %7 {strides = array<i32>} : memref<32x128xf32, #tpu.memory_space<vmem>>, vector<32x128xf32>,
    %c8_i32 = arith.constant 8 : i32
    %9 = arith.cmpi eq, %arg2, %c8_i32 : i32
    %10 = arith.extui %9 : i1 to i32
    %c0_i32_8 = arith.constant 0 : i32
    %11 = arith.cmpi ne, %10, %c0_i32_8 : i32
    scf.if %11 {
      %c0_9 = arith.constant 0 : index
      %c0_10 = arith.constant 0 : index
      %12 = vector.load %arg7[%c0_9, %c0_10] : memref<32x128xf32, #tpu.memory_space<vmem>>, vector<32x128xf32>
      %c0_11 = arith.constant 0 : index
      %c0_12 = arith.constant 0 : index
      %13 = vector.load %arg5[%c0_11, %c0_12] : memref<1x128xf32, #tpu.memory_space<vmem>>, vector<1x128xf32>
      %14 = vector.broadcast %13 : vector<1x128xf32> to vector<32x128xf32>
      %15 = arith.addf %12, %14 : vector<32x128xf32>
      %cst_13 = arith.constant 0.000000e+00 : f32
      %16 = vector.broadcast %cst_13 : f32 to vector<32x128xf32>
      %17 = arith.maximumf %15, %16 : vector<32x128xf32>
      %18 = arith.truncf %17 : vector<32x128xf32> to vector<32x128xbf16>
      %c0_14 = arith.constant 0 : index
      %c0_15 = arith.constant 0 : index
      %19 = vector.load %arg6[%c0_14, %c0_15] : memref<32x128xbf16, #tpu.memory_space<vmem>>, vector<32x128xbf16>
      tpu.vector_store %arg6[%c0_14, %c0_15], %18 {strides = array<i32>} : memref<32x128xbf16, #tpu.memory_space<vmem>>, vector<32x128xbf16>,
    } else {
    }
    return
  }
  func.func @transform_0(%arg0: i32, %arg1: i32, %arg2: i32) -> (i32, i32) {
    %c9_i32 = arith.constant 9 : i32
    %0 = arith.muli %arg1, %c9_i32 : i32
    %1 = arith.addi %0, %arg2 : i32
    %c0_i32 = arith.constant 0 : i32
    return %arg0, %1 : i32, i32
  }
  func.func @transform_1(%arg0: i32, %arg1: i32, %arg2: i32) -> (i32, i32) {
    %c9_i32 = arith.constant 9 : i32
    %0 = arith.muli %arg1, %c9_i32 : i32
    %1 = arith.addi %0, %arg2 : i32
    %c0_i32 = arith.constant 0 : i32
    return %1, %arg1 : i32, i32
  }
  func.func @transform_2(%arg0: i32, %arg1: i32, %arg2: i32) -> (i32, i32) {
    %c0_i32 = arith.constant 0 : i32
    %c0_i32_0 = arith.constant 0 : i32
    return %c0_i32, %arg1 : i32, i32
  }
  func.func @transform_3(%arg0: i32, %arg1: i32, %arg2: i32) -> (i32, i32) {
    %c0_i32 = arith.constant 0 : i32
    return %arg0, %arg1 : i32, i32
  }
}

module attributes {stable_mosaic.version = 11 : i64} {
  func.func @_se_kernel(%arg0: i32, %arg1: memref<1x16x128xbf16, #tpu.memory_space<vmem>>, %arg2: memref<128x128xbf16, #tpu.memory_space<vmem>>, %arg3: memref<1x128xf32, #tpu.memory_space<vmem>>, %arg4: memref<128x128xbf16, #tpu.memory_space<vmem>>, %arg5: memref<1x128xf32, #tpu.memory_space<vmem>>, %arg6: memref<1x16x128xbf16, #tpu.memory_space<vmem>>) attributes {dimension_semantics = [#tpu.dimension_semantics<parallel>], iteration_bounds = array<i64: 2>, scalar_prefetch = 0 : i64, scratch_operands = 0 : i64, tpu.core_type = #tpu.core_type<tc>, window_params = [{transform_indices = @transform_0, window_bounds = array<i64: 1, 16, 128>}, {pipeline_mode = #tpu.pipeline_mode<synchronous>, transform_indices = @transform_1, window_bounds = array<i64: 128, 128>}, {pipeline_mode = #tpu.pipeline_mode<synchronous>, transform_indices = @transform_2, window_bounds = array<i64: 1, 128>}, {pipeline_mode = #tpu.pipeline_mode<synchronous>, transform_indices = @transform_3, window_bounds = array<i64: 128, 128>}, {pipeline_mode = #tpu.pipeline_mode<synchronous>, transform_indices = @transform_4, window_bounds = array<i64: 1, 128>}, {transform_indices = @transform_5, window_bounds = array<i64: 1, 16, 128>}]} {
    %c0 = arith.constant 0 : index
    %c0_0 = arith.constant 0 : index
    %c0_1 = arith.constant 0 : index
    %0 = vector.load %arg1[%c0, %c0_0, %c0_1] : memref<1x16x128xbf16, #tpu.memory_space<vmem>>, vector<1x16x128xbf16>
    %1 = arith.extf %0 : vector<1x16x128xbf16> to vector<1x16x128xf32>
    %cst = arith.constant dense<0.000000e+00> : vector<1x128xf32>
    %2 = vector.multi_reduction <add>, %1, %cst [1] : vector<1x16x128xf32> to vector<1x128xf32>
    %cst_2 = arith.constant 6.250000e-02 : f32
    %3 = vector.broadcast %cst_2 : f32 to vector<1x128xf32>
    %4 = arith.mulf %2, %3 : vector<1x128xf32>
    %5 = vector.shape_cast %4 : vector<1x128xf32> to vector<1x128xf32>
    %6 = vector.broadcast %5 : vector<1x128xf32> to vector<8x128xf32>
    %7 = arith.truncf %6 : vector<8x128xf32> to vector<8x128xbf16>
    %c0_3 = arith.constant 0 : index
    %c0_4 = arith.constant 0 : index
    %8 = vector.load %arg2[%c0_3, %c0_4] : memref<128x128xbf16, #tpu.memory_space<vmem>>, vector<128x128xbf16>
    %cst_5 = arith.constant dense<0.000000e+00> : vector<8x128xf32>
    %9 = tpu.matmul %7, %8, %cst_5 {dimension_numbers = #tpu.dot_dimension_numbers<[1], [0], [0], [1], [0, 0, 1, 1], [], []>} : vector<8x128xbf16>, vector<128x128xbf16>, vector<8x128xf32> -> vector<8x128xf32>
    %c0_6 = arith.constant 0 : index
    %c0_7 = arith.constant 0 : index
    %10 = vector.load %arg3[%c0_6, %c0_7] : memref<1x128xf32, #tpu.memory_space<vmem>>, vector<1x128xf32>
    %11 = vector.broadcast %10 : vector<1x128xf32> to vector<8x128xf32>
    %12 = arith.addf %9, %11 : vector<8x128xf32>
    %cst_8 = arith.constant 0.000000e+00 : f32
    %13 = vector.broadcast %cst_8 : f32 to vector<8x128xf32>
    %14 = arith.maximumf %12, %13 : vector<8x128xf32>
    %15 = arith.truncf %14 : vector<8x128xf32> to vector<8x128xbf16>
    %c0_9 = arith.constant 0 : index
    %c0_10 = arith.constant 0 : index
    %16 = vector.load %arg4[%c0_9, %c0_10] : memref<128x128xbf16, #tpu.memory_space<vmem>>, vector<128x128xbf16>
    %cst_11 = arith.constant dense<0.000000e+00> : vector<8x128xf32>
    %17 = tpu.matmul %15, %16, %cst_11 {dimension_numbers = #tpu.dot_dimension_numbers<[1], [0], [0], [1], [0, 0, 1, 1], [], []>} : vector<8x128xbf16>, vector<128x128xbf16>, vector<8x128xf32> -> vector<8x128xf32>
    %c0_12 = arith.constant 0 : index
    %c0_13 = arith.constant 0 : index
    %18 = vector.load %arg5[%c0_12, %c0_13] : memref<1x128xf32, #tpu.memory_space<vmem>>, vector<1x128xf32>
    %19 = vector.broadcast %18 : vector<1x128xf32> to vector<8x128xf32>
    %20 = arith.addf %17, %19 : vector<8x128xf32>
    %cst_14 = arith.constant 0.000000e+00 : f32
    %21 = vector.broadcast %cst_14 : f32 to vector<8x128xf32>
    %22 = arith.subf %21, %20 : vector<8x128xf32>
    %23 = math.exp %22 : vector<8x128xf32>
    %cst_15 = arith.constant 1.000000e+00 : f32
    %24 = vector.broadcast %cst_15 : f32 to vector<8x128xf32>
    %25 = arith.addf %24, %23 : vector<8x128xf32>
    %cst_16 = arith.constant 1.000000e+00 : f32
    %26 = vector.broadcast %cst_16 : f32 to vector<8x128xf32>
    %27 = arith.divf %26, %25 : vector<8x128xf32>
    %28 = vector.extract_strided_slice %27 {offsets = [0, 0], sizes = [1, 128], strides = [1, 1]} : vector<8x128xf32> to vector<1x128xf32>
    %29 = vector.shape_cast %28 : vector<1x128xf32> to vector<1x1x128xf32>
    %30 = vector.broadcast %29 : vector<1x1x128xf32> to vector<1x16x128xf32>
    %31 = arith.mulf %1, %30 : vector<1x16x128xf32>
    %32 = arith.truncf %31 : vector<1x16x128xf32> to vector<1x16x128xbf16>
    %c0_17 = arith.constant 0 : index
    %c0_18 = arith.constant 0 : index
    %c0_19 = arith.constant 0 : index
    %33 = vector.load %arg6[%c0_17, %c0_18, %c0_19] : memref<1x16x128xbf16, #tpu.memory_space<vmem>>, vector<1x16x128xbf16>
    tpu.vector_store %arg6[%c0_17, %c0_18, %c0_19], %32 {strides = array<i32>} : memref<1x16x128xbf16, #tpu.memory_space<vmem>>, vector<1x16x128xbf16>,
    return
  }
  func.func @transform_0(%arg0: i32) -> (i32, i32, i32) {
    %c0_i32 = arith.constant 0 : i32
    %c0_i32_0 = arith.constant 0 : i32
    %c0_i32_1 = arith.constant 0 : i32
    return %arg0, %c0_i32, %c0_i32_0 : i32, i32, i32
  }
  func.func @transform_1(%arg0: i32) -> (i32, i32) {
    %c0_i32 = arith.constant 0 : i32
    %c0_i32_0 = arith.constant 0 : i32
    %c0_i32_1 = arith.constant 0 : i32
    return %c0_i32, %c0_i32_0 : i32, i32
  }
  func.func @transform_2(%arg0: i32) -> (i32, i32) {
    %c0_i32 = arith.constant 0 : i32
    %c0_i32_0 = arith.constant 0 : i32
    %c0_i32_1 = arith.constant 0 : i32
    return %c0_i32, %c0_i32_0 : i32, i32
  }
  func.func @transform_3(%arg0: i32) -> (i32, i32) {
    %c0_i32 = arith.constant 0 : i32
    %c0_i32_0 = arith.constant 0 : i32
    %c0_i32_1 = arith.constant 0 : i32
    return %c0_i32, %c0_i32_0 : i32, i32
  }
  func.func @transform_4(%arg0: i32) -> (i32, i32) {
    %c0_i32 = arith.constant 0 : i32
    %c0_i32_0 = arith.constant 0 : i32
    %c0_i32_1 = arith.constant 0 : i32
    return %c0_i32, %c0_i32_0 : i32, i32
  }
  func.func @transform_5(%arg0: i32) -> (i32, i32, i32) {
    %c0_i32 = arith.constant 0 : i32
    %c0_i32_0 = arith.constant 0 : i32
    %c0_i32_1 = arith.constant 0 : i32
    return %arg0, %c0_i32, %c0_i32_0 : i32, i32, i32
  }
}

module attributes {stable_mosaic.version = 11 : i64} {
  func.func @_mm_kernel(%arg0: i32, %arg1: i32, %arg2: i32, %arg3: memref<32x128xbf16, #tpu.memory_space<vmem>>, %arg4: memref<128x128xbf16, #tpu.memory_space<vmem>>, %arg5: memref<1x128xf32, #tpu.memory_space<vmem>>, %arg6: memref<32x128xbf16, #tpu.memory_space<vmem>>, %arg7: memref<32x128xf32, #tpu.memory_space<vmem>>) attributes {dimension_semantics = [#tpu.dimension_semantics<parallel>, #tpu.dimension_semantics<parallel>, #tpu.dimension_semantics<arbitrary>], iteration_bounds = array<i64: 1, 1, 1>, scalar_prefetch = 0 : i64, scratch_operands = 1 : i64, tpu.core_type = #tpu.core_type<tc>, window_params = [{transform_indices = @transform_0, window_bounds = array<i64: 32, 128>}, {transform_indices = @transform_1, window_bounds = array<i64: 128, 128>}, {transform_indices = @transform_2, window_bounds = array<i64: 1, 128>}, {transform_indices = @transform_3, window_bounds = array<i64: 32, 128>}]} {
    %c0_i32 = arith.constant 0 : i32
    %0 = arith.cmpi eq, %arg2, %c0_i32 : i32
    %1 = arith.extui %0 : i1 to i32
    %c0_i32_0 = arith.constant 0 : i32
    %2 = arith.cmpi ne, %1, %c0_i32_0 : i32
    scf.if %2 {
      %cst_10 = arith.constant 0.000000e+00 : f32
      %12 = vector.broadcast %cst_10 : f32 to vector<32x128xf32>
      %c0_11 = arith.constant 0 : index
      %c0_12 = arith.constant 0 : index
      %13 = vector.load %arg7[%c0_11, %c0_12] : memref<32x128xf32, #tpu.memory_space<vmem>>, vector<32x128xf32>
      tpu.vector_store %arg7[%c0_11, %c0_12], %12 {strides = array<i32>} : memref<32x128xf32, #tpu.memory_space<vmem>>, vector<32x128xf32>,
    } else {
    }
    %c0 = arith.constant 0 : index
    %c0_1 = arith.constant 0 : index
    %3 = vector.load %arg7[%c0, %c0_1] : memref<32x128xf32, #tpu.memory_space<vmem>>, vector<32x128xf32>
    %c0_2 = arith.constant 0 : index
    %c0_3 = arith.constant 0 : index
    %4 = vector.load %arg3[%c0_2, %c0_3] : memref<32x128xbf16, #tpu.memory_space<vmem>>, vector<32x128xbf16>
    %c0_4 = arith.constant 0 : index
    %c0_5 = arith.constant 0 : index
    %5 = vector.load %arg4[%c0_4, %c0_5] : memref<128x128xbf16, #tpu.memory_space<vmem>>, vector<128x128xbf16>
    %cst = arith.constant dense<0.000000e+00> : vector<32x128xf32>
    %6 = tpu.matmul %4, %5, %cst {dimension_numbers = #tpu.dot_dimension_numbers<[1], [0], [0], [1], [0, 0, 1, 1], [], []>} : vector<32x128xbf16>, vector<128x128xbf16>, vector<32x128xf32> -> vector<32x128xf32>
    %7 = arith.addf %3, %6 : vector<32x128xf32>
    %c0_6 = arith.constant 0 : index
    %c0_7 = arith.constant 0 : index
    %8 = vector.load %arg7[%c0_6, %c0_7] : memref<32x128xf32, #tpu.memory_space<vmem>>, vector<32x128xf32>
    tpu.vector_store %arg7[%c0_6, %c0_7], %7 {strides = array<i32>} : memref<32x128xf32, #tpu.memory_space<vmem>>, vector<32x128xf32>,
    %c0_i32_8 = arith.constant 0 : i32
    %9 = arith.cmpi eq, %arg2, %c0_i32_8 : i32
    %10 = arith.extui %9 : i1 to i32
    %c0_i32_9 = arith.constant 0 : i32
    %11 = arith.cmpi ne, %10, %c0_i32_9 : i32
    scf.if %11 {
      %c0_10 = arith.constant 0 : index
      %c0_11 = arith.constant 0 : index
      %12 = vector.load %arg7[%c0_10, %c0_11] : memref<32x128xf32, #tpu.memory_space<vmem>>, vector<32x128xf32>
      %c0_12 = arith.constant 0 : index
      %c0_13 = arith.constant 0 : index
      %13 = vector.load %arg5[%c0_12, %c0_13] : memref<1x128xf32, #tpu.memory_space<vmem>>, vector<1x128xf32>
      %14 = vector.broadcast %13 : vector<1x128xf32> to vector<32x128xf32>
      %15 = arith.addf %12, %14 : vector<32x128xf32>
      %16 = arith.truncf %15 : vector<32x128xf32> to vector<32x128xbf16>
      %c0_14 = arith.constant 0 : index
      %c0_15 = arith.constant 0 : index
      %17 = vector.load %arg6[%c0_14, %c0_15] : memref<32x128xbf16, #tpu.memory_space<vmem>>, vector<32x128xbf16>
      tpu.vector_store %arg6[%c0_14, %c0_15], %16 {strides = array<i32>} : memref<32x128xbf16, #tpu.memory_space<vmem>>, vector<32x128xbf16>,
    } else {
    }
    return
  }
  func.func @transform_0(%arg0: i32, %arg1: i32, %arg2: i32) -> (i32, i32) {
    %c0_i32 = arith.constant 0 : i32
    return %arg0, %arg2 : i32, i32
  }
  func.func @transform_1(%arg0: i32, %arg1: i32, %arg2: i32) -> (i32, i32) {
    %c0_i32 = arith.constant 0 : i32
    return %arg2, %arg1 : i32, i32
  }
  func.func @transform_2(%arg0: i32, %arg1: i32, %arg2: i32) -> (i32, i32) {
    %c0_i32 = arith.constant 0 : i32
    %c0_i32_0 = arith.constant 0 : i32
    return %c0_i32, %arg1 : i32, i32
  }
  func.func @transform_3(%arg0: i32, %arg1: i32, %arg2: i32) -> (i32, i32) {
    %c0_i32 = arith.constant 0 : i32
    return %arg0, %arg1 : i32, i32
  }
}

module attributes {stable_mosaic.version = 11 : i64} {
  func.func @_mm_res_kernel(%arg0: i32, %arg1: i32, %arg2: i32, %arg3: memref<32x128xbf16, #tpu.memory_space<vmem>>, %arg4: memref<128x128xbf16, #tpu.memory_space<vmem>>, %arg5: memref<1x128xf32, #tpu.memory_space<vmem>>, %arg6: memref<32x128xbf16, #tpu.memory_space<vmem>>, %arg7: memref<32x128xbf16, #tpu.memory_space<vmem>>, %arg8: memref<32x128xf32, #tpu.memory_space<vmem>>) attributes {dimension_semantics = [#tpu.dimension_semantics<parallel>, #tpu.dimension_semantics<parallel>, #tpu.dimension_semantics<arbitrary>], iteration_bounds = array<i64: 1, 1, 1>, scalar_prefetch = 0 : i64, scratch_operands = 1 : i64, tpu.core_type = #tpu.core_type<tc>, window_params = [{transform_indices = @transform_0, window_bounds = array<i64: 32, 128>}, {transform_indices = @transform_1, window_bounds = array<i64: 128, 128>}, {transform_indices = @transform_2, window_bounds = array<i64: 1, 128>}, {transform_indices = @transform_3, window_bounds = array<i64: 32, 128>}, {transform_indices = @transform_4, window_bounds = array<i64: 32, 128>}]} {
    %c0_i32 = arith.constant 0 : i32
    %0 = arith.cmpi eq, %arg2, %c0_i32 : i32
    %1 = arith.extui %0 : i1 to i32
    %c0_i32_0 = arith.constant 0 : i32
    %2 = arith.cmpi ne, %1, %c0_i32_0 : i32
    scf.if %2 {
      %cst_10 = arith.constant 0.000000e+00 : f32
      %12 = vector.broadcast %cst_10 : f32 to vector<32x128xf32>
      %c0_11 = arith.constant 0 : index
      %c0_12 = arith.constant 0 : index
      %13 = vector.load %arg8[%c0_11, %c0_12] : memref<32x128xf32, #tpu.memory_space<vmem>>, vector<32x128xf32>
      tpu.vector_store %arg8[%c0_11, %c0_12], %12 {strides = array<i32>} : memref<32x128xf32, #tpu.memory_space<vmem>>, vector<32x128xf32>,
    } else {
    }
    %c0 = arith.constant 0 : index
    %c0_1 = arith.constant 0 : index
    %3 = vector.load %arg8[%c0, %c0_1] : memref<32x128xf32, #tpu.memory_space<vmem>>, vector<32x128xf32>
    %c0_2 = arith.constant 0 : index
    %c0_3 = arith.constant 0 : index
    %4 = vector.load %arg3[%c0_2, %c0_3] : memref<32x128xbf16, #tpu.memory_space<vmem>>, vector<32x128xbf16>
    %c0_4 = arith.constant 0 : index
    %c0_5 = arith.constant 0 : index
    %5 = vector.load %arg4[%c0_4, %c0_5] : memref<128x128xbf16, #tpu.memory_space<vmem>>, vector<128x128xbf16>
    %cst = arith.constant dense<0.000000e+00> : vector<32x128xf32>
    %6 = tpu.matmul %4, %5, %cst {dimension_numbers = #tpu.dot_dimension_numbers<[1], [0], [0], [1], [0, 0, 1, 1], [], []>} : vector<32x128xbf16>, vector<128x128xbf16>, vector<32x128xf32> -> vector<32x128xf32>
    %7 = arith.addf %3, %6 : vector<32x128xf32>
    %c0_6 = arith.constant 0 : index
    %c0_7 = arith.constant 0 : index
    %8 = vector.load %arg8[%c0_6, %c0_7] : memref<32x128xf32, #tpu.memory_space<vmem>>, vector<32x128xf32>
    tpu.vector_store %arg8[%c0_6, %c0_7], %7 {strides = array<i32>} : memref<32x128xf32, #tpu.memory_space<vmem>>, vector<32x128xf32>,
    %c0_i32_8 = arith.constant 0 : i32
    %9 = arith.cmpi eq, %arg2, %c0_i32_8 : i32
    %10 = arith.extui %9 : i1 to i32
    %c0_i32_9 = arith.constant 0 : i32
    %11 = arith.cmpi ne, %10, %c0_i32_9 : i32
    scf.if %11 {
      %c0_10 = arith.constant 0 : index
      %c0_11 = arith.constant 0 : index
      %12 = vector.load %arg8[%c0_10, %c0_11] : memref<32x128xf32, #tpu.memory_space<vmem>>, vector<32x128xf32>
      %c0_12 = arith.constant 0 : index
      %c0_13 = arith.constant 0 : index
      %13 = vector.load %arg5[%c0_12, %c0_13] : memref<1x128xf32, #tpu.memory_space<vmem>>, vector<1x128xf32>
      %14 = vector.broadcast %13 : vector<1x128xf32> to vector<32x128xf32>
      %15 = arith.addf %12, %14 : vector<32x128xf32>
      %c0_14 = arith.constant 0 : index
      %c0_15 = arith.constant 0 : index
      %16 = vector.load %arg6[%c0_14, %c0_15] : memref<32x128xbf16, #tpu.memory_space<vmem>>, vector<32x128xbf16>
      %17 = arith.extf %16 : vector<32x128xbf16> to vector<32x128xf32>
      %18 = arith.addf %15, %17 : vector<32x128xf32>
      %cst_16 = arith.constant 0.000000e+00 : f32
      %19 = vector.broadcast %cst_16 : f32 to vector<32x128xf32>
      %20 = arith.maximumf %18, %19 : vector<32x128xf32>
      %21 = arith.truncf %20 : vector<32x128xf32> to vector<32x128xbf16>
      %c0_17 = arith.constant 0 : index
      %c0_18 = arith.constant 0 : index
      %22 = vector.load %arg7[%c0_17, %c0_18] : memref<32x128xbf16, #tpu.memory_space<vmem>>, vector<32x128xbf16>
      tpu.vector_store %arg7[%c0_17, %c0_18], %21 {strides = array<i32>} : memref<32x128xbf16, #tpu.memory_space<vmem>>, vector<32x128xbf16>,
    } else {
    }
    return
  }
  func.func @transform_0(%arg0: i32, %arg1: i32, %arg2: i32) -> (i32, i32) {
    %c0_i32 = arith.constant 0 : i32
    return %arg0, %arg2 : i32, i32
  }
  func.func @transform_1(%arg0: i32, %arg1: i32, %arg2: i32) -> (i32, i32) {
    %c0_i32 = arith.constant 0 : i32
    return %arg2, %arg1 : i32, i32
  }
  func.func @transform_2(%arg0: i32, %arg1: i32, %arg2: i32) -> (i32, i32) {
    %c0_i32 = arith.constant 0 : i32
    %c0_i32_0 = arith.constant 0 : i32
    return %c0_i32, %arg1 : i32, i32
  }
  func.func @transform_3(%arg0: i32, %arg1: i32, %arg2: i32) -> (i32, i32) {
    %c0_i32 = arith.constant 0 : i32
    return %arg0, %arg1 : i32, i32
  }
  func.func @transform_4(%arg0: i32, %arg1: i32, %arg2: i32) -> (i32, i32) {
    %c0_i32 = arith.constant 0 : i32
    return %arg0, %arg1 : i32, i32
  }
}

module attributes {stable_mosaic.version = 11 : i64} {
  func.func @_mm_kernel(%arg0: i32, %arg1: i32, %arg2: i32, %arg3: memref<32x128xbf16, #tpu.memory_space<vmem>>, %arg4: memref<128x128xbf16, #tpu.memory_space<vmem>>, %arg5: memref<1x128xf32, #tpu.memory_space<vmem>>, %arg6: memref<32x128xbf16, #tpu.memory_space<vmem>>, %arg7: memref<32x128xf32, #tpu.memory_space<vmem>>) attributes {dimension_semantics = [#tpu.dimension_semantics<parallel>, #tpu.dimension_semantics<parallel>, #tpu.dimension_semantics<arbitrary>], iteration_bounds = array<i64: 1, 1, 1>, scalar_prefetch = 0 : i64, scratch_operands = 1 : i64, tpu.core_type = #tpu.core_type<tc>, window_params = [{transform_indices = @transform_0, window_bounds = array<i64: 32, 128>}, {transform_indices = @transform_1, window_bounds = array<i64: 128, 128>}, {transform_indices = @transform_2, window_bounds = array<i64: 1, 128>}, {transform_indices = @transform_3, window_bounds = array<i64: 32, 128>}]} {
    %c0_i32 = arith.constant 0 : i32
    %0 = arith.cmpi eq, %arg2, %c0_i32 : i32
    %1 = arith.extui %0 : i1 to i32
    %c0_i32_0 = arith.constant 0 : i32
    %2 = arith.cmpi ne, %1, %c0_i32_0 : i32
    scf.if %2 {
      %cst_10 = arith.constant 0.000000e+00 : f32
      %12 = vector.broadcast %cst_10 : f32 to vector<32x128xf32>
      %c0_11 = arith.constant 0 : index
      %c0_12 = arith.constant 0 : index
      %13 = vector.load %arg7[%c0_11, %c0_12] : memref<32x128xf32, #tpu.memory_space<vmem>>, vector<32x128xf32>
      tpu.vector_store %arg7[%c0_11, %c0_12], %12 {strides = array<i32>} : memref<32x128xf32, #tpu.memory_space<vmem>>, vector<32x128xf32>,
    } else {
    }
    %c0 = arith.constant 0 : index
    %c0_1 = arith.constant 0 : index
    %3 = vector.load %arg7[%c0, %c0_1] : memref<32x128xf32, #tpu.memory_space<vmem>>, vector<32x128xf32>
    %c0_2 = arith.constant 0 : index
    %c0_3 = arith.constant 0 : index
    %4 = vector.load %arg3[%c0_2, %c0_3] : memref<32x128xbf16, #tpu.memory_space<vmem>>, vector<32x128xbf16>
    %c0_4 = arith.constant 0 : index
    %c0_5 = arith.constant 0 : index
    %5 = vector.load %arg4[%c0_4, %c0_5] : memref<128x128xbf16, #tpu.memory_space<vmem>>, vector<128x128xbf16>
    %cst = arith.constant dense<0.000000e+00> : vector<32x128xf32>
    %6 = tpu.matmul %4, %5, %cst {dimension_numbers = #tpu.dot_dimension_numbers<[1], [0], [0], [1], [0, 0, 1, 1], [], []>} : vector<32x128xbf16>, vector<128x128xbf16>, vector<32x128xf32> -> vector<32x128xf32>
    %7 = arith.addf %3, %6 : vector<32x128xf32>
    %c0_6 = arith.constant 0 : index
    %c0_7 = arith.constant 0 : index
    %8 = vector.load %arg7[%c0_6, %c0_7] : memref<32x128xf32, #tpu.memory_space<vmem>>, vector<32x128xf32>
    tpu.vector_store %arg7[%c0_6, %c0_7], %7 {strides = array<i32>} : memref<32x128xf32, #tpu.memory_space<vmem>>, vector<32x128xf32>,
    %c0_i32_8 = arith.constant 0 : i32
    %9 = arith.cmpi eq, %arg2, %c0_i32_8 : i32
    %10 = arith.extui %9 : i1 to i32
    %c0_i32_9 = arith.constant 0 : i32
    %11 = arith.cmpi ne, %10, %c0_i32_9 : i32
    scf.if %11 {
      %c0_10 = arith.constant 0 : index
      %c0_11 = arith.constant 0 : index
      %12 = vector.load %arg7[%c0_10, %c0_11] : memref<32x128xf32, #tpu.memory_space<vmem>>, vector<32x128xf32>
      %c0_12 = arith.constant 0 : index
      %c0_13 = arith.constant 0 : index
      %13 = vector.load %arg5[%c0_12, %c0_13] : memref<1x128xf32, #tpu.memory_space<vmem>>, vector<1x128xf32>
      %14 = vector.broadcast %13 : vector<1x128xf32> to vector<32x128xf32>
      %15 = arith.addf %12, %14 : vector<32x128xf32>
      %cst_14 = arith.constant 0.000000e+00 : f32
      %16 = vector.broadcast %cst_14 : f32 to vector<32x128xf32>
      %17 = arith.maximumf %15, %16 : vector<32x128xf32>
      %18 = arith.truncf %17 : vector<32x128xf32> to vector<32x128xbf16>
      %c0_15 = arith.constant 0 : index
      %c0_16 = arith.constant 0 : index
      %19 = vector.load %arg6[%c0_15, %c0_16] : memref<32x128xbf16, #tpu.memory_space<vmem>>, vector<32x128xbf16>
      tpu.vector_store %arg6[%c0_15, %c0_16], %18 {strides = array<i32>} : memref<32x128xbf16, #tpu.memory_space<vmem>>, vector<32x128xbf16>,
    } else {
    }
    return
  }
  func.func @transform_0(%arg0: i32, %arg1: i32, %arg2: i32) -> (i32, i32) {
    %c0_i32 = arith.constant 0 : i32
    return %arg0, %arg2 : i32, i32
  }
  func.func @transform_1(%arg0: i32, %arg1: i32, %arg2: i32) -> (i32, i32) {
    %c0_i32 = arith.constant 0 : i32
    return %arg2, %arg1 : i32, i32
  }
  func.func @transform_2(%arg0: i32, %arg1: i32, %arg2: i32) -> (i32, i32) {
    %c0_i32 = arith.constant 0 : i32
    %c0_i32_0 = arith.constant 0 : i32
    return %c0_i32, %arg1 : i32, i32
  }
  func.func @transform_3(%arg0: i32, %arg1: i32, %arg2: i32) -> (i32, i32) {
    %c0_i32 = arith.constant 0 : i32
    return %arg0, %arg1 : i32, i32
  }
}

module attributes {stable_mosaic.version = 11 : i64} {
  func.func @_se_kernel(%arg0: i32, %arg1: memref<1x16x128xbf16, #tpu.memory_space<vmem>>, %arg2: memref<128x128xbf16, #tpu.memory_space<vmem>>, %arg3: memref<1x128xf32, #tpu.memory_space<vmem>>, %arg4: memref<128x128xbf16, #tpu.memory_space<vmem>>, %arg5: memref<1x128xf32, #tpu.memory_space<vmem>>, %arg6: memref<1x16x128xbf16, #tpu.memory_space<vmem>>) attributes {dimension_semantics = [#tpu.dimension_semantics<parallel>], iteration_bounds = array<i64: 2>, scalar_prefetch = 0 : i64, scratch_operands = 0 : i64, tpu.core_type = #tpu.core_type<tc>, window_params = [{transform_indices = @transform_0, window_bounds = array<i64: 1, 16, 128>}, {pipeline_mode = #tpu.pipeline_mode<synchronous>, transform_indices = @transform_1, window_bounds = array<i64: 128, 128>}, {pipeline_mode = #tpu.pipeline_mode<synchronous>, transform_indices = @transform_2, window_bounds = array<i64: 1, 128>}, {pipeline_mode = #tpu.pipeline_mode<synchronous>, transform_indices = @transform_3, window_bounds = array<i64: 128, 128>}, {pipeline_mode = #tpu.pipeline_mode<synchronous>, transform_indices = @transform_4, window_bounds = array<i64: 1, 128>}, {transform_indices = @transform_5, window_bounds = array<i64: 1, 16, 128>}]} {
    %c0 = arith.constant 0 : index
    %c0_0 = arith.constant 0 : index
    %c0_1 = arith.constant 0 : index
    %0 = vector.load %arg1[%c0, %c0_0, %c0_1] : memref<1x16x128xbf16, #tpu.memory_space<vmem>>, vector<1x16x128xbf16>
    %1 = arith.extf %0 : vector<1x16x128xbf16> to vector<1x16x128xf32>
    %cst = arith.constant dense<0.000000e+00> : vector<1x128xf32>
    %2 = vector.multi_reduction <add>, %1, %cst [1] : vector<1x16x128xf32> to vector<1x128xf32>
    %cst_2 = arith.constant 6.250000e-02 : f32
    %3 = vector.broadcast %cst_2 : f32 to vector<1x128xf32>
    %4 = arith.mulf %2, %3 : vector<1x128xf32>
    %5 = vector.shape_cast %4 : vector<1x128xf32> to vector<1x128xf32>
    %6 = vector.broadcast %5 : vector<1x128xf32> to vector<8x128xf32>
    %7 = arith.truncf %6 : vector<8x128xf32> to vector<8x128xbf16>
    %c0_3 = arith.constant 0 : index
    %c0_4 = arith.constant 0 : index
    %8 = vector.load %arg2[%c0_3, %c0_4] : memref<128x128xbf16, #tpu.memory_space<vmem>>, vector<128x128xbf16>
    %cst_5 = arith.constant dense<0.000000e+00> : vector<8x128xf32>
    %9 = tpu.matmul %7, %8, %cst_5 {dimension_numbers = #tpu.dot_dimension_numbers<[1], [0], [0], [1], [0, 0, 1, 1], [], []>} : vector<8x128xbf16>, vector<128x128xbf16>, vector<8x128xf32> -> vector<8x128xf32>
    %c0_6 = arith.constant 0 : index
    %c0_7 = arith.constant 0 : index
    %10 = vector.load %arg3[%c0_6, %c0_7] : memref<1x128xf32, #tpu.memory_space<vmem>>, vector<1x128xf32>
    %11 = vector.broadcast %10 : vector<1x128xf32> to vector<8x128xf32>
    %12 = arith.addf %9, %11 : vector<8x128xf32>
    %cst_8 = arith.constant 0.000000e+00 : f32
    %13 = vector.broadcast %cst_8 : f32 to vector<8x128xf32>
    %14 = arith.maximumf %12, %13 : vector<8x128xf32>
    %15 = arith.truncf %14 : vector<8x128xf32> to vector<8x128xbf16>
    %c0_9 = arith.constant 0 : index
    %c0_10 = arith.constant 0 : index
    %16 = vector.load %arg4[%c0_9, %c0_10] : memref<128x128xbf16, #tpu.memory_space<vmem>>, vector<128x128xbf16>
    %cst_11 = arith.constant dense<0.000000e+00> : vector<8x128xf32>
    %17 = tpu.matmul %15, %16, %cst_11 {dimension_numbers = #tpu.dot_dimension_numbers<[1], [0], [0], [1], [0, 0, 1, 1], [], []>} : vector<8x128xbf16>, vector<128x128xbf16>, vector<8x128xf32> -> vector<8x128xf32>
    %c0_12 = arith.constant 0 : index
    %c0_13 = arith.constant 0 : index
    %18 = vector.load %arg5[%c0_12, %c0_13] : memref<1x128xf32, #tpu.memory_space<vmem>>, vector<1x128xf32>
    %19 = vector.broadcast %18 : vector<1x128xf32> to vector<8x128xf32>
    %20 = arith.addf %17, %19 : vector<8x128xf32>
    %cst_14 = arith.constant 0.000000e+00 : f32
    %21 = vector.broadcast %cst_14 : f32 to vector<8x128xf32>
    %22 = arith.subf %21, %20 : vector<8x128xf32>
    %23 = math.exp %22 : vector<8x128xf32>
    %cst_15 = arith.constant 1.000000e+00 : f32
    %24 = vector.broadcast %cst_15 : f32 to vector<8x128xf32>
    %25 = arith.addf %24, %23 : vector<8x128xf32>
    %cst_16 = arith.constant 1.000000e+00 : f32
    %26 = vector.broadcast %cst_16 : f32 to vector<8x128xf32>
    %27 = arith.divf %26, %25 : vector<8x128xf32>
    %28 = vector.extract_strided_slice %27 {offsets = [0, 0], sizes = [1, 128], strides = [1, 1]} : vector<8x128xf32> to vector<1x128xf32>
    %29 = vector.shape_cast %28 : vector<1x128xf32> to vector<1x1x128xf32>
    %30 = vector.broadcast %29 : vector<1x1x128xf32> to vector<1x16x128xf32>
    %31 = arith.mulf %1, %30 : vector<1x16x128xf32>
    %32 = arith.truncf %31 : vector<1x16x128xf32> to vector<1x16x128xbf16>
    %c0_17 = arith.constant 0 : index
    %c0_18 = arith.constant 0 : index
    %c0_19 = arith.constant 0 : index
    %33 = vector.load %arg6[%c0_17, %c0_18, %c0_19] : memref<1x16x128xbf16, #tpu.memory_space<vmem>>, vector<1x16x128xbf16>
    tpu.vector_store %arg6[%c0_17, %c0_18, %c0_19], %32 {strides = array<i32>} : memref<1x16x128xbf16, #tpu.memory_space<vmem>>, vector<1x16x128xbf16>,
    return
  }
  func.func @transform_0(%arg0: i32) -> (i32, i32, i32) {
    %c0_i32 = arith.constant 0 : i32
    %c0_i32_0 = arith.constant 0 : i32
    %c0_i32_1 = arith.constant 0 : i32
    return %arg0, %c0_i32, %c0_i32_0 : i32, i32, i32
  }
  func.func @transform_1(%arg0: i32) -> (i32, i32) {
    %c0_i32 = arith.constant 0 : i32
    %c0_i32_0 = arith.constant 0 : i32
    %c0_i32_1 = arith.constant 0 : i32
    return %c0_i32, %c0_i32_0 : i32, i32
  }
  func.func @transform_2(%arg0: i32) -> (i32, i32) {
    %c0_i32 = arith.constant 0 : i32
    %c0_i32_0 = arith.constant 0 : i32
    %c0_i32_1 = arith.constant 0 : i32
    return %c0_i32, %c0_i32_0 : i32, i32
  }
  func.func @transform_3(%arg0: i32) -> (i32, i32) {
    %c0_i32 = arith.constant 0 : i32
    %c0_i32_0 = arith.constant 0 : i32
    %c0_i32_1 = arith.constant 0 : i32
    return %c0_i32, %c0_i32_0 : i32, i32
  }
  func.func @transform_4(%arg0: i32) -> (i32, i32) {
    %c0_i32 = arith.constant 0 : i32
    %c0_i32_0 = arith.constant 0 : i32
    %c0_i32_1 = arith.constant 0 : i32
    return %c0_i32, %c0_i32_0 : i32, i32
  }
  func.func @transform_5(%arg0: i32) -> (i32, i32, i32) {
    %c0_i32 = arith.constant 0 : i32
    %c0_i32_0 = arith.constant 0 : i32
    %c0_i32_1 = arith.constant 0 : i32
    return %arg0, %c0_i32, %c0_i32_0 : i32, i32, i32
  }
}

module attributes {stable_mosaic.version = 11 : i64} {
  func.func @_mm_kernel(%arg0: i32, %arg1: i32, %arg2: i32, %arg3: memref<32x128xbf16, #tpu.memory_space<vmem>>, %arg4: memref<128x128xbf16, #tpu.memory_space<vmem>>, %arg5: memref<1x128xf32, #tpu.memory_space<vmem>>, %arg6: memref<32x128xbf16, #tpu.memory_space<vmem>>, %arg7: memref<32x128xf32, #tpu.memory_space<vmem>>) attributes {dimension_semantics = [#tpu.dimension_semantics<parallel>, #tpu.dimension_semantics<parallel>, #tpu.dimension_semantics<arbitrary>], iteration_bounds = array<i64: 1, 2, 1>, scalar_prefetch = 0 : i64, scratch_operands = 1 : i64, tpu.core_type = #tpu.core_type<tc>, window_params = [{transform_indices = @transform_0, window_bounds = array<i64: 32, 128>}, {transform_indices = @transform_1, window_bounds = array<i64: 128, 128>}, {transform_indices = @transform_2, window_bounds = array<i64: 1, 128>}, {transform_indices = @transform_3, window_bounds = array<i64: 32, 128>}]} {
    %c0_i32 = arith.constant 0 : i32
    %0 = arith.cmpi eq, %arg2, %c0_i32 : i32
    %1 = arith.extui %0 : i1 to i32
    %c0_i32_0 = arith.constant 0 : i32
    %2 = arith.cmpi ne, %1, %c0_i32_0 : i32
    scf.if %2 {
      %cst_10 = arith.constant 0.000000e+00 : f32
      %12 = vector.broadcast %cst_10 : f32 to vector<32x128xf32>
      %c0_11 = arith.constant 0 : index
      %c0_12 = arith.constant 0 : index
      %13 = vector.load %arg7[%c0_11, %c0_12] : memref<32x128xf32, #tpu.memory_space<vmem>>, vector<32x128xf32>
      tpu.vector_store %arg7[%c0_11, %c0_12], %12 {strides = array<i32>} : memref<32x128xf32, #tpu.memory_space<vmem>>, vector<32x128xf32>,
    } else {
    }
    %c0 = arith.constant 0 : index
    %c0_1 = arith.constant 0 : index
    %3 = vector.load %arg7[%c0, %c0_1] : memref<32x128xf32, #tpu.memory_space<vmem>>, vector<32x128xf32>
    %c0_2 = arith.constant 0 : index
    %c0_3 = arith.constant 0 : index
    %4 = vector.load %arg3[%c0_2, %c0_3] : memref<32x128xbf16, #tpu.memory_space<vmem>>, vector<32x128xbf16>
    %c0_4 = arith.constant 0 : index
    %c0_5 = arith.constant 0 : index
    %5 = vector.load %arg4[%c0_4, %c0_5] : memref<128x128xbf16, #tpu.memory_space<vmem>>, vector<128x128xbf16>
    %cst = arith.constant dense<0.000000e+00> : vector<32x128xf32>
    %6 = tpu.matmul %4, %5, %cst {dimension_numbers = #tpu.dot_dimension_numbers<[1], [0], [0], [1], [0, 0, 1, 1], [], []>} : vector<32x128xbf16>, vector<128x128xbf16>, vector<32x128xf32> -> vector<32x128xf32>
    %7 = arith.addf %3, %6 : vector<32x128xf32>
    %c0_6 = arith.constant 0 : index
    %c0_7 = arith.constant 0 : index
    %8 = vector.load %arg7[%c0_6, %c0_7] : memref<32x128xf32, #tpu.memory_space<vmem>>, vector<32x128xf32>
    tpu.vector_store %arg7[%c0_6, %c0_7], %7 {strides = array<i32>} : memref<32x128xf32, #tpu.memory_space<vmem>>, vector<32x128xf32>,
    %c0_i32_8 = arith.constant 0 : i32
    %9 = arith.cmpi eq, %arg2, %c0_i32_8 : i32
    %10 = arith.extui %9 : i1 to i32
    %c0_i32_9 = arith.constant 0 : i32
    %11 = arith.cmpi ne, %10, %c0_i32_9 : i32
    scf.if %11 {
      %c0_10 = arith.constant 0 : index
      %c0_11 = arith.constant 0 : index
      %12 = vector.load %arg7[%c0_10, %c0_11] : memref<32x128xf32, #tpu.memory_space<vmem>>, vector<32x128xf32>
      %c0_12 = arith.constant 0 : index
      %c0_13 = arith.constant 0 : index
      %13 = vector.load %arg5[%c0_12, %c0_13] : memref<1x128xf32, #tpu.memory_space<vmem>>, vector<1x128xf32>
      %14 = vector.broadcast %13 : vector<1x128xf32> to vector<32x128xf32>
      %15 = arith.addf %12, %14 : vector<32x128xf32>
      %cst_14 = arith.constant 0.000000e+00 : f32
      %16 = vector.broadcast %cst_14 : f32 to vector<32x128xf32>
      %17 = arith.maximumf %15, %16 : vector<32x128xf32>
      %18 = arith.truncf %17 : vector<32x128xf32> to vector<32x128xbf16>
      %c0_15 = arith.constant 0 : index
      %c0_16 = arith.constant 0 : index
      %19 = vector.load %arg6[%c0_15, %c0_16] : memref<32x128xbf16, #tpu.memory_space<vmem>>, vector<32x128xbf16>
      tpu.vector_store %arg6[%c0_15, %c0_16], %18 {strides = array<i32>} : memref<32x128xbf16, #tpu.memory_space<vmem>>, vector<32x128xbf16>,
    } else {
    }
    return
  }
  func.func @transform_0(%arg0: i32, %arg1: i32, %arg2: i32) -> (i32, i32) {
    %c0_i32 = arith.constant 0 : i32
    return %arg0, %arg2 : i32, i32
  }
  func.func @transform_1(%arg0: i32, %arg1: i32, %arg2: i32) -> (i32, i32) {
    %c0_i32 = arith.constant 0 : i32
    return %arg2, %arg1 : i32, i32
  }
  func.func @transform_2(%arg0: i32, %arg1: i32, %arg2: i32) -> (i32, i32) {
    %c0_i32 = arith.constant 0 : i32
    %c0_i32_0 = arith.constant 0 : i32
    return %c0_i32, %arg1 : i32, i32
  }
  func.func @transform_3(%arg0: i32, %arg1: i32, %arg2: i32) -> (i32, i32) {
    %c0_i32 = arith.constant 0 : i32
    return %arg0, %arg1 : i32, i32
  }
}

module attributes {stable_mosaic.version = 11 : i64} {
  func.func @_mm_kernel(%arg0: i32, %arg1: i32, %arg2: i32, %arg3: memref<8x128xbf16, #tpu.memory_space<vmem>>, %arg4: memref<128x128xbf16, #tpu.memory_space<vmem>>, %arg5: memref<1x128xf32, #tpu.memory_space<vmem>>, %arg6: memref<8x128xbf16, #tpu.memory_space<vmem>>, %arg7: memref<8x128xf32, #tpu.memory_space<vmem>>) attributes {dimension_semantics = [#tpu.dimension_semantics<parallel>, #tpu.dimension_semantics<parallel>, #tpu.dimension_semantics<arbitrary>], iteration_bounds = array<i64: 1, 2, 9>, scalar_prefetch = 0 : i64, scratch_operands = 1 : i64, tpu.core_type = #tpu.core_type<tc>, window_params = [{transform_indices = @transform_0, window_bounds = array<i64: 8, 128>}, {transform_indices = @transform_1, window_bounds = array<i64: 128, 128>}, {transform_indices = @transform_2, window_bounds = array<i64: 1, 128>}, {transform_indices = @transform_3, window_bounds = array<i64: 8, 128>}]} {
    %c0_i32 = arith.constant 0 : i32
    %0 = arith.cmpi eq, %arg2, %c0_i32 : i32
    %1 = arith.extui %0 : i1 to i32
    %c0_i32_0 = arith.constant 0 : i32
    %2 = arith.cmpi ne, %1, %c0_i32_0 : i32
    scf.if %2 {
      %cst_9 = arith.constant 0.000000e+00 : f32
      %12 = vector.broadcast %cst_9 : f32 to vector<8x128xf32>
      %c0_10 = arith.constant 0 : index
      %c0_11 = arith.constant 0 : index
      %13 = vector.load %arg7[%c0_10, %c0_11] : memref<8x128xf32, #tpu.memory_space<vmem>>, vector<8x128xf32>
      tpu.vector_store %arg7[%c0_10, %c0_11], %12 {strides = array<i32>} : memref<8x128xf32, #tpu.memory_space<vmem>>, vector<8x128xf32>,
    } else {
    }
    %c0 = arith.constant 0 : index
    %c0_1 = arith.constant 0 : index
    %3 = vector.load %arg7[%c0, %c0_1] : memref<8x128xf32, #tpu.memory_space<vmem>>, vector<8x128xf32>
    %c0_2 = arith.constant 0 : index
    %c0_3 = arith.constant 0 : index
    %4 = vector.load %arg3[%c0_2, %c0_3] : memref<8x128xbf16, #tpu.memory_space<vmem>>, vector<8x128xbf16>
    %c0_4 = arith.constant 0 : index
    %c0_5 = arith.constant 0 : index
    %5 = vector.load %arg4[%c0_4, %c0_5] : memref<128x128xbf16, #tpu.memory_space<vmem>>, vector<128x128xbf16>
    %cst = arith.constant dense<0.000000e+00> : vector<8x128xf32>
    %6 = tpu.matmul %4, %5, %cst {dimension_numbers = #tpu.dot_dimension_numbers<[1], [0], [0], [1], [0, 0, 1, 1], [], []>} : vector<8x128xbf16>, vector<128x128xbf16>, vector<8x128xf32> -> vector<8x128xf32>
    %7 = arith.addf %3, %6 : vector<8x128xf32>
    %c0_6 = arith.constant 0 : index
    %c0_7 = arith.constant 0 : index
    %8 = vector.load %arg7[%c0_6, %c0_7] : memref<8x128xf32, #tpu.memory_space<vmem>>, vector<8x128xf32>
    tpu.vector_store %arg7[%c0_6, %c0_7], %7 {strides = array<i32>} : memref<8x128xf32, #tpu.memory_space<vmem>>, vector<8x128xf32>,
    %c8_i32 = arith.constant 8 : i32
    %9 = arith.cmpi eq, %arg2, %c8_i32 : i32
    %10 = arith.extui %9 : i1 to i32
    %c0_i32_8 = arith.constant 0 : i32
    %11 = arith.cmpi ne, %10, %c0_i32_8 : i32
    scf.if %11 {
      %c0_9 = arith.constant 0 : index
      %c0_10 = arith.constant 0 : index
      %12 = vector.load %arg7[%c0_9, %c0_10] : memref<8x128xf32, #tpu.memory_space<vmem>>, vector<8x128xf32>
      %c0_11 = arith.constant 0 : index
      %c0_12 = arith.constant 0 : index
      %13 = vector.load %arg5[%c0_11, %c0_12] : memref<1x128xf32, #tpu.memory_space<vmem>>, vector<1x128xf32>
      %14 = vector.broadcast %13 : vector<1x128xf32> to vector<8x128xf32>
      %15 = arith.addf %12, %14 : vector<8x128xf32>
      %cst_13 = arith.constant 0.000000e+00 : f32
      %16 = vector.broadcast %cst_13 : f32 to vector<8x128xf32>
      %17 = arith.maximumf %15, %16 : vector<8x128xf32>
      %18 = arith.truncf %17 : vector<8x128xf32> to vector<8x128xbf16>
      %c0_14 = arith.constant 0 : index
      %c0_15 = arith.constant 0 : index
      %19 = vector.load %arg6[%c0_14, %c0_15] : memref<8x128xbf16, #tpu.memory_space<vmem>>, vector<8x128xbf16>
      tpu.vector_store %arg6[%c0_14, %c0_15], %18 {strides = array<i32>} : memref<8x128xbf16, #tpu.memory_space<vmem>>, vector<8x128xbf16>,
    } else {
    }
    return
  }
  func.func @transform_0(%arg0: i32, %arg1: i32, %arg2: i32) -> (i32, i32) {
    %c9_i32 = arith.constant 9 : i32
    %0 = arith.muli %arg1, %c9_i32 : i32
    %1 = arith.addi %0, %arg2 : i32
    %c0_i32 = arith.constant 0 : i32
    return %arg0, %1 : i32, i32
  }
  func.func @transform_1(%arg0: i32, %arg1: i32, %arg2: i32) -> (i32, i32) {
    %c9_i32 = arith.constant 9 : i32
    %0 = arith.muli %arg1, %c9_i32 : i32
    %1 = arith.addi %0, %arg2 : i32
    %c0_i32 = arith.constant 0 : i32
    return %1, %arg1 : i32, i32
  }
  func.func @transform_2(%arg0: i32, %arg1: i32, %arg2: i32) -> (i32, i32) {
    %c0_i32 = arith.constant 0 : i32
    %c0_i32_0 = arith.constant 0 : i32
    return %c0_i32, %arg1 : i32, i32
  }
  func.func @transform_3(%arg0: i32, %arg1: i32, %arg2: i32) -> (i32, i32) {
    %c0_i32 = arith.constant 0 : i32
    return %arg0, %arg1 : i32, i32
  }
}

module attributes {stable_mosaic.version = 11 : i64} {
  func.func @_se_kernel(%arg0: i32, %arg1: memref<1x8x256xbf16, #tpu.memory_space<vmem>>, %arg2: memref<256x128xbf16, #tpu.memory_space<vmem>>, %arg3: memref<1x128xf32, #tpu.memory_space<vmem>>, %arg4: memref<128x256xbf16, #tpu.memory_space<vmem>>, %arg5: memref<1x256xf32, #tpu.memory_space<vmem>>, %arg6: memref<1x8x256xbf16, #tpu.memory_space<vmem>>) attributes {dimension_semantics = [#tpu.dimension_semantics<parallel>], iteration_bounds = array<i64: 2>, scalar_prefetch = 0 : i64, scratch_operands = 0 : i64, tpu.core_type = #tpu.core_type<tc>, window_params = [{transform_indices = @transform_0, window_bounds = array<i64: 1, 8, 256>}, {pipeline_mode = #tpu.pipeline_mode<synchronous>, transform_indices = @transform_1, window_bounds = array<i64: 256, 128>}, {pipeline_mode = #tpu.pipeline_mode<synchronous>, transform_indices = @transform_2, window_bounds = array<i64: 1, 128>}, {pipeline_mode = #tpu.pipeline_mode<synchronous>, transform_indices = @transform_3, window_bounds = array<i64: 128, 256>}, {pipeline_mode = #tpu.pipeline_mode<synchronous>, transform_indices = @transform_4, window_bounds = array<i64: 1, 256>}, {transform_indices = @transform_5, window_bounds = array<i64: 1, 8, 256>}]} {
    %c0 = arith.constant 0 : index
    %c0_0 = arith.constant 0 : index
    %c0_1 = arith.constant 0 : index
    %0 = vector.load %arg1[%c0, %c0_0, %c0_1] : memref<1x8x256xbf16, #tpu.memory_space<vmem>>, vector<1x8x256xbf16>
    %1 = arith.extf %0 : vector<1x8x256xbf16> to vector<1x8x256xf32>
    %cst = arith.constant dense<0.000000e+00> : vector<1x256xf32>
    %2 = vector.multi_reduction <add>, %1, %cst [1] : vector<1x8x256xf32> to vector<1x256xf32>
    %cst_2 = arith.constant 2.500000e-01 : f32
    %3 = vector.broadcast %cst_2 : f32 to vector<1x256xf32>
    %4 = arith.mulf %2, %3 : vector<1x256xf32>
    %5 = vector.shape_cast %4 : vector<1x256xf32> to vector<1x256xf32>
    %6 = vector.broadcast %5 : vector<1x256xf32> to vector<8x256xf32>
    %7 = arith.truncf %6 : vector<8x256xf32> to vector<8x256xbf16>
    %c0_3 = arith.constant 0 : index
    %c0_4 = arith.constant 0 : index
    %8 = vector.load %arg2[%c0_3, %c0_4] : memref<256x128xbf16, #tpu.memory_space<vmem>>, vector<256x128xbf16>
    %cst_5 = arith.constant dense<0.000000e+00> : vector<8x128xf32>
    %9 = tpu.matmul %7, %8, %cst_5 {dimension_numbers = #tpu.dot_dimension_numbers<[1], [0], [0], [1], [0, 0, 1, 1], [], []>} : vector<8x256xbf16>, vector<256x128xbf16>, vector<8x128xf32> -> vector<8x128xf32>
    %c0_6 = arith.constant 0 : index
    %c0_7 = arith.constant 0 : index
    %10 = vector.load %arg3[%c0_6, %c0_7] : memref<1x128xf32, #tpu.memory_space<vmem>>, vector<1x128xf32>
    %11 = vector.broadcast %10 : vector<1x128xf32> to vector<8x128xf32>
    %12 = arith.addf %9, %11 : vector<8x128xf32>
    %cst_8 = arith.constant 0.000000e+00 : f32
    %13 = vector.broadcast %cst_8 : f32 to vector<8x128xf32>
    %14 = arith.maximumf %12, %13 : vector<8x128xf32>
    %15 = arith.truncf %14 : vector<8x128xf32> to vector<8x128xbf16>
    %c0_9 = arith.constant 0 : index
    %c0_10 = arith.constant 0 : index
    %16 = vector.load %arg4[%c0_9, %c0_10] : memref<128x256xbf16, #tpu.memory_space<vmem>>, vector<128x256xbf16>
    %cst_11 = arith.constant dense<0.000000e+00> : vector<8x256xf32>
    %17 = tpu.matmul %15, %16, %cst_11 {dimension_numbers = #tpu.dot_dimension_numbers<[1], [0], [0], [1], [0, 0, 1, 1], [], []>} : vector<8x128xbf16>, vector<128x256xbf16>, vector<8x256xf32> -> vector<8x256xf32>
    %c0_12 = arith.constant 0 : index
    %c0_13 = arith.constant 0 : index
    %18 = vector.load %arg5[%c0_12, %c0_13] : memref<1x256xf32, #tpu.memory_space<vmem>>, vector<1x256xf32>
    %19 = vector.broadcast %18 : vector<1x256xf32> to vector<8x256xf32>
    %20 = arith.addf %17, %19 : vector<8x256xf32>
    %cst_14 = arith.constant 0.000000e+00 : f32
    %21 = vector.broadcast %cst_14 : f32 to vector<8x256xf32>
    %22 = arith.subf %21, %20 : vector<8x256xf32>
    %23 = math.exp %22 : vector<8x256xf32>
    %cst_15 = arith.constant 1.000000e+00 : f32
    %24 = vector.broadcast %cst_15 : f32 to vector<8x256xf32>
    %25 = arith.addf %24, %23 : vector<8x256xf32>
    %cst_16 = arith.constant 1.000000e+00 : f32
    %26 = vector.broadcast %cst_16 : f32 to vector<8x256xf32>
    %27 = arith.divf %26, %25 : vector<8x256xf32>
    %28 = vector.extract_strided_slice %27 {offsets = [0, 0], sizes = [1, 256], strides = [1, 1]} : vector<8x256xf32> to vector<1x256xf32>
    %29 = vector.shape_cast %28 : vector<1x256xf32> to vector<1x1x256xf32>
    %30 = vector.broadcast %29 : vector<1x1x256xf32> to vector<1x8x256xf32>
    %31 = arith.mulf %1, %30 : vector<1x8x256xf32>
    %32 = arith.truncf %31 : vector<1x8x256xf32> to vector<1x8x256xbf16>
    %c0_17 = arith.constant 0 : index
    %c0_18 = arith.constant 0 : index
    %c0_19 = arith.constant 0 : index
    %33 = vector.load %arg6[%c0_17, %c0_18, %c0_19] : memref<1x8x256xbf16, #tpu.memory_space<vmem>>, vector<1x8x256xbf16>
    tpu.vector_store %arg6[%c0_17, %c0_18, %c0_19], %32 {strides = array<i32>} : memref<1x8x256xbf16, #tpu.memory_space<vmem>>, vector<1x8x256xbf16>,
    return
  }
  func.func @transform_0(%arg0: i32) -> (i32, i32, i32) {
    %c0_i32 = arith.constant 0 : i32
    %c0_i32_0 = arith.constant 0 : i32
    %c0_i32_1 = arith.constant 0 : i32
    return %arg0, %c0_i32, %c0_i32_0 : i32, i32, i32
  }
  func.func @transform_1(%arg0: i32) -> (i32, i32) {
    %c0_i32 = arith.constant 0 : i32
    %c0_i32_0 = arith.constant 0 : i32
    %c0_i32_1 = arith.constant 0 : i32
    return %c0_i32, %c0_i32_0 : i32, i32
  }
  func.func @transform_2(%arg0: i32) -> (i32, i32) {
    %c0_i32 = arith.constant 0 : i32
    %c0_i32_0 = arith.constant 0 : i32
    %c0_i32_1 = arith.constant 0 : i32
    return %c0_i32, %c0_i32_0 : i32, i32
  }
  func.func @transform_3(%arg0: i32) -> (i32, i32) {
    %c0_i32 = arith.constant 0 : i32
    %c0_i32_0 = arith.constant 0 : i32
    %c0_i32_1 = arith.constant 0 : i32
    return %c0_i32, %c0_i32_0 : i32, i32
  }
  func.func @transform_4(%arg0: i32) -> (i32, i32) {
    %c0_i32 = arith.constant 0 : i32
    %c0_i32_0 = arith.constant 0 : i32
    %c0_i32_1 = arith.constant 0 : i32
    return %c0_i32, %c0_i32_0 : i32, i32
  }
  func.func @transform_5(%arg0: i32) -> (i32, i32, i32) {
    %c0_i32 = arith.constant 0 : i32
    %c0_i32_0 = arith.constant 0 : i32
    %c0_i32_1 = arith.constant 0 : i32
    return %arg0, %c0_i32, %c0_i32_0 : i32, i32, i32
  }
}

module attributes {stable_mosaic.version = 11 : i64} {
  func.func @_mm_kernel(%arg0: i32, %arg1: i32, %arg2: i32, %arg3: memref<8x128xbf16, #tpu.memory_space<vmem>>, %arg4: memref<128x128xbf16, #tpu.memory_space<vmem>>, %arg5: memref<1x128xf32, #tpu.memory_space<vmem>>, %arg6: memref<8x128xbf16, #tpu.memory_space<vmem>>, %arg7: memref<8x128xf32, #tpu.memory_space<vmem>>) attributes {dimension_semantics = [#tpu.dimension_semantics<parallel>, #tpu.dimension_semantics<parallel>, #tpu.dimension_semantics<arbitrary>], iteration_bounds = array<i64: 1, 2, 1>, scalar_prefetch = 0 : i64, scratch_operands = 1 : i64, tpu.core_type = #tpu.core_type<tc>, window_params = [{transform_indices = @transform_0, window_bounds = array<i64: 8, 128>}, {transform_indices = @transform_1, window_bounds = array<i64: 128, 128>}, {transform_indices = @transform_2, window_bounds = array<i64: 1, 128>}, {transform_indices = @transform_3, window_bounds = array<i64: 8, 128>}]} {
    %c0_i32 = arith.constant 0 : i32
    %0 = arith.cmpi eq, %arg2, %c0_i32 : i32
    %1 = arith.extui %0 : i1 to i32
    %c0_i32_0 = arith.constant 0 : i32
    %2 = arith.cmpi ne, %1, %c0_i32_0 : i32
    scf.if %2 {
      %cst_10 = arith.constant 0.000000e+00 : f32
      %12 = vector.broadcast %cst_10 : f32 to vector<8x128xf32>
      %c0_11 = arith.constant 0 : index
      %c0_12 = arith.constant 0 : index
      %13 = vector.load %arg7[%c0_11, %c0_12] : memref<8x128xf32, #tpu.memory_space<vmem>>, vector<8x128xf32>
      tpu.vector_store %arg7[%c0_11, %c0_12], %12 {strides = array<i32>} : memref<8x128xf32, #tpu.memory_space<vmem>>, vector<8x128xf32>,
    } else {
    }
    %c0 = arith.constant 0 : index
    %c0_1 = arith.constant 0 : index
    %3 = vector.load %arg7[%c0, %c0_1] : memref<8x128xf32, #tpu.memory_space<vmem>>, vector<8x128xf32>
    %c0_2 = arith.constant 0 : index
    %c0_3 = arith.constant 0 : index
    %4 = vector.load %arg3[%c0_2, %c0_3] : memref<8x128xbf16, #tpu.memory_space<vmem>>, vector<8x128xbf16>
    %c0_4 = arith.constant 0 : index
    %c0_5 = arith.constant 0 : index
    %5 = vector.load %arg4[%c0_4, %c0_5] : memref<128x128xbf16, #tpu.memory_space<vmem>>, vector<128x128xbf16>
    %cst = arith.constant dense<0.000000e+00> : vector<8x128xf32>
    %6 = tpu.matmul %4, %5, %cst {dimension_numbers = #tpu.dot_dimension_numbers<[1], [0], [0], [1], [0, 0, 1, 1], [], []>} : vector<8x128xbf16>, vector<128x128xbf16>, vector<8x128xf32> -> vector<8x128xf32>
    %7 = arith.addf %3, %6 : vector<8x128xf32>
    %c0_6 = arith.constant 0 : index
    %c0_7 = arith.constant 0 : index
    %8 = vector.load %arg7[%c0_6, %c0_7] : memref<8x128xf32, #tpu.memory_space<vmem>>, vector<8x128xf32>
    tpu.vector_store %arg7[%c0_6, %c0_7], %7 {strides = array<i32>} : memref<8x128xf32, #tpu.memory_space<vmem>>, vector<8x128xf32>,
    %c0_i32_8 = arith.constant 0 : i32
    %9 = arith.cmpi eq, %arg2, %c0_i32_8 : i32
    %10 = arith.extui %9 : i1 to i32
    %c0_i32_9 = arith.constant 0 : i32
    %11 = arith.cmpi ne, %10, %c0_i32_9 : i32
    scf.if %11 {
      %c0_10 = arith.constant 0 : index
      %c0_11 = arith.constant 0 : index
      %12 = vector.load %arg7[%c0_10, %c0_11] : memref<8x128xf32, #tpu.memory_space<vmem>>, vector<8x128xf32>
      %c0_12 = arith.constant 0 : index
      %c0_13 = arith.constant 0 : index
      %13 = vector.load %arg5[%c0_12, %c0_13] : memref<1x128xf32, #tpu.memory_space<vmem>>, vector<1x128xf32>
      %14 = vector.broadcast %13 : vector<1x128xf32> to vector<8x128xf32>
      %15 = arith.addf %12, %14 : vector<8x128xf32>
      %16 = arith.truncf %15 : vector<8x128xf32> to vector<8x128xbf16>
      %c0_14 = arith.constant 0 : index
      %c0_15 = arith.constant 0 : index
      %17 = vector.load %arg6[%c0_14, %c0_15] : memref<8x128xbf16, #tpu.memory_space<vmem>>, vector<8x128xbf16>
      tpu.vector_store %arg6[%c0_14, %c0_15], %16 {strides = array<i32>} : memref<8x128xbf16, #tpu.memory_space<vmem>>, vector<8x128xbf16>,
    } else {
    }
    return
  }
  func.func @transform_0(%arg0: i32, %arg1: i32, %arg2: i32) -> (i32, i32) {
    %c0_i32 = arith.constant 0 : i32
    return %arg0, %arg2 : i32, i32
  }
  func.func @transform_1(%arg0: i32, %arg1: i32, %arg2: i32) -> (i32, i32) {
    %c0_i32 = arith.constant 0 : i32
    return %arg2, %arg1 : i32, i32
  }
  func.func @transform_2(%arg0: i32, %arg1: i32, %arg2: i32) -> (i32, i32) {
    %c0_i32 = arith.constant 0 : i32
    %c0_i32_0 = arith.constant 0 : i32
    return %c0_i32, %arg1 : i32, i32
  }
  func.func @transform_3(%arg0: i32, %arg1: i32, %arg2: i32) -> (i32, i32) {
    %c0_i32 = arith.constant 0 : i32
    return %arg0, %arg1 : i32, i32
  }
}

module attributes {stable_mosaic.version = 11 : i64} {
  func.func @_mm_res_kernel(%arg0: i32, %arg1: i32, %arg2: i32, %arg3: memref<8x128xbf16, #tpu.memory_space<vmem>>, %arg4: memref<128x128xbf16, #tpu.memory_space<vmem>>, %arg5: memref<1x128xf32, #tpu.memory_space<vmem>>, %arg6: memref<8x128xbf16, #tpu.memory_space<vmem>>, %arg7: memref<8x128xbf16, #tpu.memory_space<vmem>>, %arg8: memref<8x128xf32, #tpu.memory_space<vmem>>) attributes {dimension_semantics = [#tpu.dimension_semantics<parallel>, #tpu.dimension_semantics<parallel>, #tpu.dimension_semantics<arbitrary>], iteration_bounds = array<i64: 1, 2, 2>, scalar_prefetch = 0 : i64, scratch_operands = 1 : i64, tpu.core_type = #tpu.core_type<tc>, window_params = [{transform_indices = @transform_0, window_bounds = array<i64: 8, 128>}, {transform_indices = @transform_1, window_bounds = array<i64: 128, 128>}, {transform_indices = @transform_2, window_bounds = array<i64: 1, 128>}, {transform_indices = @transform_3, window_bounds = array<i64: 8, 128>}, {transform_indices = @transform_4, window_bounds = array<i64: 8, 128>}]} {
    %c0_i32 = arith.constant 0 : i32
    %0 = arith.cmpi eq, %arg2, %c0_i32 : i32
    %1 = arith.extui %0 : i1 to i32
    %c0_i32_0 = arith.constant 0 : i32
    %2 = arith.cmpi ne, %1, %c0_i32_0 : i32
    scf.if %2 {
      %cst_9 = arith.constant 0.000000e+00 : f32
      %12 = vector.broadcast %cst_9 : f32 to vector<8x128xf32>
      %c0_10 = arith.constant 0 : index
      %c0_11 = arith.constant 0 : index
      %13 = vector.load %arg8[%c0_10, %c0_11] : memref<8x128xf32, #tpu.memory_space<vmem>>, vector<8x128xf32>
      tpu.vector_store %arg8[%c0_10, %c0_11], %12 {strides = array<i32>} : memref<8x128xf32, #tpu.memory_space<vmem>>, vector<8x128xf32>,
    } else {
    }
    %c0 = arith.constant 0 : index
    %c0_1 = arith.constant 0 : index
    %3 = vector.load %arg8[%c0, %c0_1] : memref<8x128xf32, #tpu.memory_space<vmem>>, vector<8x128xf32>
    %c0_2 = arith.constant 0 : index
    %c0_3 = arith.constant 0 : index
    %4 = vector.load %arg3[%c0_2, %c0_3] : memref<8x128xbf16, #tpu.memory_space<vmem>>, vector<8x128xbf16>
    %c0_4 = arith.constant 0 : index
    %c0_5 = arith.constant 0 : index
    %5 = vector.load %arg4[%c0_4, %c0_5] : memref<128x128xbf16, #tpu.memory_space<vmem>>, vector<128x128xbf16>
    %cst = arith.constant dense<0.000000e+00> : vector<8x128xf32>
    %6 = tpu.matmul %4, %5, %cst {dimension_numbers = #tpu.dot_dimension_numbers<[1], [0], [0], [1], [0, 0, 1, 1], [], []>} : vector<8x128xbf16>, vector<128x128xbf16>, vector<8x128xf32> -> vector<8x128xf32>
    %7 = arith.addf %3, %6 : vector<8x128xf32>
    %c0_6 = arith.constant 0 : index
    %c0_7 = arith.constant 0 : index
    %8 = vector.load %arg8[%c0_6, %c0_7] : memref<8x128xf32, #tpu.memory_space<vmem>>, vector<8x128xf32>
    tpu.vector_store %arg8[%c0_6, %c0_7], %7 {strides = array<i32>} : memref<8x128xf32, #tpu.memory_space<vmem>>, vector<8x128xf32>,
    %c1_i32 = arith.constant 1 : i32
    %9 = arith.cmpi eq, %arg2, %c1_i32 : i32
    %10 = arith.extui %9 : i1 to i32
    %c0_i32_8 = arith.constant 0 : i32
    %11 = arith.cmpi ne, %10, %c0_i32_8 : i32
    scf.if %11 {
      %c0_9 = arith.constant 0 : index
      %c0_10 = arith.constant 0 : index
      %12 = vector.load %arg8[%c0_9, %c0_10] : memref<8x128xf32, #tpu.memory_space<vmem>>, vector<8x128xf32>
      %c0_11 = arith.constant 0 : index
      %c0_12 = arith.constant 0 : index
      %13 = vector.load %arg5[%c0_11, %c0_12] : memref<1x128xf32, #tpu.memory_space<vmem>>, vector<1x128xf32>
      %14 = vector.broadcast %13 : vector<1x128xf32> to vector<8x128xf32>
      %15 = arith.addf %12, %14 : vector<8x128xf32>
      %c0_13 = arith.constant 0 : index
      %c0_14 = arith.constant 0 : index
      %16 = vector.load %arg6[%c0_13, %c0_14] : memref<8x128xbf16, #tpu.memory_space<vmem>>, vector<8x128xbf16>
      %17 = arith.extf %16 : vector<8x128xbf16> to vector<8x128xf32>
      %18 = arith.addf %15, %17 : vector<8x128xf32>
      %cst_15 = arith.constant 0.000000e+00 : f32
      %19 = vector.broadcast %cst_15 : f32 to vector<8x128xf32>
      %20 = arith.maximumf %18, %19 : vector<8x128xf32>
      %21 = arith.truncf %20 : vector<8x128xf32> to vector<8x128xbf16>
      %c0_16 = arith.constant 0 : index
      %c0_17 = arith.constant 0 : index
      %22 = vector.load %arg7[%c0_16, %c0_17] : memref<8x128xbf16, #tpu.memory_space<vmem>>, vector<8x128xbf16>
      tpu.vector_store %arg7[%c0_16, %c0_17], %21 {strides = array<i32>} : memref<8x128xbf16, #tpu.memory_space<vmem>>, vector<8x128xbf16>,
    } else {
    }
    return
  }
  func.func @transform_0(%arg0: i32, %arg1: i32, %arg2: i32) -> (i32, i32) {
    %c0_i32 = arith.constant 0 : i32
    return %arg0, %arg2 : i32, i32
  }
  func.func @transform_1(%arg0: i32, %arg1: i32, %arg2: i32) -> (i32, i32) {
    %c0_i32 = arith.constant 0 : i32
    return %arg2, %arg1 : i32, i32
  }
  func.func @transform_2(%arg0: i32, %arg1: i32, %arg2: i32) -> (i32, i32) {
    %c0_i32 = arith.constant 0 : i32
    %c0_i32_0 = arith.constant 0 : i32
    return %c0_i32, %arg1 : i32, i32
  }
  func.func @transform_3(%arg0: i32, %arg1: i32, %arg2: i32) -> (i32, i32) {
    %c0_i32 = arith.constant 0 : i32
    return %arg0, %arg1 : i32, i32
  }
  func.func @transform_4(%arg0: i32, %arg1: i32, %arg2: i32) -> (i32, i32) {
    %c0_i32 = arith.constant 0 : i32
    return %arg0, %arg1 : i32, i32
  }
}

module attributes {stable_mosaic.version = 11 : i64} {
  func.func @_mm_kernel(%arg0: i32, %arg1: i32, %arg2: i32, %arg3: memref<8x128xbf16, #tpu.memory_space<vmem>>, %arg4: memref<128x128xbf16, #tpu.memory_space<vmem>>, %arg5: memref<1x128xf32, #tpu.memory_space<vmem>>, %arg6: memref<8x128xbf16, #tpu.memory_space<vmem>>, %arg7: memref<8x128xf32, #tpu.memory_space<vmem>>) attributes {dimension_semantics = [#tpu.dimension_semantics<parallel>, #tpu.dimension_semantics<parallel>, #tpu.dimension_semantics<arbitrary>], iteration_bounds = array<i64: 1, 2, 2>, scalar_prefetch = 0 : i64, scratch_operands = 1 : i64, tpu.core_type = #tpu.core_type<tc>, window_params = [{transform_indices = @transform_0, window_bounds = array<i64: 8, 128>}, {transform_indices = @transform_1, window_bounds = array<i64: 128, 128>}, {transform_indices = @transform_2, window_bounds = array<i64: 1, 128>}, {transform_indices = @transform_3, window_bounds = array<i64: 8, 128>}]} {
    %c0_i32 = arith.constant 0 : i32
    %0 = arith.cmpi eq, %arg2, %c0_i32 : i32
    %1 = arith.extui %0 : i1 to i32
    %c0_i32_0 = arith.constant 0 : i32
    %2 = arith.cmpi ne, %1, %c0_i32_0 : i32
    scf.if %2 {
      %cst_9 = arith.constant 0.000000e+00 : f32
      %12 = vector.broadcast %cst_9 : f32 to vector<8x128xf32>
      %c0_10 = arith.constant 0 : index
      %c0_11 = arith.constant 0 : index
      %13 = vector.load %arg7[%c0_10, %c0_11] : memref<8x128xf32, #tpu.memory_space<vmem>>, vector<8x128xf32>
      tpu.vector_store %arg7[%c0_10, %c0_11], %12 {strides = array<i32>} : memref<8x128xf32, #tpu.memory_space<vmem>>, vector<8x128xf32>,
    } else {
    }
    %c0 = arith.constant 0 : index
    %c0_1 = arith.constant 0 : index
    %3 = vector.load %arg7[%c0, %c0_1] : memref<8x128xf32, #tpu.memory_space<vmem>>, vector<8x128xf32>
    %c0_2 = arith.constant 0 : index
    %c0_3 = arith.constant 0 : index
    %4 = vector.load %arg3[%c0_2, %c0_3] : memref<8x128xbf16, #tpu.memory_space<vmem>>, vector<8x128xbf16>
    %c0_4 = arith.constant 0 : index
    %c0_5 = arith.constant 0 : index
    %5 = vector.load %arg4[%c0_4, %c0_5] : memref<128x128xbf16, #tpu.memory_space<vmem>>, vector<128x128xbf16>
    %cst = arith.constant dense<0.000000e+00> : vector<8x128xf32>
    %6 = tpu.matmul %4, %5, %cst {dimension_numbers = #tpu.dot_dimension_numbers<[1], [0], [0], [1], [0, 0, 1, 1], [], []>} : vector<8x128xbf16>, vector<128x128xbf16>, vector<8x128xf32> -> vector<8x128xf32>
    %7 = arith.addf %3, %6 : vector<8x128xf32>
    %c0_6 = arith.constant 0 : index
    %c0_7 = arith.constant 0 : index
    %8 = vector.load %arg7[%c0_6, %c0_7] : memref<8x128xf32, #tpu.memory_space<vmem>>, vector<8x128xf32>
    tpu.vector_store %arg7[%c0_6, %c0_7], %7 {strides = array<i32>} : memref<8x128xf32, #tpu.memory_space<vmem>>, vector<8x128xf32>,
    %c1_i32 = arith.constant 1 : i32
    %9 = arith.cmpi eq, %arg2, %c1_i32 : i32
    %10 = arith.extui %9 : i1 to i32
    %c0_i32_8 = arith.constant 0 : i32
    %11 = arith.cmpi ne, %10, %c0_i32_8 : i32
    scf.if %11 {
      %c0_9 = arith.constant 0 : index
      %c0_10 = arith.constant 0 : index
      %12 = vector.load %arg7[%c0_9, %c0_10] : memref<8x128xf32, #tpu.memory_space<vmem>>, vector<8x128xf32>
      %c0_11 = arith.constant 0 : index
      %c0_12 = arith.constant 0 : index
      %13 = vector.load %arg5[%c0_11, %c0_12] : memref<1x128xf32, #tpu.memory_space<vmem>>, vector<1x128xf32>
      %14 = vector.broadcast %13 : vector<1x128xf32> to vector<8x128xf32>
      %15 = arith.addf %12, %14 : vector<8x128xf32>
      %cst_13 = arith.constant 0.000000e+00 : f32
      %16 = vector.broadcast %cst_13 : f32 to vector<8x128xf32>
      %17 = arith.maximumf %15, %16 : vector<8x128xf32>
      %18 = arith.truncf %17 : vector<8x128xf32> to vector<8x128xbf16>
      %c0_14 = arith.constant 0 : index
      %c0_15 = arith.constant 0 : index
      %19 = vector.load %arg6[%c0_14, %c0_15] : memref<8x128xbf16, #tpu.memory_space<vmem>>, vector<8x128xbf16>
      tpu.vector_store %arg6[%c0_14, %c0_15], %18 {strides = array<i32>} : memref<8x128xbf16, #tpu.memory_space<vmem>>, vector<8x128xbf16>,
    } else {
    }
    return
  }
  func.func @transform_0(%arg0: i32, %arg1: i32, %arg2: i32) -> (i32, i32) {
    %c0_i32 = arith.constant 0 : i32
    return %arg0, %arg2 : i32, i32
  }
  func.func @transform_1(%arg0: i32, %arg1: i32, %arg2: i32) -> (i32, i32) {
    %c0_i32 = arith.constant 0 : i32
    return %arg2, %arg1 : i32, i32
  }
  func.func @transform_2(%arg0: i32, %arg1: i32, %arg2: i32) -> (i32, i32) {
    %c0_i32 = arith.constant 0 : i32
    %c0_i32_0 = arith.constant 0 : i32
    return %c0_i32, %arg1 : i32, i32
  }
  func.func @transform_3(%arg0: i32, %arg1: i32, %arg2: i32) -> (i32, i32) {
    %c0_i32 = arith.constant 0 : i32
    return %arg0, %arg1 : i32, i32
  }
}

module attributes {stable_mosaic.version = 11 : i64} {
  func.func @_se_kernel(%arg0: i32, %arg1: memref<1x8x256xbf16, #tpu.memory_space<vmem>>, %arg2: memref<256x128xbf16, #tpu.memory_space<vmem>>, %arg3: memref<1x128xf32, #tpu.memory_space<vmem>>, %arg4: memref<128x256xbf16, #tpu.memory_space<vmem>>, %arg5: memref<1x256xf32, #tpu.memory_space<vmem>>, %arg6: memref<1x8x256xbf16, #tpu.memory_space<vmem>>) attributes {dimension_semantics = [#tpu.dimension_semantics<parallel>], iteration_bounds = array<i64: 2>, scalar_prefetch = 0 : i64, scratch_operands = 0 : i64, tpu.core_type = #tpu.core_type<tc>, window_params = [{transform_indices = @transform_0, window_bounds = array<i64: 1, 8, 256>}, {pipeline_mode = #tpu.pipeline_mode<synchronous>, transform_indices = @transform_1, window_bounds = array<i64: 256, 128>}, {pipeline_mode = #tpu.pipeline_mode<synchronous>, transform_indices = @transform_2, window_bounds = array<i64: 1, 128>}, {pipeline_mode = #tpu.pipeline_mode<synchronous>, transform_indices = @transform_3, window_bounds = array<i64: 128, 256>}, {pipeline_mode = #tpu.pipeline_mode<synchronous>, transform_indices = @transform_4, window_bounds = array<i64: 1, 256>}, {transform_indices = @transform_5, window_bounds = array<i64: 1, 8, 256>}]} {
    %c0 = arith.constant 0 : index
    %c0_0 = arith.constant 0 : index
    %c0_1 = arith.constant 0 : index
    %0 = vector.load %arg1[%c0, %c0_0, %c0_1] : memref<1x8x256xbf16, #tpu.memory_space<vmem>>, vector<1x8x256xbf16>
    %1 = arith.extf %0 : vector<1x8x256xbf16> to vector<1x8x256xf32>
    %cst = arith.constant dense<0.000000e+00> : vector<1x256xf32>
    %2 = vector.multi_reduction <add>, %1, %cst [1] : vector<1x8x256xf32> to vector<1x256xf32>
    %cst_2 = arith.constant 2.500000e-01 : f32
    %3 = vector.broadcast %cst_2 : f32 to vector<1x256xf32>
    %4 = arith.mulf %2, %3 : vector<1x256xf32>
    %5 = vector.shape_cast %4 : vector<1x256xf32> to vector<1x256xf32>
    %6 = vector.broadcast %5 : vector<1x256xf32> to vector<8x256xf32>
    %7 = arith.truncf %6 : vector<8x256xf32> to vector<8x256xbf16>
    %c0_3 = arith.constant 0 : index
    %c0_4 = arith.constant 0 : index
    %8 = vector.load %arg2[%c0_3, %c0_4] : memref<256x128xbf16, #tpu.memory_space<vmem>>, vector<256x128xbf16>
    %cst_5 = arith.constant dense<0.000000e+00> : vector<8x128xf32>
    %9 = tpu.matmul %7, %8, %cst_5 {dimension_numbers = #tpu.dot_dimension_numbers<[1], [0], [0], [1], [0, 0, 1, 1], [], []>} : vector<8x256xbf16>, vector<256x128xbf16>, vector<8x128xf32> -> vector<8x128xf32>
    %c0_6 = arith.constant 0 : index
    %c0_7 = arith.constant 0 : index
    %10 = vector.load %arg3[%c0_6, %c0_7] : memref<1x128xf32, #tpu.memory_space<vmem>>, vector<1x128xf32>
    %11 = vector.broadcast %10 : vector<1x128xf32> to vector<8x128xf32>
    %12 = arith.addf %9, %11 : vector<8x128xf32>
    %cst_8 = arith.constant 0.000000e+00 : f32
    %13 = vector.broadcast %cst_8 : f32 to vector<8x128xf32>
    %14 = arith.maximumf %12, %13 : vector<8x128xf32>
    %15 = arith.truncf %14 : vector<8x128xf32> to vector<8x128xbf16>
    %c0_9 = arith.constant 0 : index
    %c0_10 = arith.constant 0 : index
    %16 = vector.load %arg4[%c0_9, %c0_10] : memref<128x256xbf16, #tpu.memory_space<vmem>>, vector<128x256xbf16>
    %cst_11 = arith.constant dense<0.000000e+00> : vector<8x256xf32>
    %17 = tpu.matmul %15, %16, %cst_11 {dimension_numbers = #tpu.dot_dimension_numbers<[1], [0], [0], [1], [0, 0, 1, 1], [], []>} : vector<8x128xbf16>, vector<128x256xbf16>, vector<8x256xf32> -> vector<8x256xf32>
    %c0_12 = arith.constant 0 : index
    %c0_13 = arith.constant 0 : index
    %18 = vector.load %arg5[%c0_12, %c0_13] : memref<1x256xf32, #tpu.memory_space<vmem>>, vector<1x256xf32>
    %19 = vector.broadcast %18 : vector<1x256xf32> to vector<8x256xf32>
    %20 = arith.addf %17, %19 : vector<8x256xf32>
    %cst_14 = arith.constant 0.000000e+00 : f32
    %21 = vector.broadcast %cst_14 : f32 to vector<8x256xf32>
    %22 = arith.subf %21, %20 : vector<8x256xf32>
    %23 = math.exp %22 : vector<8x256xf32>
    %cst_15 = arith.constant 1.000000e+00 : f32
    %24 = vector.broadcast %cst_15 : f32 to vector<8x256xf32>
    %25 = arith.addf %24, %23 : vector<8x256xf32>
    %cst_16 = arith.constant 1.000000e+00 : f32
    %26 = vector.broadcast %cst_16 : f32 to vector<8x256xf32>
    %27 = arith.divf %26, %25 : vector<8x256xf32>
    %28 = vector.extract_strided_slice %27 {offsets = [0, 0], sizes = [1, 256], strides = [1, 1]} : vector<8x256xf32> to vector<1x256xf32>
    %29 = vector.shape_cast %28 : vector<1x256xf32> to vector<1x1x256xf32>
    %30 = vector.broadcast %29 : vector<1x1x256xf32> to vector<1x8x256xf32>
    %31 = arith.mulf %1, %30 : vector<1x8x256xf32>
    %32 = arith.truncf %31 : vector<1x8x256xf32> to vector<1x8x256xbf16>
    %c0_17 = arith.constant 0 : index
    %c0_18 = arith.constant 0 : index
    %c0_19 = arith.constant 0 : index
    %33 = vector.load %arg6[%c0_17, %c0_18, %c0_19] : memref<1x8x256xbf16, #tpu.memory_space<vmem>>, vector<1x8x256xbf16>
    tpu.vector_store %arg6[%c0_17, %c0_18, %c0_19], %32 {strides = array<i32>} : memref<1x8x256xbf16, #tpu.memory_space<vmem>>, vector<1x8x256xbf16>,
    return
  }
  func.func @transform_0(%arg0: i32) -> (i32, i32, i32) {
    %c0_i32 = arith.constant 0 : i32
    %c0_i32_0 = arith.constant 0 : i32
    %c0_i32_1 = arith.constant 0 : i32
    return %arg0, %c0_i32, %c0_i32_0 : i32, i32, i32
  }
  func.func @transform_1(%arg0: i32) -> (i32, i32) {
    %c0_i32 = arith.constant 0 : i32
    %c0_i32_0 = arith.constant 0 : i32
    %c0_i32_1 = arith.constant 0 : i32
    return %c0_i32, %c0_i32_0 : i32, i32
  }
  func.func @transform_2(%arg0: i32) -> (i32, i32) {
    %c0_i32 = arith.constant 0 : i32
    %c0_i32_0 = arith.constant 0 : i32
    %c0_i32_1 = arith.constant 0 : i32
    return %c0_i32, %c0_i32_0 : i32, i32
  }
  func.func @transform_3(%arg0: i32) -> (i32, i32) {
    %c0_i32 = arith.constant 0 : i32
    %c0_i32_0 = arith.constant 0 : i32
    %c0_i32_1 = arith.constant 0 : i32
    return %c0_i32, %c0_i32_0 : i32, i32
  }
  func.func @transform_4(%arg0: i32) -> (i32, i32) {
    %c0_i32 = arith.constant 0 : i32
    %c0_i32_0 = arith.constant 0 : i32
    %c0_i32_1 = arith.constant 0 : i32
    return %c0_i32, %c0_i32_0 : i32, i32
  }
  func.func @transform_5(%arg0: i32) -> (i32, i32, i32) {
    %c0_i32 = arith.constant 0 : i32
    %c0_i32_0 = arith.constant 0 : i32
    %c0_i32_1 = arith.constant 0 : i32
    return %arg0, %c0_i32, %c0_i32_0 : i32, i32, i32
  }
}

module attributes {stable_mosaic.version = 11 : i64} {
  func.func @_mm_kernel(%arg0: i32, %arg1: i32, %arg2: i32, %arg3: memref<8x128xbf16, #tpu.memory_space<vmem>>, %arg4: memref<128x128xbf16, #tpu.memory_space<vmem>>, %arg5: memref<1x128xf32, #tpu.memory_space<vmem>>, %arg6: memref<8x128xbf16, #tpu.memory_space<vmem>>, %arg7: memref<8x128xf32, #tpu.memory_space<vmem>>) attributes {dimension_semantics = [#tpu.dimension_semantics<parallel>, #tpu.dimension_semantics<parallel>, #tpu.dimension_semantics<arbitrary>], iteration_bounds = array<i64: 1, 2, 9>, scalar_prefetch = 0 : i64, scratch_operands = 1 : i64, tpu.core_type = #tpu.core_type<tc>, window_params = [{transform_indices = @transform_0, window_bounds = array<i64: 8, 128>}, {transform_indices = @transform_1, window_bounds = array<i64: 128, 128>}, {transform_indices = @transform_2, window_bounds = array<i64: 1, 128>}, {transform_indices = @transform_3, window_bounds = array<i64: 8, 128>}]} {
    %c0_i32 = arith.constant 0 : i32
    %0 = arith.cmpi eq, %arg2, %c0_i32 : i32
    %1 = arith.extui %0 : i1 to i32
    %c0_i32_0 = arith.constant 0 : i32
    %2 = arith.cmpi ne, %1, %c0_i32_0 : i32
    scf.if %2 {
      %cst_9 = arith.constant 0.000000e+00 : f32
      %12 = vector.broadcast %cst_9 : f32 to vector<8x128xf32>
      %c0_10 = arith.constant 0 : index
      %c0_11 = arith.constant 0 : index
      %13 = vector.load %arg7[%c0_10, %c0_11] : memref<8x128xf32, #tpu.memory_space<vmem>>, vector<8x128xf32>
      tpu.vector_store %arg7[%c0_10, %c0_11], %12 {strides = array<i32>} : memref<8x128xf32, #tpu.memory_space<vmem>>, vector<8x128xf32>,
    } else {
    }
    %c0 = arith.constant 0 : index
    %c0_1 = arith.constant 0 : index
    %3 = vector.load %arg7[%c0, %c0_1] : memref<8x128xf32, #tpu.memory_space<vmem>>, vector<8x128xf32>
    %c0_2 = arith.constant 0 : index
    %c0_3 = arith.constant 0 : index
    %4 = vector.load %arg3[%c0_2, %c0_3] : memref<8x128xbf16, #tpu.memory_space<vmem>>, vector<8x128xbf16>
    %c0_4 = arith.constant 0 : index
    %c0_5 = arith.constant 0 : index
    %5 = vector.load %arg4[%c0_4, %c0_5] : memref<128x128xbf16, #tpu.memory_space<vmem>>, vector<128x128xbf16>
    %cst = arith.constant dense<0.000000e+00> : vector<8x128xf32>
    %6 = tpu.matmul %4, %5, %cst {dimension_numbers = #tpu.dot_dimension_numbers<[1], [0], [0], [1], [0, 0, 1, 1], [], []>} : vector<8x128xbf16>, vector<128x128xbf16>, vector<8x128xf32> -> vector<8x128xf32>
    %7 = arith.addf %3, %6 : vector<8x128xf32>
    %c0_6 = arith.constant 0 : index
    %c0_7 = arith.constant 0 : index
    %8 = vector.load %arg7[%c0_6, %c0_7] : memref<8x128xf32, #tpu.memory_space<vmem>>, vector<8x128xf32>
    tpu.vector_store %arg7[%c0_6, %c0_7], %7 {strides = array<i32>} : memref<8x128xf32, #tpu.memory_space<vmem>>, vector<8x128xf32>,
    %c8_i32 = arith.constant 8 : i32
    %9 = arith.cmpi eq, %arg2, %c8_i32 : i32
    %10 = arith.extui %9 : i1 to i32
    %c0_i32_8 = arith.constant 0 : i32
    %11 = arith.cmpi ne, %10, %c0_i32_8 : i32
    scf.if %11 {
      %c0_9 = arith.constant 0 : index
      %c0_10 = arith.constant 0 : index
      %12 = vector.load %arg7[%c0_9, %c0_10] : memref<8x128xf32, #tpu.memory_space<vmem>>, vector<8x128xf32>
      %c0_11 = arith.constant 0 : index
      %c0_12 = arith.constant 0 : index
      %13 = vector.load %arg5[%c0_11, %c0_12] : memref<1x128xf32, #tpu.memory_space<vmem>>, vector<1x128xf32>
      %14 = vector.broadcast %13 : vector<1x128xf32> to vector<8x128xf32>
      %15 = arith.addf %12, %14 : vector<8x128xf32>
      %cst_13 = arith.constant 0.000000e+00 : f32
      %16 = vector.broadcast %cst_13 : f32 to vector<8x128xf32>
      %17 = arith.maximumf %15, %16 : vector<8x128xf32>
      %18 = arith.truncf %17 : vector<8x128xf32> to vector<8x128xbf16>
      %c0_14 = arith.constant 0 : index
      %c0_15 = arith.constant 0 : index
      %19 = vector.load %arg6[%c0_14, %c0_15] : memref<8x128xbf16, #tpu.memory_space<vmem>>, vector<8x128xbf16>
      tpu.vector_store %arg6[%c0_14, %c0_15], %18 {strides = array<i32>} : memref<8x128xbf16, #tpu.memory_space<vmem>>, vector<8x128xbf16>,
    } else {
    }
    return
  }
  func.func @transform_0(%arg0: i32, %arg1: i32, %arg2: i32) -> (i32, i32) {
    %c9_i32 = arith.constant 9 : i32
    %0 = arith.muli %arg1, %c9_i32 : i32
    %1 = arith.addi %0, %arg2 : i32
    %c0_i32 = arith.constant 0 : i32
    return %arg0, %1 : i32, i32
  }
  func.func @transform_1(%arg0: i32, %arg1: i32, %arg2: i32) -> (i32, i32) {
    %c9_i32 = arith.constant 9 : i32
    %0 = arith.muli %arg1, %c9_i32 : i32
    %1 = arith.addi %0, %arg2 : i32
    %c0_i32 = arith.constant 0 : i32
    return %1, %arg1 : i32, i32
  }
  func.func @transform_2(%arg0: i32, %arg1: i32, %arg2: i32) -> (i32, i32) {
    %c0_i32 = arith.constant 0 : i32
    %c0_i32_0 = arith.constant 0 : i32
    return %c0_i32, %arg1 : i32, i32
  }
  func.func @transform_3(%arg0: i32, %arg1: i32, %arg2: i32) -> (i32, i32) {
    %c0_i32 = arith.constant 0 : i32
    return %arg0, %arg1 : i32, i32
  }
}

module attributes {stable_mosaic.version = 11 : i64} {
  func.func @_mm_kernel(%arg0: i32, %arg1: i32, %arg2: i32, %arg3: memref<8x128xbf16, #tpu.memory_space<vmem>>, %arg4: memref<128x128xbf16, #tpu.memory_space<vmem>>, %arg5: memref<1x128xf32, #tpu.memory_space<vmem>>, %arg6: memref<8x128xbf16, #tpu.memory_space<vmem>>, %arg7: memref<8x128xf32, #tpu.memory_space<vmem>>) attributes {dimension_semantics = [#tpu.dimension_semantics<parallel>, #tpu.dimension_semantics<parallel>, #tpu.dimension_semantics<arbitrary>], iteration_bounds = array<i64: 1, 4, 2>, scalar_prefetch = 0 : i64, scratch_operands = 1 : i64, tpu.core_type = #tpu.core_type<tc>, window_params = [{transform_indices = @transform_0, window_bounds = array<i64: 8, 128>}, {transform_indices = @transform_1, window_bounds = array<i64: 128, 128>}, {transform_indices = @transform_2, window_bounds = array<i64: 1, 128>}, {transform_indices = @transform_3, window_bounds = array<i64: 8, 128>}]} {
    %c0_i32 = arith.constant 0 : i32
    %0 = arith.cmpi eq, %arg2, %c0_i32 : i32
    %1 = arith.extui %0 : i1 to i32
    %c0_i32_0 = arith.constant 0 : i32
    %2 = arith.cmpi ne, %1, %c0_i32_0 : i32
    scf.if %2 {
      %cst_9 = arith.constant 0.000000e+00 : f32
      %12 = vector.broadcast %cst_9 : f32 to vector<8x128xf32>
      %c0_10 = arith.constant 0 : index
      %c0_11 = arith.constant 0 : index
      %13 = vector.load %arg7[%c0_10, %c0_11] : memref<8x128xf32, #tpu.memory_space<vmem>>, vector<8x128xf32>
      tpu.vector_store %arg7[%c0_10, %c0_11], %12 {strides = array<i32>} : memref<8x128xf32, #tpu.memory_space<vmem>>, vector<8x128xf32>,
    } else {
    }
    %c0 = arith.constant 0 : index
    %c0_1 = arith.constant 0 : index
    %3 = vector.load %arg7[%c0, %c0_1] : memref<8x128xf32, #tpu.memory_space<vmem>>, vector<8x128xf32>
    %c0_2 = arith.constant 0 : index
    %c0_3 = arith.constant 0 : index
    %4 = vector.load %arg3[%c0_2, %c0_3] : memref<8x128xbf16, #tpu.memory_space<vmem>>, vector<8x128xbf16>
    %c0_4 = arith.constant 0 : index
    %c0_5 = arith.constant 0 : index
    %5 = vector.load %arg4[%c0_4, %c0_5] : memref<128x128xbf16, #tpu.memory_space<vmem>>, vector<128x128xbf16>
    %cst = arith.constant dense<0.000000e+00> : vector<8x128xf32>
    %6 = tpu.matmul %4, %5, %cst {dimension_numbers = #tpu.dot_dimension_numbers<[1], [0], [0], [1], [0, 0, 1, 1], [], []>} : vector<8x128xbf16>, vector<128x128xbf16>, vector<8x128xf32> -> vector<8x128xf32>
    %7 = arith.addf %3, %6 : vector<8x128xf32>
    %c0_6 = arith.constant 0 : index
    %c0_7 = arith.constant 0 : index
    %8 = vector.load %arg7[%c0_6, %c0_7] : memref<8x128xf32, #tpu.memory_space<vmem>>, vector<8x128xf32>
    tpu.vector_store %arg7[%c0_6, %c0_7], %7 {strides = array<i32>} : memref<8x128xf32, #tpu.memory_space<vmem>>, vector<8x128xf32>,
    %c1_i32 = arith.constant 1 : i32
    %9 = arith.cmpi eq, %arg2, %c1_i32 : i32
    %10 = arith.extui %9 : i1 to i32
    %c0_i32_8 = arith.constant 0 : i32
    %11 = arith.cmpi ne, %10, %c0_i32_8 : i32
    scf.if %11 {
      %c0_9 = arith.constant 0 : index
      %c0_10 = arith.constant 0 : index
      %12 = vector.load %arg7[%c0_9, %c0_10] : memref<8x128xf32, #tpu.memory_space<vmem>>, vector<8x128xf32>
      %c0_11 = arith.constant 0 : index
      %c0_12 = arith.constant 0 : index
      %13 = vector.load %arg5[%c0_11, %c0_12] : memref<1x128xf32, #tpu.memory_space<vmem>>, vector<1x128xf32>
      %14 = vector.broadcast %13 : vector<1x128xf32> to vector<8x128xf32>
      %15 = arith.addf %12, %14 : vector<8x128xf32>
      %cst_13 = arith.constant 0.000000e+00 : f32
      %16 = vector.broadcast %cst_13 : f32 to vector<8x128xf32>
      %17 = arith.maximumf %15, %16 : vector<8x128xf32>
      %18 = arith.truncf %17 : vector<8x128xf32> to vector<8x128xbf16>
      %c0_14 = arith.constant 0 : index
      %c0_15 = arith.constant 0 : index
      %19 = vector.load %arg6[%c0_14, %c0_15] : memref<8x128xbf16, #tpu.memory_space<vmem>>, vector<8x128xbf16>
      tpu.vector_store %arg6[%c0_14, %c0_15], %18 {strides = array<i32>} : memref<8x128xbf16, #tpu.memory_space<vmem>>, vector<8x128xbf16>,
    } else {
    }
    return
  }
  func.func @transform_0(%arg0: i32, %arg1: i32, %arg2: i32) -> (i32, i32) {
    %c0_i32 = arith.constant 0 : i32
    return %arg0, %arg2 : i32, i32
  }
  func.func @transform_1(%arg0: i32, %arg1: i32, %arg2: i32) -> (i32, i32) {
    %c0_i32 = arith.constant 0 : i32
    return %arg2, %arg1 : i32, i32
  }
  func.func @transform_2(%arg0: i32, %arg1: i32, %arg2: i32) -> (i32, i32) {
    %c0_i32 = arith.constant 0 : i32
    %c0_i32_0 = arith.constant 0 : i32
    return %c0_i32, %arg1 : i32, i32
  }
  func.func @transform_3(%arg0: i32, %arg1: i32, %arg2: i32) -> (i32, i32) {
    %c0_i32 = arith.constant 0 : i32
    return %arg0, %arg1 : i32, i32
  }
}

module attributes {stable_mosaic.version = 11 : i64} {
  func.func @_mm_kernel(%arg0: i32, %arg1: i32, %arg2: i32, %arg3: memref<8x128xbf16, #tpu.memory_space<vmem>>, %arg4: memref<128x128xbf16, #tpu.memory_space<vmem>>, %arg5: memref<1x128xf32, #tpu.memory_space<vmem>>, %arg6: memref<8x128xbf16, #tpu.memory_space<vmem>>, %arg7: memref<8x128xf32, #tpu.memory_space<vmem>>) attributes {dimension_semantics = [#tpu.dimension_semantics<parallel>, #tpu.dimension_semantics<parallel>, #tpu.dimension_semantics<arbitrary>], iteration_bounds = array<i64: 1, 4, 9>, scalar_prefetch = 0 : i64, scratch_operands = 1 : i64, tpu.core_type = #tpu.core_type<tc>, window_params = [{transform_indices = @transform_0, window_bounds = array<i64: 8, 128>}, {transform_indices = @transform_1, window_bounds = array<i64: 128, 128>}, {transform_indices = @transform_2, window_bounds = array<i64: 1, 128>}, {transform_indices = @transform_3, window_bounds = array<i64: 8, 128>}]} {
    %c0_i32 = arith.constant 0 : i32
    %0 = arith.cmpi eq, %arg2, %c0_i32 : i32
    %1 = arith.extui %0 : i1 to i32
    %c0_i32_0 = arith.constant 0 : i32
    %2 = arith.cmpi ne, %1, %c0_i32_0 : i32
    scf.if %2 {
      %cst_9 = arith.constant 0.000000e+00 : f32
      %12 = vector.broadcast %cst_9 : f32 to vector<8x128xf32>
      %c0_10 = arith.constant 0 : index
      %c0_11 = arith.constant 0 : index
      %13 = vector.load %arg7[%c0_10, %c0_11] : memref<8x128xf32, #tpu.memory_space<vmem>>, vector<8x128xf32>
      tpu.vector_store %arg7[%c0_10, %c0_11], %12 {strides = array<i32>} : memref<8x128xf32, #tpu.memory_space<vmem>>, vector<8x128xf32>,
    } else {
    }
    %c0 = arith.constant 0 : index
    %c0_1 = arith.constant 0 : index
    %3 = vector.load %arg7[%c0, %c0_1] : memref<8x128xf32, #tpu.memory_space<vmem>>, vector<8x128xf32>
    %c0_2 = arith.constant 0 : index
    %c0_3 = arith.constant 0 : index
    %4 = vector.load %arg3[%c0_2, %c0_3] : memref<8x128xbf16, #tpu.memory_space<vmem>>, vector<8x128xbf16>
    %c0_4 = arith.constant 0 : index
    %c0_5 = arith.constant 0 : index
    %5 = vector.load %arg4[%c0_4, %c0_5] : memref<128x128xbf16, #tpu.memory_space<vmem>>, vector<128x128xbf16>
    %cst = arith.constant dense<0.000000e+00> : vector<8x128xf32>
    %6 = tpu.matmul %4, %5, %cst {dimension_numbers = #tpu.dot_dimension_numbers<[1], [0], [0], [1], [0, 0, 1, 1], [], []>} : vector<8x128xbf16>, vector<128x128xbf16>, vector<8x128xf32> -> vector<8x128xf32>
    %7 = arith.addf %3, %6 : vector<8x128xf32>
    %c0_6 = arith.constant 0 : index
    %c0_7 = arith.constant 0 : index
    %8 = vector.load %arg7[%c0_6, %c0_7] : memref<8x128xf32, #tpu.memory_space<vmem>>, vector<8x128xf32>
    tpu.vector_store %arg7[%c0_6, %c0_7], %7 {strides = array<i32>} : memref<8x128xf32, #tpu.memory_space<vmem>>, vector<8x128xf32>,
    %c8_i32 = arith.constant 8 : i32
    %9 = arith.cmpi eq, %arg2, %c8_i32 : i32
    %10 = arith.extui %9 : i1 to i32
    %c0_i32_8 = arith.constant 0 : i32
    %11 = arith.cmpi ne, %10, %c0_i32_8 : i32
    scf.if %11 {
      %c0_9 = arith.constant 0 : index
      %c0_10 = arith.constant 0 : index
      %12 = vector.load %arg7[%c0_9, %c0_10] : memref<8x128xf32, #tpu.memory_space<vmem>>, vector<8x128xf32>
      %c0_11 = arith.constant 0 : index
      %c0_12 = arith.constant 0 : index
      %13 = vector.load %arg5[%c0_11, %c0_12] : memref<1x128xf32, #tpu.memory_space<vmem>>, vector<1x128xf32>
      %14 = vector.broadcast %13 : vector<1x128xf32> to vector<8x128xf32>
      %15 = arith.addf %12, %14 : vector<8x128xf32>
      %cst_13 = arith.constant 0.000000e+00 : f32
      %16 = vector.broadcast %cst_13 : f32 to vector<8x128xf32>
      %17 = arith.maximumf %15, %16 : vector<8x128xf32>
      %18 = arith.truncf %17 : vector<8x128xf32> to vector<8x128xbf16>
      %c0_14 = arith.constant 0 : index
      %c0_15 = arith.constant 0 : index
      %19 = vector.load %arg6[%c0_14, %c0_15] : memref<8x128xbf16, #tpu.memory_space<vmem>>, vector<8x128xbf16>
      tpu.vector_store %arg6[%c0_14, %c0_15], %18 {strides = array<i32>} : memref<8x128xbf16, #tpu.memory_space<vmem>>, vector<8x128xbf16>,
    } else {
    }
    return
  }
  func.func @transform_0(%arg0: i32, %arg1: i32, %arg2: i32) -> (i32, i32) {
    %c9_i32 = arith.constant 9 : i32
    %0 = arith.muli %arg1, %c9_i32 : i32
    %1 = arith.addi %0, %arg2 : i32
    %c0_i32 = arith.constant 0 : i32
    return %arg0, %1 : i32, i32
  }
  func.func @transform_1(%arg0: i32, %arg1: i32, %arg2: i32) -> (i32, i32) {
    %c9_i32 = arith.constant 9 : i32
    %0 = arith.muli %arg1, %c9_i32 : i32
    %1 = arith.addi %0, %arg2 : i32
    %c0_i32 = arith.constant 0 : i32
    return %1, %arg1 : i32, i32
  }
  func.func @transform_2(%arg0: i32, %arg1: i32, %arg2: i32) -> (i32, i32) {
    %c0_i32 = arith.constant 0 : i32
    %c0_i32_0 = arith.constant 0 : i32
    return %c0_i32, %arg1 : i32, i32
  }
  func.func @transform_3(%arg0: i32, %arg1: i32, %arg2: i32) -> (i32, i32) {
    %c0_i32 = arith.constant 0 : i32
    return %arg0, %arg1 : i32, i32
  }
}

module attributes {stable_mosaic.version = 11 : i64} {
  func.func @_se_kernel(%arg0: i32, %arg1: memref<1x8x512xbf16, #tpu.memory_space<vmem>>, %arg2: memref<512x128xbf16, #tpu.memory_space<vmem>>, %arg3: memref<1x128xf32, #tpu.memory_space<vmem>>, %arg4: memref<128x512xbf16, #tpu.memory_space<vmem>>, %arg5: memref<1x512xf32, #tpu.memory_space<vmem>>, %arg6: memref<1x8x512xbf16, #tpu.memory_space<vmem>>) attributes {dimension_semantics = [#tpu.dimension_semantics<parallel>], iteration_bounds = array<i64: 2>, scalar_prefetch = 0 : i64, scratch_operands = 0 : i64, tpu.core_type = #tpu.core_type<tc>, window_params = [{transform_indices = @transform_0, window_bounds = array<i64: 1, 8, 512>}, {pipeline_mode = #tpu.pipeline_mode<synchronous>, transform_indices = @transform_1, window_bounds = array<i64: 512, 128>}, {pipeline_mode = #tpu.pipeline_mode<synchronous>, transform_indices = @transform_2, window_bounds = array<i64: 1, 128>}, {pipeline_mode = #tpu.pipeline_mode<synchronous>, transform_indices = @transform_3, window_bounds = array<i64: 128, 512>}, {pipeline_mode = #tpu.pipeline_mode<synchronous>, transform_indices = @transform_4, window_bounds = array<i64: 1, 512>}, {transform_indices = @transform_5, window_bounds = array<i64: 1, 8, 512>}]} {
    %c0 = arith.constant 0 : index
    %c0_0 = arith.constant 0 : index
    %c0_1 = arith.constant 0 : index
    %0 = vector.load %arg1[%c0, %c0_0, %c0_1] : memref<1x8x512xbf16, #tpu.memory_space<vmem>>, vector<1x8x512xbf16>
    %1 = arith.extf %0 : vector<1x8x512xbf16> to vector<1x8x512xf32>
    %cst = arith.constant dense<0.000000e+00> : vector<1x512xf32>
    %2 = vector.multi_reduction <add>, %1, %cst [1] : vector<1x8x512xf32> to vector<1x512xf32>
    %cst_2 = arith.constant 1.000000e+00 : f32
    %3 = vector.broadcast %cst_2 : f32 to vector<1x512xf32>
    %4 = arith.mulf %2, %3 : vector<1x512xf32>
    %5 = vector.shape_cast %4 : vector<1x512xf32> to vector<1x512xf32>
    %6 = vector.broadcast %5 : vector<1x512xf32> to vector<8x512xf32>
    %7 = arith.truncf %6 : vector<8x512xf32> to vector<8x512xbf16>
    %c0_3 = arith.constant 0 : index
    %c0_4 = arith.constant 0 : index
    %8 = vector.load %arg2[%c0_3, %c0_4] : memref<512x128xbf16, #tpu.memory_space<vmem>>, vector<512x128xbf16>
    %cst_5 = arith.constant dense<0.000000e+00> : vector<8x128xf32>
    %9 = tpu.matmul %7, %8, %cst_5 {dimension_numbers = #tpu.dot_dimension_numbers<[1], [0], [0], [1], [0, 0, 1, 1], [], []>} : vector<8x512xbf16>, vector<512x128xbf16>, vector<8x128xf32> -> vector<8x128xf32>
    %c0_6 = arith.constant 0 : index
    %c0_7 = arith.constant 0 : index
    %10 = vector.load %arg3[%c0_6, %c0_7] : memref<1x128xf32, #tpu.memory_space<vmem>>, vector<1x128xf32>
    %11 = vector.broadcast %10 : vector<1x128xf32> to vector<8x128xf32>
    %12 = arith.addf %9, %11 : vector<8x128xf32>
    %cst_8 = arith.constant 0.000000e+00 : f32
    %13 = vector.broadcast %cst_8 : f32 to vector<8x128xf32>
    %14 = arith.maximumf %12, %13 : vector<8x128xf32>
    %15 = arith.truncf %14 : vector<8x128xf32> to vector<8x128xbf16>
    %c0_9 = arith.constant 0 : index
    %c0_10 = arith.constant 0 : index
    %16 = vector.load %arg4[%c0_9, %c0_10] : memref<128x512xbf16, #tpu.memory_space<vmem>>, vector<128x512xbf16>
    %cst_11 = arith.constant dense<0.000000e+00> : vector<8x512xf32>
    %17 = tpu.matmul %15, %16, %cst_11 {dimension_numbers = #tpu.dot_dimension_numbers<[1], [0], [0], [1], [0, 0, 1, 1], [], []>} : vector<8x128xbf16>, vector<128x512xbf16>, vector<8x512xf32> -> vector<8x512xf32>
    %c0_12 = arith.constant 0 : index
    %c0_13 = arith.constant 0 : index
    %18 = vector.load %arg5[%c0_12, %c0_13] : memref<1x512xf32, #tpu.memory_space<vmem>>, vector<1x512xf32>
    %19 = vector.broadcast %18 : vector<1x512xf32> to vector<8x512xf32>
    %20 = arith.addf %17, %19 : vector<8x512xf32>
    %cst_14 = arith.constant 0.000000e+00 : f32
    %21 = vector.broadcast %cst_14 : f32 to vector<8x512xf32>
    %22 = arith.subf %21, %20 : vector<8x512xf32>
    %23 = math.exp %22 : vector<8x512xf32>
    %cst_15 = arith.constant 1.000000e+00 : f32
    %24 = vector.broadcast %cst_15 : f32 to vector<8x512xf32>
    %25 = arith.addf %24, %23 : vector<8x512xf32>
    %cst_16 = arith.constant 1.000000e+00 : f32
    %26 = vector.broadcast %cst_16 : f32 to vector<8x512xf32>
    %27 = arith.divf %26, %25 : vector<8x512xf32>
    %28 = vector.extract_strided_slice %27 {offsets = [0, 0], sizes = [1, 512], strides = [1, 1]} : vector<8x512xf32> to vector<1x512xf32>
    %29 = vector.shape_cast %28 : vector<1x512xf32> to vector<1x1x512xf32>
    %30 = vector.broadcast %29 : vector<1x1x512xf32> to vector<1x8x512xf32>
    %31 = arith.mulf %1, %30 : vector<1x8x512xf32>
    %32 = arith.truncf %31 : vector<1x8x512xf32> to vector<1x8x512xbf16>
    %c0_17 = arith.constant 0 : index
    %c0_18 = arith.constant 0 : index
    %c0_19 = arith.constant 0 : index
    %33 = vector.load %arg6[%c0_17, %c0_18, %c0_19] : memref<1x8x512xbf16, #tpu.memory_space<vmem>>, vector<1x8x512xbf16>
    tpu.vector_store %arg6[%c0_17, %c0_18, %c0_19], %32 {strides = array<i32>} : memref<1x8x512xbf16, #tpu.memory_space<vmem>>, vector<1x8x512xbf16>,
    return
  }
  func.func @transform_0(%arg0: i32) -> (i32, i32, i32) {
    %c0_i32 = arith.constant 0 : i32
    %c0_i32_0 = arith.constant 0 : i32
    %c0_i32_1 = arith.constant 0 : i32
    return %arg0, %c0_i32, %c0_i32_0 : i32, i32, i32
  }
  func.func @transform_1(%arg0: i32) -> (i32, i32) {
    %c0_i32 = arith.constant 0 : i32
    %c0_i32_0 = arith.constant 0 : i32
    %c0_i32_1 = arith.constant 0 : i32
    return %c0_i32, %c0_i32_0 : i32, i32
  }
  func.func @transform_2(%arg0: i32) -> (i32, i32) {
    %c0_i32 = arith.constant 0 : i32
    %c0_i32_0 = arith.constant 0 : i32
    %c0_i32_1 = arith.constant 0 : i32
    return %c0_i32, %c0_i32_0 : i32, i32
  }
  func.func @transform_3(%arg0: i32) -> (i32, i32) {
    %c0_i32 = arith.constant 0 : i32
    %c0_i32_0 = arith.constant 0 : i32
    %c0_i32_1 = arith.constant 0 : i32
    return %c0_i32, %c0_i32_0 : i32, i32
  }
  func.func @transform_4(%arg0: i32) -> (i32, i32) {
    %c0_i32 = arith.constant 0 : i32
    %c0_i32_0 = arith.constant 0 : i32
    %c0_i32_1 = arith.constant 0 : i32
    return %c0_i32, %c0_i32_0 : i32, i32
  }
  func.func @transform_5(%arg0: i32) -> (i32, i32, i32) {
    %c0_i32 = arith.constant 0 : i32
    %c0_i32_0 = arith.constant 0 : i32
    %c0_i32_1 = arith.constant 0 : i32
    return %arg0, %c0_i32, %c0_i32_0 : i32, i32, i32
  }
}

module attributes {stable_mosaic.version = 11 : i64} {
  func.func @_mm_kernel(%arg0: i32, %arg1: i32, %arg2: i32, %arg3: memref<8x128xbf16, #tpu.memory_space<vmem>>, %arg4: memref<128x128xbf16, #tpu.memory_space<vmem>>, %arg5: memref<1x128xf32, #tpu.memory_space<vmem>>, %arg6: memref<8x128xbf16, #tpu.memory_space<vmem>>, %arg7: memref<8x128xf32, #tpu.memory_space<vmem>>) attributes {dimension_semantics = [#tpu.dimension_semantics<parallel>, #tpu.dimension_semantics<parallel>, #tpu.dimension_semantics<arbitrary>], iteration_bounds = array<i64: 1, 4, 2>, scalar_prefetch = 0 : i64, scratch_operands = 1 : i64, tpu.core_type = #tpu.core_type<tc>, window_params = [{transform_indices = @transform_0, window_bounds = array<i64: 8, 128>}, {transform_indices = @transform_1, window_bounds = array<i64: 128, 128>}, {transform_indices = @transform_2, window_bounds = array<i64: 1, 128>}, {transform_indices = @transform_3, window_bounds = array<i64: 8, 128>}]} {
    %c0_i32 = arith.constant 0 : i32
    %0 = arith.cmpi eq, %arg2, %c0_i32 : i32
    %1 = arith.extui %0 : i1 to i32
    %c0_i32_0 = arith.constant 0 : i32
    %2 = arith.cmpi ne, %1, %c0_i32_0 : i32
    scf.if %2 {
      %cst_9 = arith.constant 0.000000e+00 : f32
      %12 = vector.broadcast %cst_9 : f32 to vector<8x128xf32>
      %c0_10 = arith.constant 0 : index
      %c0_11 = arith.constant 0 : index
      %13 = vector.load %arg7[%c0_10, %c0_11] : memref<8x128xf32, #tpu.memory_space<vmem>>, vector<8x128xf32>
      tpu.vector_store %arg7[%c0_10, %c0_11], %12 {strides = array<i32>} : memref<8x128xf32, #tpu.memory_space<vmem>>, vector<8x128xf32>,
    } else {
    }
    %c0 = arith.constant 0 : index
    %c0_1 = arith.constant 0 : index
    %3 = vector.load %arg7[%c0, %c0_1] : memref<8x128xf32, #tpu.memory_space<vmem>>, vector<8x128xf32>
    %c0_2 = arith.constant 0 : index
    %c0_3 = arith.constant 0 : index
    %4 = vector.load %arg3[%c0_2, %c0_3] : memref<8x128xbf16, #tpu.memory_space<vmem>>, vector<8x128xbf16>
    %c0_4 = arith.constant 0 : index
    %c0_5 = arith.constant 0 : index
    %5 = vector.load %arg4[%c0_4, %c0_5] : memref<128x128xbf16, #tpu.memory_space<vmem>>, vector<128x128xbf16>
    %cst = arith.constant dense<0.000000e+00> : vector<8x128xf32>
    %6 = tpu.matmul %4, %5, %cst {dimension_numbers = #tpu.dot_dimension_numbers<[1], [0], [0], [1], [0, 0, 1, 1], [], []>} : vector<8x128xbf16>, vector<128x128xbf16>, vector<8x128xf32> -> vector<8x128xf32>
    %7 = arith.addf %3, %6 : vector<8x128xf32>
    %c0_6 = arith.constant 0 : index
    %c0_7 = arith.constant 0 : index
    %8 = vector.load %arg7[%c0_6, %c0_7] : memref<8x128xf32, #tpu.memory_space<vmem>>, vector<8x128xf32>
    tpu.vector_store %arg7[%c0_6, %c0_7], %7 {strides = array<i32>} : memref<8x128xf32, #tpu.memory_space<vmem>>, vector<8x128xf32>,
    %c1_i32 = arith.constant 1 : i32
    %9 = arith.cmpi eq, %arg2, %c1_i32 : i32
    %10 = arith.extui %9 : i1 to i32
    %c0_i32_8 = arith.constant 0 : i32
    %11 = arith.cmpi ne, %10, %c0_i32_8 : i32
    scf.if %11 {
      %c0_9 = arith.constant 0 : index
      %c0_10 = arith.constant 0 : index
      %12 = vector.load %arg7[%c0_9, %c0_10] : memref<8x128xf32, #tpu.memory_space<vmem>>, vector<8x128xf32>
      %c0_11 = arith.constant 0 : index
      %c0_12 = arith.constant 0 : index
      %13 = vector.load %arg5[%c0_11, %c0_12] : memref<1x128xf32, #tpu.memory_space<vmem>>, vector<1x128xf32>
      %14 = vector.broadcast %13 : vector<1x128xf32> to vector<8x128xf32>
      %15 = arith.addf %12, %14 : vector<8x128xf32>
      %16 = arith.truncf %15 : vector<8x128xf32> to vector<8x128xbf16>
      %c0_13 = arith.constant 0 : index
      %c0_14 = arith.constant 0 : index
      %17 = vector.load %arg6[%c0_13, %c0_14] : memref<8x128xbf16, #tpu.memory_space<vmem>>, vector<8x128xbf16>
      tpu.vector_store %arg6[%c0_13, %c0_14], %16 {strides = array<i32>} : memref<8x128xbf16, #tpu.memory_space<vmem>>, vector<8x128xbf16>,
    } else {
    }
    return
  }
  func.func @transform_0(%arg0: i32, %arg1: i32, %arg2: i32) -> (i32, i32) {
    %c0_i32 = arith.constant 0 : i32
    return %arg0, %arg2 : i32, i32
  }
  func.func @transform_1(%arg0: i32, %arg1: i32, %arg2: i32) -> (i32, i32) {
    %c0_i32 = arith.constant 0 : i32
    return %arg2, %arg1 : i32, i32
  }
  func.func @transform_2(%arg0: i32, %arg1: i32, %arg2: i32) -> (i32, i32) {
    %c0_i32 = arith.constant 0 : i32
    %c0_i32_0 = arith.constant 0 : i32
    return %c0_i32, %arg1 : i32, i32
  }
  func.func @transform_3(%arg0: i32, %arg1: i32, %arg2: i32) -> (i32, i32) {
    %c0_i32 = arith.constant 0 : i32
    return %arg0, %arg1 : i32, i32
  }
}

module attributes {stable_mosaic.version = 11 : i64} {
  func.func @_mm_res_kernel(%arg0: i32, %arg1: i32, %arg2: i32, %arg3: memref<8x128xbf16, #tpu.memory_space<vmem>>, %arg4: memref<128x128xbf16, #tpu.memory_space<vmem>>, %arg5: memref<1x128xf32, #tpu.memory_space<vmem>>, %arg6: memref<8x128xbf16, #tpu.memory_space<vmem>>, %arg7: memref<8x128xbf16, #tpu.memory_space<vmem>>, %arg8: memref<8x128xf32, #tpu.memory_space<vmem>>) attributes {dimension_semantics = [#tpu.dimension_semantics<parallel>, #tpu.dimension_semantics<parallel>, #tpu.dimension_semantics<arbitrary>], iteration_bounds = array<i64: 1, 4, 4>, scalar_prefetch = 0 : i64, scratch_operands = 1 : i64, tpu.core_type = #tpu.core_type<tc>, window_params = [{transform_indices = @transform_0, window_bounds = array<i64: 8, 128>}, {transform_indices = @transform_1, window_bounds = array<i64: 128, 128>}, {transform_indices = @transform_2, window_bounds = array<i64: 1, 128>}, {transform_indices = @transform_3, window_bounds = array<i64: 8, 128>}, {transform_indices = @transform_4, window_bounds = array<i64: 8, 128>}]} {
    %c0_i32 = arith.constant 0 : i32
    %0 = arith.cmpi eq, %arg2, %c0_i32 : i32
    %1 = arith.extui %0 : i1 to i32
    %c0_i32_0 = arith.constant 0 : i32
    %2 = arith.cmpi ne, %1, %c0_i32_0 : i32
    scf.if %2 {
      %cst_9 = arith.constant 0.000000e+00 : f32
      %12 = vector.broadcast %cst_9 : f32 to vector<8x128xf32>
      %c0_10 = arith.constant 0 : index
      %c0_11 = arith.constant 0 : index
      %13 = vector.load %arg8[%c0_10, %c0_11] : memref<8x128xf32, #tpu.memory_space<vmem>>, vector<8x128xf32>
      tpu.vector_store %arg8[%c0_10, %c0_11], %12 {strides = array<i32>} : memref<8x128xf32, #tpu.memory_space<vmem>>, vector<8x128xf32>,
    } else {
    }
    %c0 = arith.constant 0 : index
    %c0_1 = arith.constant 0 : index
    %3 = vector.load %arg8[%c0, %c0_1] : memref<8x128xf32, #tpu.memory_space<vmem>>, vector<8x128xf32>
    %c0_2 = arith.constant 0 : index
    %c0_3 = arith.constant 0 : index
    %4 = vector.load %arg3[%c0_2, %c0_3] : memref<8x128xbf16, #tpu.memory_space<vmem>>, vector<8x128xbf16>
    %c0_4 = arith.constant 0 : index
    %c0_5 = arith.constant 0 : index
    %5 = vector.load %arg4[%c0_4, %c0_5] : memref<128x128xbf16, #tpu.memory_space<vmem>>, vector<128x128xbf16>
    %cst = arith.constant dense<0.000000e+00> : vector<8x128xf32>
    %6 = tpu.matmul %4, %5, %cst {dimension_numbers = #tpu.dot_dimension_numbers<[1], [0], [0], [1], [0, 0, 1, 1], [], []>} : vector<8x128xbf16>, vector<128x128xbf16>, vector<8x128xf32> -> vector<8x128xf32>
    %7 = arith.addf %3, %6 : vector<8x128xf32>
    %c0_6 = arith.constant 0 : index
    %c0_7 = arith.constant 0 : index
    %8 = vector.load %arg8[%c0_6, %c0_7] : memref<8x128xf32, #tpu.memory_space<vmem>>, vector<8x128xf32>
    tpu.vector_store %arg8[%c0_6, %c0_7], %7 {strides = array<i32>} : memref<8x128xf32, #tpu.memory_space<vmem>>, vector<8x128xf32>,
    %c3_i32 = arith.constant 3 : i32
    %9 = arith.cmpi eq, %arg2, %c3_i32 : i32
    %10 = arith.extui %9 : i1 to i32
    %c0_i32_8 = arith.constant 0 : i32
    %11 = arith.cmpi ne, %10, %c0_i32_8 : i32
    scf.if %11 {
      %c0_9 = arith.constant 0 : index
      %c0_10 = arith.constant 0 : index
      %12 = vector.load %arg8[%c0_9, %c0_10] : memref<8x128xf32, #tpu.memory_space<vmem>>, vector<8x128xf32>
      %c0_11 = arith.constant 0 : index
      %c0_12 = arith.constant 0 : index
      %13 = vector.load %arg5[%c0_11, %c0_12] : memref<1x128xf32, #tpu.memory_space<vmem>>, vector<1x128xf32>
      %14 = vector.broadcast %13 : vector<1x128xf32> to vector<8x128xf32>
      %15 = arith.addf %12, %14 : vector<8x128xf32>
      %c0_13 = arith.constant 0 : index
      %c0_14 = arith.constant 0 : index
      %16 = vector.load %arg6[%c0_13, %c0_14] : memref<8x128xbf16, #tpu.memory_space<vmem>>, vector<8x128xbf16>
      %17 = arith.extf %16 : vector<8x128xbf16> to vector<8x128xf32>
      %18 = arith.addf %15, %17 : vector<8x128xf32>
      %cst_15 = arith.constant 0.000000e+00 : f32
      %19 = vector.broadcast %cst_15 : f32 to vector<8x128xf32>
      %20 = arith.maximumf %18, %19 : vector<8x128xf32>
      %21 = arith.truncf %20 : vector<8x128xf32> to vector<8x128xbf16>
      %c0_16 = arith.constant 0 : index
      %c0_17 = arith.constant 0 : index
      %22 = vector.load %arg7[%c0_16, %c0_17] : memref<8x128xbf16, #tpu.memory_space<vmem>>, vector<8x128xbf16>
      tpu.vector_store %arg7[%c0_16, %c0_17], %21 {strides = array<i32>} : memref<8x128xbf16, #tpu.memory_space<vmem>>, vector<8x128xbf16>,
    } else {
    }
    return
  }
  func.func @transform_0(%arg0: i32, %arg1: i32, %arg2: i32) -> (i32, i32) {
    %c0_i32 = arith.constant 0 : i32
    return %arg0, %arg2 : i32, i32
  }
  func.func @transform_1(%arg0: i32, %arg1: i32, %arg2: i32) -> (i32, i32) {
    %c0_i32 = arith.constant 0 : i32
    return %arg2, %arg1 : i32, i32
  }
  func.func @transform_2(%arg0: i32, %arg1: i32, %arg2: i32) -> (i32, i32) {
    %c0_i32 = arith.constant 0 : i32
    %c0_i32_0 = arith.constant 0 : i32
    return %c0_i32, %arg1 : i32, i32
  }
  func.func @transform_3(%arg0: i32, %arg1: i32, %arg2: i32) -> (i32, i32) {
    %c0_i32 = arith.constant 0 : i32
    return %arg0, %arg1 : i32, i32
  }
  func.func @transform_4(%arg0: i32, %arg1: i32, %arg2: i32) -> (i32, i32) {
    %c0_i32 = arith.constant 0 : i32
    return %arg0, %arg1 : i32, i32
  }
}

module attributes {stable_mosaic.version = 11 : i64} {
  func.func @_mm_kernel(%arg0: i32, %arg1: i32, %arg2: i32, %arg3: memref<8x128xbf16, #tpu.memory_space<vmem>>, %arg4: memref<128x128xbf16, #tpu.memory_space<vmem>>, %arg5: memref<1x128xf32, #tpu.memory_space<vmem>>, %arg6: memref<8x128xbf16, #tpu.memory_space<vmem>>, %arg7: memref<8x128xf32, #tpu.memory_space<vmem>>) attributes {dimension_semantics = [#tpu.dimension_semantics<parallel>, #tpu.dimension_semantics<parallel>, #tpu.dimension_semantics<arbitrary>], iteration_bounds = array<i64: 1, 4, 4>, scalar_prefetch = 0 : i64, scratch_operands = 1 : i64, tpu.core_type = #tpu.core_type<tc>, window_params = [{transform_indices = @transform_0, window_bounds = array<i64: 8, 128>}, {transform_indices = @transform_1, window_bounds = array<i64: 128, 128>}, {transform_indices = @transform_2, window_bounds = array<i64: 1, 128>}, {transform_indices = @transform_3, window_bounds = array<i64: 8, 128>}]} {
    %c0_i32 = arith.constant 0 : i32
    %0 = arith.cmpi eq, %arg2, %c0_i32 : i32
    %1 = arith.extui %0 : i1 to i32
    %c0_i32_0 = arith.constant 0 : i32
    %2 = arith.cmpi ne, %1, %c0_i32_0 : i32
    scf.if %2 {
      %cst_9 = arith.constant 0.000000e+00 : f32
      %12 = vector.broadcast %cst_9 : f32 to vector<8x128xf32>
      %c0_10 = arith.constant 0 : index
      %c0_11 = arith.constant 0 : index
      %13 = vector.load %arg7[%c0_10, %c0_11] : memref<8x128xf32, #tpu.memory_space<vmem>>, vector<8x128xf32>
      tpu.vector_store %arg7[%c0_10, %c0_11], %12 {strides = array<i32>} : memref<8x128xf32, #tpu.memory_space<vmem>>, vector<8x128xf32>,
    } else {
    }
    %c0 = arith.constant 0 : index
    %c0_1 = arith.constant 0 : index
    %3 = vector.load %arg7[%c0, %c0_1] : memref<8x128xf32, #tpu.memory_space<vmem>>, vector<8x128xf32>
    %c0_2 = arith.constant 0 : index
    %c0_3 = arith.constant 0 : index
    %4 = vector.load %arg3[%c0_2, %c0_3] : memref<8x128xbf16, #tpu.memory_space<vmem>>, vector<8x128xbf16>
    %c0_4 = arith.constant 0 : index
    %c0_5 = arith.constant 0 : index
    %5 = vector.load %arg4[%c0_4, %c0_5] : memref<128x128xbf16, #tpu.memory_space<vmem>>, vector<128x128xbf16>
    %cst = arith.constant dense<0.000000e+00> : vector<8x128xf32>
    %6 = tpu.matmul %4, %5, %cst {dimension_numbers = #tpu.dot_dimension_numbers<[1], [0], [0], [1], [0, 0, 1, 1], [], []>} : vector<8x128xbf16>, vector<128x128xbf16>, vector<8x128xf32> -> vector<8x128xf32>
    %7 = arith.addf %3, %6 : vector<8x128xf32>
    %c0_6 = arith.constant 0 : index
    %c0_7 = arith.constant 0 : index
    %8 = vector.load %arg7[%c0_6, %c0_7] : memref<8x128xf32, #tpu.memory_space<vmem>>, vector<8x128xf32>
    tpu.vector_store %arg7[%c0_6, %c0_7], %7 {strides = array<i32>} : memref<8x128xf32, #tpu.memory_space<vmem>>, vector<8x128xf32>,
    %c3_i32 = arith.constant 3 : i32
    %9 = arith.cmpi eq, %arg2, %c3_i32 : i32
    %10 = arith.extui %9 : i1 to i32
    %c0_i32_8 = arith.constant 0 : i32
    %11 = arith.cmpi ne, %10, %c0_i32_8 : i32
    scf.if %11 {
      %c0_9 = arith.constant 0 : index
      %c0_10 = arith.constant 0 : index
      %12 = vector.load %arg7[%c0_9, %c0_10] : memref<8x128xf32, #tpu.memory_space<vmem>>, vector<8x128xf32>
      %c0_11 = arith.constant 0 : index
      %c0_12 = arith.constant 0 : index
      %13 = vector.load %arg5[%c0_11, %c0_12] : memref<1x128xf32, #tpu.memory_space<vmem>>, vector<1x128xf32>
      %14 = vector.broadcast %13 : vector<1x128xf32> to vector<8x128xf32>
      %15 = arith.addf %12, %14 : vector<8x128xf32>
      %cst_13 = arith.constant 0.000000e+00 : f32
      %16 = vector.broadcast %cst_13 : f32 to vector<8x128xf32>
      %17 = arith.maximumf %15, %16 : vector<8x128xf32>
      %18 = arith.truncf %17 : vector<8x128xf32> to vector<8x128xbf16>
      %c0_14 = arith.constant 0 : index
      %c0_15 = arith.constant 0 : index
      %19 = vector.load %arg6[%c0_14, %c0_15] : memref<8x128xbf16, #tpu.memory_space<vmem>>, vector<8x128xbf16>
      tpu.vector_store %arg6[%c0_14, %c0_15], %18 {strides = array<i32>} : memref<8x128xbf16, #tpu.memory_space<vmem>>, vector<8x128xbf16>,
    } else {
    }
    return
  }
  func.func @transform_0(%arg0: i32, %arg1: i32, %arg2: i32) -> (i32, i32) {
    %c0_i32 = arith.constant 0 : i32
    return %arg0, %arg2 : i32, i32
  }
  func.func @transform_1(%arg0: i32, %arg1: i32, %arg2: i32) -> (i32, i32) {
    %c0_i32 = arith.constant 0 : i32
    return %arg2, %arg1 : i32, i32
  }
  func.func @transform_2(%arg0: i32, %arg1: i32, %arg2: i32) -> (i32, i32) {
    %c0_i32 = arith.constant 0 : i32
    %c0_i32_0 = arith.constant 0 : i32
    return %c0_i32, %arg1 : i32, i32
  }
  func.func @transform_3(%arg0: i32, %arg1: i32, %arg2: i32) -> (i32, i32) {
    %c0_i32 = arith.constant 0 : i32
    return %arg0, %arg1 : i32, i32
  }
}

module attributes {stable_mosaic.version = 11 : i64} {
  func.func @_mm_kernel(%arg0: i32, %arg1: i32, %arg2: i32, %arg3: memref<8x128xbf16, #tpu.memory_space<vmem>>, %arg4: memref<128x128xbf16, #tpu.memory_space<vmem>>, %arg5: memref<1x128xf32, #tpu.memory_space<vmem>>, %arg6: memref<8x128xf32, #tpu.memory_space<vmem>>, %arg7: memref<8x128xf32, #tpu.memory_space<vmem>>) attributes {dimension_semantics = [#tpu.dimension_semantics<parallel>, #tpu.dimension_semantics<parallel>, #tpu.dimension_semantics<arbitrary>], iteration_bounds = array<i64: 1, 1, 4>, scalar_prefetch = 0 : i64, scratch_operands = 1 : i64, tpu.core_type = #tpu.core_type<tc>, window_params = [{transform_indices = @transform_0, window_bounds = array<i64: 8, 128>}, {transform_indices = @transform_1, window_bounds = array<i64: 128, 128>}, {transform_indices = @transform_2, window_bounds = array<i64: 1, 128>}, {transform_indices = @transform_3, window_bounds = array<i64: 8, 128>}]} {
    %c0_i32 = arith.constant 0 : i32
    %0 = arith.cmpi eq, %arg2, %c0_i32 : i32
    %1 = arith.extui %0 : i1 to i32
    %c0_i32_0 = arith.constant 0 : i32
    %2 = arith.cmpi ne, %1, %c0_i32_0 : i32
    scf.if %2 {
      %cst_9 = arith.constant 0.000000e+00 : f32
      %12 = vector.broadcast %cst_9 : f32 to vector<8x128xf32>
      %c0_10 = arith.constant 0 : index
      %c0_11 = arith.constant 0 : index
      %13 = vector.load %arg7[%c0_10, %c0_11] : memref<8x128xf32, #tpu.memory_space<vmem>>, vector<8x128xf32>
      tpu.vector_store %arg7[%c0_10, %c0_11], %12 {strides = array<i32>} : memref<8x128xf32, #tpu.memory_space<vmem>>, vector<8x128xf32>,
    } else {
    }
    %c0 = arith.constant 0 : index
    %c0_1 = arith.constant 0 : index
    %3 = vector.load %arg7[%c0, %c0_1] : memref<8x128xf32, #tpu.memory_space<vmem>>, vector<8x128xf32>
    %c0_2 = arith.constant 0 : index
    %c0_3 = arith.constant 0 : index
    %4 = vector.load %arg3[%c0_2, %c0_3] : memref<8x128xbf16, #tpu.memory_space<vmem>>, vector<8x128xbf16>
    %c0_4 = arith.constant 0 : index
    %c0_5 = arith.constant 0 : index
    %5 = vector.load %arg4[%c0_4, %c0_5] : memref<128x128xbf16, #tpu.memory_space<vmem>>, vector<128x128xbf16>
    %cst = arith.constant dense<0.000000e+00> : vector<8x128xf32>
    %6 = tpu.matmul %4, %5, %cst {dimension_numbers = #tpu.dot_dimension_numbers<[1], [0], [0], [1], [0, 0, 1, 1], [], []>} : vector<8x128xbf16>, vector<128x128xbf16>, vector<8x128xf32> -> vector<8x128xf32>
    %7 = arith.addf %3, %6 : vector<8x128xf32>
    %c0_6 = arith.constant 0 : index
    %c0_7 = arith.constant 0 : index
    %8 = vector.load %arg7[%c0_6, %c0_7] : memref<8x128xf32, #tpu.memory_space<vmem>>, vector<8x128xf32>
    tpu.vector_store %arg7[%c0_6, %c0_7], %7 {strides = array<i32>} : memref<8x128xf32, #tpu.memory_space<vmem>>, vector<8x128xf32>,
    %c3_i32 = arith.constant 3 : i32
    %9 = arith.cmpi eq, %arg2, %c3_i32 : i32
    %10 = arith.extui %9 : i1 to i32
    %c0_i32_8 = arith.constant 0 : i32
    %11 = arith.cmpi ne, %10, %c0_i32_8 : i32
    scf.if %11 {
      %c0_9 = arith.constant 0 : index
      %c0_10 = arith.constant 0 : index
      %12 = vector.load %arg7[%c0_9, %c0_10] : memref<8x128xf32, #tpu.memory_space<vmem>>, vector<8x128xf32>
      %c0_11 = arith.constant 0 : index
      %c0_12 = arith.constant 0 : index
      %13 = vector.load %arg5[%c0_11, %c0_12] : memref<1x128xf32, #tpu.memory_space<vmem>>, vector<1x128xf32>
      %14 = vector.broadcast %13 : vector<1x128xf32> to vector<8x128xf32>
      %15 = arith.addf %12, %14 : vector<8x128xf32>
      %c0_13 = arith.constant 0 : index
      %c0_14 = arith.constant 0 : index
      %16 = vector.load %arg6[%c0_13, %c0_14] : memref<8x128xf32, #tpu.memory_space<vmem>>, vector<8x128xf32>
      tpu.vector_store %arg6[%c0_13, %c0_14], %15 {strides = array<i32>} : memref<8x128xf32, #tpu.memory_space<vmem>>, vector<8x128xf32>,
    } else {
    }
    return
  }
  func.func @transform_0(%arg0: i32, %arg1: i32, %arg2: i32) -> (i32, i32) {
    %c0_i32 = arith.constant 0 : i32
    return %arg0, %arg2 : i32, i32
  }
  func.func @transform_1(%arg0: i32, %arg1: i32, %arg2: i32) -> (i32, i32) {
    %c0_i32 = arith.constant 0 : i32
    return %arg2, %arg1 : i32, i32
  }
  func.func @transform_2(%arg0: i32, %arg1: i32, %arg2: i32) -> (i32, i32) {
    %c0_i32 = arith.constant 0 : i32
    %c0_i32_0 = arith.constant 0 : i32
    return %c0_i32, %arg1 : i32, i32
  }
  func.func @transform_3(%arg0: i32, %arg1: i32, %arg2: i32) -> (i32, i32) {
    %c0_i32 = arith.constant 0 : i32
    return %arg0, %arg1 : i32, i32
  }
}

module attributes {stable_mosaic.version = 11 : i64} {
  func.func @_avgpool_kernel(%arg0: memref<2x8x512xbf16, #tpu.memory_space<vmem>>, %arg1: memref<2x512xf32, #tpu.memory_space<vmem>>) attributes {dimension_semantics = [], scalar_prefetch = 0 : i64, scratch_operands = 0 : i64, tpu.core_type = #tpu.core_type<tc>} {
    %c0 = arith.constant 0 : index
    %c0_0 = arith.constant 0 : index
    %c0_1 = arith.constant 0 : index
    %0 = vector.load %arg0[%c0, %c0_0, %c0_1] : memref<2x8x512xbf16, #tpu.memory_space<vmem>>, vector<2x8x512xbf16>
    %1 = arith.extf %0 : vector<2x8x512xbf16> to vector<2x8x512xf32>
    %cst = arith.constant dense<0.000000e+00> : vector<2x512xf32>
    %2 = vector.multi_reduction <add>, %1, %cst [1] : vector<2x8x512xf32> to vector<2x512xf32>
    %cst_2 = arith.constant 1.000000e+00 : f32
    %3 = vector.broadcast %cst_2 : f32 to vector<2x512xf32>
    %4 = arith.mulf %2, %3 : vector<2x512xf32>
    %c0_3 = arith.constant 0 : index
    %c0_4 = arith.constant 0 : index
    %5 = vector.load %arg1[%c0_3, %c0_4] : memref<2x512xf32, #tpu.memory_space<vmem>>, vector<2x512xf32>
    tpu.vector_store %arg1[%c0_3, %c0_4], %4 {strides = array<i32>} : memref<2x512xf32, #tpu.memory_space<vmem>>, vector<2x512xf32>,
    return
  }
}

</mosaic_0001>

<bundles_post_ra>
// kernel: regnet_forward.71
= control target key start
LH: loop header
LB: loop body
LE: loop exit
PB: predicated region body
PF: predicated region fallthrough
CT: control target
= control target key end

     0   :  { %8 = vsyncpa [#allocation4], 0  ;;  %s1780_s0 = inlined_call_operand.vmem [shape: bf16[512,128], index: 0, kind: input, shape index: {}]   ;;  %s1781_s1 = inlined_call_operand.hbm [shape: bf16[128,128], index: 1, kind: input, shape index: {}]   ;;  %s1782_s2 = inlined_call_operand.hbm [shape: f32[1,128], index: 2, kind: input, shape index: {}]   ;;  %s1783_s3 = inlined_call_operand.vmem [shape: bf16[512,128], index: 3, kind: output, shape index: {}]  }
   0x1   :  { %9 = vsyncpa [#allocation6], 0  ;;  %s1590_s12 = smov 0   ;;  %s1592_s13 = smov 0  }
   0x2   :  { %s1594_s14 = smov 0  }
   0x3 LB: > { %s1120_s15 = sadd.s32 4294967295, %s1564_s14   ;;  %s34_s16 = sadd.s32 1, %s1560_s13  ;;  %s1564_s14 = sphi %s1594_s14, %s15_s14   ;;  %s1560_s13 = sphi %s1592_s13, %s1793_s13   ;;  %s1556_s12 = sphi %s1590_s12, %s1792_s12  }
   0x4   : > { %p36_p0 = scmp.ge.s32.totalorder %s34_s16, 2  ;;  %p1122_p1 = scmp.ge.s32.totalorder %s1564_s14, 1 }
   0x5   : > { %p149_p2 = scmp.lt.s32.totalorder %s1564_s14, 3  ;;  %p1615_p4 = scmp.eq.s32.totalorder %s1120_s15, 0 }
   0x6   : > { %s1795_s16 = smov (%p36_p0, %s34_s16), 0  ;;  %s1566_s19 = smov [#allocation3]  }
   0x7   : > { %p1611_p3 = pnand %p1122_p1, %p149_p2  ;;  %s165_s20 = sshll.u32 %s1566_s19, 4  ;;  %s166_s20 = int_to_ptr.vmem [resolvable:$true] %s165_s20 }
   0x8   : > { %s1788_s18 = scalar_select %p1615_p4, 1, 0 }
   0x9   : > { %s1787_s17 = scalar_select %p1611_p3, 1, 0 }
   0xa   : > { %p1415_p5 = pneg %p1611_p3  ;;  %s1567_s22 = smov [#allocation5]  }
   0xb   : > { %s181_s23 = sshll.u32 %s1567_s22, 4  ;;  %s1478_s26 = scalar_lea.hbm %s1781_s1, 1024  ;;  %s1627_s23 = int_to_ptr.vmem [resolvable:$true] %s181_s23 }
   0xc   : > { %p1623_p6 = pnand %p1615_p4, %p1415_p5  ;;  %p1479_p7 = scmp.ne.s32.totalorder %s1781_s1, %s1478_s26 }
   0xd   : > { %p1485_p11 = scmp.lt.u32.totalorder %s1478_s26, %s1781_s1 }
   0xe   : > { %p1480_p8 = pneg %p1623_p6 }
  0x10   : > { %p1481_p9 = pnand %p1480_p8, %p1479_p7 }
  0x12   : > { %p1482_p10 = pneg %p1481_p9 }
  0x14   : > { %p1487_p12 = pnand %p1485_p11, %p1482_p10 }
  0x16   : > { %1490 = shalt.err (!%p1487_p12)
}
  0x17   : > { %s1491_s4 = scalar_lea.vmem %s166_s20, 1024  ;;  %p1499_p2 = scmp.lt.s32.totalorder %s166_s20, %s166_s20 }
  0x18   : > { %p1492_p13 = scmp.ne.s32.totalorder %s166_s20, %s1491_s4  ;;  %p1500_p5 = scmp.lt.s32.totalorder %s1491_s4, %s1491_s4 }
  0x1a   : > { %p1494_p0 = pnand %p1492_p13, %p1480_p8  ;;  %p1501_p4 = por %p1500_p5, %p1499_p2 }
  0x1c   : > { %p1495_p1 = pneg %p1494_p0 }
  0x1e   : > { %p1502_p3 = pnand %p1501_p4, %p1495_p1 }
  0x20   : > { %1505 = shalt.err (!%p1502_p3)
}
  0x21   : > { %s1568_s5 = smov 64   ;;  %s1569_s6 = smov 4  }
  0x22   : > { %1418 = dma.hbm_to_vmem [thread:$0]  (!%p1623_p6), %s1781_s1, 1024, %s166_s20, [#allocation4], %s1568_s5, %s1568_s5, %s1569_s6  }
  0x23   : > { %s1506_s11 = scalar_lea.hbm %s1782_s2, 16 }
  0x24   : > { %p1507_p7 = scmp.ne.s32.totalorder %s1782_s2, %s1506_s11  ;;  %p1513_p9 = scmp.lt.u32.totalorder %s1506_s11, %s1782_s2 }
  0x26   : > { %p1509_p3 = pnand %p1507_p7, %p1480_p8 }
  0x28   : > { %p1510_p4 = pneg %p1509_p3 }
  0x2a   : > { %p1515_p10 = pnand %p1513_p9, %p1510_p4 }
  0x2c   : > { %1518 = shalt.err (!%p1515_p10)
}
  0x2d   : > { %s1519_s20 = scalar_lea.vmem %s1627_s23, 16  ;;  %s1526_s25 = scalar_lea.vmem %s1627_s23, 32 }
  0x2e   : > { %p1520_p11 = scmp.ne.s32.totalorder %s1627_s23, %s1519_s20  ;;  %p1527_p0 = scmp.lt.s32.totalorder %s1627_s23, %s1627_s23 }
  0x2f   : > { %p1528_p1 = scmp.lt.s32.totalorder %s1526_s25, %s1519_s20 }
  0x30   : > { %p1522_p12 = pnand %p1520_p11, %p1480_p8 }
  0x31   : > { %p1529_p2 = por %p1528_p1, %p1527_p0 }
  0x32   : > { %p1523_p13 = pneg %p1522_p12 }
  0x34   : > { %p1530_p5 = pnand %p1529_p2, %p1523_p13 }
  0x36   : > { %1533 = shalt.err (!%p1530_p5)
}
  0x37   : > { %1421 = dma.hbm_to_vmem [thread:$0]  (!%p1623_p6), %s1782_s2, 16, %s1627_s23, [#allocation6]  }
  0x38   : > { %p1790_p7 = scmp.ne.s32.totalorder %s1787_s17, 0 }
  0x39   : > { %p1791_p8 = scmp.ne.s32.totalorder (!%p1790_p7), %s1788_s18, 0 }
  0x3a   : > { %206 = sbr.rel (%p1790_p7) target bundleno = 347 (0x15b), region = 32 }
  0x41   : > { %1547 = dma.done.wait (%p1791_p8), [#allocation4], 1024  }
  0x42   : > { %1549 = vsyncadd (%p1791_p8), [#allocation4], 4294966272 }
  0x43   : > { %1551 = dma.done.wait (%p1791_p8), [#allocation6], 16  }
  0x44   : > { %1553 = vsyncadd (%p1791_p8), [#allocation6], 4294967280  ;;  %s1129_s21 = sshll.u32 %s1556_s12, 5  ;;  %v1454_v0 = vld [vmem:[#allocation3] sm:$0xff]   ;;  %v1455_v1 = vld [vmem:[#allocation3 + $0x8] sm:$0xff]  }
  0x45   : > { %p241_p3 = scmp.lt.s32.totalorder %s1129_s21, 63  ;;  %1343 = vmatprep.subr.bf16.mxu0 %v1454_v0  ;;  %1391 = vmatprep.subr.bf16.mxu1 %v1454_v0  ;;  %v1456_v2 = vld [vmem:[#allocation3 + $0x10] sm:$0xff]   ;;  %v1457_v3 = vld [vmem:[#allocation3 + $0x18] sm:$0xff]   ;;  %v1458_v6 = vld [vmem:[#allocation3 + $0x20] sm:$0xff]  }
  0x46   : > { %1344 = vmatpush3.bf16.msra.mxu0 %v1454_v0  ;;  %1399 = vmatpush3.bf16.msra.mxu1 %v1454_v0  ;;  %v1459_v7 = vld [vmem:[#allocation3 + $0x28] sm:$0xff]   ;;  %v1460_v8 = vld [vmem:[#allocation3 + $0x30] sm:$0xff]   ;;  %v1461_v9 = vld [vmem:[#allocation3 + $0x38] sm:$0xff]  }
  0x47   : > { %s1797_s21 = smov (!%p241_p3, %s1129_s21), 63  ;;  %1345 = vmatprep.subr.bf16.mxu0 %v1455_v1  ;;  %1392 = vmatprep.subr.bf16.mxu1 %v1455_v1  ;;  %v1714_v24 = vld [vmem:[#allocation5] ss:$0 sm:$0xff] }
  0x48   : > { %s1130_s17 = sshll.u32 %s1797_s21, 2 }
  0x49   : > { %s1696_s12 = scalar_lea.vmem %s1780_s0, %s1130_s17  ;;  %s1729_s30 = scalar_lea.vmem %s1783_s3, %s1130_s17 }
  0x4a   : > { %1346 = vmatpush3.bf16.msra.mxu0 %v1455_v1  ;;  %1400 = vmatpush3.bf16.msra.mxu1 %v1455_v1  ;;  %v1462_v4 = vld [vmem:[%s1696_s12] sm:$0xff]   ;;  %v1464_v10 = vld [vmem:[%s1696_s12 + $0x8] sm:$0xff]   ;;  %v1466_v12 = vld [vmem:[%s1696_s12 + $0x10] sm:$0xff]  }
  0x4b   : > { %1347 = vmatprep.subr.bf16.mxu0 %v1456_v2  ;;  %1393 = vmatprep.subr.bf16.mxu1 %v1456_v2  ;;  %v1463_v5 = vld [vmem:[%s1696_s12 + $0x40] sm:$0xff]   ;;  %v1465_v11 = vld [vmem:[%s1696_s12 + $0x48] sm:$0xff]   ;;  %v1467_v13 = vld [vmem:[%s1696_s12 + $0x50] sm:$0xff]  }
  0x4c   : > { %1359 = vmatprep.mubr.bf16.mxu0 %v1462_v4  ;;  %1375 = vmatprep.mubr.bf16.mxu1 %v1463_v5  ;;  %v1468_v14 = vld [vmem:[%s1696_s12 + $0x18] sm:$0xff]   ;;  %v1470_v16 = vld [vmem:[%s1696_s12 + $0x20] sm:$0xff]   ;;  %v1472_v18 = vld [vmem:[%s1696_s12 + $0x28] sm:$0xff]  }
  0x4d   : > { %v1469_v15 = vld [vmem:[%s1696_s12 + $0x58] sm:$0xff]   ;;  %v1471_v17 = vld [vmem:[%s1696_s12 + $0x60] sm:$0xff]   ;;  %v1473_v19 = vld [vmem:[%s1696_s12 + $0x68] sm:$0xff]  }
  0x4e   : > { %1348 = vmatpush3.bf16.msra.mxu0 %v1456_v2  ;;  %1401 = vmatpush3.bf16.msra.mxu1 %v1456_v2  ;;  %v1474_v20 = vld [vmem:[%s1696_s12 + $0x30] sm:$0xff]   ;;  %v1476_v22 = vld [vmem:[%s1696_s12 + $0x38] sm:$0xff]  }
  0x4f   : > { %1349 = vmatprep.subr.bf16.mxu0 %v1457_v3  ;;  %1394 = vmatprep.subr.bf16.mxu1 %v1457_v3  ;;  %v1475_v21 = vld [vmem:[%s1696_s12 + $0x70] sm:$0xff]   ;;  %v1477_v23 = vld [vmem:[%s1696_s12 + $0x78] sm:$0xff]  }
  0x52   : > { %1350 = vmatpush3.bf16.msra.mxu0 %v1457_v3  ;;  %1402 = vmatpush3.bf16.msra.mxu1 %v1457_v3 }
  0x53   : > { %1351 = vmatprep.subr.bf16.mxu0 %v1458_v6  ;;  %1395 = vmatprep.subr.bf16.mxu1 %v1458_v6 }
  0x56   : > { %1352 = vmatpush3.bf16.msra.mxu0 %v1458_v6  ;;  %1403 = vmatpush3.bf16.msra.mxu1 %v1458_v6 }
  0x57   : > { %1353 = vmatprep.subr.bf16.mxu0 %v1459_v7  ;;  %1396 = vmatprep.subr.bf16.mxu1 %v1459_v7 }
  0x5a   : > { %1354 = vmatpush3.bf16.msra.mxu0 %v1459_v7  ;;  %1404 = vmatpush3.bf16.msra.mxu1 %v1459_v7 }
  0x5b   : > { %1355 = vmatprep.subr.bf16.mxu0 %v1460_v8  ;;  %1397 = vmatprep.subr.bf16.mxu1 %v1460_v8 }
  0x5e   : > { %1356 = vmatpush3.bf16.msra.mxu0 %v1460_v8  ;;  %1405 = vmatpush3.bf16.msra.mxu1 %v1460_v8 }
  0x5f   : > { %1357 = vmatprep.subr.bf16.mxu0 %v1461_v9  ;;  %1398 = vmatprep.subr.bf16.mxu1 %v1461_v9 }
  0x62   : > { %1358 = vmatpush3.bf16.msra.mxu0 %v1461_v9  ;;  %1406 = vmatpush3.bf16.msra.mxu1 %v1461_v9 }
  0x65   : > { %1360 = vmatmul.mubr.bf16.vlgmr.msra.gmra.mrb[0].mxu0 %v1464_v10  ;;  %1376 = vmatmul.mubr.bf16.vlgmr.msra.gmra.mrb[0].mxu1 %v1465_v11 }
  0x66   : > { %1363 = vmatprep.mubr.bf16.mxu0 %v1466_v12  ;;  %1379 = vmatprep.mubr.bf16.mxu1 %v1467_v13 }
  0x6d   : > { %1364 = vmatmul.mubr.bf16.gmra.mrb[4].mxu0 %v1468_v14  ;;  %1380 = vmatmul.mubr.bf16.gmra.mrb[4].mxu1 %v1469_v15 }
  0x6e   : > { %1367 = vmatprep.mubr.bf16.mxu0 %v1470_v16  ;;  %1383 = vmatprep.mubr.bf16.mxu1 %v1471_v17 }
  0x75   : > { %1368 = vmatmul.mubr.bf16.gmra.mrb[8].mxu0 %v1472_v18  ;;  %1384 = vmatmul.mubr.bf16.gmra.mrb[8].mxu1 %v1473_v19 }
  0x76   : > { %1371 = vmatprep.mubr.bf16.mxu0 %v1474_v20  ;;  %1387 = vmatprep.mubr.bf16.mxu1 %v1475_v21 }
  0x7d   : > { %1372 = vmatmul.mubr.bf16.gmra.mrb[12].mxu0 %v1476_v22  ;;  %1388 = vmatmul.mubr.bf16.gmra.mrb[12].mxu1 %v1477_v23 }
 0x138   : > { %v1361_v25 = vpop.f32.mrb[0].mxu0  ;;  %v1377_v26 = vpop.f32.mrb[0].mxu1 }
 0x139   : > { %v789_v27 = vadd.f32 %v1361_v25, %v1714_v24  ;;  %v805_v28 = vadd.f32 %v1377_v26, %v1714_v24  ;;  %v554_v29 = vpop.f32.mrb[1].mxu0  ;;  %v618_v30 = vpop.f32.mrb[1].mxu1 }
 0x13a   : > { %v787_v31 = vadd.f32 %v1714_v24, %v554_v29  ;;  %v803_v32 = vadd.f32 %v1714_v24, %v618_v30  ;;  %v1362_v33 = vpop.f32.mrb[2].mxu0  ;;  %v1378_v34 = vpop.f32.mrb[2].mxu1 }
 0x13b   : > { %v790_v35 = vadd.f32 %v1362_v33, %v1714_v24  ;;  %v806_v36 = vadd.f32 %v1378_v34, %v1714_v24  ;;  %v557_v37 = vpop.f32.mrb[3].mxu0  ;;  %v621_v38 = vpop.f32.mrb[3].mxu1  ;;  %v821_v41 = vmax.f32 %v789_v27, 0.0  ;;  %v837_v42 = vmax.f32 %v805_v28, 0.0 }
 0x13c   : > { %v788_v39 = vadd.f32 %v1714_v24, %v557_v37  ;;  %v804_v40 = vadd.f32 %v1714_v24, %v621_v38  ;;  %v819_v45 = vmax.f32 %v787_v31, 0.0  ;;  %v835_v46 = vmax.f32 %v803_v32, 0.0 }
 0x13d   : > { %v822_v43 = vmax.f32 %v790_v35, 0.0  ;;  %v838_v44 = vmax.f32 %v806_v36, 0.0 }
 0x13e   : > { %v820_v47 = vmax.f32 %v788_v39, 0.0  ;;  %v836_v48 = vmax.f32 %v804_v40, 0.0 }
 0x13f   : > { %v1232_v49 = vpack.c.bf16 %v822_v43, %v821_v41  ;;  %v1272_v50 = vpack.c.bf16 %v838_v44, %v837_v42 }
 0x140   : > { %v1227_v51 = vpack.c.bf16 %v820_v47, %v819_v45  ;;  %v1267_v52 = vpack.c.bf16 %v836_v48, %v835_v46  ;;  %v1365_v53 = vpop.f32.mrb[4].mxu0  ;;  %v1381_v54 = vpop.f32.mrb[4].mxu1 }
 0x141   : > { %1304 = vst [vmem:[%s1729_s30 + $0x8] sm:$0xff] %v1232_v49   ;;  %1312 = vst [vmem:[%s1729_s30 + $0x48] sm:$0xff] %v1272_v50   ;;  %v793_v55 = vadd.f32 %v1365_v53, %v1714_v24  ;;  %v809_v56 = vadd.f32 %v1381_v54, %v1714_v24  ;;  %v570_v57 = vpop.f32.mrb[5].mxu0  ;;  %v634_v58 = vpop.f32.mrb[5].mxu1 }
 0x142   : > { %1228 = vst [vmem:[%s1729_s30] sm:$0xff] %v1227_v51   ;;  %1311 = vst [vmem:[%s1729_s30 + $0x40] sm:$0xff] %v1267_v52   ;;  %v791_v59 = vadd.f32 %v1714_v24, %v570_v57  ;;  %v807_v60 = vadd.f32 %v1714_v24, %v634_v58  ;;  %v1366_v61 = vpop.f32.mrb[6].mxu0  ;;  %v1382_v62 = vpop.f32.mrb[6].mxu1 }
 0x143   : > { %v794_v63 = vadd.f32 %v1366_v61, %v1714_v24  ;;  %v810_v0 = vadd.f32 %v1382_v62, %v1714_v24  ;;  %v573_v1 = vpop.f32.mrb[7].mxu0  ;;  %v637_v2 = vpop.f32.mrb[7].mxu1  ;;  %v825_v5 = vmax.f32 %v793_v55, 0.0  ;;  %v841_v6 = vmax.f32 %v809_v56, 0.0 }
 0x144   : > { %v792_v3 = vadd.f32 %v1714_v24, %v573_v1  ;;  %v808_v4 = vadd.f32 %v1714_v24, %v637_v2  ;;  %v823_v9 = vmax.f32 %v791_v59, 0.0  ;;  %v839_v10 = vmax.f32 %v807_v60, 0.0 }
 0x145   : > { %v826_v7 = vmax.f32 %v794_v63, 0.0  ;;  %v842_v8 = vmax.f32 %v810_v0, 0.0 }
 0x146   : > { %v824_v11 = vmax.f32 %v792_v3, 0.0  ;;  %v840_v12 = vmax.f32 %v808_v4, 0.0 }
 0x147   : > { %v1242_v13 = vpack.c.bf16 %v826_v7, %v825_v5  ;;  %v1282_v14 = vpack.c.bf16 %v842_v8, %v841_v6 }
 0x148   : > { %v1237_v15 = vpack.c.bf16 %v824_v11, %v823_v9  ;;  %v1277_v16 = vpack.c.bf16 %v840_v12, %v839_v10  ;;  %v1369_v17 = vpop.f32.mrb[8].mxu0  ;;  %v1385_v18 = vpop.f32.mrb[8].mxu1 }
 0x149   : > { %1306 = vst [vmem:[%s1729_s30 + $0x18] sm:$0xff] %v1242_v13   ;;  %1314 = vst [vmem:[%s1729_s30 + $0x58] sm:$0xff] %v1282_v14   ;;  %v797_v19 = vadd.f32 %v1369_v17, %v1714_v24  ;;  %v813_v20 = vadd.f32 %v1385_v18, %v1714_v24  ;;  %v586_v21 = vpop.f32.mrb[9].mxu0  ;;  %v650_v22 = vpop.f32.mrb[9].mxu1 }
 0x14a   : > { %1305 = vst [vmem:[%s1729_s30 + $0x10] sm:$0xff] %v1237_v15   ;;  %1313 = vst [vmem:[%s1729_s30 + $0x50] sm:$0xff] %v1277_v16   ;;  %v795_v23 = vadd.f32 %v1714_v24, %v586_v21  ;;  %v811_v25 = vadd.f32 %v1714_v24, %v650_v22  ;;  %v1370_v26 = vpop.f32.mrb[10].mxu0  ;;  %v1386_v27 = vpop.f32.mrb[10].mxu1 }
 0x14b   : > { %v798_v28 = vadd.f32 %v1370_v26, %v1714_v24  ;;  %v814_v29 = vadd.f32 %v1386_v27, %v1714_v24  ;;  %v589_v30 = vpop.f32.mrb[11].mxu0  ;;  %v653_v31 = vpop.f32.mrb[11].mxu1  ;;  %v829_v34 = vmax.f32 %v797_v19, 0.0  ;;  %v845_v35 = vmax.f32 %v813_v20, 0.0 }
 0x14c   : > { %v796_v32 = vadd.f32 %v1714_v24, %v589_v30  ;;  %v812_v33 = vadd.f32 %v1714_v24, %v653_v31  ;;  %v827_v38 = vmax.f32 %v795_v23, 0.0  ;;  %v843_v39 = vmax.f32 %v811_v25, 0.0 }
 0x14d   : > { %v830_v36 = vmax.f32 %v798_v28, 0.0  ;;  %v846_v37 = vmax.f32 %v814_v29, 0.0 }
 0x14e   : > { %v828_v40 = vmax.f32 %v796_v32, 0.0  ;;  %v844_v41 = vmax.f32 %v812_v33, 0.0 }
 0x14f   : > { %v1252_v42 = vpack.c.bf16 %v830_v36, %v829_v34  ;;  %v1292_v43 = vpack.c.bf16 %v846_v37, %v845_v35 }
 0x150   : > { %v1247_v44 = vpack.c.bf16 %v828_v40, %v827_v38  ;;  %v1287_v45 = vpack.c.bf16 %v844_v41, %v843_v39  ;;  %v1373_v46 = vpop.f32.mrb[12].mxu0  ;;  %v1389_v47 = vpop.f32.mrb[12].mxu1 }
 0x151   : > { %1308 = vst [vmem:[%s1729_s30 + $0x28] sm:$0xff] %v1252_v42   ;;  %1316 = vst [vmem:[%s1729_s30 + $0x68] sm:$0xff] %v1292_v43   ;;  %v801_v48 = vadd.f32 %v1373_v46, %v1714_v24  ;;  %v817_v49 = vadd.f32 %v1389_v47, %v1714_v24  ;;  %v602_v50 = vpop.f32.mrb[13].mxu0  ;;  %v666_v51 = vpop.f32.mrb[13].mxu1 }
 0x152   : > { %1307 = vst [vmem:[%s1729_s30 + $0x20] sm:$0xff] %v1247_v44   ;;  %1315 = vst [vmem:[%s1729_s30 + $0x60] sm:$0xff] %v1287_v45   ;;  %v799_v52 = vadd.f32 %v1714_v24, %v602_v50  ;;  %v815_v53 = vadd.f32 %v1714_v24, %v666_v51  ;;  %v1374_v54 = vpop.f32.mrb[14].mxu0  ;;  %v1390_v55 = vpop.f32.mrb[14].mxu1 }
 0x153   : > { %v802_v56 = vadd.f32 %v1374_v54, %v1714_v24  ;;  %v818_v57 = vadd.f32 %v1390_v55, %v1714_v24  ;;  %v605_v58 = vpop.f32.mrb[15].mxu0  ;;  %v669_v59 = vpop.f32.mrb[15].mxu1  ;;  %v833_v62 = vmax.f32 %v801_v48, 0.0  ;;  %v849_v63 = vmax.f32 %v817_v49, 0.0 }
 0x154   : > { %v800_v60 = vadd.f32 %v1714_v24, %v605_v58  ;;  %v816_v61 = vadd.f32 %v1714_v24, %v669_v59  ;;  %v831_v2 = vmax.f32 %v799_v52, 0.0  ;;  %v847_v3 = vmax.f32 %v815_v53, 0.0 }
 0x155   : > { %v834_v0 = vmax.f32 %v802_v56, 0.0  ;;  %v850_v1 = vmax.f32 %v818_v57, 0.0 }
 0x156   : > { %v832_v4 = vmax.f32 %v800_v60, 0.0  ;;  %v848_v5 = vmax.f32 %v816_v61, 0.0 }
 0x157   : > { %v1262_v6 = vpack.c.bf16 %v834_v0, %v833_v62  ;;  %v1302_v7 = vpack.c.bf16 %v850_v1, %v849_v63 }
 0x158   : > { %v1257_v8 = vpack.c.bf16 %v832_v4, %v831_v2  ;;  %v1297_v9 = vpack.c.bf16 %v848_v5, %v847_v3 }
 0x159   : > { %1310 = vst [vmem:[%s1729_s30 + $0x38] sm:$0xff] %v1262_v6   ;;  %1318 = vst [vmem:[%s1729_s30 + $0x78] sm:$0xff] %v1302_v7  }
 0x15a   : > { %1309 = vst [vmem:[%s1729_s30 + $0x30] sm:$0xff] %v1257_v8   ;;  %1317 = vst [vmem:[%s1729_s30 + $0x70] sm:$0xff] %v1297_v9  }
 0x15b PF: > { %s15_s14 = sadd.s32 1, %s1564_s14   ;;  %s1792_s12 = smov %s1560_s13 }
 0x15c   : > { %p12_p6 = scmp.ge.s32.totalorder %s15_s14, 4   ;;  %s1793_s13 = smov %s1795_s16 }
 0x15e   :  { %14 = sbr.rel (!%p12_p6) target bundleno = 3 (0x3), region = 81 }
 0x165   :  { %1039 = vsyncpa [#allocation4], 1 }
 0x166   :  { %1041 = vsyncpa [#allocation4 + $0x1], 1 }
 0x167   :  { %1042 = vsyncpa [#allocation6], 1 }

// kernel: regnet_forward.75
= control target key start
LH: loop header
LB: loop body
LE: loop exit
PB: predicated region body
PF: predicated region fallthrough
CT: control target
= control target key end

     0   :  { %s811_s18 = smov 0   ;;  %s955_s0 = inlined_call_operand.vmem [shape: bf16[2,64,128], index: 0, kind: input, shape index: {}]   ;;  %s956_s1 = inlined_call_operand.vmem [shape: bf16[128,128], index: 1, kind: input, shape index: {}]   ;;  %s957_s2 = inlined_call_operand.vmem [shape: f32[1,128], index: 2, kind: input, shape index: {}]   ;;  %s958_s3 = inlined_call_operand.vmem [shape: bf16[128,128], index: 3, kind: input, shape index: {}]   ;;  %s959_s4 = inlined_call_operand.vmem [shape: f32[1,128], index: 4, kind: input, shape index: {}]   ;;  %s960_s5 = inlined_call_operand.vmem [shape: bf16[2,64,128], index: 5, kind: output, shape index: {}]  }
   0x1 LB: > { %s594_s19 = sadd.s32 4294967295, %s777_s18   ;;  %p598_p0 = scmp.ge.s32.totalorder %s777_s18, 1  ;;  %s777_s18 = sphi %s811_s18, %s15_s18  }
   0x2   : > { %p187_p1 = scmp.lt.s32.totalorder %s777_s18, 3 }
   0x4   : > { %p188_p2 = pnand %p598_p0, %p187_p1 }
   0x5   : > { %v751_v0 = vld [vmem:[%s956_s1] sm:$0xff] (!%p188_p2)   ;;  %v779_v1 = vmov (!%p188_p2), 0.0   ;;  %v752_v2 = vld [vmem:[%s956_s1 + $0x8] sm:$0xff] (!%p188_p2)   ;;  %vm780_vm0 = vmmov (!%p188_p2), 0   ;;  %p215_p3 = scmp.lt.s32.totalorder (!%p188_p2), %s594_s19, 1  ;;  %v753_v3 = vld [vmem:[%s956_s1 + $0x10] sm:$0xff] (!%p188_p2)   ;;  %v487_v62 = vlaneseq (!%p188_p2) }
   0x6   : > { %191 = sbr.rel (%p188_p2) target bundleno = 517 (0x205), region = 40  ;;  %701 = vmatprep.subr.bf16.mxu0 (!%p188_p2), %v779_v1  ;;  %721 = vmatprep.subr.bf16.mxu1 (!%p188_p2), %v779_v1  ;;  %v754_v4 = vld [vmem:[%s956_s1 + $0x18] sm:$0xff] (!%p188_p2)   ;;  %v759_v11 = vld [vmem:[%s958_s3] sm:$0xff] (!%p188_p2)   ;;  %v760_v14 = vld [vmem:[%s958_s3 + $0x8] sm:$0xff] (!%p188_p2)  }
   0x7   : > { %702 = vmatpush3.bf16.msra.mxu0 (!%p188_p2), %v751_v0  ;;  %717 = vmatprep.mubr.msk.bf16.mxu0 (!%p188_p2), %vm780_vm0, %v779_v1  ;;  %v755_v15 = vld [vmem:[%s956_s1 + $0x20] sm:$0xff] (!%p188_p2)   ;;  %v761_v21 = vld [vmem:[%s958_s3 + $0x10] sm:$0xff] (!%p188_p2)   ;;  %v756_v24 = vld [vmem:[%s956_s1 + $0x28] sm:$0xff] (!%p188_p2)   ;;  %v488_v63 = vshrl.u32 (!%p188_p2), %v487_v62, 7 }
   0x8   : > { %703 = vmatprep.subr.bf16.mxu0 (!%p188_p2), %v779_v1  ;;  %737 = vmatprep.mubr.msk.bf16.mxu1 (!%p188_p2), %vm780_vm0, %v779_v1  ;;  %v762_v27 = vld [vmem:[%s958_s3 + $0x18] sm:$0xff] (!%p188_p2)   ;;  %v757_v29 = vld [vmem:[%s956_s1 + $0x30] sm:$0xff] (!%p188_p2)   ;;  %v763_v31 = vld [vmem:[%s958_s3 + $0x20] sm:$0xff] (!%p188_p2)  }
   0x9   : > { %722 = vmatpush3.bf16.msra.mxu1 (!%p188_p2), %v759_v11  ;;  %v758_v33 = vld [vmem:[%s956_s1 + $0x38] sm:$0xff] (!%p188_p2)   ;;  %v764_v35 = vld [vmem:[%s958_s3 + $0x28] sm:$0xff] (!%p188_p2)   ;;  %v765_v42 = vld [vmem:[%s958_s3 + $0x30] sm:$0xff] (!%p188_p2)   ;;  %v489_v0 = vsub.s32 (!%p188_p2), 0, %v488_v63 }
   0xa   : > { %723 = vmatprep.subr.bf16.mxu1 (!%p188_p2), %v779_v1  ;;  %v766_v43 = vld [vmem:[%s958_s3 + $0x38] sm:$0xff] (!%p188_p2)   ;;  %v603_v44 = vld [vmem:[%s957_s2] ss:$0 sm:$0xff] (!%p188_p2) }
   0xb   : > { %704 = vmatpush3.bf16.msra.mxu0 (!%p188_p2), %v752_v2  ;;  %v612_v52 = vld [vmem:[%s959_s4] ss:$0 sm:$0xff] (!%p188_p2) }
   0xc   : > { %705 = vmatprep.subr.bf16.mxu0 (!%p188_p2), %v779_v1 }
   0xd   : > { %s962_s19 = smov (!%p215_p3, %s594_s19), 1  ;;  %724 = vmatpush3.bf16.msra.mxu1 %v760_v14 }
   0xe   : > { %s631_s26 = sshll.u32 %s962_s19, 5  ;;  %725 = vmatprep.subr.bf16.mxu1 %v779_v1 }
   0xf   : > { %s219_s29 = scalar_lea.vmem %s955_s0, %s631_s26  ;;  %706 = vmatpush3.bf16.msra.mxu0 %v753_v3  ;;  %s224_s15 = scalar_lea.vmem %s960_s5, %s631_s26 }
  0x10   : > { %v845_v5 = vld [vmem:[%s219_s29] sm:$0xff]   ;;  %v847_v6 = vld [vmem:[%s219_s29 + $0x8] sm:$0xff]   ;;  %v852_v10 = vld [vmem:[%s219_s29 + $0x10] sm:$0xff]   ;;  %707 = vmatprep.subr.bf16.mxu0 %v779_v1 }
  0x11   : > { %v643_v7 = vunpack.c.l.bf16 %v845_v5  ;;  %v644_v8 = vunpack.c.h.bf16 %v845_v5  ;;  %v647_v9 = vunpack.c.l.bf16 %v847_v6  ;;  %v648_v12 = vunpack.c.h.bf16 %v847_v6  ;;  %v873_v18 = vld [vmem:[%s219_s29 + $0x18] sm:$0xff]   ;;  %726 = vmatpush3.bf16.msra.mxu1 %v761_v21 }
  0x12   : > { %v651_v16 = vunpack.c.l.bf16 %v852_v10  ;;  %v652_v19 = vunpack.c.h.bf16 %v852_v10  ;;  %v655_v22 = vunpack.c.l.bf16 %v873_v18  ;;  %v656_v25 = vunpack.c.h.bf16 %v873_v18  ;;  %727 = vmatprep.subr.bf16.mxu1 %v779_v1 }
  0x13   : > { %v242_v13 = vadd.f32 %v644_v8, %v643_v7  ;;  %708 = vmatpush3.bf16.msra.mxu0 %v754_v4 }
  0x14   : > { %709 = vmatprep.subr.bf16.mxu0 %v779_v1 }
  0x15   : > { %v243_v17 = vadd.f32 %v647_v9, %v242_v13  ;;  %728 = vmatpush3.bf16.msra.mxu1 %v762_v27 }
  0x16   : > { %729 = vmatprep.subr.bf16.mxu1 %v779_v1 }
  0x17   : > { %v244_v20 = vadd.f32 %v648_v12, %v243_v17  ;;  %710 = vmatpush3.bf16.msra.mxu0 %v755_v15 }
  0x18   : > { %711 = vmatprep.subr.bf16.mxu0 %v779_v1 }
  0x19   : > { %v245_v23 = vadd.f32 %v651_v16, %v244_v20  ;;  %730 = vmatpush3.bf16.msra.mxu1 %v763_v31 }
  0x1a   : > { %731 = vmatprep.subr.bf16.mxu1 %v779_v1 }
  0x1b   : > { %v246_v26 = vadd.f32 %v652_v19, %v245_v23  ;;  %712 = vmatpush3.bf16.msra.mxu0 %v756_v24 }
  0x1c   : > { %713 = vmatprep.subr.bf16.mxu0 %v779_v1 }
  0x1d   : > { %v247_v28 = vadd.f32 %v655_v22, %v246_v26  ;;  %732 = vmatpush3.bf16.msra.mxu1 %v764_v35 }
  0x1e   : > { %733 = vmatprep.subr.bf16.mxu1 %v779_v1 }
  0x1f   : > { %v248_v30 = vadd.f32 %v656_v25, %v247_v28  ;;  %714 = vmatpush3.bf16.msra.mxu0 %v757_v29 }
  0x20   : > { %715 = vmatprep.subr.bf16.mxu0 %v779_v1 }
  0x21   : > { %v249_v32 = vrot.slane %v248_v30, 4  ;;  %734 = vmatpush3.bf16.msra.mxu1 %v765_v42 }
  0x22   : > { %735 = vmatprep.subr.bf16.mxu1 %v779_v1 }
  0x23   : > { %v250_v34 = vadd.f32 %v249_v32, %v248_v30  ;;  %716 = vmatpush3.bf16.msra.mxu0 %v758_v33 }
  0x25   : > { %v251_v36 = vrot.slane %v250_v34, 2  ;;  %736 = vmatpush3.bf16.msra.mxu1 %v766_v43 }
  0x27   : > { %v252_v37 = vadd.f32 %v251_v36, %v250_v34 }
  0x29   : > { %v253_v38 = vrot.slane %v252_v37, 1 }
  0x2b   : > { %v254_v39 = vadd.f32 %v253_v38, %v252_v37 }
  0x2d   : > { %v255_v40 = vmul.f32 0.015625, %v254_v39 }
  0x2f   : > { %v256_v41 = vpack.c.bf16 %v255_v40, %v255_v40 }
  0x31   : > { %718 = vmatmul.mubr.bf16.vlgmr.msra.gmra.mrb[0].mxu0 %v256_v41 }
 0x104   : > { %v362_v45 = vpop.f32.mrb[0].mxu0 }
 0x105   : > { %v363_v46 = vadd.f32 %v603_v44, %v362_v45  ;;  %v719_v47 = vpop.f32.mrb[1].mxu0 }
 0x106   : > { %v365_v48 = vpop.f32.mrb[2].mxu0 }
 0x107   : > { %v368_v49 = vmax.f32 %v363_v46, 0.0  ;;  %v720_v50 = vpop.f32.mrb[3].mxu0 }
 0x109   : > { %v369_v51 = vpack.c.bf16 %v368_v49, %v368_v49 }
 0x10b   : > { %738 = vmatmul.mubr.bf16.vlgmr.msra.gmra.mrb[0].mxu1 %v369_v51 }
 0x1de   : > { %v475_v53 = vpop.f32.mrb[0].mxu1 }
 0x1df   : > { %v476_v54 = vadd.f32 %v612_v52, %v475_v53  ;;  %v739_v55 = vpop.f32.mrb[1].mxu1 }
 0x1e0   : > { %v478_v56 = vpop.f32.mrb[2].mxu1 }
 0x1e1   : > { %v481_v57 = vsub.f32 0.0, %v476_v54  ;;  %v740_v58 = vpop.f32.mrb[3].mxu1 }
 0x1e3   : > { %v482_v59 = vmul.f32 1.442695, %v481_v57 }
 0x1e5   : > { %767 = vpow2.f32 %v482_v59 }
 0x1ef   : > { %v768_v60 = vpop.eup %767 }
 0x1f0   : > { %v484_v61 = vadd.f32 1.0, %v768_v60 }
 0x1f2   : > { %769 = vrcp.f32 %v484_v61 }
 0x1fc   : > { %v770_v1 = vpop.eup %769 }
 0x1fd   : > { %v490_v2 = vrot.slane %v770_v1, %v489_v0 }
 0x1ff   : > { %v491_v3 = vmul.f32 %v643_v7, %v490_v2  ;;  %v492_v4 = vmul.f32 %v644_v8, %v490_v2  ;;  %v493_v11 = vmul.f32 %v647_v9, %v490_v2  ;;  %v494_v13 = vmul.f32 %v648_v12, %v490_v2 }
 0x200   : > { %v495_v14 = vmul.f32 %v651_v16, %v490_v2  ;;  %v496_v7 = vmul.f32 %v652_v19, %v490_v2  ;;  %v497_v5 = vmul.f32 %v655_v22, %v490_v2  ;;  %v498_v8 = vmul.f32 %v656_v25, %v490_v2 }
 0x201   : > { %v660_v9 = vpack.c.bf16 %v492_v4, %v491_v3  ;;  %v665_v6 = vpack.c.bf16 %v494_v13, %v493_v11 }
 0x202   : > { %v670_v12 = vpack.c.bf16 %v496_v7, %v495_v14  ;;  %v675_v15 = vpack.c.bf16 %v498_v8, %v497_v5 }
 0x203   : > { %661 = vst [vmem:[%s224_s15] sm:$0xff] %v660_v9   ;;  %680 = vst [vmem:[%s224_s15 + $0x8] sm:$0xff] %v665_v6  }
 0x204   : > { %681 = vst [vmem:[%s224_s15 + $0x10] sm:$0xff] %v670_v12   ;;  %682 = vst [vmem:[%s224_s15 + $0x18] sm:$0xff] %v675_v15  }
 0x205 PF: > { %s15_s18 = sadd.s32 1, %s777_s18  }
 0x206   : > { %p12_p4 = scmp.ge.s32.totalorder %s15_s18, 4  }
 0x208   :  { %14 = sbr.rel (!%p12_p4) target bundleno = 1 (0x1), region = 70 }

// kernel: regnet_forward.74
= control target key start
LH: loop header
LB: loop body
LE: loop exit
PB: predicated region body
PF: predicated region fallthrough
CT: control target
= control target key end

     0   :  { %s1214_s12 = smov 0   ;;  %s1216_s13 = smov 0   ;;  %s1346_s0 = inlined_call_operand.vmem [shape: bf16[128,1152], index: 0, kind: input, shape index: {}]   ;;  %s1347_s1 = inlined_call_operand.vmem [shape: bf16[1152,128], index: 1, kind: input, shape index: {}]   ;;  %s1348_s2 = inlined_call_operand.vmem [shape: f32[1,128], index: 2, kind: input, shape index: {}]   ;;  %s1349_s3 = inlined_call_operand.vmem [shape: bf16[128,128], index: 3, kind: output, shape index: {}]  }
   0x1   :  { %s1218_s14 = smov 0   ;;  %s1220_s15 = smov 0  }
   0x2   :  { %s1222_s16 = smov 0  }
   0x3 LB: > { %s25_s17 = sadd.s32 1, %s1187_s15  ;;  %p52_p1 = scmp.ne.s32.totalorder %s1179_s13, %s1175_s12  ;;  %s1191_s16 = sphi %s1222_s16, %s13_s16   ;;  %s1187_s15 = sphi %s1220_s15, %s1353_s15   ;;  %s1183_s14 = sphi %s1218_s14, %s1352_s14   ;;  %s1179_s13 = sphi %s1216_s13, %s1351_s13   ;;  %s1175_s12 = sphi %s1214_s12, %s1350_s12  }
   0x4   : > { %p26_p0 = scmp.ge.s32.totalorder %s25_s17, 9  ;;  %p53_p2 = scmp.eq.s32.totalorder %s1191_s16, 0 }
   0x5   : > { %s45_s19 = sadd.s32 1, %s1179_s13  ;;  %p923_p5 = scmp.ge.s32.totalorder %s1191_s16, 9 }
   0x6   : > { %s1355_s17 = smov (%p26_p0, %s25_s17), 0  ;;  %p54_p3 = por %p53_p2, %p52_p1 }
   0x7   : > { %s41_s18 = ssub.s32 %s1187_s15, %s1355_s17  ;;  %170 = sbr.rel (%p923_p5) target bundleno = 28 (0x1c), region = 20 }
   0x8   : > { %p43_p4 = scmp.eq.s32.totalorder %s41_s18, 0 }
   0xa   : > { %s1249_s20 = scalar_select %p43_p4, %s1179_s13, %s45_s19  }
   0xe   : > { %173 = sbr.rel (!%p54_p3) target bundleno = 28 (0x1c), region = 24  ;;  %s175_s21 = sand.u32 (%p54_p3), 1, %s1179_s13  }
   0xf   : > { %s925_s22 = sshll.u32 (%p54_p3), %s1187_s15, 2  ;;  %s924_s23 = sshll.u32 (%p54_p3), %s175_s21, 6 }
  0x10   : > { %s1257_s26 = scalar_lea.vmem (%p54_p3), %s1346_s0, %s925_s22  ;;  %s177_s27 = scalar_lea.vmem (%p54_p3), [#allocation3], %s924_s23 }
  0x11   : > { %v200_v0 = vld [vmem:[%s1257_s26] sm:$0xf] (%p54_p3)  ;;  %v202_v1 = vld [vmem:[%s1257_s26 + $0x24] sm:$0xf] (%p54_p3)  ;;  %v204_v2 = vld [vmem:[%s1257_s26 + $0x48] sm:$0xf] (%p54_p3) }
  0x12   : > { %201 = vst [vmem:[%s177_s27] sm:$0xf] (%p54_p3), %v200_v0  ;;  %203 = vst [vmem:[%s177_s27 + $0x4] sm:$0xf] (%p54_p3), %v202_v1  ;;  %v206_v3 = vld [vmem:[%s1257_s26 + $0x6c] sm:$0xf] (%p54_p3) }
  0x13   : > { %v208_v4 = vld [vmem:[%s1257_s26 + $0x90] sm:$0xf] (%p54_p3)  ;;  %205 = vst [vmem:[%s177_s27 + $0x8] sm:$0xf] (%p54_p3), %v204_v2  ;;  %207 = vst [vmem:[%s177_s27 + $0xc] sm:$0xf] (%p54_p3), %v206_v3 }
  0x14   : > { %209 = vst [vmem:[%s177_s27 + $0x10] sm:$0xf] (%p54_p3), %v208_v4  ;;  %v210_v5 = vld [vmem:[%s1257_s26 + $0xb4] sm:$0xf] (%p54_p3)  ;;  %v212_v6 = vld [vmem:[%s1257_s26 + $0xd8] sm:$0xf] (%p54_p3) }
  0x15   : > { %v214_v7 = vld [vmem:[%s1257_s26 + $0xfc] sm:$0xf]  ;;  %211 = vst [vmem:[%s177_s27 + $0x14] sm:$0xf] %v210_v5  ;;  %213 = vst [vmem:[%s177_s27 + $0x18] sm:$0xf] %v212_v6 }
  0x16   : > { %215 = vst [vmem:[%s177_s27 + $0x1c] sm:$0xf] %v214_v7  ;;  %v216_v8 = vld [vmem:[%s1257_s26 + $0x120] sm:$0xf]  ;;  %v218_v9 = vld [vmem:[%s1257_s26 + $0x144] sm:$0xf] }
  0x17   : > { %v220_v10 = vld [vmem:[%s1257_s26 + $0x168] sm:$0xf]  ;;  %217 = vst [vmem:[%s177_s27 + $0x20] sm:$0xf] %v216_v8  ;;  %219 = vst [vmem:[%s177_s27 + $0x24] sm:$0xf] %v218_v9 }
  0x18   : > { %221 = vst [vmem:[%s177_s27 + $0x28] sm:$0xf] %v220_v10  ;;  %v222_v11 = vld [vmem:[%s1257_s26 + $0x18c] sm:$0xf]  ;;  %v224_v12 = vld [vmem:[%s1257_s26 + $0x1b0] sm:$0xf] }
  0x19   : > { %v226_v13 = vld [vmem:[%s1257_s26 + $0x1d4] sm:$0xf]  ;;  %223 = vst [vmem:[%s177_s27 + $0x2c] sm:$0xf] %v222_v11  ;;  %225 = vst [vmem:[%s177_s27 + $0x30] sm:$0xf] %v224_v12 }
  0x1a   : > { %227 = vst [vmem:[%s177_s27 + $0x34] sm:$0xf] %v226_v13  ;;  %v228_v14 = vld [vmem:[%s1257_s26 + $0x1f8] sm:$0xf]  ;;  %v230_v15 = vld [vmem:[%s1257_s26 + $0x21c] sm:$0xf] }
  0x1b   : > { %229 = vst [vmem:[%s177_s27 + $0x38] sm:$0xf] %v228_v14  ;;  %231 = vst [vmem:[%s177_s27 + $0x3c] sm:$0xf] %v230_v15 }
  0x1c PF: > { %p926_p6 = scmp.ge.s32.totalorder %s1191_s16, 1  ;;  %p301_p7 = scmp.lt.s32.totalorder %s1191_s16, 10 }
  0x1e   : > { %p302_p8 = pnand %p926_p6, %p301_p7 }
  0x1f   : > { %s308_s28 = sand.u32 (!%p302_p8), 1, %s1175_s12   ;;  %s928_s29 = sshll.u32 (!%p302_p8), %s1183_s14, 4 }
  0x20   : > { %305 = sbr.rel (%p302_p8) target bundleno = 323 (0x143), region = 69  ;;  %s927_s30 = sshll.u32 (!%p302_p8), %s308_s28, 6 }
  0x21   : > { %p353_p9 = scmp.lt.s32.totalorder (!%p302_p8), %s928_s29, 143  ;;  %s1284_s8 = scalar_lea.vmem (!%p302_p8), [#allocation3], %s927_s30 }
  0x22   : > { %p930_p10 = scmp.ne.s32.totalorder (!%p302_p8), %s1183_s14, 0 }
  0x27   : > { %s1357_s29 = smov (!%p353_p9, %s928_s29), 143  ;;  %379 = sbr.rel (%p930_p10) target bundleno = 49 (0x31), region = 77 }
  0x28   : > { %s929_s4 = sshll.u32 %s1357_s29, 2  ;;  %v1193_v16 = vmov (!%p930_p10), 0.0  }
  0x29   : > { %s1282_s7 = scalar_lea.vmem %s1347_s1, %s929_s4  ;;  %380 = vst [vmem:[#allocation2] sm:$0xff] (!%p930_p10), %v1193_v16  ;;  %381 = vst [vmem:[#allocation2 + $0x8] sm:$0xff] (!%p930_p10), %v1193_v16 }
  0x2a   : > { %382 = vst [vmem:[#allocation2 + $0x10] sm:$0xff] (!%p930_p10), %v1193_v16  ;;  %383 = vst [vmem:[#allocation2 + $0x18] sm:$0xff] (!%p930_p10), %v1193_v16 }
  0x2b   : > { %384 = vst [vmem:[#allocation2 + $0x20] sm:$0xff] (!%p930_p10), %v1193_v16  ;;  %385 = vst [vmem:[#allocation2 + $0x28] sm:$0xff] (!%p930_p10), %v1193_v16 }
  0x2c   : > { %386 = vst [vmem:[#allocation2 + $0x30] sm:$0xff] (!%p930_p10), %v1193_v16  ;;  %387 = vst [vmem:[#allocation2 + $0x38] sm:$0xff] (!%p930_p10), %v1193_v16 }
  0x2d   : > { %388 = vst [vmem:[#allocation2 + $0x40] sm:$0xff] (!%p930_p10), %v1193_v16  ;;  %389 = vst [vmem:[#allocation2 + $0x48] sm:$0xff] (!%p930_p10), %v1193_v16 }
  0x2e   : > { %390 = vst [vmem:[#allocation2 + $0x50] sm:$0xff] %v1193_v16  ;;  %391 = vst [vmem:[#allocation2 + $0x58] sm:$0xff] %v1193_v16 }
  0x2f   : > { %392 = vst [vmem:[#allocation2 + $0x60] sm:$0xff] %v1193_v16  ;;  %393 = vst [vmem:[#allocation2 + $0x68] sm:$0xff] %v1193_v16 }
  0x30   : > { %394 = vst [vmem:[#allocation2 + $0x70] sm:$0xff] %v1193_v16  ;;  %395 = vst [vmem:[#allocation2 + $0x78] sm:$0xff] %v1193_v16 }
  0x31 PF: > { %v1137_v17 = vld [vmem:[%s1282_s7] sm:$0xff]   ;;  %v1138_v18 = vld [vmem:[%s1282_s7 + $0x8] sm:$0xff]   ;;  %v1139_v19 = vld [vmem:[%s1282_s7 + $0x10] sm:$0xff]   ;;  %p947_p11 = scmp.ne.s32.totalorder %s1183_s14, 8 }
  0x32   : > { %1048 = vmatprep.subr.bf16.mxu0 %v1137_v17  ;;  %1080 = vmatprep.subr.bf16.mxu1 %v1137_v17  ;;  %v1140_v20 = vld [vmem:[%s1282_s7 + $0x18] sm:$0xff]   ;;  %v1145_v21 = vld [vmem:[%s1284_s8] sm:$0xff]   ;;  %v1142_v24 = vld [vmem:[%s1282_s7 + $0x28] sm:$0xff]  }
  0x33   : > { %1049 = vmatpush3.bf16.msra.mxu0 %v1137_v17  ;;  %1088 = vmatpush3.bf16.msra.mxu1 %v1137_v17  ;;  %v1146_v22 = vld [vmem:[%s1284_s8 + $0x20] sm:$0xff]   ;;  %v1143_v25 = vld [vmem:[%s1282_s7 + $0x30] sm:$0xff]   ;;  %v1144_v26 = vld [vmem:[%s1282_s7 + $0x38] sm:$0xff]  }
  0x34   : > { %1050 = vmatprep.subr.bf16.mxu0 %v1138_v18  ;;  %1081 = vmatprep.subr.bf16.mxu1 %v1138_v18  ;;  %v1141_v23 = vld [vmem:[%s1282_s7 + $0x20] sm:$0xff]   ;;  %v1147_v27 = vld [vmem:[%s1284_s8 + $0x8] sm:$0xff]   ;;  %v1149_v29 = vld [vmem:[%s1284_s8 + $0x10] sm:$0xff]  }
  0x35   : > { %1064 = vmatprep.mubr.bf16.mxu0 %v1145_v21  ;;  %1072 = vmatprep.mubr.bf16.mxu1 %v1146_v22  ;;  %v1148_v28 = vld [vmem:[%s1284_s8 + $0x28] sm:$0xff]   ;;  %v1150_v30 = vld [vmem:[%s1284_s8 + $0x30] sm:$0xff]   ;;  %v1151_v31 = vld [vmem:[%s1284_s8 + $0x18] sm:$0xff]  }
  0x36   : > { %v1152_v32 = vld [vmem:[%s1284_s8 + $0x38] sm:$0xff]   ;;  %v398_v33 = vld [vmem:[#allocation2 + $0x10] sm:$0xff]  ;;  %v396_v35 = vld [vmem:[#allocation2] sm:$0xff] }
  0x37   : > { %1051 = vmatpush3.bf16.msra.mxu0 %v1138_v18  ;;  %1089 = vmatpush3.bf16.msra.mxu1 %v1138_v18  ;;  %v406_v34 = vld [vmem:[#allocation2 + $0x50] sm:$0xff]  ;;  %v404_v36 = vld [vmem:[#allocation2 + $0x40] sm:$0xff]  ;;  %v399_v39 = vld [vmem:[#allocation2 + $0x18] sm:$0xff] }
  0x38   : > { %1052 = vmatprep.subr.bf16.mxu0 %v1139_v19  ;;  %1082 = vmatprep.subr.bf16.mxu1 %v1139_v19  ;;  %v407_v40 = vld [vmem:[#allocation2 + $0x58] sm:$0xff]  ;;  %v397_v45 = vld [vmem:[#allocation2 + $0x8] sm:$0xff]  ;;  %v402_v57 = vld [vmem:[#allocation2 + $0x30] sm:$0xff] }
  0x39   : > { %v405_v46 = vld [vmem:[#allocation2 + $0x48] sm:$0xff]  ;;  %v410_v58 = vld [vmem:[#allocation2 + $0x70] sm:$0xff]  ;;  %v400_v59 = vld [vmem:[#allocation2 + $0x20] sm:$0xff] }
  0x3a   : > { %v408_v60 = vld [vmem:[#allocation2 + $0x60] sm:$0xff]  ;;  %v403_v63 = vld [vmem:[#allocation2 + $0x38] sm:$0xff]  ;;  %v401_v5 = vld [vmem:[#allocation2 + $0x28] sm:$0xff] }
  0x3b   : > { %1053 = vmatpush3.bf16.msra.mxu0 %v1139_v19  ;;  %1090 = vmatpush3.bf16.msra.mxu1 %v1139_v19  ;;  %v411_v0 = vld [vmem:[#allocation2 + $0x78] sm:$0xff]  ;;  %v409_v6 = vld [vmem:[#allocation2 + $0x68] sm:$0xff]  ;;  %v948_v19 = vld [vmem:[%s1348_s2] ss:$0 sm:$0xff] (!%p947_p11) }
  0x3c   : > { %1054 = vmatprep.subr.bf16.mxu0 %v1140_v20  ;;  %1083 = vmatprep.subr.bf16.mxu1 %v1140_v20 }
  0x3f   : > { %1055 = vmatpush3.bf16.msra.mxu0 %v1140_v20  ;;  %1091 = vmatpush3.bf16.msra.mxu1 %v1140_v20 }
  0x40   : > { %1056 = vmatprep.subr.bf16.mxu0 %v1141_v23  ;;  %1084 = vmatprep.subr.bf16.mxu1 %v1141_v23 }
  0x43   : > { %1057 = vmatpush3.bf16.msra.mxu0 %v1141_v23  ;;  %1092 = vmatpush3.bf16.msra.mxu1 %v1141_v23 }
  0x44   : > { %1058 = vmatprep.subr.bf16.mxu0 %v1142_v24  ;;  %1085 = vmatprep.subr.bf16.mxu1 %v1142_v24 }
  0x47   : > { %1059 = vmatpush3.bf16.msra.mxu0 %v1142_v24  ;;  %1093 = vmatpush3.bf16.msra.mxu1 %v1142_v24 }
  0x48   : > { %1060 = vmatprep.subr.bf16.mxu0 %v1143_v25  ;;  %1086 = vmatprep.subr.bf16.mxu1 %v1143_v25 }
  0x4b   : > { %1061 = vmatpush3.bf16.msra.mxu0 %v1143_v25  ;;  %1094 = vmatpush3.bf16.msra.mxu1 %v1143_v25 }
  0x4c   : > { %1062 = vmatprep.subr.bf16.mxu0 %v1144_v26  ;;  %1087 = vmatprep.subr.bf16.mxu1 %v1144_v26 }
  0x4f   : > { %1063 = vmatpush3.bf16.msra.mxu0 %v1144_v26  ;;  %1095 = vmatpush3.bf16.msra.mxu1 %v1144_v26 }
  0x52   : > { %1065 = vmatmul.mubr.bf16.vlgmr.msra.gmra.mrb[0].mxu0 %v1147_v27  ;;  %1073 = vmatmul.mubr.bf16.vlgmr.msra.gmra.mrb[0].mxu1 %v1148_v28 }
  0x53   : > { %1068 = vmatprep.mubr.bf16.mxu0 %v1149_v29  ;;  %1076 = vmatprep.mubr.bf16.mxu1 %v1150_v30 }
  0x5a   : > { %1069 = vmatmul.mubr.bf16.gmra.mrb[4].mxu0 %v1151_v31  ;;  %1077 = vmatmul.mubr.bf16.gmra.mrb[4].mxu1 %v1152_v32 }
 0x125   : > { %v1066_v37 = vpop.f32.mrb[0].mxu0  ;;  %v1074_v38 = vpop.f32.mrb[0].mxu1 }
 0x126   : > { %v639_v41 = vadd.f32 %v1066_v37, %v398_v33  ;;  %v647_v42 = vadd.f32 %v1074_v38, %v406_v34  ;;  %v574_v43 = vpop.f32.mrb[1].mxu0  ;;  %v606_v44 = vpop.f32.mrb[1].mxu1 }
 0x127   : > { %v637_v47 = vadd.f32 %v574_v43, %v396_v35  ;;  %v645_v48 = vadd.f32 %v606_v44, %v404_v36  ;;  %v1067_v49 = vpop.f32.mrb[2].mxu0  ;;  %v1075_v50 = vpop.f32.mrb[2].mxu1 }
 0x128   : > { %655 = vst [vmem:[#allocation2 + $0x10] sm:$0xff] %v639_v41  ;;  %663 = vst [vmem:[#allocation2 + $0x50] sm:$0xff] %v647_v42  ;;  %v640_v51 = vadd.f32 %v1067_v49, %v399_v39  ;;  %v648_v52 = vadd.f32 %v1075_v50, %v407_v40  ;;  %v577_v53 = vpop.f32.mrb[3].mxu0  ;;  %v609_v54 = vpop.f32.mrb[3].mxu1 }
 0x129   : > { %653 = vst [vmem:[#allocation2] sm:$0xff] %v637_v47  ;;  %661 = vst [vmem:[#allocation2 + $0x40] sm:$0xff] %v645_v48  ;;  %v638_v55 = vadd.f32 %v577_v53, %v397_v45  ;;  %v646_v56 = vadd.f32 %v609_v54, %v405_v46 }
 0x12a   : > { %656 = vst [vmem:[#allocation2 + $0x18] sm:$0xff] %v640_v51  ;;  %664 = vst [vmem:[#allocation2 + $0x58] sm:$0xff] %v648_v52 }
 0x12b   : > { %654 = vst [vmem:[#allocation2 + $0x8] sm:$0xff] %v638_v55  ;;  %662 = vst [vmem:[#allocation2 + $0x48] sm:$0xff] %v646_v56 }
 0x12d   : > { %v1070_v61 = vpop.f32.mrb[4].mxu0  ;;  %v1078_v62 = vpop.f32.mrb[4].mxu1  ;;  %672 = sbr.rel (%p947_p11) target bundleno = 323 (0x143), region = 81 }
 0x12e   : > { %v643_v1 = vadd.f32 %v1070_v61, %v402_v57  ;;  %v651_v2 = vadd.f32 %v1078_v62, %v410_v58  ;;  %v590_v3 = vpop.f32.mrb[5].mxu0  ;;  %v622_v4 = vpop.f32.mrb[5].mxu1 }
 0x12f   : > { %v641_v7 = vadd.f32 %v590_v3, %v400_v59  ;;  %v649_v8 = vadd.f32 %v622_v4, %v408_v60  ;;  %v1071_v9 = vpop.f32.mrb[6].mxu0  ;;  %v1079_v10 = vpop.f32.mrb[6].mxu1  ;;  %v675_v22 = vld [vmem:[#allocation2 + $0x10] sm:$0xff] (!%p947_p11) }
 0x130   : > { %659 = vst [vmem:[#allocation2 + $0x30] sm:$0xff] %v643_v1  ;;  %667 = vst [vmem:[#allocation2 + $0x70] sm:$0xff] %v651_v2  ;;  %v644_v11 = vadd.f32 %v1071_v9, %v403_v63  ;;  %v652_v12 = vadd.f32 %v1079_v10, %v411_v0  ;;  %v593_v13 = vpop.f32.mrb[7].mxu0  ;;  %v625_v14 = vpop.f32.mrb[7].mxu1  ;;  %v673_v17 = vld [vmem:[#allocation2] sm:$0xff] (!%p947_p11)  ;;  %v698_v25 = vadd.f32 (!%p947_p11), %v948_v19, %v675_v22  ;;  %v683_v37 = vld [vmem:[#allocation2 + $0x50] sm:$0xff] (!%p947_p11) }
 0x131   : > { %657 = vst [vmem:[#allocation2 + $0x20] sm:$0xff] %v641_v7  ;;  %665 = vst [vmem:[#allocation2 + $0x60] sm:$0xff] %v649_v8  ;;  %v642_v15 = vadd.f32 %v593_v13, %v401_v5  ;;  %v650_v16 = vadd.f32 %v625_v14, %v409_v6  ;;  %v696_v20 = vadd.f32 (!%p947_p11), %v948_v19, %v673_v17  ;;  %v676_v23 = vld [vmem:[#allocation2 + $0x18] sm:$0xff] (!%p947_p11)  ;;  %v681_v35 = vld [vmem:[#allocation2 + $0x40] sm:$0xff] (!%p947_p11) }
 0x132   : > { %660 = vst [vmem:[#allocation2 + $0x38] sm:$0xff] %v644_v11  ;;  %668 = vst [vmem:[#allocation2 + $0x78] sm:$0xff] %v652_v12  ;;  %v674_v18 = vld [vmem:[#allocation2 + $0x8] sm:$0xff] (!%p947_p11)  ;;  %v699_v26 = vadd.f32 (!%p947_p11), %v948_v19, %v676_v23  ;;  %v714_v38 = vmax.f32 (!%p947_p11), %v698_v25, 0.0  ;;  %v684_v42 = vld [vmem:[#allocation2 + $0x58] sm:$0xff] (!%p947_p11)  ;;  %v704_v47 = vadd.f32 (!%p947_p11), %v948_v19, %v681_v35  ;;  %v706_v52 = vadd.f32 (!%p947_p11), %v948_v19, %v683_v37 }
 0x133   : > { %658 = vst [vmem:[#allocation2 + $0x28] sm:$0xff] %v642_v15  ;;  %666 = vst [vmem:[#allocation2 + $0x68] sm:$0xff] %v650_v16  ;;  %v697_v21 = vadd.f32 (!%p947_p11), %v948_v19, %v674_v18  ;;  %v712_v31 = vmax.f32 (!%p947_p11), %v696_v20, 0.0  ;;  %v682_v36 = vld [vmem:[#allocation2 + $0x48] sm:$0xff] (!%p947_p11)  ;;  %v707_v57 = vadd.f32 (!%p947_p11), %v948_v19, %v684_v42 }
 0x134   : > { %v715_v39 = vmax.f32 %v699_v26, 0.0  ;;  %v705_v51 = vadd.f32 %v948_v19, %v682_v36  ;;  %v720_v56 = vmax.f32 %v704_v47, 0.0  ;;  %v722_v61 = vmax.f32 %v706_v52, 0.0 }
 0x135   : > { %v713_v32 = vmax.f32 %v697_v21, 0.0  ;;  %v723_v63 = vmax.f32 %v707_v57, 0.0 }
 0x136   : > { %v993_v49 = vpack.c.bf16 %v715_v39, %v714_v38  ;;  %v721_v60 = vmax.f32 %v705_v51, 0.0 }
 0x137   : > { %v679_v29 = vld [vmem:[#allocation2 + $0x30] sm:$0xff]  ;;  %v988_v44 = vpack.c.bf16 %v713_v32, %v712_v31  ;;  %v1013_v5 = vpack.c.bf16 %v723_v63, %v722_v61 }
 0x138   : > { %v677_v24 = vld [vmem:[#allocation2 + $0x20] sm:$0xff]  ;;  %v702_v34 = vadd.f32 %v948_v19, %v679_v29  ;;  %v687_v53 = vld [vmem:[#allocation2 + $0x70] sm:$0xff]  ;;  %1025 = vst [vmem:[%s1349_s3 + $0x8] sm:$0xff] %v993_v49   ;;  %v1008_v3 = vpack.c.bf16 %v721_v60, %v720_v56 }
 0x139   : > { %v700_v28 = vadd.f32 %v948_v19, %v677_v24  ;;  %v680_v30 = vld [vmem:[#allocation2 + $0x38] sm:$0xff]  ;;  %v685_v43 = vld [vmem:[#allocation2 + $0x60] sm:$0xff]  ;;  %989 = vst [vmem:[%s1349_s3] sm:$0xff] %v988_v44   ;;  %v710_v1 = vadd.f32 %v948_v19, %v687_v53  ;;  %1029 = vst [vmem:[%s1349_s3 + $0x28] sm:$0xff] %v1013_v5  }
 0x13a   : > { %v678_v27 = vld [vmem:[#allocation2 + $0x28] sm:$0xff]  ;;  %v703_v41 = vadd.f32 %v948_v19, %v680_v30  ;;  %v718_v46 = vmax.f32 %v702_v34, 0.0  ;;  %v688_v54 = vld [vmem:[#allocation2 + $0x78] sm:$0xff]  ;;  %v708_v58 = vadd.f32 %v948_v19, %v685_v43  ;;  %1028 = vst [vmem:[%s1349_s3 + $0x20] sm:$0xff] %v1008_v3  }
 0x13b   : > { %v701_v33 = vadd.f32 %v948_v19, %v678_v27  ;;  %v716_v40 = vmax.f32 %v700_v28, 0.0  ;;  %v686_v48 = vld [vmem:[#allocation2 + $0x68] sm:$0xff]  ;;  %v711_v2 = vadd.f32 %v948_v19, %v688_v54  ;;  %v726_v6 = vmax.f32 %v710_v1, 0.0 }
 0x13c   : > { %v719_v50 = vmax.f32 %v703_v41, 0.0  ;;  %v709_v62 = vadd.f32 %v948_v19, %v686_v48  ;;  %v724_v0 = vmax.f32 %v708_v58, 0.0 }
 0x13d   : > { %v717_v45 = vmax.f32 %v701_v33, 0.0  ;;  %v727_v7 = vmax.f32 %v711_v2, 0.0 }
 0x13e   : > { %v1003_v59 = vpack.c.bf16 %v719_v50, %v718_v46  ;;  %v725_v4 = vmax.f32 %v709_v62, 0.0 }
 0x13f   : > { %v998_v55 = vpack.c.bf16 %v717_v45, %v716_v40  ;;  %v1023_v9 = vpack.c.bf16 %v727_v7, %v726_v6 }
 0x140   : > { %1027 = vst [vmem:[%s1349_s3 + $0x18] sm:$0xff] %v1003_v59   ;;  %v1018_v8 = vpack.c.bf16 %v725_v4, %v724_v0 }
 0x141   : > { %1026 = vst [vmem:[%s1349_s3 + $0x10] sm:$0xff] %v998_v55   ;;  %1031 = vst [vmem:[%s1349_s3 + $0x38] sm:$0xff] %v1023_v9  }
 0x142   : > { %1030 = vst [vmem:[%s1349_s3 + $0x30] sm:$0xff] %v1018_v8  }
 0x143 PF: > { %s13_s16 = sadd.s32 1, %s1191_s16   ;;  %s1350_s12 = smov %s1179_s13 }
 0x144   : > { %p10_p12 = scmp.ge.s32.totalorder %s13_s16, 11   ;;  %s1351_s13 = smov %s1249_s20 }
 0x145   : > { %s1352_s14 = smov %s1187_s15  ;;  %s1353_s15 = smov %s1355_s17 }
 0x146   :  { %12 = sbr.rel (!%p10_p12) target bundleno = 3 (0x3), region = 122 }

// kernel: regnet_forward.72
= control target key start
LH: loop header
LB: loop body
LE: loop exit
PB: predicated region body
PF: predicated region fallthrough
CT: control target
= control target key end

     0   :  { %s705_s1 = inlined_call_operand.vmem [shape: bf16[128,128], index: 1, kind: input, shape index: {}]   ;;  %s706_s0 = inlined_call_operand.vmem [shape: bf16[128,128], index: 0, kind: input, shape index: {}]   ;;  %s707_s2 = inlined_call_operand.vmem [shape: f32[1,128], index: 2, kind: input, shape index: {}]   ;;  %s708_s3 = inlined_call_operand.vmem [shape: bf16[128,128], index: 3, kind: output, shape index: {}]  }
   0x1   :  { %v594_v0 = vld [vmem:[%s705_s1] sm:$0xff]   ;;  %v595_v1 = vld [vmem:[%s705_s1 + $0x8] sm:$0xff]   ;;  %v596_v2 = vld [vmem:[%s705_s1 + $0x10] sm:$0xff]  }
   0x2   :  { %546 = vmatprep.subr.bf16.mxu0 %v594_v0  ;;  %578 = vmatprep.subr.bf16.mxu1 %v594_v0  ;;  %v597_v3 = vld [vmem:[%s705_s1 + $0x18] sm:$0xff]   ;;  %v602_v4 = vld [vmem:[%s706_s0] sm:$0xff]   ;;  %v599_v7 = vld [vmem:[%s705_s1 + $0x28] sm:$0xff]  }
   0x3   :  { %547 = vmatpush3.bf16.msra.mxu0 %v594_v0  ;;  %586 = vmatpush3.bf16.msra.mxu1 %v594_v0  ;;  %v603_v5 = vld [vmem:[%s706_s0 + $0x20] sm:$0xff]   ;;  %v600_v8 = vld [vmem:[%s705_s1 + $0x30] sm:$0xff]   ;;  %v601_v9 = vld [vmem:[%s705_s1 + $0x38] sm:$0xff]  }
   0x4   :  { %548 = vmatprep.subr.bf16.mxu0 %v595_v1  ;;  %579 = vmatprep.subr.bf16.mxu1 %v595_v1  ;;  %v598_v6 = vld [vmem:[%s705_s1 + $0x20] sm:$0xff]   ;;  %v604_v10 = vld [vmem:[%s706_s0 + $0x8] sm:$0xff]   ;;  %v606_v12 = vld [vmem:[%s706_s0 + $0x10] sm:$0xff]  }
   0x5   :  { %562 = vmatprep.mubr.bf16.mxu0 %v602_v4  ;;  %570 = vmatprep.mubr.bf16.mxu1 %v603_v5  ;;  %v605_v11 = vld [vmem:[%s706_s0 + $0x28] sm:$0xff]   ;;  %v607_v13 = vld [vmem:[%s706_s0 + $0x30] sm:$0xff]   ;;  %v608_v14 = vld [vmem:[%s706_s0 + $0x18] sm:$0xff]  }
   0x6   :  { %v609_v15 = vld [vmem:[%s706_s0 + $0x38] sm:$0xff]   ;;  %v450_v17 = vld [vmem:[%s707_s2] ss:$0 sm:$0xff] }
   0x7   :  { %549 = vmatpush3.bf16.msra.mxu0 %v595_v1  ;;  %587 = vmatpush3.bf16.msra.mxu1 %v595_v1 }
   0x8   :  { %550 = vmatprep.subr.bf16.mxu0 %v596_v2  ;;  %580 = vmatprep.subr.bf16.mxu1 %v596_v2 }
   0xb   :  { %551 = vmatpush3.bf16.msra.mxu0 %v596_v2  ;;  %588 = vmatpush3.bf16.msra.mxu1 %v596_v2 }
   0xc   :  { %552 = vmatprep.subr.bf16.mxu0 %v597_v3  ;;  %581 = vmatprep.subr.bf16.mxu1 %v597_v3 }
   0xf   :  { %553 = vmatpush3.bf16.msra.mxu0 %v597_v3  ;;  %589 = vmatpush3.bf16.msra.mxu1 %v597_v3 }
  0x10   :  { %554 = vmatprep.subr.bf16.mxu0 %v598_v6  ;;  %582 = vmatprep.subr.bf16.mxu1 %v598_v6 }
  0x13   :  { %555 = vmatpush3.bf16.msra.mxu0 %v598_v6  ;;  %590 = vmatpush3.bf16.msra.mxu1 %v598_v6 }
  0x14   :  { %556 = vmatprep.subr.bf16.mxu0 %v599_v7  ;;  %583 = vmatprep.subr.bf16.mxu1 %v599_v7 }
  0x17   :  { %557 = vmatpush3.bf16.msra.mxu0 %v599_v7  ;;  %591 = vmatpush3.bf16.msra.mxu1 %v599_v7 }
  0x18   :  { %558 = vmatprep.subr.bf16.mxu0 %v600_v8  ;;  %584 = vmatprep.subr.bf16.mxu1 %v600_v8 }
  0x1b   :  { %559 = vmatpush3.bf16.msra.mxu0 %v600_v8  ;;  %592 = vmatpush3.bf16.msra.mxu1 %v600_v8 }
  0x1c   :  { %560 = vmatprep.subr.bf16.mxu0 %v601_v9  ;;  %585 = vmatprep.subr.bf16.mxu1 %v601_v9 }
  0x1f   :  { %561 = vmatpush3.bf16.msra.mxu0 %v601_v9  ;;  %593 = vmatpush3.bf16.msra.mxu1 %v601_v9 }
  0x22   :  { %563 = vmatmul.mubr.bf16.vlgmr.msra.gmra.mrb[0].mxu0 %v604_v10  ;;  %571 = vmatmul.mubr.bf16.vlgmr.msra.gmra.mrb[0].mxu1 %v605_v11 }
  0x23   :  { %566 = vmatprep.mubr.bf16.mxu0 %v606_v12  ;;  %574 = vmatprep.mubr.bf16.mxu1 %v607_v13 }
  0x2a   :  { %567 = vmatmul.mubr.bf16.gmra.mrb[4].mxu0 %v608_v14  ;;  %575 = vmatmul.mubr.bf16.gmra.mrb[4].mxu1 %v609_v15 }
  0xf5   :  { %v564_v16 = vpop.f32.mrb[0].mxu0  ;;  %v572_v18 = vpop.f32.mrb[0].mxu1 }
  0xf6   :  { %v213_v19 = vpop.f32.mrb[1].mxu0  ;;  %v245_v20 = vpop.f32.mrb[1].mxu1  ;;  %v336_v23 = vadd.f32 %v564_v16, %v450_v17  ;;  %v344_v24 = vadd.f32 %v572_v18, %v450_v17 }
  0xf7   :  { %v565_v21 = vpop.f32.mrb[2].mxu0  ;;  %v573_v22 = vpop.f32.mrb[2].mxu1  ;;  %v334_v29 = vadd.f32 %v450_v17, %v213_v19  ;;  %v342_v30 = vadd.f32 %v450_v17, %v245_v20 }
  0xf8   :  { %v337_v25 = vadd.f32 %v565_v21, %v450_v17  ;;  %v345_v26 = vadd.f32 %v573_v22, %v450_v17  ;;  %v216_v27 = vpop.f32.mrb[3].mxu0  ;;  %v248_v28 = vpop.f32.mrb[3].mxu1 }
  0xf9   :  { %v335_v31 = vadd.f32 %v450_v17, %v216_v27  ;;  %v343_v32 = vadd.f32 %v450_v17, %v248_v28 }
  0xfa   :  { %v491_v33 = vpack.c.bf16 %v337_v25, %v336_v23  ;;  %v511_v34 = vpack.c.bf16 %v345_v26, %v344_v24 }
  0xfb   :  { %v486_v35 = vpack.c.bf16 %v335_v31, %v334_v29  ;;  %v506_v36 = vpack.c.bf16 %v343_v32, %v342_v30 }
  0xfc   :  { %523 = vst [vmem:[%s708_s3 + $0x8] sm:$0xff] %v491_v33   ;;  %527 = vst [vmem:[%s708_s3 + $0x28] sm:$0xff] %v511_v34  }
  0xfd   :  { %487 = vst [vmem:[%s708_s3] sm:$0xff] %v486_v35   ;;  %526 = vst [vmem:[%s708_s3 + $0x20] sm:$0xff] %v506_v36   ;;  %v568_v37 = vpop.f32.mrb[4].mxu0  ;;  %v576_v38 = vpop.f32.mrb[4].mxu1 }
  0xfe   :  { %v229_v39 = vpop.f32.mrb[5].mxu0  ;;  %v261_v40 = vpop.f32.mrb[5].mxu1  ;;  %v340_v43 = vadd.f32 %v568_v37, %v450_v17  ;;  %v348_v44 = vadd.f32 %v576_v38, %v450_v17 }
  0xff   :  { %v569_v41 = vpop.f32.mrb[6].mxu0  ;;  %v577_v42 = vpop.f32.mrb[6].mxu1  ;;  %v338_v49 = vadd.f32 %v450_v17, %v229_v39  ;;  %v346_v50 = vadd.f32 %v450_v17, %v261_v40 }
 0x100   :  { %v341_v45 = vadd.f32 %v569_v41, %v450_v17  ;;  %v349_v46 = vadd.f32 %v577_v42, %v450_v17  ;;  %v232_v47 = vpop.f32.mrb[7].mxu0  ;;  %v264_v48 = vpop.f32.mrb[7].mxu1 }
 0x101   :  { %v339_v51 = vadd.f32 %v450_v17, %v232_v47  ;;  %v347_v52 = vadd.f32 %v450_v17, %v264_v48 }
 0x102   :  { %v501_v53 = vpack.c.bf16 %v341_v45, %v340_v43  ;;  %v521_v54 = vpack.c.bf16 %v349_v46, %v348_v44 }
 0x103   :  { %v496_v55 = vpack.c.bf16 %v339_v51, %v338_v49  ;;  %v516_v56 = vpack.c.bf16 %v347_v52, %v346_v50 }
 0x104   :  { %525 = vst [vmem:[%s708_s3 + $0x18] sm:$0xff] %v501_v53   ;;  %529 = vst [vmem:[%s708_s3 + $0x38] sm:$0xff] %v521_v54  }
 0x105   :  { %524 = vst [vmem:[%s708_s3 + $0x10] sm:$0xff] %v496_v55   ;;  %528 = vst [vmem:[%s708_s3 + $0x30] sm:$0xff] %v516_v56  }

// kernel: regnet_forward.76
= control target key start
LH: loop header
LB: loop body
LE: loop exit
PB: predicated region body
PF: predicated region fallthrough
CT: control target
= control target key end

     0   :  { %s874_s1 = inlined_call_operand.vmem [shape: bf16[128,128], index: 1, kind: input, shape index: {}]   ;;  %s875_s0 = inlined_call_operand.vmem [shape: bf16[128,128], index: 0, kind: input, shape index: {}]   ;;  %s876_s3 = inlined_call_operand.vmem [shape: bf16[128,128], index: 3, kind: input, shape index: {}]   ;;  %s877_s2 = inlined_call_operand.vmem [shape: f32[1,128], index: 2, kind: input, shape index: {}]   ;;  %s878_s4 = inlined_call_operand.vmem [shape: bf16[128,128], index: 4, kind: output, shape index: {}]  }
   0x1   :  { %v700_v0 = vld [vmem:[%s874_s1] sm:$0xff]   ;;  %v701_v1 = vld [vmem:[%s874_s1 + $0x8] sm:$0xff]   ;;  %v702_v2 = vld [vmem:[%s874_s1 + $0x10] sm:$0xff]  }
   0x2   :  { %652 = vmatprep.subr.bf16.mxu0 %v700_v0  ;;  %684 = vmatprep.subr.bf16.mxu1 %v700_v0  ;;  %v703_v3 = vld [vmem:[%s874_s1 + $0x18] sm:$0xff]   ;;  %v708_v4 = vld [vmem:[%s875_s0] sm:$0xff]   ;;  %v705_v7 = vld [vmem:[%s874_s1 + $0x28] sm:$0xff]  }
   0x3   :  { %653 = vmatpush3.bf16.msra.mxu0 %v700_v0  ;;  %692 = vmatpush3.bf16.msra.mxu1 %v700_v0  ;;  %v709_v5 = vld [vmem:[%s875_s0 + $0x20] sm:$0xff]   ;;  %v706_v8 = vld [vmem:[%s874_s1 + $0x30] sm:$0xff]   ;;  %v707_v9 = vld [vmem:[%s874_s1 + $0x38] sm:$0xff]  }
   0x4   :  { %654 = vmatprep.subr.bf16.mxu0 %v701_v1  ;;  %685 = vmatprep.subr.bf16.mxu1 %v701_v1  ;;  %v704_v6 = vld [vmem:[%s874_s1 + $0x20] sm:$0xff]   ;;  %v710_v10 = vld [vmem:[%s875_s0 + $0x8] sm:$0xff]   ;;  %v712_v12 = vld [vmem:[%s875_s0 + $0x10] sm:$0xff]  }
   0x5   :  { %668 = vmatprep.mubr.bf16.mxu0 %v708_v4  ;;  %676 = vmatprep.mubr.bf16.mxu1 %v709_v5  ;;  %v711_v11 = vld [vmem:[%s875_s0 + $0x28] sm:$0xff]   ;;  %v713_v13 = vld [vmem:[%s875_s0 + $0x30] sm:$0xff]   ;;  %v714_v14 = vld [vmem:[%s875_s0 + $0x18] sm:$0xff]  }
   0x6   :  { %v715_v15 = vld [vmem:[%s875_s0 + $0x38] sm:$0xff]   ;;  %v622_v16 = vld [vmem:[%s876_s3 + $0x8] sm:$0xff]   ;;  %v551_v18 = vld [vmem:[%s876_s3] sm:$0xff]  }
   0x7   :  { %655 = vmatpush3.bf16.msra.mxu0 %v701_v1  ;;  %693 = vmatpush3.bf16.msra.mxu1 %v701_v1  ;;  %v626_v17 = vld [vmem:[%s876_s3 + $0x28] sm:$0xff]   ;;  %v625_v19 = vld [vmem:[%s876_s3 + $0x20] sm:$0xff]   ;;  %v809_v21 = vld [vmem:[%s876_s3 + $0x18] sm:$0xff]   ;;  %v556_v23 = vunpack.c.l.bf16 %v622_v16  ;;  %v552_v25 = vunpack.c.l.bf16 %v551_v18  ;;  %v557_v31 = vunpack.c.h.bf16 %v622_v16  ;;  %v553_v33 = vunpack.c.h.bf16 %v551_v18 }
   0x8   :  { %656 = vmatprep.subr.bf16.mxu0 %v702_v2  ;;  %686 = vmatprep.subr.bf16.mxu1 %v702_v2  ;;  %v804_v20 = vld [vmem:[%s877_s2] ss:$0 sm:$0xff]  ;;  %v814_v22 = vld [vmem:[%s876_s3 + $0x38] sm:$0xff]   ;;  %v572_v24 = vunpack.c.l.bf16 %v626_v17  ;;  %v568_v26 = vunpack.c.l.bf16 %v625_v19  ;;  %v819_v27 = vld [vmem:[%s876_s3 + $0x10] sm:$0xff]   ;;  %v573_v32 = vunpack.c.h.bf16 %v626_v17  ;;  %v569_v34 = vunpack.c.h.bf16 %v625_v19 }
   0x9   :  { %v824_v28 = vld [vmem:[%s876_s3 + $0x30] sm:$0xff]   ;;  %v564_v39 = vunpack.c.l.bf16 %v809_v21  ;;  %v580_v40 = vunpack.c.l.bf16 %v814_v22  ;;  %v560_v45 = vunpack.c.l.bf16 %v819_v27  ;;  %v565_v59 = vunpack.c.h.bf16 %v809_v21 }
   0xa   :  { %v576_v46 = vunpack.c.l.bf16 %v824_v28  ;;  %v581_v60 = vunpack.c.h.bf16 %v814_v22  ;;  %v561_v63 = vunpack.c.h.bf16 %v819_v27  ;;  %v577_v0 = vunpack.c.h.bf16 %v824_v28 }
   0xb   :  { %657 = vmatpush3.bf16.msra.mxu0 %v702_v2  ;;  %694 = vmatpush3.bf16.msra.mxu1 %v702_v2 }
   0xc   :  { %658 = vmatprep.subr.bf16.mxu0 %v703_v3  ;;  %687 = vmatprep.subr.bf16.mxu1 %v703_v3 }
   0xf   :  { %659 = vmatpush3.bf16.msra.mxu0 %v703_v3  ;;  %695 = vmatpush3.bf16.msra.mxu1 %v703_v3 }
  0x10   :  { %660 = vmatprep.subr.bf16.mxu0 %v704_v6  ;;  %688 = vmatprep.subr.bf16.mxu1 %v704_v6 }
  0x13   :  { %661 = vmatpush3.bf16.msra.mxu0 %v704_v6  ;;  %696 = vmatpush3.bf16.msra.mxu1 %v704_v6 }
  0x14   :  { %662 = vmatprep.subr.bf16.mxu0 %v705_v7  ;;  %689 = vmatprep.subr.bf16.mxu1 %v705_v7 }
  0x17   :  { %663 = vmatpush3.bf16.msra.mxu0 %v705_v7  ;;  %697 = vmatpush3.bf16.msra.mxu1 %v705_v7 }
  0x18   :  { %664 = vmatprep.subr.bf16.mxu0 %v706_v8  ;;  %690 = vmatprep.subr.bf16.mxu1 %v706_v8 }
  0x1b   :  { %665 = vmatpush3.bf16.msra.mxu0 %v706_v8  ;;  %698 = vmatpush3.bf16.msra.mxu1 %v706_v8 }
  0x1c   :  { %666 = vmatprep.subr.bf16.mxu0 %v707_v9  ;;  %691 = vmatprep.subr.bf16.mxu1 %v707_v9 }
  0x1f   :  { %667 = vmatpush3.bf16.msra.mxu0 %v707_v9  ;;  %699 = vmatpush3.bf16.msra.mxu1 %v707_v9 }
  0x22   :  { %669 = vmatmul.mubr.bf16.vlgmr.msra.gmra.mrb[0].mxu0 %v710_v10  ;;  %677 = vmatmul.mubr.bf16.vlgmr.msra.gmra.mrb[0].mxu1 %v711_v11 }
  0x23   :  { %672 = vmatprep.mubr.bf16.mxu0 %v712_v12  ;;  %680 = vmatprep.mubr.bf16.mxu1 %v713_v13 }
  0x2a   :  { %673 = vmatmul.mubr.bf16.gmra.mrb[4].mxu0 %v714_v14  ;;  %681 = vmatmul.mubr.bf16.gmra.mrb[4].mxu1 %v715_v15 }
  0xf5   :  { %v670_v29 = vpop.f32.mrb[0].mxu0  ;;  %v678_v30 = vpop.f32.mrb[0].mxu1 }
  0xf6   :  { %v339_v35 = vadd.f32 %v670_v29, %v804_v20  ;;  %v347_v36 = vadd.f32 %v678_v30, %v804_v20  ;;  %v216_v37 = vpop.f32.mrb[1].mxu0  ;;  %v248_v38 = vpop.f32.mrb[1].mxu1 }
  0xf7   :  { %v337_v41 = vadd.f32 %v804_v20, %v216_v37  ;;  %v345_v42 = vadd.f32 %v804_v20, %v248_v38  ;;  %v671_v43 = vpop.f32.mrb[2].mxu0  ;;  %v679_v44 = vpop.f32.mrb[2].mxu1 }
  0xf8   :  { %v387_v47 = vadd.f32 %v556_v23, %v339_v35  ;;  %v395_v48 = vadd.f32 %v572_v24, %v347_v36  ;;  %v340_v49 = vadd.f32 %v671_v43, %v804_v20  ;;  %v348_v50 = vadd.f32 %v679_v44, %v804_v20  ;;  %v219_v51 = vpop.f32.mrb[3].mxu0  ;;  %v251_v52 = vpop.f32.mrb[3].mxu1 }
  0xf9   :  { %v385_v53 = vadd.f32 %v552_v25, %v337_v41  ;;  %v393_v54 = vadd.f32 %v568_v26, %v345_v42  ;;  %v338_v55 = vadd.f32 %v804_v20, %v219_v51  ;;  %v346_v56 = vadd.f32 %v804_v20, %v251_v52 }
  0xfa   :  { %v388_v57 = vadd.f32 %v557_v31, %v340_v49  ;;  %v396_v58 = vadd.f32 %v573_v32, %v348_v50  ;;  %v403_v1 = vmax.f32 %v387_v47, 0.0  ;;  %v411_v2 = vmax.f32 %v395_v48, 0.0 }
  0xfb   :  { %v386_v61 = vadd.f32 %v553_v33, %v338_v55  ;;  %v394_v62 = vadd.f32 %v569_v34, %v346_v56  ;;  %v401_v5 = vmax.f32 %v385_v53, 0.0  ;;  %v409_v6 = vmax.f32 %v393_v54, 0.0 }
  0xfc   :  { %v404_v3 = vmax.f32 %v388_v57, 0.0  ;;  %v412_v4 = vmax.f32 %v396_v58, 0.0 }
  0xfd   :  { %v402_v7 = vmax.f32 %v386_v61, 0.0  ;;  %v410_v8 = vmax.f32 %v394_v62, 0.0  ;;  %v674_v9 = vpop.f32.mrb[4].mxu0  ;;  %v682_v10 = vpop.f32.mrb[4].mxu1 }
  0xfe   :  { %v590_v11 = vpack.c.bf16 %v404_v3, %v403_v1  ;;  %v610_v12 = vpack.c.bf16 %v412_v4, %v411_v2  ;;  %v343_v13 = vadd.f32 %v674_v9, %v804_v20  ;;  %v351_v14 = vadd.f32 %v682_v10, %v804_v20  ;;  %v232_v15 = vpop.f32.mrb[5].mxu0  ;;  %v264_v16 = vpop.f32.mrb[5].mxu1 }
  0xff   :  { %v585_v17 = vpack.c.bf16 %v402_v7, %v401_v5  ;;  %v605_v18 = vpack.c.bf16 %v410_v8, %v409_v6  ;;  %v341_v19 = vadd.f32 %v804_v20, %v232_v15  ;;  %v349_v21 = vadd.f32 %v804_v20, %v264_v16  ;;  %v675_v22 = vpop.f32.mrb[6].mxu0  ;;  %v683_v23 = vpop.f32.mrb[6].mxu1 }
 0x100   :  { %629 = vst [vmem:[%s878_s4 + $0x8] sm:$0xff] %v590_v11   ;;  %633 = vst [vmem:[%s878_s4 + $0x28] sm:$0xff] %v610_v12   ;;  %v391_v24 = vadd.f32 %v564_v39, %v343_v13  ;;  %v399_v25 = vadd.f32 %v580_v40, %v351_v14  ;;  %v344_v26 = vadd.f32 %v675_v22, %v804_v20  ;;  %v235_v28 = vpop.f32.mrb[7].mxu0  ;;  %v267_v29 = vpop.f32.mrb[7].mxu1 }
 0x101   :  { %v352_v27 = vadd.f32 %v683_v23, %v804_v20  ;;  %586 = vst [vmem:[%s878_s4] sm:$0xff] %v585_v17   ;;  %632 = vst [vmem:[%s878_s4 + $0x20] sm:$0xff] %v605_v18   ;;  %v389_v30 = vadd.f32 %v560_v45, %v341_v19  ;;  %v397_v31 = vadd.f32 %v576_v46, %v349_v21 }
 0x102   :  { %v342_v32 = vadd.f32 %v804_v20, %v235_v28  ;;  %v350_v33 = vadd.f32 %v804_v20, %v267_v29  ;;  %v392_v34 = vadd.f32 %v565_v59, %v344_v26  ;;  %v407_v38 = vmax.f32 %v391_v24, 0.0 }
 0x103   :  { %v400_v35 = vadd.f32 %v581_v60, %v352_v27  ;;  %v415_v39 = vmax.f32 %v399_v25, 0.0  ;;  %v405_v42 = vmax.f32 %v389_v30, 0.0  ;;  %v413_v43 = vmax.f32 %v397_v31, 0.0 }
 0x104   :  { %v390_v36 = vadd.f32 %v561_v63, %v342_v32  ;;  %v398_v37 = vadd.f32 %v577_v0, %v350_v33  ;;  %v408_v40 = vmax.f32 %v392_v34, 0.0 }
 0x105   :  { %v416_v41 = vmax.f32 %v400_v35, 0.0 }
 0x106   :  { %v406_v44 = vmax.f32 %v390_v36, 0.0  ;;  %v414_v47 = vmax.f32 %v398_v37, 0.0  ;;  %v600_v48 = vpack.c.bf16 %v408_v40, %v407_v38 }
 0x107   :  { %v620_v49 = vpack.c.bf16 %v416_v41, %v415_v39 }
 0x108   :  { %v595_v45 = vpack.c.bf16 %v406_v44, %v405_v42  ;;  %v615_v46 = vpack.c.bf16 %v414_v47, %v413_v43  ;;  %631 = vst [vmem:[%s878_s4 + $0x18] sm:$0xff] %v600_v48  }
 0x109   :  { %635 = vst [vmem:[%s878_s4 + $0x38] sm:$0xff] %v620_v49  }
 0x10a   :  { %630 = vst [vmem:[%s878_s4 + $0x10] sm:$0xff] %v595_v45   ;;  %634 = vst [vmem:[%s878_s4 + $0x30] sm:$0xff] %v615_v46  }

// kernel: regnet_forward.78
= control target key start
LH: loop header
LB: loop body
LE: loop exit
PB: predicated region body
PF: predicated region fallthrough
CT: control target
= control target key end

     0   :  { %s721_s1 = inlined_call_operand.vmem [shape: bf16[128,128], index: 1, kind: input, shape index: {}]   ;;  %s722_s0 = inlined_call_operand.vmem [shape: bf16[128,128], index: 0, kind: input, shape index: {}]   ;;  %s723_s2 = inlined_call_operand.vmem [shape: f32[1,128], index: 2, kind: input, shape index: {}]   ;;  %s724_s3 = inlined_call_operand.vmem [shape: bf16[128,128], index: 3, kind: output, shape index: {}]  }
   0x1   :  { %v610_v0 = vld [vmem:[%s721_s1] sm:$0xff]   ;;  %v611_v1 = vld [vmem:[%s721_s1 + $0x8] sm:$0xff]   ;;  %v612_v2 = vld [vmem:[%s721_s1 + $0x10] sm:$0xff]  }
   0x2   :  { %562 = vmatprep.subr.bf16.mxu0 %v610_v0  ;;  %594 = vmatprep.subr.bf16.mxu1 %v610_v0  ;;  %v613_v3 = vld [vmem:[%s721_s1 + $0x18] sm:$0xff]   ;;  %v618_v4 = vld [vmem:[%s722_s0] sm:$0xff]   ;;  %v615_v7 = vld [vmem:[%s721_s1 + $0x28] sm:$0xff]  }
   0x3   :  { %563 = vmatpush3.bf16.msra.mxu0 %v610_v0  ;;  %602 = vmatpush3.bf16.msra.mxu1 %v610_v0  ;;  %v619_v5 = vld [vmem:[%s722_s0 + $0x20] sm:$0xff]   ;;  %v616_v8 = vld [vmem:[%s721_s1 + $0x30] sm:$0xff]   ;;  %v617_v9 = vld [vmem:[%s721_s1 + $0x38] sm:$0xff]  }
   0x4   :  { %564 = vmatprep.subr.bf16.mxu0 %v611_v1  ;;  %595 = vmatprep.subr.bf16.mxu1 %v611_v1  ;;  %v614_v6 = vld [vmem:[%s721_s1 + $0x20] sm:$0xff]   ;;  %v620_v10 = vld [vmem:[%s722_s0 + $0x8] sm:$0xff]   ;;  %v622_v12 = vld [vmem:[%s722_s0 + $0x10] sm:$0xff]  }
   0x5   :  { %578 = vmatprep.mubr.bf16.mxu0 %v618_v4  ;;  %586 = vmatprep.mubr.bf16.mxu1 %v619_v5  ;;  %v621_v11 = vld [vmem:[%s722_s0 + $0x28] sm:$0xff]   ;;  %v623_v13 = vld [vmem:[%s722_s0 + $0x30] sm:$0xff]   ;;  %v624_v14 = vld [vmem:[%s722_s0 + $0x18] sm:$0xff]  }
   0x6   :  { %v625_v15 = vld [vmem:[%s722_s0 + $0x38] sm:$0xff]   ;;  %v466_v16 = vld [vmem:[%s723_s2] ss:$0 sm:$0xff] }
   0x7   :  { %565 = vmatpush3.bf16.msra.mxu0 %v611_v1  ;;  %603 = vmatpush3.bf16.msra.mxu1 %v611_v1 }
   0x8   :  { %566 = vmatprep.subr.bf16.mxu0 %v612_v2  ;;  %596 = vmatprep.subr.bf16.mxu1 %v612_v2 }
   0xb   :  { %567 = vmatpush3.bf16.msra.mxu0 %v612_v2  ;;  %604 = vmatpush3.bf16.msra.mxu1 %v612_v2 }
   0xc   :  { %568 = vmatprep.subr.bf16.mxu0 %v613_v3  ;;  %597 = vmatprep.subr.bf16.mxu1 %v613_v3 }
   0xf   :  { %569 = vmatpush3.bf16.msra.mxu0 %v613_v3  ;;  %605 = vmatpush3.bf16.msra.mxu1 %v613_v3 }
  0x10   :  { %570 = vmatprep.subr.bf16.mxu0 %v614_v6  ;;  %598 = vmatprep.subr.bf16.mxu1 %v614_v6 }
  0x13   :  { %571 = vmatpush3.bf16.msra.mxu0 %v614_v6  ;;  %606 = vmatpush3.bf16.msra.mxu1 %v614_v6 }
  0x14   :  { %572 = vmatprep.subr.bf16.mxu0 %v615_v7  ;;  %599 = vmatprep.subr.bf16.mxu1 %v615_v7 }
  0x17   :  { %573 = vmatpush3.bf16.msra.mxu0 %v615_v7  ;;  %607 = vmatpush3.bf16.msra.mxu1 %v615_v7 }
  0x18   :  { %574 = vmatprep.subr.bf16.mxu0 %v616_v8  ;;  %600 = vmatprep.subr.bf16.mxu1 %v616_v8 }
  0x1b   :  { %575 = vmatpush3.bf16.msra.mxu0 %v616_v8  ;;  %608 = vmatpush3.bf16.msra.mxu1 %v616_v8 }
  0x1c   :  { %576 = vmatprep.subr.bf16.mxu0 %v617_v9  ;;  %601 = vmatprep.subr.bf16.mxu1 %v617_v9 }
  0x1f   :  { %577 = vmatpush3.bf16.msra.mxu0 %v617_v9  ;;  %609 = vmatpush3.bf16.msra.mxu1 %v617_v9 }
  0x22   :  { %579 = vmatmul.mubr.bf16.vlgmr.msra.gmra.mrb[0].mxu0 %v620_v10  ;;  %587 = vmatmul.mubr.bf16.vlgmr.msra.gmra.mrb[0].mxu1 %v621_v11 }
  0x23   :  { %582 = vmatprep.mubr.bf16.mxu0 %v622_v12  ;;  %590 = vmatprep.mubr.bf16.mxu1 %v623_v13 }
  0x2a   :  { %583 = vmatmul.mubr.bf16.gmra.mrb[4].mxu0 %v624_v14  ;;  %591 = vmatmul.mubr.bf16.gmra.mrb[4].mxu1 %v625_v15 }
  0xf5   :  { %v580_v17 = vpop.f32.mrb[0].mxu0  ;;  %v588_v18 = vpop.f32.mrb[0].mxu1 }
  0xf6   :  { %v336_v19 = vadd.f32 %v580_v17, %v466_v16  ;;  %v344_v20 = vadd.f32 %v588_v18, %v466_v16  ;;  %v213_v21 = vpop.f32.mrb[1].mxu0  ;;  %v245_v22 = vpop.f32.mrb[1].mxu1 }
  0xf7   :  { %v334_v23 = vadd.f32 %v466_v16, %v213_v21  ;;  %v342_v24 = vadd.f32 %v466_v16, %v245_v22  ;;  %v581_v25 = vpop.f32.mrb[2].mxu0  ;;  %v589_v26 = vpop.f32.mrb[2].mxu1 }
  0xf8   :  { %v337_v27 = vadd.f32 %v581_v25, %v466_v16  ;;  %v345_v28 = vadd.f32 %v589_v26, %v466_v16  ;;  %v216_v29 = vpop.f32.mrb[3].mxu0  ;;  %v248_v30 = vpop.f32.mrb[3].mxu1  ;;  %v352_v33 = vmax.f32 %v336_v19, 0.0  ;;  %v360_v34 = vmax.f32 %v344_v20, 0.0 }
  0xf9   :  { %v335_v31 = vadd.f32 %v466_v16, %v216_v29  ;;  %v343_v32 = vadd.f32 %v466_v16, %v248_v30  ;;  %v350_v37 = vmax.f32 %v334_v23, 0.0  ;;  %v358_v38 = vmax.f32 %v342_v24, 0.0 }
  0xfa   :  { %v353_v35 = vmax.f32 %v337_v27, 0.0  ;;  %v361_v36 = vmax.f32 %v345_v28, 0.0 }
  0xfb   :  { %v351_v39 = vmax.f32 %v335_v31, 0.0  ;;  %v359_v40 = vmax.f32 %v343_v32, 0.0 }
  0xfc   :  { %v507_v41 = vpack.c.bf16 %v353_v35, %v352_v33  ;;  %v527_v42 = vpack.c.bf16 %v361_v36, %v360_v34 }
  0xfd   :  { %v502_v43 = vpack.c.bf16 %v351_v39, %v350_v37  ;;  %v522_v44 = vpack.c.bf16 %v359_v40, %v358_v38  ;;  %v584_v45 = vpop.f32.mrb[4].mxu0  ;;  %v592_v46 = vpop.f32.mrb[4].mxu1 }
  0xfe   :  { %539 = vst [vmem:[%s724_s3 + $0x8] sm:$0xff] %v507_v41   ;;  %543 = vst [vmem:[%s724_s3 + $0x28] sm:$0xff] %v527_v42   ;;  %v340_v47 = vadd.f32 %v584_v45, %v466_v16  ;;  %v348_v48 = vadd.f32 %v592_v46, %v466_v16  ;;  %v229_v49 = vpop.f32.mrb[5].mxu0  ;;  %v261_v50 = vpop.f32.mrb[5].mxu1 }
  0xff   :  { %503 = vst [vmem:[%s724_s3] sm:$0xff] %v502_v43   ;;  %542 = vst [vmem:[%s724_s3 + $0x20] sm:$0xff] %v522_v44   ;;  %v338_v51 = vadd.f32 %v466_v16, %v229_v49  ;;  %v346_v52 = vadd.f32 %v466_v16, %v261_v50  ;;  %v585_v53 = vpop.f32.mrb[6].mxu0  ;;  %v593_v54 = vpop.f32.mrb[6].mxu1 }
 0x100   :  { %v341_v55 = vadd.f32 %v585_v53, %v466_v16  ;;  %v349_v56 = vadd.f32 %v593_v54, %v466_v16  ;;  %v232_v57 = vpop.f32.mrb[7].mxu0  ;;  %v264_v58 = vpop.f32.mrb[7].mxu1  ;;  %v356_v61 = vmax.f32 %v340_v47, 0.0  ;;  %v364_v62 = vmax.f32 %v348_v48, 0.0 }
 0x101   :  { %v339_v59 = vadd.f32 %v466_v16, %v232_v57  ;;  %v347_v60 = vadd.f32 %v466_v16, %v264_v58  ;;  %v354_v1 = vmax.f32 %v338_v51, 0.0  ;;  %v362_v2 = vmax.f32 %v346_v52, 0.0 }
 0x102   :  { %v357_v63 = vmax.f32 %v341_v55, 0.0  ;;  %v365_v0 = vmax.f32 %v349_v56, 0.0 }
 0x103   :  { %v355_v3 = vmax.f32 %v339_v59, 0.0  ;;  %v363_v4 = vmax.f32 %v347_v60, 0.0 }
 0x104   :  { %v517_v5 = vpack.c.bf16 %v357_v63, %v356_v61  ;;  %v537_v6 = vpack.c.bf16 %v365_v0, %v364_v62 }
 0x105   :  { %v512_v7 = vpack.c.bf16 %v355_v3, %v354_v1  ;;  %v532_v8 = vpack.c.bf16 %v363_v4, %v362_v2 }
 0x106   :  { %541 = vst [vmem:[%s724_s3 + $0x18] sm:$0xff] %v517_v5   ;;  %545 = vst [vmem:[%s724_s3 + $0x38] sm:$0xff] %v537_v6  }
 0x107   :  { %540 = vst [vmem:[%s724_s3 + $0x10] sm:$0xff] %v512_v7   ;;  %544 = vst [vmem:[%s724_s3 + $0x30] sm:$0xff] %v532_v8  }

// kernel: regnet_forward.79
= control target key start
LH: loop header
LB: loop body
LE: loop exit
PB: predicated region body
PF: predicated region fallthrough
CT: control target
= control target key end

     0   :  { %s820_s12 = smov 0   ;;  %s822_s13 = smov 0   ;;  %s913_s0 = inlined_call_operand.vmem [shape: bf16[32,1152], index: 0, kind: input, shape index: {}]   ;;  %s914_s1 = inlined_call_operand.vmem [shape: bf16[1152,128], index: 1, kind: input, shape index: {}]   ;;  %s915_s2 = inlined_call_operand.vmem [shape: f32[1,128], index: 2, kind: input, shape index: {}]   ;;  %s916_s3 = inlined_call_operand.vmem [shape: bf16[32,128], index: 3, kind: output, shape index: {}]  }
   0x1   :  { %s824_s14 = smov 0   ;;  %s826_s15 = smov 0  }
   0x2   :  { %s828_s16 = smov 0  }
   0x3 LB: > { %s25_s17 = sadd.s32 1, %s793_s15  ;;  %p52_p1 = scmp.ne.s32.totalorder %s785_s13, %s781_s12  ;;  %s797_s16 = sphi %s828_s16, %s13_s16   ;;  %s793_s15 = sphi %s826_s15, %s920_s15   ;;  %s789_s14 = sphi %s824_s14, %s919_s14   ;;  %s785_s13 = sphi %s822_s13, %s918_s13   ;;  %s781_s12 = sphi %s820_s12, %s917_s12  }
   0x4   : > { %p26_p0 = scmp.ge.s32.totalorder %s25_s17, 9  ;;  %p53_p2 = scmp.eq.s32.totalorder %s797_s16, 0 }
   0x5   : > { %s45_s19 = sadd.s32 1, %s785_s13  ;;  %p635_p5 = scmp.ge.s32.totalorder %s797_s16, 9 }
   0x6   : > { %s922_s17 = smov (%p26_p0, %s25_s17), 0  ;;  %p54_p3 = por %p53_p2, %p52_p1 }
   0x7   : > { %s41_s18 = ssub.s32 %s793_s15, %s922_s17  ;;  %170 = sbr.rel (%p635_p5) target bundleno = 21 (0x15), region = 20 }
   0x8   : > { %p43_p4 = scmp.eq.s32.totalorder %s41_s18, 0 }
   0xa   : > { %s855_s20 = scalar_select %p43_p4, %s785_s13, %s45_s19  }
   0xe   : > { %173 = sbr.rel (!%p54_p3) target bundleno = 21 (0x15), region = 24  ;;  %s175_s21 = sand.u32 (%p54_p3), 1, %s785_s13  }
   0xf   : > { %s637_s22 = sshll.u32 (%p54_p3), %s793_s15, 2  ;;  %s636_s23 = sshll.u32 (%p54_p3), %s175_s21, 4 }
  0x10   : > { %s184_s26 = scalar_lea.vmem (%p54_p3), %s913_s0, %s637_s22  ;;  %s177_s27 = scalar_lea.vmem (%p54_p3), [#allocation3], %s636_s23 }
  0x11   : > { %v200_v0 = vld [vmem:[%s184_s26] sm:$0xf] (%p54_p3)  ;;  %v202_v1 = vld [vmem:[%s184_s26 + $0x24] sm:$0xf] (%p54_p3)  ;;  %v204_v2 = vld [vmem:[%s184_s26 + $0x48] sm:$0xf] (%p54_p3) }
  0x12   : > { %201 = vst [vmem:[%s177_s27] sm:$0xf] (%p54_p3), %v200_v0  ;;  %203 = vst [vmem:[%s177_s27 + $0x4] sm:$0xf] (%p54_p3), %v202_v1  ;;  %v206_v3 = vld [vmem:[%s184_s26 + $0x6c] sm:$0xf] (%p54_p3) }
  0x13   : > { %205 = vst [vmem:[%s177_s27 + $0x8] sm:$0xf] (%p54_p3), %v204_v2  ;;  %207 = vst [vmem:[%s177_s27 + $0xc] sm:$0xf] (%p54_p3), %v206_v3 }
  0x15 PF: > { %p638_p6 = scmp.ge.s32.totalorder %s797_s16, 1  ;;  %p253_p7 = scmp.lt.s32.totalorder %s797_s16, 10 }
  0x17   : > { %p254_p8 = pnand %p638_p6, %p253_p7 }
  0x18   : > { %s260_s28 = sand.u32 (!%p254_p8), 1, %s781_s12   ;;  %s640_s29 = sshll.u32 (!%p254_p8), %s789_s14, 4 }
  0x19   : > { %257 = sbr.rel (%p254_p8) target bundleno = 304 (0x130), region = 69  ;;  %s867_s30 = sshll.u32 (!%p254_p8), %s260_s28, 4 }
  0x1a   : > { %p305_p9 = scmp.lt.s32.totalorder (!%p254_p8), %s640_s29, 143  ;;  %s262_s8 = scalar_lea.vmem (!%p254_p8), [#allocation3], %s867_s30 }
  0x1b   : > { %p642_p10 = scmp.ne.s32.totalorder (!%p254_p8), %s789_s14, 0 }
  0x20   : > { %s924_s29 = smov (!%p305_p9, %s640_s29), 143  ;;  %331 = sbr.rel (%p642_p10) target bundleno = 39 (0x27), region = 77 }
  0x21   : > { %s641_s4 = sshll.u32 %s924_s29, 2  ;;  %v799_v4 = vmov (!%p642_p10), 0.0  }
  0x22   : > { %s872_s7 = scalar_lea.vmem %s914_s1, %s641_s4  ;;  %332 = vst [vmem:[#allocation2] sm:$0xff] (!%p642_p10), %v799_v4  ;;  %333 = vst [vmem:[#allocation2 + $0x8] sm:$0xff] (!%p642_p10), %v799_v4 }
  0x23   : > { %334 = vst [vmem:[#allocation2 + $0x10] sm:$0xff] (!%p642_p10), %v799_v4  ;;  %335 = vst [vmem:[#allocation2 + $0x18] sm:$0xff] (!%p642_p10), %v799_v4 }
  0x27 PF: > { %v749_v5 = vld [vmem:[%s872_s7] sm:$0xff]   ;;  %v750_v6 = vld [vmem:[%s872_s7 + $0x8] sm:$0xff]   ;;  %v751_v7 = vld [vmem:[%s872_s7 + $0x10] sm:$0xff]   ;;  %p653_p11 = scmp.ne.s32.totalorder %s789_s14, 8 }
  0x28   : > { %688 = vmatprep.subr.bf16.mxu0 %v749_v5  ;;  %v752_v8 = vld [vmem:[%s872_s7 + $0x18] sm:$0xff]   ;;  %v757_v9 = vld [vmem:[%s262_s8] sm:$0xff]   ;;  %v754_v11 = vld [vmem:[%s872_s7 + $0x28] sm:$0xff]  }
  0x29   : > { %689 = vmatpush3.bf16.msra.mxu0 %v749_v5  ;;  %704 = vmatprep.mubr.bf16.mxu0 %v757_v9  ;;  %v753_v10 = vld [vmem:[%s872_s7 + $0x20] sm:$0xff]   ;;  %v755_v12 = vld [vmem:[%s872_s7 + $0x30] sm:$0xff]   ;;  %v756_v13 = vld [vmem:[%s872_s7 + $0x38] sm:$0xff]  }
  0x2a   : > { %690 = vmatprep.subr.bf16.mxu0 %v750_v6  ;;  %v758_v14 = vld [vmem:[%s262_s8 + $0x8] sm:$0xff]   ;;  %v338_v15 = vld [vmem:[#allocation2 + $0x10] sm:$0xff]  ;;  %v336_v16 = vld [vmem:[#allocation2] sm:$0xff] }
  0x2b   : > { %v339_v18 = vld [vmem:[#allocation2 + $0x18] sm:$0xff]  ;;  %v337_v21 = vld [vmem:[#allocation2 + $0x8] sm:$0xff]  ;;  %v654_v29 = vld [vmem:[%s915_s2] ss:$0 sm:$0xff] (!%p653_p11) }
  0x2d   : > { %691 = vmatpush3.bf16.msra.mxu0 %v750_v6 }
  0x2e   : > { %692 = vmatprep.subr.bf16.mxu0 %v751_v7 }
  0x31   : > { %693 = vmatpush3.bf16.msra.mxu0 %v751_v7 }
  0x32   : > { %694 = vmatprep.subr.bf16.mxu0 %v752_v8 }
  0x35   : > { %695 = vmatpush3.bf16.msra.mxu0 %v752_v8 }
  0x36   : > { %696 = vmatprep.subr.bf16.mxu0 %v753_v10 }
  0x39   : > { %697 = vmatpush3.bf16.msra.mxu0 %v753_v10 }
  0x3a   : > { %698 = vmatprep.subr.bf16.mxu0 %v754_v11 }
  0x3d   : > { %699 = vmatpush3.bf16.msra.mxu0 %v754_v11 }
  0x3e   : > { %700 = vmatprep.subr.bf16.mxu0 %v755_v12 }
  0x41   : > { %701 = vmatpush3.bf16.msra.mxu0 %v755_v12 }
  0x42   : > { %702 = vmatprep.subr.bf16.mxu0 %v756_v13 }
  0x45   : > { %703 = vmatpush3.bf16.msra.mxu0 %v756_v13 }
  0x48   : > { %705 = vmatmul.mubr.bf16.vlgmr.msra.gmra.mrb[0].mxu0 %v758_v14 }
 0x11b   : > { %v706_v17 = vpop.f32.mrb[0].mxu0  ;;  %480 = sbr.rel (%p653_p11) target bundleno = 304 (0x130), region = 81 }
 0x11c   : > { %v471_v19 = vadd.f32 %v706_v17, %v338_v15  ;;  %v454_v20 = vpop.f32.mrb[1].mxu0 }
 0x11d   : > { %v469_v22 = vadd.f32 %v454_v20, %v336_v16  ;;  %v707_v23 = vpop.f32.mrb[2].mxu0 }
 0x11e   : > { %475 = vst [vmem:[#allocation2 + $0x10] sm:$0xff] %v471_v19  ;;  %v472_v24 = vadd.f32 %v707_v23, %v339_v18  ;;  %v457_v25 = vpop.f32.mrb[3].mxu0 }
 0x11f   : > { %473 = vst [vmem:[#allocation2] sm:$0xff] %v469_v22  ;;  %v470_v26 = vadd.f32 %v457_v25, %v337_v21 }
 0x120   : > { %476 = vst [vmem:[#allocation2 + $0x18] sm:$0xff] %v472_v24 }
 0x121   : > { %474 = vst [vmem:[#allocation2 + $0x8] sm:$0xff] %v470_v26 }
 0x125   : > { %v483_v32 = vld [vmem:[#allocation2 + $0x10] sm:$0xff] }
 0x126   : > { %v481_v27 = vld [vmem:[#allocation2] sm:$0xff]  ;;  %v494_v34 = vadd.f32 %v654_v29, %v483_v32 }
 0x127   : > { %v492_v30 = vadd.f32 %v654_v29, %v481_v27  ;;  %v484_v33 = vld [vmem:[#allocation2 + $0x18] sm:$0xff] }
 0x128   : > { %v482_v28 = vld [vmem:[#allocation2 + $0x8] sm:$0xff]  ;;  %v495_v35 = vadd.f32 %v654_v29, %v484_v33  ;;  %v498_v38 = vmax.f32 %v494_v34, 0.0 }
 0x129   : > { %v493_v31 = vadd.f32 %v654_v29, %v482_v28  ;;  %v496_v36 = vmax.f32 %v492_v30, 0.0 }
 0x12a   : > { %v499_v39 = vmax.f32 %v495_v35, 0.0 }
 0x12b   : > { %v497_v37 = vmax.f32 %v493_v31, 0.0 }
 0x12c   : > { %v675_v41 = vpack.c.bf16 %v499_v39, %v498_v38 }
 0x12d   : > { %v670_v40 = vpack.c.bf16 %v497_v37, %v496_v36 }
 0x12e   : > { %677 = vst [vmem:[%s916_s3 + $0x8] sm:$0xff] %v675_v41  }
 0x12f   : > { %671 = vst [vmem:[%s916_s3] sm:$0xff] %v670_v40  }
 0x130 PF: > { %s13_s16 = sadd.s32 1, %s797_s16   ;;  %s917_s12 = smov %s785_s13 }
 0x131   : > { %p10_p12 = scmp.ge.s32.totalorder %s13_s16, 11   ;;  %s918_s13 = smov %s855_s20 }
 0x132   : > { %s919_s14 = smov %s793_s15  ;;  %s920_s15 = smov %s922_s17 }
 0x133   :  { %12 = sbr.rel (!%p10_p12) target bundleno = 3 (0x3), region = 122 }

// kernel: regnet_forward.80
= control target key start
LH: loop header
LB: loop body
LE: loop exit
PB: predicated region body
PF: predicated region fallthrough
CT: control target
= control target key end

     0   :  { %s712_s18 = smov 0   ;;  %s820_s0 = inlined_call_operand.vmem [shape: bf16[2,16,128], index: 0, kind: input, shape index: {}]   ;;  %s821_s1 = inlined_call_operand.vmem [shape: bf16[128,128], index: 1, kind: input, shape index: {}]   ;;  %s822_s2 = inlined_call_operand.vmem [shape: f32[1,128], index: 2, kind: input, shape index: {}]   ;;  %s823_s3 = inlined_call_operand.vmem [shape: bf16[128,128], index: 3, kind: input, shape index: {}]   ;;  %s824_s4 = inlined_call_operand.vmem [shape: f32[1,128], index: 4, kind: input, shape index: {}]   ;;  %s825_s5 = inlined_call_operand.vmem [shape: bf16[2,16,128], index: 5, kind: output, shape index: {}]  }
   0x1 LB: > { %s540_s19 = sadd.s32 4294967295, %s678_s18   ;;  %p544_p0 = scmp.ge.s32.totalorder %s678_s18, 1  ;;  %s678_s18 = sphi %s712_s18, %s15_s18  }
   0x2   : > { %p187_p1 = scmp.lt.s32.totalorder %s678_s18, 3 }
   0x4   : > { %p188_p2 = pnand %p544_p0, %p187_p1 }
   0x5   : > { %v652_v0 = vld [vmem:[%s821_s1] sm:$0xff] (!%p188_p2)   ;;  %v680_v1 = vmov (!%p188_p2), 0.0   ;;  %v653_v2 = vld [vmem:[%s821_s1 + $0x8] sm:$0xff] (!%p188_p2)   ;;  %vm681_vm0 = vmmov (!%p188_p2), 0   ;;  %p215_p3 = scmp.lt.s32.totalorder (!%p188_p2), %s540_s19, 1  ;;  %v654_v3 = vld [vmem:[%s821_s1 + $0x10] sm:$0xff] (!%p188_p2)   ;;  %v469_v47 = vlaneseq (!%p188_p2) }
   0x6   : > { %191 = sbr.rel (%p188_p2) target bundleno = 505 (0x1f9), region = 40  ;;  %602 = vmatprep.subr.bf16.mxu0 (!%p188_p2), %v680_v1  ;;  %622 = vmatprep.subr.bf16.mxu1 (!%p188_p2), %v680_v1  ;;  %v660_v7 = vld [vmem:[%s823_s3] sm:$0xff] (!%p188_p2)   ;;  %v655_v8 = vld [vmem:[%s821_s1 + $0x18] sm:$0xff] (!%p188_p2)   ;;  %v661_v10 = vld [vmem:[%s823_s3 + $0x8] sm:$0xff] (!%p188_p2)  }
   0x7   : > { %603 = vmatpush3.bf16.msra.mxu0 (!%p188_p2), %v652_v0  ;;  %618 = vmatprep.mubr.msk.bf16.mxu0 (!%p188_p2), %vm681_vm0, %v680_v1  ;;  %v656_v12 = vld [vmem:[%s821_s1 + $0x20] sm:$0xff] (!%p188_p2)   ;;  %v662_v13 = vld [vmem:[%s823_s3 + $0x10] sm:$0xff] (!%p188_p2)   ;;  %v657_v16 = vld [vmem:[%s821_s1 + $0x28] sm:$0xff] (!%p188_p2)   ;;  %v470_v48 = vshrl.u32 (!%p188_p2), %v469_v47, 7 }
   0x8   : > { %604 = vmatprep.subr.bf16.mxu0 (!%p188_p2), %v680_v1  ;;  %638 = vmatprep.mubr.msk.bf16.mxu1 (!%p188_p2), %vm681_vm0, %v680_v1  ;;  %v663_v18 = vld [vmem:[%s823_s3 + $0x18] sm:$0xff] (!%p188_p2)   ;;  %v658_v20 = vld [vmem:[%s821_s1 + $0x30] sm:$0xff] (!%p188_p2)   ;;  %v664_v22 = vld [vmem:[%s823_s3 + $0x20] sm:$0xff] (!%p188_p2)  }
   0x9   : > { %623 = vmatpush3.bf16.msra.mxu1 (!%p188_p2), %v660_v7  ;;  %v659_v24 = vld [vmem:[%s821_s1 + $0x38] sm:$0xff] (!%p188_p2)   ;;  %v665_v25 = vld [vmem:[%s823_s3 + $0x28] sm:$0xff] (!%p188_p2)   ;;  %v666_v27 = vld [vmem:[%s823_s3 + $0x30] sm:$0xff] (!%p188_p2)   ;;  %v471_v49 = vsub.s32 (!%p188_p2), 0, %v470_v48 }
   0xa   : > { %624 = vmatprep.subr.bf16.mxu1 (!%p188_p2), %v680_v1  ;;  %v667_v28 = vld [vmem:[%s823_s3 + $0x38] sm:$0xff] (!%p188_p2)   ;;  %v549_v29 = vld [vmem:[%s822_s2] ss:$0 sm:$0xff] (!%p188_p2) }
   0xb   : > { %605 = vmatpush3.bf16.msra.mxu0 (!%p188_p2), %v653_v2  ;;  %v558_v37 = vld [vmem:[%s824_s4] ss:$0 sm:$0xff] (!%p188_p2) }
   0xc   : > { %606 = vmatprep.subr.bf16.mxu0 (!%p188_p2), %v680_v1 }
   0xd   : > { %s827_s19 = smov (!%p215_p3, %s540_s19), 1  ;;  %625 = vmatpush3.bf16.msra.mxu1 %v661_v10 }
   0xe   : > { %s571_s26 = sshll.u32 %s827_s19, 3  ;;  %626 = vmatprep.subr.bf16.mxu1 %v680_v1 }
   0xf   : > { %s219_s29 = scalar_lea.vmem %s820_s0, %s571_s26  ;;  %607 = vmatpush3.bf16.msra.mxu0 %v654_v3  ;;  %s224_s15 = scalar_lea.vmem %s825_s5, %s571_s26 }
  0x10   : > { %v743_v4 = vld [vmem:[%s219_s29] sm:$0xff]   ;;  %608 = vmatprep.subr.bf16.mxu0 %v680_v1 }
  0x11   : > { %v577_v5 = vunpack.c.l.bf16 %v743_v4  ;;  %v578_v6 = vunpack.c.h.bf16 %v743_v4  ;;  %627 = vmatpush3.bf16.msra.mxu1 %v662_v13 }
  0x12   : > { %628 = vmatprep.subr.bf16.mxu1 %v680_v1 }
  0x13   : > { %v230_v9 = vadd.f32 %v578_v6, %v577_v5  ;;  %609 = vmatpush3.bf16.msra.mxu0 %v655_v8 }
  0x14   : > { %610 = vmatprep.subr.bf16.mxu0 %v680_v1 }
  0x15   : > { %v231_v11 = vrot.slane %v230_v9, 4  ;;  %629 = vmatpush3.bf16.msra.mxu1 %v663_v18 }
  0x16   : > { %630 = vmatprep.subr.bf16.mxu1 %v680_v1 }
  0x17   : > { %v232_v14 = vadd.f32 %v231_v11, %v230_v9  ;;  %611 = vmatpush3.bf16.msra.mxu0 %v656_v12 }
  0x18   : > { %612 = vmatprep.subr.bf16.mxu0 %v680_v1 }
  0x19   : > { %v233_v15 = vrot.slane %v232_v14, 2  ;;  %631 = vmatpush3.bf16.msra.mxu1 %v664_v22 }
  0x1a   : > { %632 = vmatprep.subr.bf16.mxu1 %v680_v1 }
  0x1b   : > { %v234_v17 = vadd.f32 %v233_v15, %v232_v14  ;;  %613 = vmatpush3.bf16.msra.mxu0 %v657_v16 }
  0x1c   : > { %614 = vmatprep.subr.bf16.mxu0 %v680_v1 }
  0x1d   : > { %v235_v19 = vrot.slane %v234_v17, 1  ;;  %633 = vmatpush3.bf16.msra.mxu1 %v665_v25 }
  0x1e   : > { %634 = vmatprep.subr.bf16.mxu1 %v680_v1 }
  0x1f   : > { %v236_v21 = vadd.f32 %v235_v19, %v234_v17  ;;  %615 = vmatpush3.bf16.msra.mxu0 %v658_v20 }
  0x20   : > { %616 = vmatprep.subr.bf16.mxu0 %v680_v1 }
  0x21   : > { %v237_v23 = vmul.f32 0.0625, %v236_v21  ;;  %635 = vmatpush3.bf16.msra.mxu1 %v666_v27 }
  0x22   : > { %636 = vmatprep.subr.bf16.mxu1 %v680_v1 }
  0x23   : > { %v238_v26 = vpack.c.bf16 %v237_v23, %v237_v23  ;;  %617 = vmatpush3.bf16.msra.mxu0 %v659_v24 }
  0x25   : > { %637 = vmatpush3.bf16.msra.mxu1 %v667_v28 }
  0x26   : > { %619 = vmatmul.mubr.bf16.vlgmr.msra.gmra.mrb[0].mxu0 %v238_v26 }
  0xf9   : > { %v344_v30 = vpop.f32.mrb[0].mxu0 }
  0xfa   : > { %v345_v31 = vadd.f32 %v549_v29, %v344_v30  ;;  %v620_v32 = vpop.f32.mrb[1].mxu0 }
  0xfb   : > { %v347_v33 = vpop.f32.mrb[2].mxu0 }
  0xfc   : > { %v350_v34 = vmax.f32 %v345_v31, 0.0  ;;  %v621_v35 = vpop.f32.mrb[3].mxu0 }
  0xfe   : > { %v351_v36 = vpack.c.bf16 %v350_v34, %v350_v34 }
 0x100   : > { %639 = vmatmul.mubr.bf16.vlgmr.msra.gmra.mrb[0].mxu1 %v351_v36 }
 0x1d3   : > { %v457_v38 = vpop.f32.mrb[0].mxu1 }
 0x1d4   : > { %v458_v39 = vadd.f32 %v558_v37, %v457_v38  ;;  %v640_v40 = vpop.f32.mrb[1].mxu1 }
 0x1d5   : > { %v460_v41 = vpop.f32.mrb[2].mxu1 }
 0x1d6   : > { %v463_v42 = vsub.f32 0.0, %v458_v39  ;;  %v641_v43 = vpop.f32.mrb[3].mxu1 }
 0x1d8   : > { %v464_v44 = vmul.f32 1.442695, %v463_v42 }
 0x1da   : > { %668 = vpow2.f32 %v464_v44 }
 0x1e4   : > { %v669_v45 = vpop.eup %668 }
 0x1e5   : > { %v466_v46 = vadd.f32 1.0, %v669_v45 }
 0x1e7   : > { %670 = vrcp.f32 %v466_v46 }
 0x1f1   : > { %v671_v50 = vpop.eup %670 }
 0x1f2   : > { %v472_v51 = vrot.slane %v671_v50, %v471_v49 }
 0x1f4   : > { %v473_v52 = vmul.f32 %v577_v5, %v472_v51  ;;  %v474_v53 = vmul.f32 %v578_v6, %v472_v51 }
 0x1f6   : > { %v582_v54 = vpack.c.bf16 %v474_v53, %v473_v52 }
 0x1f8   : > { %583 = vst [vmem:[%s224_s15] sm:$0xff] %v582_v54  }
 0x1f9 PF: > { %s15_s18 = sadd.s32 1, %s678_s18  }
 0x1fa   : > { %p12_p4 = scmp.ge.s32.totalorder %s15_s18, 4  }
 0x1fc   :  { %14 = sbr.rel (!%p12_p4) target bundleno = 1 (0x1), region = 70 }

// kernel: regnet_forward.77
= control target key start
LH: loop header
LB: loop body
LE: loop exit
PB: predicated region body
PF: predicated region fallthrough
CT: control target
= control target key end

     0   :  { %s335_s1 = inlined_call_operand.vmem [shape: bf16[128,128], index: 1, kind: input, shape index: {}]   ;;  %s336_s0 = inlined_call_operand.vmem [shape: bf16[32,128], index: 0, kind: input, shape index: {}]   ;;  %s337_s2 = inlined_call_operand.vmem [shape: f32[1,128], index: 2, kind: input, shape index: {}]   ;;  %s338_s3 = inlined_call_operand.vmem [shape: bf16[32,128], index: 3, kind: output, shape index: {}]  }
   0x1   :  { %v266_v0 = vld [vmem:[%s335_s1] sm:$0xff]   ;;  %v267_v1 = vld [vmem:[%s335_s1 + $0x8] sm:$0xff]   ;;  %v268_v2 = vld [vmem:[%s335_s1 + $0x10] sm:$0xff]  }
   0x2   :  { %246 = vmatprep.subr.bf16.mxu0 %v266_v0  ;;  %v269_v3 = vld [vmem:[%s335_s1 + $0x18] sm:$0xff]   ;;  %v274_v4 = vld [vmem:[%s336_s0] sm:$0xff]   ;;  %v271_v6 = vld [vmem:[%s335_s1 + $0x28] sm:$0xff]  }
   0x3   :  { %247 = vmatpush3.bf16.msra.mxu0 %v266_v0  ;;  %262 = vmatprep.mubr.bf16.mxu0 %v274_v4  ;;  %v270_v5 = vld [vmem:[%s335_s1 + $0x20] sm:$0xff]   ;;  %v272_v7 = vld [vmem:[%s335_s1 + $0x30] sm:$0xff]   ;;  %v273_v8 = vld [vmem:[%s335_s1 + $0x38] sm:$0xff]  }
   0x4   :  { %248 = vmatprep.subr.bf16.mxu0 %v267_v1  ;;  %v275_v9 = vld [vmem:[%s336_s0 + $0x8] sm:$0xff]   ;;  %v216_v11 = vld [vmem:[%s337_s2] ss:$0 sm:$0xff] }
   0x7   :  { %249 = vmatpush3.bf16.msra.mxu0 %v267_v1 }
   0x8   :  { %250 = vmatprep.subr.bf16.mxu0 %v268_v2 }
   0xb   :  { %251 = vmatpush3.bf16.msra.mxu0 %v268_v2 }
   0xc   :  { %252 = vmatprep.subr.bf16.mxu0 %v269_v3 }
   0xf   :  { %253 = vmatpush3.bf16.msra.mxu0 %v269_v3 }
  0x10   :  { %254 = vmatprep.subr.bf16.mxu0 %v270_v5 }
  0x13   :  { %255 = vmatpush3.bf16.msra.mxu0 %v270_v5 }
  0x14   :  { %256 = vmatprep.subr.bf16.mxu0 %v271_v6 }
  0x17   :  { %257 = vmatpush3.bf16.msra.mxu0 %v271_v6 }
  0x18   :  { %258 = vmatprep.subr.bf16.mxu0 %v272_v7 }
  0x1b   :  { %259 = vmatpush3.bf16.msra.mxu0 %v272_v7 }
  0x1c   :  { %260 = vmatprep.subr.bf16.mxu0 %v273_v8 }
  0x1f   :  { %261 = vmatpush3.bf16.msra.mxu0 %v273_v8 }
  0x22   :  { %263 = vmatmul.mubr.bf16.vlgmr.msra.gmra.mrb[0].mxu0 %v275_v9 }
  0xf5   :  { %v264_v10 = vpop.f32.mrb[0].mxu0 }
  0xf6   :  { %v141_v12 = vpop.f32.mrb[1].mxu0  ;;  %v180_v14 = vadd.f32 %v264_v10, %v216_v11 }
  0xf7   :  { %v265_v13 = vpop.f32.mrb[2].mxu0  ;;  %v178_v17 = vadd.f32 %v216_v11, %v141_v12 }
  0xf8   :  { %v181_v15 = vadd.f32 %v265_v13, %v216_v11  ;;  %v144_v16 = vpop.f32.mrb[3].mxu0 }
  0xf9   :  { %v179_v18 = vadd.f32 %v216_v11, %v144_v16 }
  0xfa   :  { %v233_v19 = vpack.c.bf16 %v181_v15, %v180_v14 }
  0xfb   :  { %v228_v20 = vpack.c.bf16 %v179_v18, %v178_v17 }
  0xfc   :  { %235 = vst [vmem:[%s338_s3 + $0x8] sm:$0xff] %v233_v19  }
  0xfd   :  { %229 = vst [vmem:[%s338_s3] sm:$0xff] %v228_v20  }

// kernel: regnet_forward.81
= control target key start
LH: loop header
LB: loop body
LE: loop exit
PB: predicated region body
PF: predicated region fallthrough
CT: control target
= control target key end

     0   :  { %s374_s1 = inlined_call_operand.vmem [shape: bf16[128,128], index: 1, kind: input, shape index: {}]   ;;  %s375_s0 = inlined_call_operand.vmem [shape: bf16[32,128], index: 0, kind: input, shape index: {}]   ;;  %s376_s3 = inlined_call_operand.vmem [shape: bf16[32,128], index: 3, kind: input, shape index: {}]   ;;  %s377_s2 = inlined_call_operand.vmem [shape: f32[1,128], index: 2, kind: input, shape index: {}]   ;;  %s378_s4 = inlined_call_operand.vmem [shape: bf16[32,128], index: 4, kind: output, shape index: {}]  }
   0x1   :  { %v294_v0 = vld [vmem:[%s374_s1] sm:$0xff]   ;;  %v295_v1 = vld [vmem:[%s374_s1 + $0x8] sm:$0xff]   ;;  %v296_v2 = vld [vmem:[%s374_s1 + $0x10] sm:$0xff]  }
   0x2   :  { %274 = vmatprep.subr.bf16.mxu0 %v294_v0  ;;  %v297_v3 = vld [vmem:[%s374_s1 + $0x18] sm:$0xff]   ;;  %v302_v4 = vld [vmem:[%s375_s0] sm:$0xff]   ;;  %v299_v6 = vld [vmem:[%s374_s1 + $0x28] sm:$0xff]  }
   0x3   :  { %275 = vmatpush3.bf16.msra.mxu0 %v294_v0  ;;  %290 = vmatprep.mubr.bf16.mxu0 %v302_v4  ;;  %v298_v5 = vld [vmem:[%s374_s1 + $0x20] sm:$0xff]   ;;  %v300_v7 = vld [vmem:[%s374_s1 + $0x30] sm:$0xff]   ;;  %v301_v8 = vld [vmem:[%s374_s1 + $0x38] sm:$0xff]  }
   0x4   :  { %276 = vmatprep.subr.bf16.mxu0 %v295_v1  ;;  %v303_v9 = vld [vmem:[%s375_s0 + $0x8] sm:$0xff]   ;;  %v245_v11 = vld [vmem:[%s376_s3] sm:$0xff]  }
   0x5   :  { %v262_v10 = vld [vmem:[%s376_s3 + $0x8] sm:$0xff]   ;;  %v235_v12 = vld [vmem:[%s377_s2] ss:$0 sm:$0xff]  ;;  %v246_v15 = vunpack.c.l.bf16 %v245_v11  ;;  %v247_v21 = vunpack.c.h.bf16 %v245_v11 }
   0x6   :  { %v250_v13 = vunpack.c.l.bf16 %v262_v10  ;;  %v251_v18 = vunpack.c.h.bf16 %v262_v10 }
   0x7   :  { %277 = vmatpush3.bf16.msra.mxu0 %v295_v1 }
   0x8   :  { %278 = vmatprep.subr.bf16.mxu0 %v296_v2 }
   0xb   :  { %279 = vmatpush3.bf16.msra.mxu0 %v296_v2 }
   0xc   :  { %280 = vmatprep.subr.bf16.mxu0 %v297_v3 }
   0xf   :  { %281 = vmatpush3.bf16.msra.mxu0 %v297_v3 }
  0x10   :  { %282 = vmatprep.subr.bf16.mxu0 %v298_v5 }
  0x13   :  { %283 = vmatpush3.bf16.msra.mxu0 %v298_v5 }
  0x14   :  { %284 = vmatprep.subr.bf16.mxu0 %v299_v6 }
  0x17   :  { %285 = vmatpush3.bf16.msra.mxu0 %v299_v6 }
  0x18   :  { %286 = vmatprep.subr.bf16.mxu0 %v300_v7 }
  0x1b   :  { %287 = vmatpush3.bf16.msra.mxu0 %v300_v7 }
  0x1c   :  { %288 = vmatprep.subr.bf16.mxu0 %v301_v8 }
  0x1f   :  { %289 = vmatpush3.bf16.msra.mxu0 %v301_v8 }
  0x22   :  { %291 = vmatmul.mubr.bf16.vlgmr.msra.gmra.mrb[0].mxu0 %v303_v9 }
  0xf5   :  { %v292_v14 = vpop.f32.mrb[0].mxu0 }
  0xf6   :  { %v183_v16 = vadd.f32 %v292_v14, %v235_v12  ;;  %v144_v17 = vpop.f32.mrb[1].mxu0 }
  0xf7   :  { %v181_v19 = vadd.f32 %v235_v12, %v144_v17  ;;  %v293_v20 = vpop.f32.mrb[2].mxu0 }
  0xf8   :  { %v195_v22 = vadd.f32 %v250_v13, %v183_v16  ;;  %v184_v23 = vadd.f32 %v293_v20, %v235_v12  ;;  %v147_v24 = vpop.f32.mrb[3].mxu0 }
  0xf9   :  { %v193_v25 = vadd.f32 %v246_v15, %v181_v19  ;;  %v182_v26 = vadd.f32 %v235_v12, %v147_v24 }
  0xfa   :  { %v196_v27 = vadd.f32 %v251_v18, %v184_v23  ;;  %v199_v29 = vmax.f32 %v195_v22, 0.0 }
  0xfb   :  { %v194_v28 = vadd.f32 %v247_v21, %v182_v26  ;;  %v197_v31 = vmax.f32 %v193_v25, 0.0 }
  0xfc   :  { %v200_v30 = vmax.f32 %v196_v27, 0.0 }
  0xfd   :  { %v198_v32 = vmax.f32 %v194_v28, 0.0 }
  0xfe   :  { %v260_v33 = vpack.c.bf16 %v200_v30, %v199_v29 }
  0xff   :  { %v255_v34 = vpack.c.bf16 %v198_v32, %v197_v31 }
 0x100   :  { %263 = vst [vmem:[%s378_s4 + $0x8] sm:$0xff] %v260_v33  }
 0x101   :  { %256 = vst [vmem:[%s378_s4] sm:$0xff] %v255_v34  }

// kernel: regnet_forward.82
= control target key start
LH: loop header
LB: loop body
LE: loop exit
PB: predicated region body
PF: predicated region fallthrough
CT: control target
= control target key end

     0   :  { %s339_s1 = inlined_call_operand.vmem [shape: bf16[128,128], index: 1, kind: input, shape index: {}]   ;;  %s340_s0 = inlined_call_operand.vmem [shape: bf16[32,128], index: 0, kind: input, shape index: {}]   ;;  %s341_s2 = inlined_call_operand.vmem [shape: f32[1,128], index: 2, kind: input, shape index: {}]   ;;  %s342_s3 = inlined_call_operand.vmem [shape: bf16[32,128], index: 3, kind: output, shape index: {}]  }
   0x1   :  { %v270_v0 = vld [vmem:[%s339_s1] sm:$0xff]   ;;  %v271_v1 = vld [vmem:[%s339_s1 + $0x8] sm:$0xff]   ;;  %v272_v2 = vld [vmem:[%s339_s1 + $0x10] sm:$0xff]  }
   0x2   :  { %250 = vmatprep.subr.bf16.mxu0 %v270_v0  ;;  %v273_v3 = vld [vmem:[%s339_s1 + $0x18] sm:$0xff]   ;;  %v278_v4 = vld [vmem:[%s340_s0] sm:$0xff]   ;;  %v275_v6 = vld [vmem:[%s339_s1 + $0x28] sm:$0xff]  }
   0x3   :  { %251 = vmatpush3.bf16.msra.mxu0 %v270_v0  ;;  %266 = vmatprep.mubr.bf16.mxu0 %v278_v4  ;;  %v274_v5 = vld [vmem:[%s339_s1 + $0x20] sm:$0xff]   ;;  %v276_v7 = vld [vmem:[%s339_s1 + $0x30] sm:$0xff]   ;;  %v277_v8 = vld [vmem:[%s339_s1 + $0x38] sm:$0xff]  }
   0x4   :  { %252 = vmatprep.subr.bf16.mxu0 %v271_v1  ;;  %v279_v9 = vld [vmem:[%s340_s0 + $0x8] sm:$0xff]   ;;  %v220_v10 = vld [vmem:[%s341_s2] ss:$0 sm:$0xff] }
   0x7   :  { %253 = vmatpush3.bf16.msra.mxu0 %v271_v1 }
   0x8   :  { %254 = vmatprep.subr.bf16.mxu0 %v272_v2 }
   0xb   :  { %255 = vmatpush3.bf16.msra.mxu0 %v272_v2 }
   0xc   :  { %256 = vmatprep.subr.bf16.mxu0 %v273_v3 }
   0xf   :  { %257 = vmatpush3.bf16.msra.mxu0 %v273_v3 }
  0x10   :  { %258 = vmatprep.subr.bf16.mxu0 %v274_v5 }
  0x13   :  { %259 = vmatpush3.bf16.msra.mxu0 %v274_v5 }
  0x14   :  { %260 = vmatprep.subr.bf16.mxu0 %v275_v6 }
  0x17   :  { %261 = vmatpush3.bf16.msra.mxu0 %v275_v6 }
  0x18   :  { %262 = vmatprep.subr.bf16.mxu0 %v276_v7 }
  0x1b   :  { %263 = vmatpush3.bf16.msra.mxu0 %v276_v7 }
  0x1c   :  { %264 = vmatprep.subr.bf16.mxu0 %v277_v8 }
  0x1f   :  { %265 = vmatpush3.bf16.msra.mxu0 %v277_v8 }
  0x22   :  { %267 = vmatmul.mubr.bf16.vlgmr.msra.gmra.mrb[0].mxu0 %v279_v9 }
  0xf5   :  { %v268_v11 = vpop.f32.mrb[0].mxu0 }
  0xf6   :  { %v180_v12 = vadd.f32 %v268_v11, %v220_v10  ;;  %v141_v13 = vpop.f32.mrb[1].mxu0 }
  0xf7   :  { %v178_v14 = vadd.f32 %v220_v10, %v141_v13  ;;  %v269_v15 = vpop.f32.mrb[2].mxu0 }
  0xf8   :  { %v181_v16 = vadd.f32 %v269_v15, %v220_v10  ;;  %v144_v17 = vpop.f32.mrb[3].mxu0  ;;  %v184_v19 = vmax.f32 %v180_v12, 0.0 }
  0xf9   :  { %v179_v18 = vadd.f32 %v220_v10, %v144_v17  ;;  %v182_v21 = vmax.f32 %v178_v14, 0.0 }
  0xfa   :  { %v185_v20 = vmax.f32 %v181_v16, 0.0 }
  0xfb   :  { %v183_v22 = vmax.f32 %v179_v18, 0.0 }
  0xfc   :  { %v237_v23 = vpack.c.bf16 %v185_v20, %v184_v19 }
  0xfd   :  { %v232_v24 = vpack.c.bf16 %v183_v22, %v182_v21 }
  0xfe   :  { %239 = vst [vmem:[%s342_s3 + $0x8] sm:$0xff] %v237_v23  }
  0xff   :  { %233 = vst [vmem:[%s342_s3] sm:$0xff] %v232_v24  }

// kernel: regnet_forward.84
= control target key start
LH: loop header
LB: loop body
LE: loop exit
PB: predicated region body
PF: predicated region fallthrough
CT: control target
= control target key end

     0   :  { %10 = vsyncpa [#allocation3], 0  ;;  %s1030_s0 = inlined_call_operand.vmem [shape: bf16[2,16,128], index: 0, kind: input, shape index: {}]   ;;  %s1031_s1 = inlined_call_operand.vmem [shape: bf16[128,128], index: 1, kind: input, shape index: {}]   ;;  %s1032_s2 = inlined_call_operand.hbm [shape: f32[1,128], index: 2, kind: input, shape index: {}]   ;;  %s1033_s3 = inlined_call_operand.vmem [shape: bf16[128,128], index: 3, kind: input, shape index: {}]   ;;  %s1034_s4 = inlined_call_operand.hbm [shape: f32[1,128], index: 4, kind: input, shape index: {}]   ;;  %s1035_s5 = inlined_call_operand.vmem [shape: bf16[2,16,128], index: 5, kind: output, shape index: {}]  }
   0x1   :  { %11 = vsyncpa [#allocation5], 0  ;;  %s851_s18 = smov 0  }
   0x2 LB: > { %s857_s19 = sadd.s32 4294967295, %s815_s18   ;;  %p590_p0 = scmp.ge.s32.totalorder %s815_s18, 1  ;;  %s815_s18 = sphi %s851_s18, %s17_s18  }
   0x3   : > { %p158_p1 = scmp.lt.s32.totalorder %s815_s18, 3  ;;  %p1036_p2 = scmp.eq.s32.totalorder %s857_s19, 0 }
   0x4   : > { %s817_s21 = smov [#allocation2]   ;;  %s818_s23 = smov [#allocation4]  }
   0x5   : > { %p862_p3 = pnand %p590_p0, %p158_p1  ;;  %s174_s22 = sshll.u32 %s817_s21, 4  ;;  %s175_s22 = int_to_ptr.vmem [resolvable:$true] %s174_s22 }
   0x6   : > { %s188_s24 = sshll.u32 %s818_s23, 4  ;;  %s745_s28 = scalar_lea.hbm %s1032_s2, 16  ;;  %s874_s24 = int_to_ptr.vmem [resolvable:$true] %s188_s24 }
   0x7   : > { %s1038_s20 = scalar_select %p862_p3, 1, 0 }
   0x8   : > { %p702_p4 = pneg %p862_p3  ;;  %p746_p6 = scmp.ne.s32.totalorder %s1032_s2, %s745_s28 }
   0x9   : > { %p752_p10 = scmp.lt.u32.totalorder %s745_s28, %s1032_s2 }
   0xa   : > { %p870_p5 = pnand %p1036_p2, %p702_p4 }
   0xc   : > { %p747_p7 = pneg %p870_p5 }
   0xe   : > { %p748_p8 = pnand %p747_p7, %p746_p6 }
  0x10   : > { %p749_p9 = pneg %p748_p8 }
  0x12   : > { %p754_p11 = pnand %p752_p10, %p749_p9 }
  0x14   : > { %757 = shalt.err (!%p754_p11)
}
  0x15   : > { %s758_s8 = scalar_lea.vmem %s175_s22, 16  ;;  %s765_s9 = scalar_lea.vmem %s175_s22, 32 }
  0x16   : > { %p759_p12 = scmp.ne.s32.totalorder %s175_s22, %s758_s8  ;;  %p766_p1 = scmp.lt.s32.totalorder %s175_s22, %s175_s22 }
  0x17   : > { %p767_p4 = scmp.lt.s32.totalorder %s765_s9, %s758_s8 }
  0x18   : > { %p761_p13 = pnand %p759_p12, %p747_p7 }
  0x19   : > { %p768_p2 = por %p767_p4, %p766_p1 }
  0x1a   : > { %p762_p0 = pneg %p761_p13 }
  0x1c   : > { %p769_p3 = pnand %p768_p2, %p762_p0 }
  0x1e   : > { %772 = shalt.err (!%p769_p3)
}
  0x1f   : > { %705 = dma.hbm_to_vmem [thread:$0]  (!%p870_p5), %s1032_s2, 16, %s175_s22, [#allocation3]  }
  0x20   : > { %s773_s14 = scalar_lea.hbm %s1034_s4, 16 }
  0x21   : > { %p774_p6 = scmp.ne.s32.totalorder %s1034_s4, %s773_s14  ;;  %p780_p3 = scmp.lt.u32.totalorder %s773_s14, %s1034_s4 }
  0x23   : > { %p776_p8 = pnand %p774_p6, %p747_p7 }
  0x25   : > { %p777_p2 = pneg %p776_p8 }
  0x27   : > { %p782_p9 = pnand %p780_p3, %p777_p2 }
  0x29   : > { %785 = shalt.err (!%p782_p9)
}
  0x2a   : > { %s786_s22 = scalar_lea.vmem %s874_s24, 16  ;;  %s793_s23 = scalar_lea.vmem %s874_s24, 32 }
  0x2b   : > { %p787_p10 = scmp.ne.s32.totalorder %s874_s24, %s786_s22  ;;  %p794_p13 = scmp.lt.s32.totalorder %s874_s24, %s874_s24 }
  0x2c   : > { %p795_p0 = scmp.lt.s32.totalorder %s793_s23, %s786_s22 }
  0x2d   : > { %p789_p11 = pnand %p787_p10, %p747_p7 }
  0x2e   : > { %p796_p1 = por %p795_p0, %p794_p13 }
  0x2f   : > { %p790_p12 = pneg %p789_p11 }
  0x31   : > { %p797_p4 = pnand %p796_p1, %p790_p12 }
  0x33   : > { %800 = shalt.err (!%p797_p4)
}
  0x34   : > { %708 = dma.hbm_to_vmem [thread:$0]  (!%p870_p5), %s1034_s4, 16, %s874_s24, [#allocation5]  }
  0x35   : > { %p1040_p6 = scmp.ne.s32.totalorder %s1038_s20, 0 }
  0x36   : > { %p1041_p7 = scmp.eq.s32.totalorder (!%p1040_p6), %s857_s19, 0 }
  0x37   : > { %209 = sbr.rel (%p1040_p6) target bundleno = 567 (0x237), region = 40 }
  0x3e   : > { %806 = dma.done.wait (%p1041_p7), [#allocation3], 16   ;;  %p1042_p8 = pmov %p1041_p7 }
  0x3f   : > { %p1043_p2 = pmov %p1041_p7 }
  0x40   : > { %808 = vsyncadd (%p1042_p8), [#allocation3], 4294967280 }
  0x41   : > { %810 = dma.done.wait (%p1043_p2), [#allocation5], 16   ;;  %p1044_p3 = pmov %p1043_p2 }
  0x42   : > { %v819_v0 = vmov 0.0   ;;  %vm820_vm0 = vmmov 0   ;;  %p241_p5 = scmp.lt.s32.totalorder %s857_s19, 1  ;;  %v725_v1 = vld [vmem:[%s1031_s1] sm:$0xff]   ;;  %v726_v2 = vld [vmem:[%s1031_s1 + $0x8] sm:$0xff]   ;;  %v727_v3 = vld [vmem:[%s1031_s1 + $0x10] sm:$0xff]   ;;  %v495_v47 = vlaneseq }
  0x43   : > { %812 = vsyncadd (%p1044_p3), [#allocation5], 4294967280  ;;  %654 = vmatprep.subr.bf16.mxu0 %v819_v0  ;;  %670 = vmatprep.mubr.msk.bf16.mxu0 %vm820_vm0, %v819_v0  ;;  %v733_v7 = vld [vmem:[%s1033_s3] sm:$0xff]   ;;  %v728_v8 = vld [vmem:[%s1031_s1 + $0x18] sm:$0xff]  }
  0x44   : > { %674 = vmatprep.subr.bf16.mxu1 %v819_v0  ;;  %690 = vmatprep.mubr.msk.bf16.mxu1 %vm820_vm0, %v819_v0  ;;  %s1046_s19 = smov (!%p241_p5, %s857_s19), 1  ;;  %v734_v10 = vld [vmem:[%s1033_s3 + $0x8] sm:$0xff]   ;;  %v729_v12 = vld [vmem:[%s1031_s1 + $0x20] sm:$0xff]   ;;  %v735_v13 = vld [vmem:[%s1033_s3 + $0x10] sm:$0xff]   ;;  %v496_v48 = vshrl.u32 %v495_v47, 7 }
  0x45   : > { %655 = vmatpush3.bf16.msra.mxu0 %v725_v1  ;;  %s623_s29 = sshll.u32 %s1046_s19, 3  ;;  %675 = vmatpush3.bf16.msra.mxu1 %v733_v7  ;;  %v730_v16 = vld [vmem:[%s1031_s1 + $0x28] sm:$0xff]   ;;  %v736_v18 = vld [vmem:[%s1033_s3 + $0x18] sm:$0xff]   ;;  %v731_v20 = vld [vmem:[%s1031_s1 + $0x30] sm:$0xff]  }
  0x46   : > { %656 = vmatprep.subr.bf16.mxu0 %v819_v0  ;;  %s245_s7 = scalar_lea.vmem %s1030_s0, %s623_s29  ;;  %676 = vmatprep.subr.bf16.mxu1 %v819_v0  ;;  %v737_v22 = vld [vmem:[%s1033_s3 + $0x20] sm:$0xff]   ;;  %v732_v24 = vld [vmem:[%s1031_s1 + $0x38] sm:$0xff]   ;;  %v738_v25 = vld [vmem:[%s1033_s3 + $0x28] sm:$0xff]   ;;  %v497_v49 = vsub.s32 0, %v496_v48  ;;  %s250_s16 = scalar_lea.vmem %s1035_s5, %s623_s29 }
  0x47   : > { %v959_v4 = vld [vmem:[%s245_s7] sm:$0xff]   ;;  %v739_v27 = vld [vmem:[%s1033_s3 + $0x30] sm:$0xff]   ;;  %v740_v28 = vld [vmem:[%s1033_s3 + $0x38] sm:$0xff]  }
  0x48   : > { %v629_v5 = vunpack.c.l.bf16 %v959_v4  ;;  %v630_v6 = vunpack.c.h.bf16 %v959_v4  ;;  %v601_v29 = vld [vmem:[#allocation2] ss:$0 sm:$0xff]  ;;  %v610_v37 = vld [vmem:[#allocation4] ss:$0 sm:$0xff] }
  0x49   : > { %657 = vmatpush3.bf16.msra.mxu0 %v726_v2  ;;  %677 = vmatpush3.bf16.msra.mxu1 %v734_v10 }
  0x4a   : > { %658 = vmatprep.subr.bf16.mxu0 %v819_v0  ;;  %v256_v9 = vadd.f32 %v630_v6, %v629_v5  ;;  %678 = vmatprep.subr.bf16.mxu1 %v819_v0 }
  0x4c   : > { %v257_v11 = vrot.slane %v256_v9, 4 }
  0x4d   : > { %659 = vmatpush3.bf16.msra.mxu0 %v727_v3  ;;  %679 = vmatpush3.bf16.msra.mxu1 %v735_v13 }
  0x4e   : > { %660 = vmatprep.subr.bf16.mxu0 %v819_v0  ;;  %v258_v14 = vadd.f32 %v257_v11, %v256_v9  ;;  %680 = vmatprep.subr.bf16.mxu1 %v819_v0 }
  0x50   : > { %v259_v15 = vrot.slane %v258_v14, 2 }
  0x51   : > { %661 = vmatpush3.bf16.msra.mxu0 %v728_v8  ;;  %681 = vmatpush3.bf16.msra.mxu1 %v736_v18 }
  0x52   : > { %662 = vmatprep.subr.bf16.mxu0 %v819_v0  ;;  %v260_v17 = vadd.f32 %v259_v15, %v258_v14  ;;  %682 = vmatprep.subr.bf16.mxu1 %v819_v0 }
  0x54   : > { %v261_v19 = vrot.slane %v260_v17, 1 }
  0x55   : > { %663 = vmatpush3.bf16.msra.mxu0 %v729_v12  ;;  %683 = vmatpush3.bf16.msra.mxu1 %v737_v22 }
  0x56   : > { %664 = vmatprep.subr.bf16.mxu0 %v819_v0  ;;  %v262_v21 = vadd.f32 %v261_v19, %v260_v17  ;;  %684 = vmatprep.subr.bf16.mxu1 %v819_v0 }
  0x58   : > { %v263_v23 = vmul.f32 0.0625, %v262_v21 }
  0x59   : > { %665 = vmatpush3.bf16.msra.mxu0 %v730_v16  ;;  %685 = vmatpush3.bf16.msra.mxu1 %v738_v25 }
  0x5a   : > { %666 = vmatprep.subr.bf16.mxu0 %v819_v0  ;;  %v264_v26 = vpack.c.bf16 %v263_v23, %v263_v23  ;;  %686 = vmatprep.subr.bf16.mxu1 %v819_v0 }
  0x5d   : > { %667 = vmatpush3.bf16.msra.mxu0 %v731_v20  ;;  %687 = vmatpush3.bf16.msra.mxu1 %v739_v27 }
  0x5e   : > { %668 = vmatprep.subr.bf16.mxu0 %v819_v0  ;;  %688 = vmatprep.subr.bf16.mxu1 %v819_v0 }
  0x61   : > { %669 = vmatpush3.bf16.msra.mxu0 %v732_v24  ;;  %689 = vmatpush3.bf16.msra.mxu1 %v740_v28 }
  0x64   : > { %671 = vmatmul.mubr.bf16.vlgmr.msra.gmra.mrb[0].mxu0 %v264_v26 }
 0x137   : > { %v370_v30 = vpop.f32.mrb[0].mxu0 }
 0x138   : > { %v371_v31 = vadd.f32 %v601_v29, %v370_v30  ;;  %v672_v32 = vpop.f32.mrb[1].mxu0 }
 0x139   : > { %v373_v33 = vpop.f32.mrb[2].mxu0 }
 0x13a   : > { %v376_v34 = vmax.f32 %v371_v31, 0.0  ;;  %v673_v35 = vpop.f32.mrb[3].mxu0 }
 0x13c   : > { %v377_v36 = vpack.c.bf16 %v376_v34, %v376_v34 }
 0x13e   : > { %691 = vmatmul.mubr.bf16.vlgmr.msra.gmra.mrb[0].mxu1 %v377_v36 }
 0x211   : > { %v483_v38 = vpop.f32.mrb[0].mxu1 }
 0x212   : > { %v484_v39 = vadd.f32 %v610_v37, %v483_v38  ;;  %v692_v40 = vpop.f32.mrb[1].mxu1 }
 0x213   : > { %v486_v41 = vpop.f32.mrb[2].mxu1 }
 0x214   : > { %v489_v42 = vsub.f32 0.0, %v484_v39  ;;  %v693_v43 = vpop.f32.mrb[3].mxu1 }
 0x216   : > { %v490_v44 = vmul.f32 1.442695, %v489_v42 }
 0x218   : > { %741 = vpow2.f32 %v490_v44 }
 0x222   : > { %v742_v45 = vpop.eup %741 }
 0x223   : > { %v492_v46 = vadd.f32 1.0, %v742_v45 }
 0x225   : > { %743 = vrcp.f32 %v492_v46 }
 0x22f   : > { %v744_v50 = vpop.eup %743 }
 0x230   : > { %v498_v51 = vrot.slane %v744_v50, %v497_v49 }
 0x232   : > { %v499_v52 = vmul.f32 %v629_v5, %v498_v51  ;;  %v500_v53 = vmul.f32 %v630_v6, %v498_v51 }
 0x234   : > { %v634_v54 = vpack.c.bf16 %v500_v53, %v499_v52 }
 0x236   : > { %635 = vst [vmem:[%s250_s16] sm:$0xff] %v634_v54  }
 0x237 PF: > { %s17_s18 = sadd.s32 1, %s815_s18  }
 0x238   : > { %p14_p9 = scmp.ge.s32.totalorder %s17_s18, 4  }
 0x23a   :  { %16 = sbr.rel (!%p14_p9) target bundleno = 2 (0x2), region = 79 }
 0x241   :  { %532 = vsyncpa [#allocation3], 1 }
 0x242   :  { %534 = vsyncpa [#allocation3 + $0x1], 1 }
 0x243   :  { %535 = vsyncpa [#allocation5], 1 }

// kernel: regnet_forward.91
= control target key start
LH: loop header
LB: loop body
LE: loop exit
PB: predicated region body
PF: predicated region fallthrough
CT: control target
= control target key end

     0   :  { %s879_s12 = smov 0   ;;  %s881_s13 = smov 0   ;;  %s984_s0 = inlined_call_operand.vmem [shape: bf16[32,128], index: 0, kind: input, shape index: {}]   ;;  %s985_s1 = inlined_call_operand.vmem [shape: bf16[128,256], index: 1, kind: input, shape index: {}]   ;;  %s986_s2 = inlined_call_operand.vmem [shape: f32[1,256], index: 2, kind: input, shape index: {}]   ;;  %s987_s3 = inlined_call_operand.vmem [shape: bf16[32,256], index: 3, kind: output, shape index: {}]  }
   0x1   :  { %s883_s14 = smov 0   ;;  %s885_s15 = smov 0  }
   0x2   :  { %s887_s16 = smov 0  }
   0x3 LB: > { %s28_s17 = sadd.s32 1, %s853_s15  ;;  %s695_s18 = sadd.s32 4294967295, %s857_s16   ;;  %s857_s16 = sphi %s887_s16, %s13_s16   ;;  %s853_s15 = sphi %s885_s15, %s992_s15   ;;  %s849_s14 = sphi %s883_s14, %s991_s14   ;;  %s845_s13 = sphi %s881_s13, %s990_s13   ;;  %s841_s12 = sphi %s879_s12, %s989_s12  }
   0x4   : > { %p30_p0 = scmp.ge.s32.totalorder %s28_s17, 2  ;;  %p76_p1 = scmp.ne.s32.totalorder %s845_s13, %s841_s12 }
   0x5   : > { %p77_p2 = scmp.eq.s32.totalorder %s857_s16, 0  ;;  %p134_p4 = scmp.eq.s32.totalorder %s695_s18, 1 }
   0x6   : > { %s994_s17 = smov (%p30_p0, %s28_s17), 0  ;;  %s69_s20 = sadd.s32 1, %s845_s13 }
   0x7   : > { %p78_p3 = por %p77_p2, %p76_p1  ;;  %s65_s19 = ssub.s32 %s853_s15, %s994_s17 }
   0x8   : > { %p67_p5 = scmp.eq.s32.totalorder %s65_s19, 0  ;;  %p914_p6 = por %p134_p4, %p76_p1 }
   0x9   : > { %p699_p7 = scmp.ge.s32.totalorder %s857_s16, 2 }
   0xa   : > { %s919_s22 = scalar_select %p67_p5, %s845_s13, %s69_s20  }
   0xb   : > { %168 = sbr.rel (%p699_p7) target bundleno = 32 (0x20), region = 20 }
  0x12   : > { %171 = sbr.rel (!%p78_p3) target bundleno = 32 (0x20), region = 24  ;;  %s173_s23 = sand.u32 (%p78_p3), 1, %s845_s13  }
  0x13   : > { %s701_s24 = sshll.u32 (%p78_p3), %s853_s15, 2  ;;  %s700_s25 = sshll.u32 (%p78_p3), %s173_s23, 6 }
  0x14   : > { %s927_s28 = scalar_lea.vmem (%p78_p3), %s985_s1, %s701_s24  ;;  %s175_s29 = scalar_lea.vmem (%p78_p3), [#allocation3], %s700_s25 }
  0x15   : > { %v196_v0 = vld [vmem:[%s927_s28] sm:$0xf] (%p78_p3)  ;;  %v198_v1 = vld [vmem:[%s927_s28 + $0x8] sm:$0xf] (%p78_p3)  ;;  %v200_v2 = vld [vmem:[%s927_s28 + $0x10] sm:$0xf] (%p78_p3) }
  0x16   : > { %197 = vst [vmem:[%s175_s29] sm:$0xf] (%p78_p3), %v196_v0  ;;  %199 = vst [vmem:[%s175_s29 + $0x4] sm:$0xf] (%p78_p3), %v198_v1  ;;  %v202_v3 = vld [vmem:[%s927_s28 + $0x18] sm:$0xf] (%p78_p3) }
  0x17   : > { %v204_v4 = vld [vmem:[%s927_s28 + $0x20] sm:$0xf] (%p78_p3)  ;;  %201 = vst [vmem:[%s175_s29 + $0x8] sm:$0xf] (%p78_p3), %v200_v2  ;;  %203 = vst [vmem:[%s175_s29 + $0xc] sm:$0xf] (%p78_p3), %v202_v3 }
  0x18   : > { %205 = vst [vmem:[%s175_s29 + $0x10] sm:$0xf] (%p78_p3), %v204_v4  ;;  %v206_v5 = vld [vmem:[%s927_s28 + $0x28] sm:$0xf] (%p78_p3)  ;;  %v208_v6 = vld [vmem:[%s927_s28 + $0x30] sm:$0xf] (%p78_p3) }
  0x19   : > { %v210_v7 = vld [vmem:[%s927_s28 + $0x38] sm:$0xf]  ;;  %207 = vst [vmem:[%s175_s29 + $0x14] sm:$0xf] %v206_v5  ;;  %209 = vst [vmem:[%s175_s29 + $0x18] sm:$0xf] %v208_v6 }
  0x1a   : > { %211 = vst [vmem:[%s175_s29 + $0x1c] sm:$0xf] %v210_v7  ;;  %v212_v8 = vld [vmem:[%s927_s28 + $0x40] sm:$0xf]  ;;  %v214_v9 = vld [vmem:[%s927_s28 + $0x48] sm:$0xf] }
  0x1b   : > { %v216_v10 = vld [vmem:[%s927_s28 + $0x50] sm:$0xf]  ;;  %213 = vst [vmem:[%s175_s29 + $0x20] sm:$0xf] %v212_v8  ;;  %215 = vst [vmem:[%s175_s29 + $0x24] sm:$0xf] %v214_v9 }
  0x1c   : > { %217 = vst [vmem:[%s175_s29 + $0x28] sm:$0xf] %v216_v10  ;;  %v218_v11 = vld [vmem:[%s927_s28 + $0x58] sm:$0xf]  ;;  %v220_v12 = vld [vmem:[%s927_s28 + $0x60] sm:$0xf] }
  0x1d   : > { %v222_v13 = vld [vmem:[%s927_s28 + $0x68] sm:$0xf]  ;;  %219 = vst [vmem:[%s175_s29 + $0x2c] sm:$0xf] %v218_v11  ;;  %221 = vst [vmem:[%s175_s29 + $0x30] sm:$0xf] %v220_v12 }
  0x1e   : > { %223 = vst [vmem:[%s175_s29 + $0x34] sm:$0xf] %v222_v13  ;;  %v224_v14 = vld [vmem:[%s927_s28 + $0x70] sm:$0xf]  ;;  %v226_v15 = vld [vmem:[%s927_s28 + $0x78] sm:$0xf] }
  0x1f   : > { %225 = vst [vmem:[%s175_s29 + $0x38] sm:$0xf] %v224_v14  ;;  %227 = vst [vmem:[%s175_s29 + $0x3c] sm:$0xf] %v226_v15 }
  0x20 PF: > { %p702_p8 = scmp.ge.s32.totalorder %s857_s16, 1  ;;  %p287_p9 = scmp.lt.s32.totalorder %s857_s16, 3 }
  0x22   : > { %p288_p10 = pnand %p702_p8, %p287_p9 }
  0x23   : > { %s294_s30 = sand.u32 (!%p288_p10), 1, %s841_s12   ;;  %v817_v16 = vld [vmem:[%s984_s0] sm:$0xff] (!%p288_p10)   ;;  %v818_v25 = vld [vmem:[%s984_s0 + $0x8] sm:$0xff] (!%p288_p10)   ;;  %p337_p11 = scmp.lt.s32.totalorder (!%p288_p10), %s849_s14, 1 }
  0x24   : > { %291 = sbr.rel (%p288_p10) target bundleno = 302 (0x12e), region = 69  ;;  %s703_s6 = sshll.u32 (!%p288_p10), %s294_s30, 6  ;;  %765 = vmatprep.mubr.bf16.mxu0 (!%p288_p10), %v817_v16 }
  0x25   : > { %s296_s7 = scalar_lea.vmem (!%p288_p10), [#allocation3], %s703_s6  ;;  %s704_s20 = sshll.u32 (!%p288_p10), %s294_s30, 4 }
  0x26   : > { %v809_v17 = vld [vmem:[%s296_s7] sm:$0xff] (!%p288_p10)   ;;  %v810_v18 = vld [vmem:[%s296_s7 + $0x8] sm:$0xff] (!%p288_p10)   ;;  %v811_v19 = vld [vmem:[%s296_s7 + $0x10] sm:$0xff] (!%p288_p10)   ;;  %s326_s23 = scalar_lea.vmem (!%p288_p10), [#allocation4], %s704_s20 }
  0x27   : > { %749 = vmatprep.subr.bf16.mxu0 (!%p288_p10), %v809_v17  ;;  %v812_v20 = vld [vmem:[%s296_s7 + $0x18] sm:$0xff] (!%p288_p10)   ;;  %v813_v21 = vld [vmem:[%s296_s7 + $0x20] sm:$0xff] (!%p288_p10)   ;;  %v814_v22 = vld [vmem:[%s296_s7 + $0x28] sm:$0xff] (!%p288_p10)  }
  0x28   : > { %750 = vmatpush3.bf16.msra.mxu0 (!%p288_p10), %v809_v17  ;;  %v815_v23 = vld [vmem:[%s296_s7 + $0x30] sm:$0xff] (!%p288_p10)   ;;  %v816_v24 = vld [vmem:[%s296_s7 + $0x38] sm:$0xff] (!%p288_p10)  }
  0x29   : > { %751 = vmatprep.subr.bf16.mxu0 (!%p288_p10), %v810_v18 }
  0x2b   : > { %s338_s10 = scalar_select %p337_p11, %s849_s14, 1 }
  0x2c   : > { %752 = vmatpush3.bf16.msra.mxu0 %v810_v18  ;;  %s721_s24 = sshll.u32 (%p914_p6), %s849_s14, 2 }
  0x2d   : > { %753 = vmatprep.subr.bf16.mxu0 %v811_v19  ;;  %s339_s19 = scalar_lea.vmem %s986_s2, %s338_s10  ;;  %s544_s26 = scalar_lea.vmem (%p914_p6), %s987_s3, %s721_s24 }
  0x2e   : > { %v715_v26 = vld [vmem:[%s339_s19] ss:$0 sm:$0xff] }
  0x30   : > { %754 = vmatpush3.bf16.msra.mxu0 %v811_v19 }
  0x31   : > { %755 = vmatprep.subr.bf16.mxu0 %v812_v20 }
  0x34   : > { %756 = vmatpush3.bf16.msra.mxu0 %v812_v20 }
  0x35   : > { %757 = vmatprep.subr.bf16.mxu0 %v813_v21 }
  0x38   : > { %758 = vmatpush3.bf16.msra.mxu0 %v813_v21 }
  0x39   : > { %759 = vmatprep.subr.bf16.mxu0 %v814_v22 }
  0x3c   : > { %760 = vmatpush3.bf16.msra.mxu0 %v814_v22 }
  0x3d   : > { %761 = vmatprep.subr.bf16.mxu0 %v815_v23 }
  0x40   : > { %762 = vmatpush3.bf16.msra.mxu0 %v815_v23 }
  0x41   : > { %763 = vmatprep.subr.bf16.mxu0 %v816_v24 }
  0x44   : > { %764 = vmatpush3.bf16.msra.mxu0 %v816_v24 }
  0x47   : > { %766 = vmatmul.mubr.bf16.vlgmr.msra.gmra.mrb[0].mxu0 %v818_v25 }
 0x11a   : > { %v767_v27 = vpop.f32.mrb[0].mxu0 }
 0x11b   : > { %v507_v28 = vadd.f32 %v767_v27, %v715_v26  ;;  %v468_v29 = vpop.f32.mrb[1].mxu0 }
 0x11c   : > { %v505_v30 = vadd.f32 %v715_v26, %v468_v29  ;;  %v768_v31 = vpop.f32.mrb[2].mxu0 }
 0x11d   : > { %v508_v32 = vadd.f32 %v768_v31, %v715_v26  ;;  %v471_v33 = vpop.f32.mrb[3].mxu0  ;;  %v511_v35 = vmax.f32 %v507_v28, 0.0 }
 0x11e   : > { %v506_v34 = vadd.f32 %v715_v26, %v471_v33  ;;  %v509_v37 = vmax.f32 %v505_v30, 0.0  ;;  %539 = sbr.rel (!%p914_p6) target bundleno = 302 (0x12e), region = 85 }
 0x11f   : > { %v512_v36 = vmax.f32 %v508_v32, 0.0 }
 0x120   : > { %v510_v38 = vmax.f32 %v506_v34, 0.0 }
 0x121   : > { %v736_v39 = vpack.c.bf16 %v512_v36, %v511_v35 }
 0x122   : > { %v731_v40 = vpack.c.bf16 %v510_v38, %v509_v37 }
 0x123   : > { %738 = vst [vmem:[%s326_s23 + $0x8] sm:$0xff] %v736_v39  }
 0x124   : > { %732 = vst [vmem:[%s326_s23] sm:$0xff] %v731_v40  }
 0x12a   : > { %v564_v43 = vld [vmem:[%s326_s23 + $0x8] sm:$0xf]  ;;  %v566_v44 = vld [vmem:[%s326_s23 + $0xc] sm:$0xf] }
 0x12b   : > { %v560_v41 = vld [vmem:[%s326_s23] sm:$0xf]  ;;  %v562_v42 = vld [vmem:[%s326_s23 + $0x4] sm:$0xf]  ;;  %565 = vst [vmem:[%s544_s26 + $0x10] sm:$0xf] %v564_v43 }
 0x12c   : > { %561 = vst [vmem:[%s544_s26] sm:$0xf] %v560_v41  ;;  %563 = vst [vmem:[%s544_s26 + $0x8] sm:$0xf] %v562_v42 }
 0x12d   : > { %567 = vst [vmem:[%s544_s26 + $0x18] sm:$0xf] %v566_v44 }
 0x12e PF: > { %s13_s16 = sadd.s32 1, %s857_s16   ;;  %s989_s12 = smov %s845_s13 }
 0x12f   : > { %p10_p12 = scmp.ge.s32.totalorder %s13_s16, 4   ;;  %s990_s13 = smov %s919_s22 }
 0x130   : > { %s991_s14 = smov %s853_s15  ;;  %s992_s15 = smov %s994_s17 }
 0x131   :  { %12 = sbr.rel (!%p10_p12) target bundleno = 3 (0x3), region = 163 }

// kernel: regnet_forward.92
= control target key start
LH: loop header
LB: loop body
LE: loop exit
PB: predicated region body
PF: predicated region fallthrough
CT: control target
= control target key end

     0   :  { %s823_s12 = smov 0   ;;  %s825_s13 = smov 0   ;;  %s956_s0 = inlined_call_operand.vmem [shape: bf16[8,2304], index: 0, kind: input, shape index: {}]   ;;  %s957_s1 = inlined_call_operand.vmem [shape: bf16[2304,256], index: 1, kind: input, shape index: {}]   ;;  %s958_s2 = inlined_call_operand.vmem [shape: f32[1,256], index: 2, kind: input, shape index: {}]   ;;  %s959_s3 = inlined_call_operand.vmem [shape: bf16[8,256], index: 3, kind: output, shape index: {}]  }
   0x1   :  { %s827_s14 = smov 0   ;;  %s829_s15 = smov 0  }
   0x2   :  { %s831_s16 = smov 0   ;;  %s833_s17 = smov 0  }
   0x3   :  { %s835_s18 = smov 0  }
   0x4 LB: > { %s25_s19 = sadd.s32 1, %s790_s16  ;;  %s28_s20 = sadd.s32 1, %s794_s17  ;;  %s798_s18 = sphi %s835_s18, %s13_s18   ;;  %s794_s17 = sphi %s833_s17, %s965_s17   ;;  %s790_s16 = sphi %s831_s16, %s964_s16   ;;  %s786_s15 = sphi %s829_s15, %s963_s15   ;;  %s782_s14 = sphi %s827_s14, %s962_s14   ;;  %s778_s13 = sphi %s825_s13, %s961_s13   ;;  %s774_s12 = sphi %s823_s12, %s960_s12  }
   0x5   : > { %p26_p0 = scmp.ge.s32.totalorder %s25_s19, 9  ;;  %p84_p1 = scmp.ne.s32.totalorder %s778_s13, %s774_s12 }
   0x6   : > { %p85_p2 = scmp.eq.s32.totalorder %s798_s18, 0  ;;  %s68_s21 = smul.u32 9, %s794_s17 }
   0x7   : > { %s967_s19 = smov (%p26_p0, %s25_s19), 0  ;;  %s969_s20 = smov (!%p26_p0, %s28_s20), %s794_s17 }
   0x8   : > { %p30_p3 = scmp.ge.s32.totalorder %s969_s20, 2  ;;  %p86_p4 = por %p85_p2, %p84_p1 }
   0x9   : > { %s69_s22 = sadd.s32 %s790_s16, %s68_s21  ;;  %s77_s28 = sadd.s32 1, %s778_s13 }
   0xa   : > { %s971_s20 = smov (%p30_p3, %s969_s20), 0  ;;  %p625_p6 = scmp.ge.s32.totalorder %s798_s18, 18 }
   0xb   : > { %s70_s23 = smul.u32 9, %s971_s20  ;;  %s73_s24 = ssub.s32 %s794_s17, %s971_s20 }
   0xc   : > { %164 = sbr.rel (%p625_p6) target bundleno = 35 (0x23), region = 16 }
   0xd   : > { %s71_s25 = sadd.s32 %s70_s23, %s967_s19 }
   0xe   : > { %s72_s26 = ssub.s32 %s69_s22, %s71_s25 }
   0xf   : > { %s74_s27 = sor.u32 %s73_s24, %s72_s26 }
  0x10   : > { %p75_p5 = scmp.eq.s32.totalorder %s74_s27, 0 }
  0x12   : > { %s876_s29 = scalar_select %p75_p5, %s778_s13, %s77_s28  }
  0x13   : > { %182 = sbr.rel (!%p86_p4) target bundleno = 35 (0x23), region = 24  ;;  %s184_s30 = sand.u32 (%p86_p4), 1, %s778_s13  }
  0x14   : > { %s647_s4 = sshll.u32 (%p86_p4), %s69_s22, 5  ;;  %s626_s5 = sshll.u32 (%p86_p4), %s184_s30, 6 }
  0x15   : > { %s191_s6 = sadd.s32 (%p86_p4), %s794_s17, %s647_s4  ;;  %s186_s11 = scalar_lea.vmem (%p86_p4), [#allocation3], %s626_s5 }
  0x16   : > { %s629_s7 = sshll.u32 (%p86_p4), %s191_s6, 2 }
  0x17   : > { %s884_s10 = scalar_lea.vmem (%p86_p4), %s957_s1, %s629_s7 }
  0x18   : > { %v209_v0 = vld [vmem:[%s884_s10] sm:$0xf] (%p86_p4)  ;;  %v211_v1 = vld [vmem:[%s884_s10 + $0x8] sm:$0xf] (%p86_p4)  ;;  %v213_v2 = vld [vmem:[%s884_s10 + $0x10] sm:$0xf] (%p86_p4) }
  0x19   : > { %210 = vst [vmem:[%s186_s11] sm:$0xf] (%p86_p4), %v209_v0  ;;  %212 = vst [vmem:[%s186_s11 + $0x4] sm:$0xf] (%p86_p4), %v211_v1  ;;  %v215_v3 = vld [vmem:[%s884_s10 + $0x18] sm:$0xf] (%p86_p4) }
  0x1a   : > { %214 = vst [vmem:[%s186_s11 + $0x8] sm:$0xf] %v213_v2  ;;  %v217_v4 = vld [vmem:[%s884_s10 + $0x20] sm:$0xf]  ;;  %v219_v5 = vld [vmem:[%s884_s10 + $0x28] sm:$0xf] }
  0x1b   : > { %216 = vst [vmem:[%s186_s11 + $0xc] sm:$0xf] %v215_v3  ;;  %218 = vst [vmem:[%s186_s11 + $0x10] sm:$0xf] %v217_v4  ;;  %v221_v6 = vld [vmem:[%s884_s10 + $0x30] sm:$0xf] }
  0x1c   : > { %220 = vst [vmem:[%s186_s11 + $0x14] sm:$0xf] %v219_v5  ;;  %v223_v7 = vld [vmem:[%s884_s10 + $0x38] sm:$0xf]  ;;  %v225_v8 = vld [vmem:[%s884_s10 + $0x40] sm:$0xf] }
  0x1d   : > { %222 = vst [vmem:[%s186_s11 + $0x18] sm:$0xf] %v221_v6  ;;  %224 = vst [vmem:[%s186_s11 + $0x1c] sm:$0xf] %v223_v7  ;;  %v227_v9 = vld [vmem:[%s884_s10 + $0x48] sm:$0xf] }
  0x1e   : > { %226 = vst [vmem:[%s186_s11 + $0x20] sm:$0xf] %v225_v8  ;;  %v229_v10 = vld [vmem:[%s884_s10 + $0x50] sm:$0xf]  ;;  %v231_v11 = vld [vmem:[%s884_s10 + $0x58] sm:$0xf] }
  0x1f   : > { %228 = vst [vmem:[%s186_s11 + $0x24] sm:$0xf] %v227_v9  ;;  %230 = vst [vmem:[%s186_s11 + $0x28] sm:$0xf] %v229_v10  ;;  %v233_v12 = vld [vmem:[%s884_s10 + $0x60] sm:$0xf] }
  0x20   : > { %232 = vst [vmem:[%s186_s11 + $0x2c] sm:$0xf] %v231_v11  ;;  %v235_v13 = vld [vmem:[%s884_s10 + $0x68] sm:$0xf]  ;;  %v237_v14 = vld [vmem:[%s884_s10 + $0x70] sm:$0xf] }
  0x21   : > { %234 = vst [vmem:[%s186_s11 + $0x30] sm:$0xf] %v233_v12  ;;  %236 = vst [vmem:[%s186_s11 + $0x34] sm:$0xf] %v235_v13  ;;  %v239_v15 = vld [vmem:[%s884_s10 + $0x78] sm:$0xf] }
  0x22   : > { %238 = vst [vmem:[%s186_s11 + $0x38] sm:$0xf] %v237_v14  ;;  %240 = vst [vmem:[%s186_s11 + $0x3c] sm:$0xf] %v239_v15 }
  0x23 PF: > { %p630_p7 = scmp.ge.s32.totalorder %s798_s18, 1  ;;  %p300_p8 = scmp.lt.s32.totalorder %s798_s18, 19 }
  0x25   : > { %p301_p9 = pnand %p630_p7, %p300_p8 }
  0x26   : > { %s307_s21 = sand.u32 (!%p301_p9), 1, %s774_s12   ;;  %s346_s22 = smul.u32 (!%p301_p9), 9, %s786_s15 }
  0x27   : > { %304 = sbr.rel (%p301_p9) target bundleno = 318 (0x13e), region = 69  ;;  %s631_s23 = sshll.u32 (!%p301_p9), %s307_s21, 6 }
  0x28   : > { %p361_p10 = scmp.lt.s32.totalorder (!%p301_p9), %s786_s15, 1  ;;  %s347_s24 = sadd.s32 (!%p301_p9), %s782_s14, %s346_s22 }
  0x29   : > { %p350_p11 = scmp.lt.s32.totalorder (!%p301_p9), %s347_s24, 17  ;;  %s309_s9 = scalar_lea.vmem (!%p301_p9), [#allocation3], %s631_s23 }
  0x2a   : > { %p634_p12 = scmp.ne.s32.totalorder (!%p301_p9), %s782_s14, 0 }
  0x2e   : > { %s973_s15 = smov (!%p361_p10, %s786_s15), 1  ;;  %s975_s24 = smov (!%p350_p11, %s347_s24), 17 }
  0x2f   : > { %s363_s27 = scalar_lea.vmem %s958_s2, %s973_s15  ;;  %s633_s28 = sshll.u32 %s973_s15, 2  ;;  %v800_v16 = vmov (!%p634_p12), 0.0  }
  0x30   : > { %s632_s30 = sshll.u32 %s975_s24, 2  ;;  %s919_s12 = scalar_lea.vmem %s959_s3, %s633_s28  ;;  %377 = vst [vmem:[#allocation2] sm:$0xff] (!%p634_p12), %v800_v16 }
  0x31   : > { %s924_s8 = scalar_lea.vmem %s956_s0, %s632_s30  ;;  %376 = sbr.rel (%p634_p12) target bundleno = 56 (0x38), region = 77 }
  0x38 PF: > { %v736_v17 = vld [vmem:[%s309_s9] sm:$0xff]   ;;  %v801_v18 = vmov 0.0   ;;  %v737_v19 = vld [vmem:[%s309_s9 + $0x8] sm:$0xff]   ;;  %vm802_vm0 = vmmov 0   ;;  %v738_v20 = vld [vmem:[%s309_s9 + $0x10] sm:$0xff]   ;;  %p643_p13 = scmp.ne.s32.totalorder %s782_s14, 8 }
  0x39   : > { %657 = vmatprep.subr.bf16.mxu0 %v801_v18  ;;  %673 = vmatprep.mubr.msk.bf16.mxu0 %vm802_vm0, %v801_v18  ;;  %v739_v21 = vld [vmem:[%s309_s9 + $0x18] sm:$0xff]   ;;  %v740_v22 = vld [vmem:[%s309_s9 + $0x20] sm:$0xff]   ;;  %v741_v23 = vld [vmem:[%s309_s9 + $0x28] sm:$0xff]  }
  0x3a   : > { %658 = vmatpush3.bf16.msra.mxu0 %v736_v17  ;;  %v742_v24 = vld [vmem:[%s309_s9 + $0x30] sm:$0xff]   ;;  %v743_v25 = vld [vmem:[%s309_s9 + $0x38] sm:$0xff]  }
  0x3b   : > { %659 = vmatprep.subr.bf16.mxu0 %v801_v18  ;;  %v379_v26 = vld [vmem:[%s924_s8] sm:$0xf] }
  0x3c   : > { %v378_v27 = vld [vmem:[#allocation2] sm:$0xff] }
  0x3d   : > { %v644_v34 = vld [vmem:[%s363_s27] ss:$0 sm:$0xff] (!%p643_p13) }
  0x3e   : > { %660 = vmatpush3.bf16.msra.mxu0 %v737_v19 }
  0x3f   : > { %661 = vmatprep.subr.bf16.mxu0 %v801_v18 }
  0x42   : > { %662 = vmatpush3.bf16.msra.mxu0 %v738_v20 }
  0x43   : > { %663 = vmatprep.subr.bf16.mxu0 %v801_v18 }
  0x46   : > { %664 = vmatpush3.bf16.msra.mxu0 %v739_v21 }
  0x47   : > { %665 = vmatprep.subr.bf16.mxu0 %v801_v18 }
  0x4a   : > { %666 = vmatpush3.bf16.msra.mxu0 %v740_v22 }
  0x4b   : > { %667 = vmatprep.subr.bf16.mxu0 %v801_v18 }
  0x4e   : > { %668 = vmatpush3.bf16.msra.mxu0 %v741_v23 }
  0x4f   : > { %669 = vmatprep.subr.bf16.mxu0 %v801_v18 }
  0x52   : > { %670 = vmatpush3.bf16.msra.mxu0 %v742_v24 }
  0x53   : > { %671 = vmatprep.subr.bf16.mxu0 %v801_v18 }
  0x56   : > { %672 = vmatpush3.bf16.msra.mxu0 %v743_v25 }
  0x59   : > { %674 = vmatmul.mubr.bf16.vlgmr.msra.gmra.mrb[0].mxu0 %v379_v26 }
 0x129   : > { %489 = sbr.rel (%p643_p13) target bundleno = 318 (0x13e), region = 81 }
 0x12c   : > { %v478_v28 = vpop.f32.mrb[0].mxu0 }
 0x12d   : > { %v484_v29 = vadd.f32 %v478_v28, %v378_v27  ;;  %v675_v30 = vpop.f32.mrb[1].mxu0 }
 0x12e   : > { %v481_v31 = vpop.f32.mrb[2].mxu0 }
 0x12f   : > { %485 = vst [vmem:[#allocation2] sm:$0xff] %v484_v29  ;;  %v676_v32 = vpop.f32.mrb[3].mxu0 }
 0x136   : > { %v490_v33 = vld [vmem:[#allocation2] sm:$0xff] }
 0x137   : > { %v498_v35 = vadd.f32 %v644_v34, %v490_v33 }
 0x139   : > { %v499_v36 = vmax.f32 %v498_v35, 0.0 }
 0x13b   : > { %v500_v37 = vpack.c.bf16 %v499_v36, %v499_v36 }
 0x13d   : > { %501 = vst [vmem:[%s919_s12] sm:$0xf] %v500_v37 }
 0x13e PF: > { %s13_s18 = sadd.s32 1, %s798_s18   ;;  %s960_s12 = smov %s778_s13 }
 0x13f   : > { %p10_p0 = scmp.ge.s32.totalorder %s13_s18, 20   ;;  %s961_s13 = smov %s876_s29 }
 0x140   : > { %s962_s14 = smov %s790_s16  ;;  %s963_s15 = smov %s794_s17 }
 0x141   : > { %s964_s16 = smov %s967_s19  ;;  %s965_s17 = smov %s971_s20 }
 0x142   :  { %12 = sbr.rel (!%p10_p0) target bundleno = 4 (0x4), region = 122 }

// kernel: regnet_forward.93
= control target key start
LH: loop header
LB: loop body
LE: loop exit
PB: predicated region body
PF: predicated region fallthrough
CT: control target
= control target key end

     0   :  { %s823_s18 = smov 0   ;;  %s959_s0 = inlined_call_operand.vmem [shape: bf16[2,8,256], index: 0, kind: input, shape index: {}]   ;;  %s960_s1 = inlined_call_operand.vmem [shape: bf16[256,128], index: 1, kind: input, shape index: {}]   ;;  %s961_s2 = inlined_call_operand.vmem [shape: f32[1,128], index: 2, kind: input, shape index: {}]   ;;  %s962_s3 = inlined_call_operand.vmem [shape: bf16[128,256], index: 3, kind: input, shape index: {}]   ;;  %s963_s4 = inlined_call_operand.vmem [shape: f32[1,256], index: 4, kind: input, shape index: {}]   ;;  %s964_s5 = inlined_call_operand.vmem [shape: bf16[2,8,256], index: 5, kind: output, shape index: {}]  }
   0x1 LB: > { %s657_s19 = sadd.s32 4294967295, %s790_s18   ;;  %p661_p0 = scmp.ge.s32.totalorder %s790_s18, 1  ;;  %s790_s18 = sphi %s823_s18, %s15_s18  }
   0x2   : > { %p187_p1 = scmp.lt.s32.totalorder %s790_s18, 3 }
   0x4   : > { %p188_p2 = pnand %p661_p0, %p187_p1 }
   0x5   : > { %v736_v0 = vld [vmem:[%s960_s1 + $0x40] sm:$0xff] (!%p188_p2)   ;;  %v738_v2 = vld [vmem:[%s960_s1 + $0x48] sm:$0xff] (!%p188_p2)   ;;  %p215_p3 = scmp.lt.s32.totalorder (!%p188_p2), %s657_s19, 1  ;;  %v740_v4 = vld [vmem:[%s960_s1 + $0x50] sm:$0xff] (!%p188_p2)   ;;  %v792_v51 = vmov (!%p188_p2), 0   ;;  %v440_v61 = vlaneseq (!%p188_p2) }
   0x6   : > { %191 = sbr.rel (%p188_p2) target bundleno = 509 (0x1fd), region = 40  ;;  %v737_v1 = vld [vmem:[%s960_s1] sm:$0xff] (!%p188_p2)   ;;  %705 = vmatprep.subr.bf16.mxu0 (!%p188_p2), %v736_v0  ;;  %v739_v3 = vld [vmem:[%s960_s1 + $0x8] sm:$0xff] (!%p188_p2)   ;;  %v741_v5 = vld [vmem:[%s960_s1 + $0x10] sm:$0xff] (!%p188_p2)   ;;  %562 = vmatprep.mubr.bf16.mxu1 (!%p188_p2), %v792_v51 }
   0x7   : > { %706 = vmatpush3.bf16.msra.mxu0 (!%p188_p2), %v737_v1  ;;  %v742_v6 = vld [vmem:[%s960_s1 + $0x58] sm:$0xff] (!%p188_p2)   ;;  %v744_v8 = vld [vmem:[%s960_s1 + $0x60] sm:$0xff] (!%p188_p2)   ;;  %v746_v10 = vld [vmem:[%s960_s1 + $0x68] sm:$0xff] (!%p188_p2)   ;;  %v441_v62 = vshrl.u32 (!%p188_p2), %v440_v61, 7 }
   0x8   : > { %707 = vmatprep.subr.bf16.mxu0 (!%p188_p2), %v738_v2  ;;  %v743_v7 = vld [vmem:[%s960_s1 + $0x18] sm:$0xff] (!%p188_p2)   ;;  %v745_v9 = vld [vmem:[%s960_s1 + $0x20] sm:$0xff] (!%p188_p2)   ;;  %v747_v16 = vld [vmem:[%s960_s1 + $0x28] sm:$0xff] (!%p188_p2)  }
   0x9   : > { %v752_v14 = vld [vmem:[%s962_s3 + $0x4] ss:$8 sps:$4 sm:$0xff] (!%p188_p2)   ;;  %v754_v15 = vld [vmem:[%s962_s3] ss:$8 sps:$4 sm:$0xff] (!%p188_p2)   ;;  %v755_v17 = vld [vmem:[%s962_s3 + $0x14] ss:$8 sps:$4 sm:$0xff] (!%p188_p2)  }
   0xa   : > { %v748_v18 = vld [vmem:[%s960_s1 + $0x70] sm:$0xff] (!%p188_p2)   ;;  %530 = vmatprep.subr.bf16.mxu1 (!%p188_p2), %v752_v14  ;;  %v758_v24 = vld [vmem:[%s962_s3 + $0x24] ss:$8 sps:$4 sm:$0xff] (!%p188_p2)   ;;  %v750_v26 = vld [vmem:[%s960_s1 + $0x78] sm:$0xff] (!%p188_p2)   ;;  %v442_v63 = vsub.s32 (!%p188_p2), 0, %v441_v62  ;;  %v446_v1 = vsub.s32 (!%p188_p2), 1, %v441_v62 }
   0xb   : > { %708 = vmatpush3.bf16.msra.mxu0 (!%p188_p2), %v739_v3  ;;  %531 = vmatpush1.bf16.msra.mxu1 (!%p188_p2), %v754_v15  ;;  %v757_v21 = vld [vmem:[%s962_s3 + $0x10] ss:$8 sps:$4 sm:$0xff] (!%p188_p2)   ;;  %v760_v29 = vld [vmem:[%s962_s3 + $0x20] ss:$8 sps:$4 sm:$0xff] (!%p188_p2)   ;;  %v761_v32 = vld [vmem:[%s962_s3 + $0x34] ss:$8 sps:$4 sm:$0xff] (!%p188_p2)  }
   0xc   : > { %709 = vmatprep.subr.bf16.mxu0 (!%p188_p2), %v740_v4  ;;  %532 = vmatprep.subr.bf16.mxu1 (!%p188_p2), %v755_v17  ;;  %v749_v25 = vld [vmem:[%s960_s1 + $0x30] sm:$0xff] (!%p188_p2)   ;;  %v751_v33 = vld [vmem:[%s960_s1 + $0x38] sm:$0xff] (!%p188_p2)   ;;  %v764_v39 = vld [vmem:[%s962_s3 + $0x44] ss:$8 sps:$4 sm:$0xff] (!%p188_p2)  }
   0xd   : > { %s966_s19 = smov (!%p215_p3, %s657_s19), 1  ;;  %v763_v36 = vld [vmem:[%s962_s3 + $0x30] ss:$8 sps:$4 sm:$0xff]   ;;  %v766_v42 = vld [vmem:[%s962_s3 + $0x40] ss:$8 sps:$4 sm:$0xff]  }
   0xe   : > { %s702_s9 = sshll.u32 %s966_s19, 3  ;;  %v767_v45 = vld [vmem:[%s962_s3 + $0x54] ss:$8 sps:$4 sm:$0xff]   ;;  %v769_v46 = vld [vmem:[%s962_s3 + $0x50] ss:$8 sps:$4 sm:$0xff]  }
   0xf   : > { %710 = vmatpush3.bf16.msra.mxu0 %v741_v5  ;;  %s219_s16 = scalar_lea.vmem %s959_s0, %s702_s9  ;;  %533 = vmatpush1.bf16.msra.mxu1 %v757_v21  ;;  %v770_v47 = vld [vmem:[%s962_s3 + $0x64] ss:$8 sps:$4 sm:$0xff]   ;;  %v772_v48 = vld [vmem:[%s962_s3 + $0x60] ss:$8 sps:$4 sm:$0xff]   ;;  %v773_v49 = vld [vmem:[%s962_s3 + $0x74] ss:$8 sps:$4 sm:$0xff]   ;;  %s224_s27 = scalar_lea.vmem %s964_s5, %s702_s9 }
  0x10   : > { %711 = vmatprep.subr.bf16.mxu0 %v742_v6  ;;  %v226_v11 = vld [vmem:[%s219_s16] sm:$0xff]  ;;  %534 = vmatprep.subr.bf16.mxu1 %v758_v24  ;;  %v775_v50 = vld [vmem:[%s962_s3 + $0x70] ss:$8 sps:$4 sm:$0xff]  }
  0x11   : > { %v872_v12 = vunpack.c.l.bf16 %v226_v11  ;;  %v874_v13 = vunpack.c.h.bf16 %v226_v11  ;;  %v666_v53 = vld [vmem:[%s961_s2] ss:$0 sm:$0xff] }
  0x12   : > { %v438_v0 = vld [vmem:[%s963_s4] sm:$0x3] }
  0x13   : > { %712 = vmatpush3.bf16.msra.mxu0 %v743_v7  ;;  %v235_v19 = vrot.slane %v874_v13, 4  ;;  %v229_v20 = vrot.slane %v872_v12, 4  ;;  %535 = vmatpush1.bf16.msra.mxu1 %v760_v29  ;;  %v443_v2 = vrot.slane %v438_v0, %v442_v63  ;;  %v447_v3 = vrot.slane %v438_v0, %v446_v1 }
  0x14   : > { %713 = vmatprep.subr.bf16.mxu0 %v744_v8  ;;  %536 = vmatprep.subr.bf16.mxu1 %v761_v32 }
  0x15   : > { %v236_v22 = vadd.f32 %v235_v19, %v874_v13  ;;  %v230_v23 = vadd.f32 %v229_v20, %v872_v12 }
  0x17   : > { %714 = vmatpush3.bf16.msra.mxu0 %v745_v9  ;;  %v237_v27 = vrot.slane %v236_v22, 2  ;;  %v231_v28 = vrot.slane %v230_v23, 2  ;;  %537 = vmatpush1.bf16.msra.mxu1 %v763_v36 }
  0x18   : > { %715 = vmatprep.subr.bf16.mxu0 %v746_v10  ;;  %538 = vmatprep.subr.bf16.mxu1 %v764_v39 }
  0x19   : > { %v238_v30 = vadd.f32 %v237_v27, %v236_v22  ;;  %v232_v31 = vadd.f32 %v231_v28, %v230_v23 }
  0x1b   : > { %716 = vmatpush3.bf16.msra.mxu0 %v747_v16  ;;  %v239_v34 = vrot.slane %v238_v30, 1  ;;  %v233_v35 = vrot.slane %v232_v31, 1  ;;  %539 = vmatpush1.bf16.msra.mxu1 %v766_v42 }
  0x1c   : > { %717 = vmatprep.subr.bf16.mxu0 %v748_v18  ;;  %540 = vmatprep.subr.bf16.mxu1 %v767_v45 }
  0x1d   : > { %v240_v37 = vadd.f32 %v239_v34, %v238_v30  ;;  %v234_v38 = vadd.f32 %v233_v35, %v232_v31 }
  0x1f   : > { %718 = vmatpush3.bf16.msra.mxu0 %v749_v25  ;;  %v242_v40 = vmul.f32 0.25, %v240_v37  ;;  %v241_v41 = vmul.f32 0.25, %v234_v38  ;;  %541 = vmatpush1.bf16.msra.mxu1 %v769_v46 }
  0x20   : > { %719 = vmatprep.subr.bf16.mxu0 %v750_v26  ;;  %542 = vmatprep.subr.bf16.mxu1 %v770_v47 }
  0x21   : > { %v244_v43 = vpack.c.bf16 %v242_v40, %v242_v40  ;;  %v243_v44 = vpack.c.bf16 %v241_v41, %v241_v41 }
  0x23   : > { %720 = vmatpush3.bf16.msra.mxu0 %v751_v33  ;;  %412 = vmatprep.mubr.bf16.mxu0 %v244_v43 }
  0x24   : > { %543 = vmatpush1.bf16.msra.mxu1 %v772_v48 }
  0x25   : > { %544 = vmatprep.subr.bf16.mxu1 %v773_v49 }
  0x26   : > { %413 = vmatmul.mubr.bf16.vlgmr.msra.gmra.mrb[0].mxu0 %v243_v44 }
  0x28   : > { %545 = vmatpush1.bf16.msra.mxu1 %v775_v50 }
  0xf9   : > { %v721_v52 = vpop.f32.mrb[0].mxu0 }
  0xfa   : > { %v722_v54 = vpop.f32.mrb[1].mxu0 }
  0xfb   : > { %v723_v55 = vadd.f32 %v722_v54, %v721_v52  ;;  %v724_v56 = vpop.f32.mrb[2].mxu0 }
  0xfc   : > { %v725_v57 = vpop.f32.mrb[3].mxu0 }
  0xfd   : > { %v415_v58 = vadd.f32 %v723_v55, %v666_v53 }
  0xff   : > { %v420_v59 = vmax.f32 %v415_v58, 0.0 }
 0x101   : > { %v421_v60 = vpack.c.bf16 %v420_v59, %v420_v59 }
 0x103   : > { %563 = vmatmul.mubr.bf16.vlgmr.msra.gmra.mrb[0].mxu1 %v421_v60 }
 0x1d6   : > { %v564_v4 = vpop.f32.mrb[0].mxu1 }
 0x1d7   : > { %v565_v5 = vadd.f32 %v564_v4, %v443_v2  ;;  %v566_v6 = vpop.f32.mrb[1].mxu1 }
 0x1d8   : > { %v567_v7 = vadd.f32 %v566_v6, %v447_v3  ;;  %v568_v8 = vpop.f32.mrb[2].mxu1 }
 0x1d9   : > { %v571_v9 = vsub.f32 0.0, %v565_v5  ;;  %v569_v10 = vpop.f32.mrb[3].mxu1 }
 0x1da   : > { %v572_v11 = vsub.f32 0.0, %v567_v7 }
 0x1db   : > { %v573_v14 = vmul.f32 1.442695, %v571_v9 }
 0x1dc   : > { %v575_v15 = vmul.f32 1.442695, %v572_v11 }
 0x1dd   : > { %776 = vpow2.f32 %v573_v14 }
 0x1de   : > { %778 = vpow2.f32 %v575_v15 }
 0x1e7   : > { %v777_v16 = vpop.eup %776 }
 0x1e8   : > { %v779_v17 = vpop.eup %778  ;;  %v577_v18 = vadd.f32 1.0, %v777_v16 }
 0x1e9   : > { %v578_v19 = vadd.f32 1.0, %v779_v17 }
 0x1ea   : > { %780 = vrcp.f32 %v577_v18 }
 0x1eb   : > { %782 = vrcp.f32 %v578_v19 }
 0x1f4   : > { %v781_v20 = vpop.eup %780 }
 0x1f5   : > { %v783_v21 = vpop.eup %782  ;;  %v586_v22 = vrot.slane %v781_v20, %v442_v63 }
 0x1f6   : > { %v590_v23 = vrot.slane %v783_v21, %v442_v63 }
 0x1f7   : > { %v591_v24 = vmul.f32 %v586_v22, %v872_v12 }
 0x1f8   : > { %v592_v25 = vmul.f32 %v590_v23, %v874_v13 }
 0x1fa   : > { %v704_v26 = vpack.c.bf16 %v592_v25, %v591_v24 }
 0x1fc   : > { %601 = vst [vmem:[%s224_s27] sm:$0xff] %v704_v26 }
 0x1fd PF: > { %s15_s18 = sadd.s32 1, %s790_s18  }
 0x1fe   : > { %p12_p4 = scmp.ge.s32.totalorder %s15_s18, 4  }
 0x200   :  { %14 = sbr.rel (!%p12_p4) target bundleno = 1 (0x1), region = 70 }

// kernel: regnet_forward.90
= control target key start
LH: loop header
LB: loop body
LE: loop exit
PB: predicated region body
PF: predicated region fallthrough
CT: control target
= control target key end

     0   :  { %s753_s12 = smov 0   ;;  %s755_s13 = smov 0   ;;  %s843_s0 = inlined_call_operand.vmem [shape: bf16[8,128], index: 0, kind: input, shape index: {}]   ;;  %s844_s1 = inlined_call_operand.vmem [shape: bf16[128,256], index: 1, kind: input, shape index: {}]   ;;  %s845_s2 = inlined_call_operand.vmem [shape: f32[1,256], index: 2, kind: input, shape index: {}]   ;;  %s846_s3 = inlined_call_operand.vmem [shape: bf16[8,256], index: 3, kind: output, shape index: {}]  }
   0x1   :  { %s757_s14 = smov 0   ;;  %s759_s15 = smov 0  }
   0x2   :  { %s761_s16 = smov 0  }
   0x3 LB: > { %s28_s17 = sadd.s32 1, %s725_s15  ;;  %p76_p1 = scmp.ne.s32.totalorder %s717_s13, %s713_s12  ;;  %s729_s16 = sphi %s761_s16, %s13_s16   ;;  %s725_s15 = sphi %s759_s15, %s850_s15   ;;  %s721_s14 = sphi %s757_s14, %s849_s14   ;;  %s717_s13 = sphi %s755_s13, %s848_s13   ;;  %s713_s12 = sphi %s753_s12, %s847_s12  }
   0x4   : > { %p30_p0 = scmp.ge.s32.totalorder %s28_s17, 2  ;;  %p77_p2 = scmp.eq.s32.totalorder %s729_s16, 0 }
   0x5   : > { %s69_s19 = sadd.s32 1, %s717_s13  ;;  %p595_p5 = scmp.ge.s32.totalorder %s729_s16, 2 }
   0x6   : > { %s852_s17 = smov (%p30_p0, %s28_s17), 0  ;;  %p78_p3 = por %p77_p2, %p76_p1 }
   0x7   : > { %s65_s18 = ssub.s32 %s725_s15, %s852_s17  ;;  %166 = sbr.rel (%p595_p5) target bundleno = 28 (0x1c), region = 20 }
   0x8   : > { %p67_p4 = scmp.eq.s32.totalorder %s65_s18, 0 }
   0xa   : > { %s788_s20 = scalar_select %p67_p4, %s717_s13, %s69_s19  }
   0xe   : > { %169 = sbr.rel (!%p78_p3) target bundleno = 28 (0x1c), region = 24  ;;  %s171_s21 = sand.u32 (%p78_p3), 1, %s717_s13  }
   0xf   : > { %s597_s22 = sshll.u32 (%p78_p3), %s725_s15, 2  ;;  %s596_s23 = sshll.u32 (%p78_p3), %s171_s21, 6 }
  0x10   : > { %s796_s26 = scalar_lea.vmem (%p78_p3), %s844_s1, %s597_s22  ;;  %s173_s27 = scalar_lea.vmem (%p78_p3), [#allocation3], %s596_s23 }
  0x11   : > { %v194_v0 = vld [vmem:[%s796_s26] sm:$0xf] (%p78_p3)  ;;  %v196_v1 = vld [vmem:[%s796_s26 + $0x8] sm:$0xf] (%p78_p3)  ;;  %v198_v2 = vld [vmem:[%s796_s26 + $0x10] sm:$0xf] (%p78_p3) }
  0x12   : > { %195 = vst [vmem:[%s173_s27] sm:$0xf] (%p78_p3), %v194_v0  ;;  %197 = vst [vmem:[%s173_s27 + $0x4] sm:$0xf] (%p78_p3), %v196_v1  ;;  %v200_v3 = vld [vmem:[%s796_s26 + $0x18] sm:$0xf] (%p78_p3) }
  0x13   : > { %v202_v4 = vld [vmem:[%s796_s26 + $0x20] sm:$0xf] (%p78_p3)  ;;  %199 = vst [vmem:[%s173_s27 + $0x8] sm:$0xf] (%p78_p3), %v198_v2  ;;  %201 = vst [vmem:[%s173_s27 + $0xc] sm:$0xf] (%p78_p3), %v200_v3 }
  0x14   : > { %203 = vst [vmem:[%s173_s27 + $0x10] sm:$0xf] (%p78_p3), %v202_v4  ;;  %v204_v5 = vld [vmem:[%s796_s26 + $0x28] sm:$0xf] (%p78_p3)  ;;  %v206_v6 = vld [vmem:[%s796_s26 + $0x30] sm:$0xf] (%p78_p3) }
  0x15   : > { %v208_v7 = vld [vmem:[%s796_s26 + $0x38] sm:$0xf]  ;;  %205 = vst [vmem:[%s173_s27 + $0x14] sm:$0xf] %v204_v5  ;;  %207 = vst [vmem:[%s173_s27 + $0x18] sm:$0xf] %v206_v6 }
  0x16   : > { %209 = vst [vmem:[%s173_s27 + $0x1c] sm:$0xf] %v208_v7  ;;  %v210_v8 = vld [vmem:[%s796_s26 + $0x40] sm:$0xf]  ;;  %v212_v9 = vld [vmem:[%s796_s26 + $0x48] sm:$0xf] }
  0x17   : > { %v214_v10 = vld [vmem:[%s796_s26 + $0x50] sm:$0xf]  ;;  %211 = vst [vmem:[%s173_s27 + $0x20] sm:$0xf] %v210_v8  ;;  %213 = vst [vmem:[%s173_s27 + $0x24] sm:$0xf] %v212_v9 }
  0x18   : > { %215 = vst [vmem:[%s173_s27 + $0x28] sm:$0xf] %v214_v10  ;;  %v216_v11 = vld [vmem:[%s796_s26 + $0x58] sm:$0xf]  ;;  %v218_v12 = vld [vmem:[%s796_s26 + $0x60] sm:$0xf] }
  0x19   : > { %v220_v13 = vld [vmem:[%s796_s26 + $0x68] sm:$0xf]  ;;  %217 = vst [vmem:[%s173_s27 + $0x2c] sm:$0xf] %v216_v11  ;;  %219 = vst [vmem:[%s173_s27 + $0x30] sm:$0xf] %v218_v12 }
  0x1a   : > { %221 = vst [vmem:[%s173_s27 + $0x34] sm:$0xf] %v220_v13  ;;  %v222_v14 = vld [vmem:[%s796_s26 + $0x70] sm:$0xf]  ;;  %v224_v15 = vld [vmem:[%s796_s26 + $0x78] sm:$0xf] }
  0x1b   : > { %223 = vst [vmem:[%s173_s27 + $0x38] sm:$0xf] %v222_v14  ;;  %225 = vst [vmem:[%s173_s27 + $0x3c] sm:$0xf] %v224_v15 }
  0x1c PF: > { %p598_p6 = scmp.ge.s32.totalorder %s729_s16, 1  ;;  %p285_p7 = scmp.lt.s32.totalorder %s729_s16, 3 }
  0x1e   : > { %p286_p8 = pnand %p598_p6, %p285_p7 }
  0x1f   : > { %s292_s28 = sand.u32 (!%p286_p8), 1, %s713_s12   ;;  %v731_v16 = vmov (!%p286_p8), 0.0   ;;  %vm732_vm0 = vmmov (!%p286_p8), 0   ;;  %v354_v25 = vld [vmem:[%s843_s0] sm:$0xf] (!%p286_p8)  ;;  %p336_p9 = scmp.lt.s32.totalorder (!%p286_p8), %s721_s14, 1 }
  0x20   : > { %289 = sbr.rel (%p286_p8) target bundleno = 283 (0x11b), region = 69  ;;  %621 = vmatprep.subr.bf16.mxu0 (!%p286_p8), %v731_v16  ;;  %s599_s29 = sshll.u32 (!%p286_p8), %s292_s28, 6  ;;  %637 = vmatprep.mubr.msk.bf16.mxu0 (!%p286_p8), %vm732_vm0, %v731_v16 }
  0x21   : > { %s294_s30 = scalar_lea.vmem (!%p286_p8), [#allocation3], %s599_s29 }
  0x22   : > { %v683_v17 = vld [vmem:[%s294_s30] sm:$0xff] (!%p286_p8)   ;;  %v684_v18 = vld [vmem:[%s294_s30 + $0x8] sm:$0xff] (!%p286_p8)   ;;  %v685_v19 = vld [vmem:[%s294_s30 + $0x10] sm:$0xff] (!%p286_p8)  }
  0x23   : > { %622 = vmatpush3.bf16.msra.mxu0 (!%p286_p8), %v683_v17  ;;  %v686_v20 = vld [vmem:[%s294_s30 + $0x18] sm:$0xff] (!%p286_p8)   ;;  %v687_v21 = vld [vmem:[%s294_s30 + $0x20] sm:$0xff] (!%p286_p8)   ;;  %v688_v22 = vld [vmem:[%s294_s30 + $0x28] sm:$0xff] (!%p286_p8)  }
  0x24   : > { %623 = vmatprep.subr.bf16.mxu0 (!%p286_p8), %v731_v16  ;;  %v689_v23 = vld [vmem:[%s294_s30 + $0x30] sm:$0xff] (!%p286_p8)   ;;  %v690_v24 = vld [vmem:[%s294_s30 + $0x38] sm:$0xff] (!%p286_p8)  }
  0x27   : > { %624 = vmatpush3.bf16.msra.mxu0 %v684_v18  ;;  %s854_s14 = smov (!%p336_p9, %s721_s14), 1 }
  0x28   : > { %625 = vmatprep.subr.bf16.mxu0 %v731_v16  ;;  %s338_s8 = scalar_lea.vmem %s845_s2, %s854_s14  ;;  %s600_s9 = sshll.u32 %s854_s14, 2 }
  0x29   : > { %v609_v26 = vld [vmem:[%s338_s8] ss:$0 sm:$0xff]  ;;  %s346_s12 = scalar_lea.vmem %s846_s3, %s600_s9 }
  0x2b   : > { %626 = vmatpush3.bf16.msra.mxu0 %v685_v19 }
  0x2c   : > { %627 = vmatprep.subr.bf16.mxu0 %v731_v16 }
  0x2f   : > { %628 = vmatpush3.bf16.msra.mxu0 %v686_v20 }
  0x30   : > { %629 = vmatprep.subr.bf16.mxu0 %v731_v16 }
  0x33   : > { %630 = vmatpush3.bf16.msra.mxu0 %v687_v21 }
  0x34   : > { %631 = vmatprep.subr.bf16.mxu0 %v731_v16 }
  0x37   : > { %632 = vmatpush3.bf16.msra.mxu0 %v688_v22 }
  0x38   : > { %633 = vmatprep.subr.bf16.mxu0 %v731_v16 }
  0x3b   : > { %634 = vmatpush3.bf16.msra.mxu0 %v689_v23 }
  0x3c   : > { %635 = vmatprep.subr.bf16.mxu0 %v731_v16 }
  0x3f   : > { %636 = vmatpush3.bf16.msra.mxu0 %v690_v24 }
  0x42   : > { %638 = vmatmul.mubr.bf16.vlgmr.msra.gmra.mrb[0].mxu0 %v354_v25 }
 0x115   : > { %v453_v27 = vpop.f32.mrb[0].mxu0 }
 0x116   : > { %v472_v28 = vadd.f32 %v609_v26, %v453_v27  ;;  %v639_v29 = vpop.f32.mrb[1].mxu0 }
 0x117   : > { %v456_v30 = vpop.f32.mrb[2].mxu0 }
 0x118   : > { %v473_v31 = vpack.c.bf16 %v472_v28, %v472_v28  ;;  %v640_v32 = vpop.f32.mrb[3].mxu0 }
 0x11a   : > { %474 = vst [vmem:[%s346_s12] sm:$0xf] %v473_v31 }
 0x11b PF: > { %s13_s16 = sadd.s32 1, %s729_s16   ;;  %s847_s12 = smov %s717_s13 }
 0x11c   : > { %p10_p10 = scmp.ge.s32.totalorder %s13_s16, 4   ;;  %s848_s13 = smov %s788_s20 }
 0x11d   : > { %s849_s14 = smov %s725_s15  ;;  %s850_s15 = smov %s852_s17 }
 0x11e   :  { %12 = sbr.rel (!%p10_p10) target bundleno = 3 (0x3), region = 122 }

// kernel: regnet_forward.94
= control target key start
LH: loop header
LB: loop body
LE: loop exit
PB: predicated region body
PF: predicated region fallthrough
CT: control target
= control target key end

     0   :  { %s884_s15 = smov 0   ;;  %s886_s16 = smov 0   ;;  %s1022_s0 = inlined_call_operand.vmem [shape: bf16[8,256], index: 0, kind: input, shape index: {}]   ;;  %s1023_s1 = inlined_call_operand.vmem [shape: bf16[256,256], index: 1, kind: input, shape index: {}]   ;;  %s1024_s2 = inlined_call_operand.vmem [shape: f32[1,256], index: 2, kind: input, shape index: {}]   ;;  %s1025_s3 = inlined_call_operand.vmem [shape: bf16[8,256], index: 3, kind: input, shape index: {}]   ;;  %s1026_s4 = inlined_call_operand.vmem [shape: bf16[8,256], index: 4, kind: output, shape index: {}]  }
   0x1   :  { %s888_s17 = smov 0   ;;  %s890_s18 = smov 0  }
   0x2   :  { %s892_s19 = smov 0   ;;  %s894_s20 = smov 0  }
   0x3   :  { %s896_s21 = smov 0  }
   0x4 LB: > { %s26_s22 = sadd.s32 1, %s846_s19  ;;  %s29_s23 = sadd.s32 1, %s850_s20  ;;  %s854_s21 = sphi %s896_s21, %s14_s21   ;;  %s850_s20 = sphi %s894_s20, %s1032_s20   ;;  %s846_s19 = sphi %s892_s19, %s1031_s19   ;;  %s842_s18 = sphi %s890_s18, %s1030_s18   ;;  %s838_s17 = sphi %s888_s17, %s1029_s17   ;;  %s834_s16 = sphi %s886_s16, %s1028_s16   ;;  %s830_s15 = sphi %s884_s15, %s1027_s15  }
   0x5   : > { %p27_p0 = scmp.ge.s32.totalorder %s26_s22, 2  ;;  %p77_p1 = scmp.ne.s32.totalorder %s834_s16, %s830_s15 }
   0x6   : > { %p78_p2 = scmp.eq.s32.totalorder %s854_s21, 0  ;;  %s70_s27 = sadd.s32 1, %s834_s16 }
   0x7   : > { %s1034_s22 = smov (%p27_p0, %s26_s22), 0  ;;  %s1036_s23 = smov (!%p27_p0, %s29_s23), %s850_s20 }
   0x8   : > { %p79_p3 = por %p78_p2, %p77_p1  ;;  %p31_p4 = scmp.ge.s32.totalorder %s1036_s23, 2 }
   0x9   : > { %s65_s24 = ssub.s32 %s846_s19, %s1034_s22  ;;  %p680_p6 = scmp.ge.s32.totalorder %s854_s21, 4 }
   0xa   : > { %s1038_s23 = smov (%p31_p4, %s1036_s23), 0 }
   0xb   : > { %s66_s25 = ssub.s32 %s850_s20, %s1038_s23  ;;  %185 = sbr.rel (%p680_p6) target bundleno = 34 (0x22), region = 16 }
   0xc   : > { %s67_s26 = sor.u32 %s66_s25, %s65_s24 }
   0xd   : > { %p68_p5 = scmp.eq.s32.totalorder %s67_s26, 0 }
   0xf   : > { %s935_s28 = scalar_select %p68_p5, %s834_s16, %s70_s27  }
  0x12   : > { %199 = sbr.rel (!%p79_p3) target bundleno = 34 (0x22), region = 24  ;;  %s201_s29 = sand.u32 (%p79_p3), 1, %s834_s16  }
  0x13   : > { %s703_s30 = sshll.u32 (%p79_p3), %s846_s19, 5  ;;  %s681_s5 = sshll.u32 (%p79_p3), %s201_s29, 6 }
  0x14   : > { %s206_s6 = sadd.s32 (%p79_p3), %s850_s20, %s703_s30  ;;  %s203_s11 = scalar_lea.vmem (%p79_p3), [#allocation3], %s681_s5 }
  0x15   : > { %s684_s7 = sshll.u32 (%p79_p3), %s206_s6, 2 }
  0x16   : > { %s944_s10 = scalar_lea.vmem (%p79_p3), %s1023_s1, %s684_s7 }
  0x17   : > { %v224_v0 = vld [vmem:[%s944_s10] sm:$0xf] (%p79_p3)  ;;  %v226_v1 = vld [vmem:[%s944_s10 + $0x8] sm:$0xf] (%p79_p3)  ;;  %v228_v2 = vld [vmem:[%s944_s10 + $0x10] sm:$0xf] (%p79_p3) }
  0x18   : > { %225 = vst [vmem:[%s203_s11] sm:$0xf] (%p79_p3), %v224_v0  ;;  %227 = vst [vmem:[%s203_s11 + $0x4] sm:$0xf] (%p79_p3), %v226_v1  ;;  %v230_v3 = vld [vmem:[%s944_s10 + $0x18] sm:$0xf] (%p79_p3) }
  0x19   : > { %229 = vst [vmem:[%s203_s11 + $0x8] sm:$0xf] %v228_v2  ;;  %v232_v4 = vld [vmem:[%s944_s10 + $0x20] sm:$0xf]  ;;  %v234_v5 = vld [vmem:[%s944_s10 + $0x28] sm:$0xf] }
  0x1a   : > { %231 = vst [vmem:[%s203_s11 + $0xc] sm:$0xf] %v230_v3  ;;  %233 = vst [vmem:[%s203_s11 + $0x10] sm:$0xf] %v232_v4  ;;  %v236_v6 = vld [vmem:[%s944_s10 + $0x30] sm:$0xf] }
  0x1b   : > { %235 = vst [vmem:[%s203_s11 + $0x14] sm:$0xf] %v234_v5  ;;  %v238_v7 = vld [vmem:[%s944_s10 + $0x38] sm:$0xf]  ;;  %v240_v8 = vld [vmem:[%s944_s10 + $0x40] sm:$0xf] }
  0x1c   : > { %237 = vst [vmem:[%s203_s11 + $0x18] sm:$0xf] %v236_v6  ;;  %239 = vst [vmem:[%s203_s11 + $0x1c] sm:$0xf] %v238_v7  ;;  %v242_v9 = vld [vmem:[%s944_s10 + $0x48] sm:$0xf] }
  0x1d   : > { %241 = vst [vmem:[%s203_s11 + $0x20] sm:$0xf] %v240_v8  ;;  %v244_v10 = vld [vmem:[%s944_s10 + $0x50] sm:$0xf]  ;;  %v246_v11 = vld [vmem:[%s944_s10 + $0x58] sm:$0xf] }
  0x1e   : > { %243 = vst [vmem:[%s203_s11 + $0x24] sm:$0xf] %v242_v9  ;;  %245 = vst [vmem:[%s203_s11 + $0x28] sm:$0xf] %v244_v10  ;;  %v248_v12 = vld [vmem:[%s944_s10 + $0x60] sm:$0xf] }
  0x1f   : > { %247 = vst [vmem:[%s203_s11 + $0x2c] sm:$0xf] %v246_v11  ;;  %v250_v13 = vld [vmem:[%s944_s10 + $0x68] sm:$0xf]  ;;  %v252_v14 = vld [vmem:[%s944_s10 + $0x70] sm:$0xf] }
  0x20   : > { %249 = vst [vmem:[%s203_s11 + $0x30] sm:$0xf] %v248_v12  ;;  %251 = vst [vmem:[%s203_s11 + $0x34] sm:$0xf] %v250_v13  ;;  %v254_v15 = vld [vmem:[%s944_s10 + $0x78] sm:$0xf] }
  0x21   : > { %253 = vst [vmem:[%s203_s11 + $0x38] sm:$0xf] %v252_v14  ;;  %255 = vst [vmem:[%s203_s11 + $0x3c] sm:$0xf] %v254_v15 }
  0x22 PF: > { %p685_p7 = scmp.ge.s32.totalorder %s854_s21, 1  ;;  %p326_p8 = scmp.lt.s32.totalorder %s854_s21, 5 }
  0x24   : > { %p327_p9 = pnand %p685_p7, %p326_p8 }
  0x25   : > { %s333_s12 = sand.u32 (!%p327_p9), 1, %s830_s15   ;;  %p382_p10 = scmp.lt.s32.totalorder (!%p327_p9), %s838_s17, 1 }
  0x26   : > { %330 = sbr.rel (%p327_p9) target bundleno = 317 (0x13d), region = 73  ;;  %s686_s13 = sshll.u32 (!%p327_p9), %s333_s12, 6 }
  0x27   : > { %p389_p11 = scmp.lt.s32.totalorder (!%p327_p9), %s842_s18, 1  ;;  %s335_s12 = scalar_lea.vmem (!%p327_p9), [#allocation3], %s686_s13 }
  0x28   : > { %p690_p12 = scmp.ne.s32.totalorder (!%p327_p9), %s838_s17, 0 }
  0x2d   : > { %s383_s14 = scalar_select %p382_p10, %s838_s17, 1 }
  0x2e   : > { %s1040_s18 = smov (!%p389_p11, %s842_s18), 1  ;;  %412 = sbr.rel (%p690_p12) target bundleno = 53 (0x35), region = 81 }
  0x2f   : > { %s687_s24 = sshll.u32 %s383_s14, 2  ;;  %s391_s5 = scalar_lea.vmem %s1024_s2, %s1040_s18  ;;  %v856_v16 = vmov (!%p690_p12), 0.0  }
  0x30   : > { %s974_s27 = scalar_lea.vmem %s1022_s0, %s687_s24  ;;  %s688_s6 = sshll.u32 %s1040_s18, 2  ;;  %413 = vst [vmem:[#allocation2] sm:$0xff] (!%p690_p12), %v856_v16 }
  0x31   : > { %s984_s8 = scalar_lea.vmem %s1025_s3, %s688_s6  ;;  %s989_s11 = scalar_lea.vmem %s1026_s4, %s688_s6 }
  0x35 PF: > { %v792_v17 = vld [vmem:[%s335_s12] sm:$0xff]   ;;  %v857_v18 = vmov 0.0   ;;  %v793_v19 = vld [vmem:[%s335_s12 + $0x8] sm:$0xff]   ;;  %vm858_vm0 = vmmov 0   ;;  %v794_v20 = vld [vmem:[%s335_s12 + $0x10] sm:$0xff]   ;;  %p699_p13 = scmp.ne.s32.totalorder %s838_s17, 1 }
  0x36   : > { %713 = vmatprep.subr.bf16.mxu0 %v857_v18  ;;  %729 = vmatprep.mubr.msk.bf16.mxu0 %vm858_vm0, %v857_v18  ;;  %v795_v21 = vld [vmem:[%s335_s12 + $0x18] sm:$0xff]   ;;  %v796_v22 = vld [vmem:[%s335_s12 + $0x20] sm:$0xff]   ;;  %v797_v23 = vld [vmem:[%s335_s12 + $0x28] sm:$0xff]  }
  0x37   : > { %714 = vmatpush3.bf16.msra.mxu0 %v792_v17  ;;  %v798_v24 = vld [vmem:[%s335_s12 + $0x30] sm:$0xff]   ;;  %v799_v25 = vld [vmem:[%s335_s12 + $0x38] sm:$0xff]  }
  0x38   : > { %715 = vmatprep.subr.bf16.mxu0 %v857_v18  ;;  %v415_v26 = vld [vmem:[%s974_s27] sm:$0xf] }
  0x39   : > { %v414_v27 = vld [vmem:[#allocation2] sm:$0xff] }
  0x3a   : > { %v700_v34 = vld [vmem:[%s391_s5] ss:$0 sm:$0xff] (!%p699_p13) }
  0x3b   : > { %716 = vmatpush3.bf16.msra.mxu0 %v793_v19  ;;  %v535_v35 = vld [vmem:[%s984_s8] sm:$0xf] (!%p699_p13) }
  0x3c   : > { %717 = vmatprep.subr.bf16.mxu0 %v857_v18  ;;  %v536_v37 = vunpack.c.l.bf16 (!%p699_p13), %v535_v35 }
  0x3f   : > { %718 = vmatpush3.bf16.msra.mxu0 %v794_v20 }
  0x40   : > { %719 = vmatprep.subr.bf16.mxu0 %v857_v18 }
  0x43   : > { %720 = vmatpush3.bf16.msra.mxu0 %v795_v21 }
  0x44   : > { %721 = vmatprep.subr.bf16.mxu0 %v857_v18 }
  0x47   : > { %722 = vmatpush3.bf16.msra.mxu0 %v796_v22 }
  0x48   : > { %723 = vmatprep.subr.bf16.mxu0 %v857_v18 }
  0x4b   : > { %724 = vmatpush3.bf16.msra.mxu0 %v797_v23 }
  0x4c   : > { %725 = vmatprep.subr.bf16.mxu0 %v857_v18 }
  0x4f   : > { %726 = vmatpush3.bf16.msra.mxu0 %v798_v24 }
  0x50   : > { %727 = vmatprep.subr.bf16.mxu0 %v857_v18 }
  0x53   : > { %728 = vmatpush3.bf16.msra.mxu0 %v799_v25 }
  0x56   : > { %730 = vmatmul.mubr.bf16.vlgmr.msra.gmra.mrb[0].mxu0 %v415_v26 }
 0x126   : > { %525 = sbr.rel (%p699_p13) target bundleno = 317 (0x13d), region = 85 }
 0x129   : > { %v514_v28 = vpop.f32.mrb[0].mxu0 }
 0x12a   : > { %v520_v29 = vadd.f32 %v514_v28, %v414_v27  ;;  %v731_v30 = vpop.f32.mrb[1].mxu0 }
 0x12b   : > { %v517_v31 = vpop.f32.mrb[2].mxu0 }
 0x12c   : > { %521 = vst [vmem:[#allocation2] sm:$0xff] %v520_v29  ;;  %v732_v32 = vpop.f32.mrb[3].mxu0 }
 0x133   : > { %v526_v33 = vld [vmem:[#allocation2] sm:$0xff] }
 0x134   : > { %v534_v36 = vadd.f32 %v700_v34, %v526_v33 }
 0x136   : > { %v537_v38 = vadd.f32 %v536_v37, %v534_v36 }
 0x138   : > { %v538_v39 = vmax.f32 %v537_v38, 0.0 }
 0x13a   : > { %v539_v40 = vpack.c.bf16 %v538_v39, %v538_v39 }
 0x13c   : > { %540 = vst [vmem:[%s989_s11] sm:$0xf] %v539_v40 }
 0x13d PF: > { %s14_s21 = sadd.s32 1, %s854_s21   ;;  %s1027_s15 = smov %s834_s16 }
 0x13e   : > { %p11_p0 = scmp.ge.s32.totalorder %s14_s21, 6   ;;  %s1028_s16 = smov %s935_s28 }
 0x13f   : > { %s1029_s17 = smov %s846_s19  ;;  %s1030_s18 = smov %s850_s20 }
 0x140   : > { %s1031_s19 = smov %s1034_s22  ;;  %s1032_s20 = smov %s1038_s23 }
 0x141   :  { %13 = sbr.rel (!%p11_p0) target bundleno = 4 (0x4), region = 129 }

// kernel: regnet_forward.95
= control target key start
LH: loop header
LB: loop body
LE: loop exit
PB: predicated region body
PF: predicated region fallthrough
CT: control target
= control target key end

     0   :  { %s799_s12 = smov 0   ;;  %s801_s13 = smov 0   ;;  %s931_s0 = inlined_call_operand.vmem [shape: bf16[8,256], index: 0, kind: input, shape index: {}]   ;;  %s932_s1 = inlined_call_operand.vmem [shape: bf16[256,256], index: 1, kind: input, shape index: {}]   ;;  %s933_s2 = inlined_call_operand.vmem [shape: f32[1,256], index: 2, kind: input, shape index: {}]   ;;  %s934_s3 = inlined_call_operand.vmem [shape: bf16[8,256], index: 3, kind: output, shape index: {}]  }
   0x1   :  { %s803_s14 = smov 0   ;;  %s805_s15 = smov 0  }
   0x2   :  { %s807_s16 = smov 0   ;;  %s809_s17 = smov 0  }
   0x3   :  { %s811_s18 = smov 0  }
   0x4 LB: > { %s25_s19 = sadd.s32 1, %s766_s16  ;;  %s28_s20 = sadd.s32 1, %s770_s17  ;;  %s774_s18 = sphi %s811_s18, %s13_s18   ;;  %s770_s17 = sphi %s809_s17, %s940_s17   ;;  %s766_s16 = sphi %s807_s16, %s939_s16   ;;  %s762_s15 = sphi %s805_s15, %s938_s15   ;;  %s758_s14 = sphi %s803_s14, %s937_s14   ;;  %s754_s13 = sphi %s801_s13, %s936_s13   ;;  %s750_s12 = sphi %s799_s12, %s935_s12  }
   0x5   : > { %p26_p0 = scmp.ge.s32.totalorder %s25_s19, 2  ;;  %p76_p1 = scmp.ne.s32.totalorder %s754_s13, %s750_s12 }
   0x6   : > { %p77_p2 = scmp.eq.s32.totalorder %s774_s18, 0  ;;  %s69_s24 = sadd.s32 1, %s754_s13 }
   0x7   : > { %s942_s19 = smov (%p26_p0, %s25_s19), 0  ;;  %s944_s20 = smov (!%p26_p0, %s28_s20), %s770_s17 }
   0x8   : > { %p78_p3 = por %p77_p2, %p76_p1  ;;  %p30_p4 = scmp.ge.s32.totalorder %s944_s20, 2 }
   0x9   : > { %s64_s21 = ssub.s32 %s766_s16, %s942_s19  ;;  %p601_p6 = scmp.ge.s32.totalorder %s774_s18, 4 }
   0xa   : > { %s946_s20 = smov (%p30_p4, %s944_s20), 0 }
   0xb   : > { %s65_s22 = ssub.s32 %s770_s17, %s946_s20  ;;  %156 = sbr.rel (%p601_p6) target bundleno = 34 (0x22), region = 16 }
   0xc   : > { %s66_s23 = sor.u32 %s65_s22, %s64_s21 }
   0xd   : > { %p67_p5 = scmp.eq.s32.totalorder %s66_s23, 0 }
   0xf   : > { %s850_s25 = scalar_select %p67_p5, %s754_s13, %s69_s24  }
  0x12   : > { %170 = sbr.rel (!%p78_p3) target bundleno = 34 (0x22), region = 24  ;;  %s172_s26 = sand.u32 (%p78_p3), 1, %s754_s13  }
  0x13   : > { %s623_s27 = sshll.u32 (%p78_p3), %s766_s16, 5  ;;  %s602_s28 = sshll.u32 (%p78_p3), %s172_s26, 6 }
  0x14   : > { %s177_s29 = sadd.s32 (%p78_p3), %s770_s17, %s623_s27  ;;  %s174_s7 = scalar_lea.vmem (%p78_p3), [#allocation3], %s602_s28 }
  0x15   : > { %s605_s30 = sshll.u32 (%p78_p3), %s177_s29, 2 }
  0x16   : > { %s859_s6 = scalar_lea.vmem (%p78_p3), %s932_s1, %s605_s30 }
  0x17   : > { %v195_v0 = vld [vmem:[%s859_s6] sm:$0xf] (%p78_p3)  ;;  %v197_v1 = vld [vmem:[%s859_s6 + $0x8] sm:$0xf] (%p78_p3)  ;;  %v199_v2 = vld [vmem:[%s859_s6 + $0x10] sm:$0xf] (%p78_p3) }
  0x18   : > { %196 = vst [vmem:[%s174_s7] sm:$0xf] (%p78_p3), %v195_v0  ;;  %198 = vst [vmem:[%s174_s7 + $0x4] sm:$0xf] (%p78_p3), %v197_v1  ;;  %v201_v3 = vld [vmem:[%s859_s6 + $0x18] sm:$0xf] (%p78_p3) }
  0x19   : > { %200 = vst [vmem:[%s174_s7 + $0x8] sm:$0xf] %v199_v2  ;;  %v203_v4 = vld [vmem:[%s859_s6 + $0x20] sm:$0xf]  ;;  %v205_v5 = vld [vmem:[%s859_s6 + $0x28] sm:$0xf] }
  0x1a   : > { %202 = vst [vmem:[%s174_s7 + $0xc] sm:$0xf] %v201_v3  ;;  %204 = vst [vmem:[%s174_s7 + $0x10] sm:$0xf] %v203_v4  ;;  %v207_v6 = vld [vmem:[%s859_s6 + $0x30] sm:$0xf] }
  0x1b   : > { %206 = vst [vmem:[%s174_s7 + $0x14] sm:$0xf] %v205_v5  ;;  %v209_v7 = vld [vmem:[%s859_s6 + $0x38] sm:$0xf]  ;;  %v211_v8 = vld [vmem:[%s859_s6 + $0x40] sm:$0xf] }
  0x1c   : > { %208 = vst [vmem:[%s174_s7 + $0x18] sm:$0xf] %v207_v6  ;;  %210 = vst [vmem:[%s174_s7 + $0x1c] sm:$0xf] %v209_v7  ;;  %v213_v9 = vld [vmem:[%s859_s6 + $0x48] sm:$0xf] }
  0x1d   : > { %212 = vst [vmem:[%s174_s7 + $0x20] sm:$0xf] %v211_v8  ;;  %v215_v10 = vld [vmem:[%s859_s6 + $0x50] sm:$0xf]  ;;  %v217_v11 = vld [vmem:[%s859_s6 + $0x58] sm:$0xf] }
  0x1e   : > { %214 = vst [vmem:[%s174_s7 + $0x24] sm:$0xf] %v213_v9  ;;  %216 = vst [vmem:[%s174_s7 + $0x28] sm:$0xf] %v215_v10  ;;  %v219_v12 = vld [vmem:[%s859_s6 + $0x60] sm:$0xf] }
  0x1f   : > { %218 = vst [vmem:[%s174_s7 + $0x2c] sm:$0xf] %v217_v11  ;;  %v221_v13 = vld [vmem:[%s859_s6 + $0x68] sm:$0xf]  ;;  %v223_v14 = vld [vmem:[%s859_s6 + $0x70] sm:$0xf] }
  0x20   : > { %220 = vst [vmem:[%s174_s7 + $0x30] sm:$0xf] %v219_v12  ;;  %222 = vst [vmem:[%s174_s7 + $0x34] sm:$0xf] %v221_v13  ;;  %v225_v15 = vld [vmem:[%s859_s6 + $0x78] sm:$0xf] }
  0x21   : > { %224 = vst [vmem:[%s174_s7 + $0x38] sm:$0xf] %v223_v14  ;;  %226 = vst [vmem:[%s174_s7 + $0x3c] sm:$0xf] %v225_v15 }
  0x22 PF: > { %p606_p7 = scmp.ge.s32.totalorder %s774_s18, 1  ;;  %p286_p8 = scmp.lt.s32.totalorder %s774_s18, 5 }
  0x24   : > { %p287_p9 = pnand %p606_p7, %p286_p8 }
  0x25   : > { %s293_s8 = sand.u32 (!%p287_p9), 1, %s750_s12   ;;  %p332_p10 = scmp.lt.s32.totalorder (!%p287_p9), %s758_s14, 1 }
  0x26   : > { %290 = sbr.rel (%p287_p9) target bundleno = 315 (0x13b), region = 69  ;;  %s607_s9 = sshll.u32 (!%p287_p9), %s293_s8, 6 }
  0x27   : > { %p339_p11 = scmp.lt.s32.totalorder (!%p287_p9), %s762_s15, 1  ;;  %s295_s4 = scalar_lea.vmem (!%p287_p9), [#allocation3], %s607_s9 }
  0x28   : > { %p610_p12 = scmp.ne.s32.totalorder (!%p287_p9), %s758_s14, 0 }
  0x2d   : > { %s333_s10 = scalar_select %p332_p10, %s758_s14, 1 }
  0x2e   : > { %s948_s15 = smov (!%p339_p11, %s762_s15), 1  ;;  %354 = sbr.rel (%p610_p12) target bundleno = 53 (0x35), region = 77 }
  0x2f   : > { %s608_s11 = sshll.u32 %s333_s10, 2  ;;  %s341_s27 = scalar_lea.vmem %s933_s2, %s948_s15  ;;  %v776_v16 = vmov (!%p610_p12), 0.0  }
  0x30   : > { %s889_s23 = scalar_lea.vmem %s931_s0, %s608_s11  ;;  %s609_s28 = sshll.u32 %s948_s15, 2  ;;  %355 = vst [vmem:[#allocation2] sm:$0xff] (!%p610_p12), %v776_v16 }
  0x31   : > { %s899_s30 = scalar_lea.vmem %s934_s3, %s609_s28 }
  0x35 PF: > { %v712_v17 = vld [vmem:[%s295_s4] sm:$0xff]   ;;  %v777_v18 = vmov 0.0   ;;  %v713_v19 = vld [vmem:[%s295_s4 + $0x8] sm:$0xff]   ;;  %vm778_vm0 = vmmov 0   ;;  %v714_v20 = vld [vmem:[%s295_s4 + $0x10] sm:$0xff]   ;;  %p619_p13 = scmp.ne.s32.totalorder %s758_s14, 1 }
  0x36   : > { %633 = vmatprep.subr.bf16.mxu0 %v777_v18  ;;  %649 = vmatprep.mubr.msk.bf16.mxu0 %vm778_vm0, %v777_v18  ;;  %v715_v21 = vld [vmem:[%s295_s4 + $0x18] sm:$0xff]   ;;  %v716_v22 = vld [vmem:[%s295_s4 + $0x20] sm:$0xff]   ;;  %v717_v23 = vld [vmem:[%s295_s4 + $0x28] sm:$0xff]  }
  0x37   : > { %634 = vmatpush3.bf16.msra.mxu0 %v712_v17  ;;  %v718_v24 = vld [vmem:[%s295_s4 + $0x30] sm:$0xff]   ;;  %v719_v25 = vld [vmem:[%s295_s4 + $0x38] sm:$0xff]  }
  0x38   : > { %635 = vmatprep.subr.bf16.mxu0 %v777_v18  ;;  %v357_v26 = vld [vmem:[%s889_s23] sm:$0xf] }
  0x39   : > { %v356_v27 = vld [vmem:[#allocation2] sm:$0xff] }
  0x3a   : > { %v620_v34 = vld [vmem:[%s341_s27] ss:$0 sm:$0xff] (!%p619_p13) }
  0x3b   : > { %636 = vmatpush3.bf16.msra.mxu0 %v713_v19 }
  0x3c   : > { %637 = vmatprep.subr.bf16.mxu0 %v777_v18 }
  0x3f   : > { %638 = vmatpush3.bf16.msra.mxu0 %v714_v20 }
  0x40   : > { %639 = vmatprep.subr.bf16.mxu0 %v777_v18 }
  0x43   : > { %640 = vmatpush3.bf16.msra.mxu0 %v715_v21 }
  0x44   : > { %641 = vmatprep.subr.bf16.mxu0 %v777_v18 }
  0x47   : > { %642 = vmatpush3.bf16.msra.mxu0 %v716_v22 }
  0x48   : > { %643 = vmatprep.subr.bf16.mxu0 %v777_v18 }
  0x4b   : > { %644 = vmatpush3.bf16.msra.mxu0 %v717_v23 }
  0x4c   : > { %645 = vmatprep.subr.bf16.mxu0 %v777_v18 }
  0x4f   : > { %646 = vmatpush3.bf16.msra.mxu0 %v718_v24 }
  0x50   : > { %647 = vmatprep.subr.bf16.mxu0 %v777_v18 }
  0x53   : > { %648 = vmatpush3.bf16.msra.mxu0 %v719_v25 }
  0x56   : > { %650 = vmatmul.mubr.bf16.vlgmr.msra.gmra.mrb[0].mxu0 %v357_v26 }
 0x126   : > { %467 = sbr.rel (%p619_p13) target bundleno = 315 (0x13b), region = 81 }
 0x129   : > { %v456_v28 = vpop.f32.mrb[0].mxu0 }
 0x12a   : > { %v462_v29 = vadd.f32 %v456_v28, %v356_v27  ;;  %v651_v30 = vpop.f32.mrb[1].mxu0 }
 0x12b   : > { %v459_v31 = vpop.f32.mrb[2].mxu0 }
 0x12c   : > { %463 = vst [vmem:[#allocation2] sm:$0xff] %v462_v29  ;;  %v652_v32 = vpop.f32.mrb[3].mxu0 }
 0x133   : > { %v468_v33 = vld [vmem:[#allocation2] sm:$0xff] }
 0x134   : > { %v476_v35 = vadd.f32 %v620_v34, %v468_v33 }
 0x136   : > { %v477_v36 = vmax.f32 %v476_v35, 0.0 }
 0x138   : > { %v478_v37 = vpack.c.bf16 %v477_v36, %v477_v36 }
 0x13a   : > { %479 = vst [vmem:[%s899_s30] sm:$0xf] %v478_v37 }
 0x13b PF: > { %s13_s18 = sadd.s32 1, %s774_s18   ;;  %s935_s12 = smov %s754_s13 }
 0x13c   : > { %p10_p0 = scmp.ge.s32.totalorder %s13_s18, 6   ;;  %s936_s13 = smov %s850_s25 }
 0x13d   : > { %s937_s14 = smov %s766_s16  ;;  %s938_s15 = smov %s770_s17 }
 0x13e   : > { %s939_s16 = smov %s942_s19  ;;  %s940_s17 = smov %s946_s20 }
 0x13f   :  { %12 = sbr.rel (!%p10_p0) target bundleno = 4 (0x4), region = 122 }

// kernel: regnet_forward.97
= control target key start
LH: loop header
LB: loop body
LE: loop exit
PB: predicated region body
PF: predicated region fallthrough
CT: control target
= control target key end

     0   :  { %10 = vsyncpa [#allocation3], 0  ;;  %s894_s18 = smov 0   ;;  %s1066_s0 = inlined_call_operand.vmem [shape: bf16[2,8,256], index: 0, kind: input, shape index: {}]   ;;  %s1067_s1 = inlined_call_operand.vmem [shape: bf16[256,128], index: 1, kind: input, shape index: {}]   ;;  %s1068_s2 = inlined_call_operand.hbm [shape: f32[1,128], index: 2, kind: input, shape index: {}]   ;;  %s1069_s3 = inlined_call_operand.vmem [shape: bf16[128,256], index: 3, kind: input, shape index: {}]   ;;  %s1070_s4 = inlined_call_operand.vmem [shape: f32[1,256], index: 4, kind: input, shape index: {}]   ;;  %s1071_s5 = inlined_call_operand.vmem [shape: bf16[2,8,256], index: 5, kind: output, shape index: {}]  }
   0x1 LB: > { %s900_s19 = sadd.s32 4294967295, %s860_s18   ;;  %p684_p0 = scmp.ge.s32.totalorder %s860_s18, 1  ;;  %s860_s18 = sphi %s894_s18, %s16_s18  }
   0x2   : > { %p157_p1 = scmp.lt.s32.totalorder %s860_s18, 3  ;;  %p1072_p3 = scmp.eq.s32.totalorder %s900_s19, 0 }
   0x3   : > { %s862_s21 = smov [#allocation2]   ;;  %s822_s26 = scalar_lea.hbm %s1068_s2, 16 }
   0x4   : > { %p904_p2 = pnand %p684_p0, %p157_p1  ;;  %s173_s22 = sshll.u32 %s862_s21, 4  ;;  %s174_s22 = int_to_ptr.vmem [resolvable:$true] %s173_s22 }
   0x5   : > { %p823_p6 = scmp.ne.s32.totalorder %s1068_s2, %s822_s26  ;;  %p829_p10 = scmp.lt.u32.totalorder %s822_s26, %s1068_s2 }
   0x6   : > { %s1074_s20 = scalar_select %p904_p2, 1, 0 }
   0x7   : > { %p758_p4 = pneg %p904_p2 }
   0x9   : > { %p913_p5 = pnand %p1072_p3, %p758_p4 }
   0xb   : > { %p824_p7 = pneg %p913_p5 }
   0xd   : > { %p825_p8 = pnand %p824_p7, %p823_p6 }
   0xf   : > { %p826_p9 = pneg %p825_p8 }
  0x11   : > { %p831_p11 = pnand %p829_p10, %p826_p9 }
  0x13   : > { %834 = shalt.err (!%p831_p11)
}
  0x14   : > { %s835_s6 = scalar_lea.vmem %s174_s22, 16  ;;  %s842_s7 = scalar_lea.vmem %s174_s22, 32 }
  0x15   : > { %p836_p12 = scmp.ne.s32.totalorder %s174_s22, %s835_s6  ;;  %p843_p1 = scmp.lt.s32.totalorder %s174_s22, %s174_s22 }
  0x16   : > { %p844_p4 = scmp.lt.s32.totalorder %s842_s7, %s835_s6 }
  0x17   : > { %p838_p13 = pnand %p836_p12, %p824_p7 }
  0x18   : > { %p845_p3 = por %p844_p4, %p843_p1 }
  0x19   : > { %p839_p0 = pneg %p838_p13 }
  0x1b   : > { %p846_p2 = pnand %p845_p3, %p839_p0 }
  0x1d   : > { %849 = shalt.err (!%p846_p2)
}
  0x1e   : > { %761 = dma.hbm_to_vmem [thread:$0]  (!%p913_p5), %s1068_s2, 16, %s174_s22, [#allocation3]  }
  0x1f   : > { %p1076_p6 = scmp.ne.s32.totalorder %s1074_s20, 0 }
  0x20   : > { %p1077_p8 = scmp.eq.s32.totalorder (!%p1076_p6), %s900_s19, 0 }
  0x21   : > { %200 = sbr.rel (%p1076_p6) target bundleno = 545 (0x221), region = 40 }
  0x28   : > { %855 = dma.done.wait (%p1077_p8), [#allocation3], 16   ;;  %p1078_p7 = pmov %p1077_p8 }
  0x29   : > { %v774_v0 = vld [vmem:[%s1067_s1 + $0x40] sm:$0xff]   ;;  %v776_v2 = vld [vmem:[%s1067_s1 + $0x48] sm:$0xff]   ;;  %p228_p2 = scmp.lt.s32.totalorder %s900_s19, 1  ;;  %v778_v4 = vld [vmem:[%s1067_s1 + $0x50] sm:$0xff]   ;;  %v863_v51 = vmov 0   ;;  %v453_v61 = vlaneseq }
  0x2a   : > { %857 = vsyncadd (%p1078_p7), [#allocation3], 4294967280  ;;  %v775_v1 = vld [vmem:[%s1067_s1] sm:$0xff]   ;;  %732 = vmatprep.subr.bf16.mxu0 %v774_v0  ;;  %v777_v3 = vld [vmem:[%s1067_s1 + $0x8] sm:$0xff]   ;;  %575 = vmatprep.mubr.bf16.mxu1 %v863_v51 }
  0x2b   : > { %733 = vmatpush3.bf16.msra.mxu0 %v775_v1  ;;  %s1080_s19 = smov (!%p228_p2, %s900_s19), 1  ;;  %v779_v5 = vld [vmem:[%s1067_s1 + $0x10] sm:$0xff]   ;;  %v780_v6 = vld [vmem:[%s1067_s1 + $0x58] sm:$0xff]   ;;  %v782_v8 = vld [vmem:[%s1067_s1 + $0x60] sm:$0xff]   ;;  %v454_v62 = vshrl.u32 %v453_v61, 7 }
  0x2c   : > { %734 = vmatprep.subr.bf16.mxu0 %v776_v2  ;;  %s729_s26 = sshll.u32 %s1080_s19, 3  ;;  %v781_v7 = vld [vmem:[%s1067_s1 + $0x18] sm:$0xff]   ;;  %v783_v9 = vld [vmem:[%s1067_s1 + $0x20] sm:$0xff]   ;;  %v784_v10 = vld [vmem:[%s1067_s1 + $0x68] sm:$0xff]  }
  0x2d   : > { %s232_s8 = scalar_lea.vmem %s1066_s0, %s729_s26  ;;  %v790_v14 = vld [vmem:[%s1069_s3 + $0x4] ss:$8 sps:$4 sm:$0xff]   ;;  %v792_v15 = vld [vmem:[%s1069_s3] ss:$8 sps:$4 sm:$0xff]   ;;  %v793_v17 = vld [vmem:[%s1069_s3 + $0x14] ss:$8 sps:$4 sm:$0xff]   ;;  %s237_s15 = scalar_lea.vmem %s1071_s5, %s729_s26 }
  0x2e   : > { %v239_v11 = vld [vmem:[%s232_s8] sm:$0xff]  ;;  %v785_v16 = vld [vmem:[%s1067_s1 + $0x28] sm:$0xff]   ;;  %v786_v18 = vld [vmem:[%s1067_s1 + $0x70] sm:$0xff]   ;;  %543 = vmatprep.subr.bf16.mxu1 %v790_v14  ;;  %v455_v63 = vsub.s32 0, %v454_v62  ;;  %v459_v1 = vsub.s32 1, %v454_v62 }
  0x2f   : > { %735 = vmatpush3.bf16.msra.mxu0 %v777_v3  ;;  %v982_v12 = vunpack.c.l.bf16 %v239_v11  ;;  %v984_v13 = vunpack.c.h.bf16 %v239_v11  ;;  %544 = vmatpush1.bf16.msra.mxu1 %v792_v15  ;;  %v795_v21 = vld [vmem:[%s1069_s3 + $0x10] ss:$8 sps:$4 sm:$0xff]   ;;  %v796_v24 = vld [vmem:[%s1069_s3 + $0x24] ss:$8 sps:$4 sm:$0xff]   ;;  %v798_v29 = vld [vmem:[%s1069_s3 + $0x20] ss:$8 sps:$4 sm:$0xff]  }
  0x30   : > { %736 = vmatprep.subr.bf16.mxu0 %v778_v4  ;;  %545 = vmatprep.subr.bf16.mxu1 %v793_v17  ;;  %v787_v25 = vld [vmem:[%s1067_s1 + $0x30] sm:$0xff]   ;;  %v788_v26 = vld [vmem:[%s1067_s1 + $0x78] sm:$0xff]   ;;  %v802_v39 = vld [vmem:[%s1069_s3 + $0x44] ss:$8 sps:$4 sm:$0xff]  }
  0x31   : > { %v248_v19 = vrot.slane %v984_v13, 4  ;;  %v242_v20 = vrot.slane %v982_v12, 4  ;;  %v799_v32 = vld [vmem:[%s1069_s3 + $0x34] ss:$8 sps:$4 sm:$0xff]   ;;  %v801_v36 = vld [vmem:[%s1069_s3 + $0x30] ss:$8 sps:$4 sm:$0xff]  }
  0x32   : > { %v789_v33 = vld [vmem:[%s1067_s1 + $0x38] sm:$0xff]   ;;  %v804_v42 = vld [vmem:[%s1069_s3 + $0x40] ss:$8 sps:$4 sm:$0xff]   ;;  %v808_v47 = vld [vmem:[%s1069_s3 + $0x64] ss:$8 sps:$4 sm:$0xff]  }
  0x33   : > { %737 = vmatpush3.bf16.msra.mxu0 %v779_v5  ;;  %v249_v22 = vadd.f32 %v248_v19, %v984_v13  ;;  %v243_v23 = vadd.f32 %v242_v20, %v982_v12  ;;  %546 = vmatpush1.bf16.msra.mxu1 %v795_v21  ;;  %v805_v45 = vld [vmem:[%s1069_s3 + $0x54] ss:$8 sps:$4 sm:$0xff]   ;;  %v807_v46 = vld [vmem:[%s1069_s3 + $0x50] ss:$8 sps:$4 sm:$0xff]   ;;  %v810_v48 = vld [vmem:[%s1069_s3 + $0x60] ss:$8 sps:$4 sm:$0xff]  }
  0x34   : > { %738 = vmatprep.subr.bf16.mxu0 %v780_v6  ;;  %547 = vmatprep.subr.bf16.mxu1 %v796_v24  ;;  %v811_v49 = vld [vmem:[%s1069_s3 + $0x74] ss:$8 sps:$4 sm:$0xff]   ;;  %v813_v50 = vld [vmem:[%s1069_s3 + $0x70] ss:$8 sps:$4 sm:$0xff]   ;;  %v693_v53 = vld [vmem:[#allocation2] ss:$0 sm:$0xff] }
  0x35   : > { %v250_v27 = vrot.slane %v249_v22, 2  ;;  %v244_v28 = vrot.slane %v243_v23, 2  ;;  %v451_v0 = vld [vmem:[%s1070_s4] sm:$0x3] }
  0x36   : > { %v456_v2 = vrot.slane %v451_v0, %v455_v63  ;;  %v460_v3 = vrot.slane %v451_v0, %v459_v1 }
  0x37   : > { %739 = vmatpush3.bf16.msra.mxu0 %v781_v7  ;;  %v251_v30 = vadd.f32 %v250_v27, %v249_v22  ;;  %v245_v31 = vadd.f32 %v244_v28, %v243_v23  ;;  %548 = vmatpush1.bf16.msra.mxu1 %v798_v29 }
  0x38   : > { %740 = vmatprep.subr.bf16.mxu0 %v782_v8  ;;  %549 = vmatprep.subr.bf16.mxu1 %v799_v32 }
  0x39   : > { %v252_v34 = vrot.slane %v251_v30, 1  ;;  %v246_v35 = vrot.slane %v245_v31, 1 }
  0x3b   : > { %741 = vmatpush3.bf16.msra.mxu0 %v783_v9  ;;  %v253_v37 = vadd.f32 %v252_v34, %v251_v30  ;;  %v247_v38 = vadd.f32 %v246_v35, %v245_v31  ;;  %550 = vmatpush1.bf16.msra.mxu1 %v801_v36 }
  0x3c   : > { %742 = vmatprep.subr.bf16.mxu0 %v784_v10  ;;  %551 = vmatprep.subr.bf16.mxu1 %v802_v39 }
  0x3d   : > { %v255_v40 = vmul.f32 0.25, %v253_v37  ;;  %v254_v41 = vmul.f32 0.25, %v247_v38 }
  0x3f   : > { %743 = vmatpush3.bf16.msra.mxu0 %v785_v16  ;;  %v257_v43 = vpack.c.bf16 %v255_v40, %v255_v40  ;;  %v256_v44 = vpack.c.bf16 %v254_v41, %v254_v41  ;;  %552 = vmatpush1.bf16.msra.mxu1 %v804_v42 }
  0x40   : > { %744 = vmatprep.subr.bf16.mxu0 %v786_v18  ;;  %553 = vmatprep.subr.bf16.mxu1 %v805_v45 }
  0x41   : > { %425 = vmatprep.mubr.bf16.mxu0 %v257_v43 }
  0x43   : > { %745 = vmatpush3.bf16.msra.mxu0 %v787_v25  ;;  %554 = vmatpush1.bf16.msra.mxu1 %v807_v46 }
  0x44   : > { %746 = vmatprep.subr.bf16.mxu0 %v788_v26  ;;  %555 = vmatprep.subr.bf16.mxu1 %v808_v47 }
  0x47   : > { %747 = vmatpush3.bf16.msra.mxu0 %v789_v33  ;;  %556 = vmatpush1.bf16.msra.mxu1 %v810_v48 }
  0x48   : > { %557 = vmatprep.subr.bf16.mxu1 %v811_v49 }
  0x4a   : > { %426 = vmatmul.mubr.bf16.vlgmr.msra.gmra.mrb[0].mxu0 %v256_v44 }
  0x4b   : > { %558 = vmatpush1.bf16.msra.mxu1 %v813_v50 }
 0x11d   : > { %v748_v52 = vpop.f32.mrb[0].mxu0 }
 0x11e   : > { %v749_v54 = vpop.f32.mrb[1].mxu0 }
 0x11f   : > { %v750_v55 = vadd.f32 %v749_v54, %v748_v52  ;;  %v751_v56 = vpop.f32.mrb[2].mxu0 }
 0x120   : > { %v752_v57 = vpop.f32.mrb[3].mxu0 }
 0x121   : > { %v428_v58 = vadd.f32 %v750_v55, %v693_v53 }
 0x123   : > { %v433_v59 = vmax.f32 %v428_v58, 0.0 }
 0x125   : > { %v434_v60 = vpack.c.bf16 %v433_v59, %v433_v59 }
 0x127   : > { %576 = vmatmul.mubr.bf16.vlgmr.msra.gmra.mrb[0].mxu1 %v434_v60 }
 0x1fa   : > { %v577_v4 = vpop.f32.mrb[0].mxu1 }
 0x1fb   : > { %v578_v5 = vadd.f32 %v577_v4, %v456_v2  ;;  %v579_v6 = vpop.f32.mrb[1].mxu1 }
 0x1fc   : > { %v580_v7 = vadd.f32 %v579_v6, %v460_v3  ;;  %v581_v8 = vpop.f32.mrb[2].mxu1 }
 0x1fd   : > { %v584_v9 = vsub.f32 0.0, %v578_v5  ;;  %v582_v10 = vpop.f32.mrb[3].mxu1 }
 0x1fe   : > { %v585_v11 = vsub.f32 0.0, %v580_v7 }
 0x1ff   : > { %v586_v14 = vmul.f32 1.442695, %v584_v9 }
 0x200   : > { %v588_v15 = vmul.f32 1.442695, %v585_v11 }
 0x201   : > { %814 = vpow2.f32 %v586_v14 }
 0x202   : > { %816 = vpow2.f32 %v588_v15 }
 0x20b   : > { %v815_v16 = vpop.eup %814 }
 0x20c   : > { %v817_v17 = vpop.eup %816  ;;  %v590_v18 = vadd.f32 1.0, %v815_v16 }
 0x20d   : > { %v591_v19 = vadd.f32 1.0, %v817_v17 }
 0x20e   : > { %818 = vrcp.f32 %v590_v18 }
 0x20f   : > { %820 = vrcp.f32 %v591_v19 }
 0x218   : > { %v819_v20 = vpop.eup %818 }
 0x219   : > { %v821_v21 = vpop.eup %820  ;;  %v599_v22 = vrot.slane %v819_v20, %v455_v63 }
 0x21a   : > { %v603_v23 = vrot.slane %v821_v21, %v455_v63 }
 0x21b   : > { %v604_v24 = vmul.f32 %v599_v22, %v982_v12 }
 0x21c   : > { %v605_v25 = vmul.f32 %v603_v23, %v984_v13 }
 0x21e   : > { %v731_v26 = vpack.c.bf16 %v605_v25, %v604_v24 }
 0x220   : > { %614 = vst [vmem:[%s237_s15] sm:$0xff] %v731_v26 }
 0x221 PF: > { %s16_s18 = sadd.s32 1, %s860_s18  }
 0x222   : > { %p13_p3 = scmp.ge.s32.totalorder %s16_s18, 4  }
 0x224   :  { %15 = sbr.rel (!%p13_p3) target bundleno = 1 (0x1), region = 75 }
 0x22b   :  { %636 = vsyncpa [#allocation3], 1 }
 0x22c   :  { %638 = vsyncpa [#allocation3 + $0x1], 1 }

// kernel: regnet_forward.104
= control target key start
LH: loop header
LB: loop body
LE: loop exit
PB: predicated region body
PF: predicated region fallthrough
CT: control target
= control target key end

     0   :  { %8 = vsyncpa [#allocation5], 0  ;;  %s1149_s0 = inlined_call_operand.vmem [shape: bf16[8,2304], index: 0, kind: input, shape index: {}]   ;;  %s1150_s1 = inlined_call_operand.vmem [shape: bf16[2304,256], index: 1, kind: input, shape index: {}]   ;;  %s1151_s2 = inlined_call_operand.hbm [shape: f32[1,256], index: 2, kind: input, shape index: {}]   ;;  %s1152_s3 = inlined_call_operand.vmem [shape: bf16[8,256], index: 3, kind: output, shape index: {}]  }
   0x1   :  { %10 = vsyncpa [#allocation5 + $0x1], 0  ;;  %s939_s12 = smov 0   ;;  %s941_s13 = smov 0  }
   0x2   :  { %s943_s14 = smov 0   ;;  %s945_s15 = smov 0  }
   0x3   :  { %s947_s16 = smov 0   ;;  %s949_s17 = smov 0  }
   0x4   :  { %s951_s18 = smov 0   ;;  %s953_s19 = smov 0  }
   0x5   :  { %s955_s20 = smov 0   ;;  %s957_s21 = smov 0  }
   0x6 LB: > { %s28_s22 = sadd.s32 1, %s905_s19  ;;  %s31_s23 = sadd.s32 1, %s909_s20  ;;  %s913_s21 = sphi %s957_s21, %s16_s21   ;;  %s909_s20 = sphi %s955_s20, %s1166_s20   ;;  %s905_s19 = sphi %s953_s19, %s1165_s19   ;;  %s901_s18 = sphi %s951_s18, %s1164_s18   ;;  %s897_s17 = sphi %s949_s17, %s1163_s17   ;;  %s893_s16 = sphi %s947_s16, %s1162_s16   ;;  %s889_s15 = sphi %s945_s15, %s1161_s15   ;;  %s885_s14 = sphi %s943_s14, %s1160_s14   ;;  %s881_s13 = sphi %s941_s13, %s1159_s13   ;;  %s877_s12 = sphi %s939_s12, %s1158_s12  }
   0x7   : > { %p29_p0 = scmp.ge.s32.totalorder %s28_s22, 9  ;;  %s654_s24 = sadd.s32 4294967295, %s913_s21  }
   0x8   : > { %s71_s25 = smul.u32 9, %s909_s20  ;;  %s80_s26 = sadd.s32 1, %s893_s16 }
   0x9   : > { %s1168_s22 = smov (%p29_p0, %s28_s22), 0  ;;  %s1170_s23 = smov (!%p29_p0, %s31_s23), %s909_s20 }
   0xa   : > { %p87_p1 = scmp.ne.s32.totalorder %s893_s16, %s889_s15  ;;  %p33_p2 = scmp.ge.s32.totalorder %s1170_s23, 2 }
   0xb   : > { %p88_p3 = scmp.eq.s32.totalorder %s913_s21, 0  ;;  %s72_s27 = sadd.s32 %s905_s19, %s71_s25 }
   0xc   : > { %p113_p4 = scmp.ne.s32.totalorder %s885_s14, %s881_s13  ;;  %s1172_s23 = smov (%p33_p2, %s1170_s23), 0 }
   0xd   : > { %p1005_p5 = por %p88_p3, %p87_p1  ;;  %s73_s30 = smul.u32 9, %s1172_s23 }
   0xe   : > { %p1009_p6 = por %p113_p4, %p88_p3  ;;  %s76_s4 = ssub.s32 %s909_s20, %s1172_s23 }
   0xf   : > { %p104_p7 = scmp.eq.s32.totalorder %s76_s4, 0  ;;  %p119_p8 = scmp.ne.s32.totalorder %s881_s13, %s877_s12 }
  0x10   : > { %s74_s5 = sadd.s32 %s73_s30, %s1168_s22  ;;  %p120_p9 = scmp.eq.s32.totalorder %s654_s24, 0 }
  0x11   : > { %s75_s6 = ssub.s32 %s72_s27, %s74_s5  ;;  %s106_s7 = sadd.s32 1, %s885_s14 }
  0x12   : > { %s77_s8 = sor.u32 %s76_s4, %s75_s6  ;;  %p1020_p10 = por %p120_p9, %p119_p8 }
  0x13   : > { %p78_p11 = scmp.eq.s32.totalorder %s77_s8, 0  ;;  %p657_p12 = scmp.ge.s32.totalorder %s913_s21, 18 }
  0x14   : > { %s1156_s9 = scalar_select %p1020_p10, 1, 0 }
  0x15   : > { %s1025_s10 = scalar_select %p104_p7, %s885_s14, %s106_s7  }
  0x16   : > { %s1028_s11 = scalar_select %p78_p11, %s893_s16, %s80_s26  }
  0x17   : > { %167 = sbr.rel (%p657_p12) target bundleno = 71 (0x47), region = 16 }
  0x1e   : > { %185 = sbr.rel (!%p1005_p5) target bundleno = 46 (0x2e), region = 24  ;;  %s187_s12 = sand.u32 (%p1005_p5), 1, %s893_s16  }
  0x1f   : > { %s680_s24 = sshll.u32 (%p1005_p5), %s72_s27, 5  ;;  %s658_s25 = sshll.u32 (%p1005_p5), %s187_s12, 6 }
  0x20   : > { %s194_s30 = sadd.s32 (%p1005_p5), %s909_s20, %s680_s24  ;;  %s189_s26 = scalar_lea.vmem (%p1005_p5), [#allocation3], %s658_s25 }
  0x21   : > { %s661_s4 = sshll.u32 (%p1005_p5), %s194_s30, 2 }
  0x22   : > { %s1038_s7 = scalar_lea.vmem (%p1005_p5), %s1150_s1, %s661_s4 }
  0x23   : > { %v212_v0 = vld [vmem:[%s1038_s7] sm:$0xf] (%p1005_p5)  ;;  %v214_v1 = vld [vmem:[%s1038_s7 + $0x8] sm:$0xf] (%p1005_p5)  ;;  %v216_v2 = vld [vmem:[%s1038_s7 + $0x10] sm:$0xf] (%p1005_p5) }
  0x24   : > { %213 = vst [vmem:[%s189_s26] sm:$0xf] (%p1005_p5), %v212_v0  ;;  %215 = vst [vmem:[%s189_s26 + $0x4] sm:$0xf] (%p1005_p5), %v214_v1  ;;  %v218_v3 = vld [vmem:[%s1038_s7 + $0x18] sm:$0xf] (%p1005_p5) }
  0x25   : > { %217 = vst [vmem:[%s189_s26 + $0x8] sm:$0xf] %v216_v2  ;;  %v220_v4 = vld [vmem:[%s1038_s7 + $0x20] sm:$0xf]  ;;  %v222_v5 = vld [vmem:[%s1038_s7 + $0x28] sm:$0xf] }
  0x26   : > { %219 = vst [vmem:[%s189_s26 + $0xc] sm:$0xf] %v218_v3  ;;  %221 = vst [vmem:[%s189_s26 + $0x10] sm:$0xf] %v220_v4  ;;  %v224_v6 = vld [vmem:[%s1038_s7 + $0x30] sm:$0xf] }
  0x27   : > { %223 = vst [vmem:[%s189_s26 + $0x14] sm:$0xf] %v222_v5  ;;  %v226_v7 = vld [vmem:[%s1038_s7 + $0x38] sm:$0xf]  ;;  %v228_v8 = vld [vmem:[%s1038_s7 + $0x40] sm:$0xf] }
  0x28   : > { %225 = vst [vmem:[%s189_s26 + $0x18] sm:$0xf] %v224_v6  ;;  %227 = vst [vmem:[%s189_s26 + $0x1c] sm:$0xf] %v226_v7  ;;  %v230_v9 = vld [vmem:[%s1038_s7 + $0x48] sm:$0xf] }
  0x29   : > { %229 = vst [vmem:[%s189_s26 + $0x20] sm:$0xf] %v228_v8  ;;  %v232_v10 = vld [vmem:[%s1038_s7 + $0x50] sm:$0xf]  ;;  %v234_v11 = vld [vmem:[%s1038_s7 + $0x58] sm:$0xf] }
  0x2a   : > { %231 = vst [vmem:[%s189_s26 + $0x24] sm:$0xf] %v230_v9  ;;  %233 = vst [vmem:[%s189_s26 + $0x28] sm:$0xf] %v232_v10  ;;  %v236_v12 = vld [vmem:[%s1038_s7 + $0x60] sm:$0xf] }
  0x2b   : > { %235 = vst [vmem:[%s189_s26 + $0x2c] sm:$0xf] %v234_v11  ;;  %v238_v13 = vld [vmem:[%s1038_s7 + $0x68] sm:$0xf]  ;;  %v240_v14 = vld [vmem:[%s1038_s7 + $0x70] sm:$0xf] }
  0x2c   : > { %237 = vst [vmem:[%s189_s26 + $0x30] sm:$0xf] %v236_v12  ;;  %239 = vst [vmem:[%s189_s26 + $0x34] sm:$0xf] %v238_v13  ;;  %v242_v15 = vld [vmem:[%s1038_s7 + $0x78] sm:$0xf] }
  0x2d   : > { %241 = vst [vmem:[%s189_s26 + $0x38] sm:$0xf] %v240_v14  ;;  %243 = vst [vmem:[%s189_s26 + $0x3c] sm:$0xf] %v242_v15 }
  0x2e PF: > { %s299_s27 = sand.u32 1, %s885_s14   ;;  %s662_s28 = sshll.u32 %s909_s20, 4 }
  0x2f   : > { %s1061_s24 = scalar_lea.hbm %s1151_s2, %s662_s28  ;;  %s302_s25 = scalar_lea.vmem [#allocation4], %s299_s27 }
  0x30   : > { %s309_s30 = sshll.u32 %s302_s25, 4  ;;  %s300_s4 = scalar_lea.sflag [#allocation5], %s299_s27  ;;  %s310_s30 = int_to_ptr.vmem [resolvable:$true] %s309_s30 }
  0x31   : > { %s803_s5 = scalar_lea.hbm %s1061_s24, 16  ;;  %s807_s26 = scalar_lea.hbm %s1151_s2, 32 }
  0x32   : > { %p804_p13 = scmp.ne.s32.totalorder %s1061_s24, %s803_s5  ;;  %p808_p2 = scmp.lt.u32.totalorder %s1061_s24, %s1151_s2 }
  0x33   : > { %p809_p3 = scmp.lt.u32.totalorder %s807_s26, %s803_s5  ;;  %p811_p5 = scmp.lt.u32.totalorder %s803_s5, %s1061_s24 }
  0x34   : > { %p805_p0 = pnand %p804_p13, %p1009_p6 }
  0x35   : > { %p810_p4 = por %p809_p3, %p808_p2 }
  0x36   : > { %p806_p1 = pneg %p805_p0 }
  0x37   : > { %p812_p7 = por %p811_p5, %p810_p4 }
  0x39   : > { %p813_p8 = pnand %p812_p7, %p806_p1 }
  0x3b   : > { %816 = shalt.err (!%p813_p8)
}
  0x3c   : > { %s817_s27 = scalar_lea.vmem %s310_s30, 16  ;;  %s915_s12 = smov [#allocation4]  }
  0x3d   : > { %p818_p9 = scmp.ne.s32.totalorder %s310_s30, %s817_s27  ;;  %s821_s25 = sshll.u32 %s915_s12, 4  ;;  %s822_s25 = int_to_ptr.vmem [resolvable:$false] %s821_s25 }
  0x3e   : > { %s823_s6 = scalar_lea.vmem %s822_s25, 32  ;;  %p824_p13 = scmp.lt.s32.totalorder %s310_s30, %s822_s25 }
  0x3f   : > { %p819_p11 = pnand %p818_p9, %p1009_p6  ;;  %p825_p0 = scmp.lt.s32.totalorder %s823_s6, %s817_s27 }
  0x41   : > { %p820_p12 = pneg %p819_p11  ;;  %p826_p10 = por %p825_p0, %p824_p13 }
  0x43   : > { %p827_p2 = pnand %p826_p10, %p820_p12 }
  0x45   : > { %830 = shalt.err (!%p827_p2)
}
  0x46   : > { %710 = dma.hbm_to_vmem [thread:$0]  (%p1009_p6), %s1061_s24, 16, %s310_s30, %s300_s4  }
  0x47 PF: > { %p663_p1 = scmp.ge.s32.totalorder %s913_s21, 1  ;;  %p314_p3 = scmp.lt.s32.totalorder %s913_s21, 19 }
  0x49   : > { %p315_p4 = pnand %p663_p1, %p314_p3 }
  0x4a   : > { %s321_s5 = sand.u32 (!%p315_p4), 1, %s889_s15   ;;  %s327_s7 = sand.u32 (!%p315_p4), 1, %s881_s13  }
  0x4b   : > { %318 = sbr.rel (%p315_p4) target bundleno = 356 (0x164), region = 69  ;;  %s664_s26 = sshll.u32 (!%p315_p4), %s321_s5, 6 }
  0x4c   : > { %s1084_s8 = scalar_lea.vmem (!%p315_p4), [#allocation3], %s664_s26  ;;  %s328_s28 = scalar_lea.sflag (!%p315_p4), [#allocation5], %s327_s7 }
  0x4d   : > { %s1086_s27 = scalar_lea.vmem (!%p315_p4), [#allocation4], %s327_s7  ;;  %p1157_p10 = scmp.ne.s32.totalorder (!%p315_p4), %s1156_s9, 0 }
  0x52   : > { %872 = dma.done.wait (%p1157_p10), %s328_s28, 16  }
  0x53   : > { %874 = vsyncadd (%p1157_p10), %s328_s28, 4294967280  ;;  %s369_s29 = smul.u32 9, %s901_s18  ;;  %p386_p6 = scmp.lt.s32.totalorder %s901_s18, 1 }
  0x54   : > { %p667_p7 = scmp.ne.s32.totalorder %s897_s17, 0 }
  0x55   : > { %s370_s24 = sadd.s32 %s897_s17, %s369_s29  ;;  %s1174_s18 = smov (!%p386_p6, %s901_s18), 1  ;;  %v916_v16 = vmov (!%p667_p7), 0.0  }
  0x56   : > { %p373_p5 = scmp.lt.s32.totalorder %s370_s24, 17  ;;  %s666_s15 = sshll.u32 %s1174_s18, 2  ;;  %397 = vst [vmem:[#allocation2] sm:$0xff] (!%p667_p7), %v916_v16 }
  0x57   : > { %s1099_s25 = scalar_lea.vmem %s1152_s3, %s666_s15  ;;  %396 = sbr.rel (%p667_p7) target bundleno = 94 (0x5e), region = 81 }
  0x58   : > { %s1176_s24 = smov (!%p373_p5, %s370_s24), 17 }
  0x59   : > { %s665_s30 = sshll.u32 %s1176_s24, 2 }
  0x5a   : > { %s1104_s5 = scalar_lea.vmem %s1149_s0, %s665_s30 }
  0x5e PF: > { %v795_v17 = vld [vmem:[%s1084_s8] sm:$0xff]   ;;  %v917_v18 = vmov 0.0   ;;  %v796_v19 = vld [vmem:[%s1084_s8 + $0x8] sm:$0xff]   ;;  %vm918_vm0 = vmmov 0   ;;  %v797_v20 = vld [vmem:[%s1084_s8 + $0x10] sm:$0xff]   ;;  %p676_p8 = scmp.ne.s32.totalorder %s897_s17, 8 }
  0x5f   : > { %690 = vmatprep.subr.bf16.mxu0 %v917_v18  ;;  %706 = vmatprep.mubr.msk.bf16.mxu0 %vm918_vm0, %v917_v18  ;;  %v798_v21 = vld [vmem:[%s1084_s8 + $0x18] sm:$0xff]   ;;  %v799_v22 = vld [vmem:[%s1084_s8 + $0x20] sm:$0xff]   ;;  %v800_v23 = vld [vmem:[%s1084_s8 + $0x28] sm:$0xff]  }
  0x60   : > { %691 = vmatpush3.bf16.msra.mxu0 %v795_v17  ;;  %v801_v24 = vld [vmem:[%s1084_s8 + $0x30] sm:$0xff]   ;;  %v802_v25 = vld [vmem:[%s1084_s8 + $0x38] sm:$0xff]  }
  0x61   : > { %692 = vmatprep.subr.bf16.mxu0 %v917_v18  ;;  %v399_v26 = vld [vmem:[%s1104_s5] sm:$0xf] }
  0x62   : > { %v398_v27 = vld [vmem:[#allocation2] sm:$0xff] }
  0x63   : > { %v677_v34 = vld [vmem:[%s1086_s27] ss:$0 sm:$0xff] (!%p676_p8) }
  0x64   : > { %693 = vmatpush3.bf16.msra.mxu0 %v796_v19 }
  0x65   : > { %694 = vmatprep.subr.bf16.mxu0 %v917_v18 }
  0x68   : > { %695 = vmatpush3.bf16.msra.mxu0 %v797_v20 }
  0x69   : > { %696 = vmatprep.subr.bf16.mxu0 %v917_v18 }
  0x6c   : > { %697 = vmatpush3.bf16.msra.mxu0 %v798_v21 }
  0x6d   : > { %698 = vmatprep.subr.bf16.mxu0 %v917_v18 }
  0x70   : > { %699 = vmatpush3.bf16.msra.mxu0 %v799_v22 }
  0x71   : > { %700 = vmatprep.subr.bf16.mxu0 %v917_v18 }
  0x74   : > { %701 = vmatpush3.bf16.msra.mxu0 %v800_v23 }
  0x75   : > { %702 = vmatprep.subr.bf16.mxu0 %v917_v18 }
  0x78   : > { %703 = vmatpush3.bf16.msra.mxu0 %v801_v24 }
  0x79   : > { %704 = vmatprep.subr.bf16.mxu0 %v917_v18 }
  0x7c   : > { %705 = vmatpush3.bf16.msra.mxu0 %v802_v25 }
  0x7f   : > { %707 = vmatmul.mubr.bf16.vlgmr.msra.gmra.mrb[0].mxu0 %v399_v26 }
 0x14f   : > { %509 = sbr.rel (%p676_p8) target bundleno = 356 (0x164), region = 85 }
 0x152   : > { %v498_v28 = vpop.f32.mrb[0].mxu0 }
 0x153   : > { %v504_v29 = vadd.f32 %v498_v28, %v398_v27  ;;  %v708_v30 = vpop.f32.mrb[1].mxu0 }
 0x154   : > { %v501_v31 = vpop.f32.mrb[2].mxu0 }
 0x155   : > { %505 = vst [vmem:[#allocation2] sm:$0xff] %v504_v29  ;;  %v709_v32 = vpop.f32.mrb[3].mxu0 }
 0x15c   : > { %v510_v33 = vld [vmem:[#allocation2] sm:$0xff] }
 0x15d   : > { %v518_v35 = vadd.f32 %v677_v34, %v510_v33 }
 0x15f   : > { %v519_v36 = vmax.f32 %v518_v35, 0.0 }
 0x161   : > { %v520_v37 = vpack.c.bf16 %v519_v36, %v519_v36 }
 0x163   : > { %521 = vst [vmem:[%s1099_s25] sm:$0xf] %v520_v37 }
 0x164 PF: > { %s16_s21 = sadd.s32 1, %s913_s21   ;;  %s1158_s12 = smov %s881_s13 }
 0x165   : > { %p13_p9 = scmp.ge.s32.totalorder %s16_s21, 20   ;;  %s1159_s13 = smov %s885_s14 }
 0x166   : > { %s1160_s14 = smov %s1025_s10  ;;  %s1161_s15 = smov %s893_s16 }
 0x167   : > { %s1162_s16 = smov %s1028_s11  ;;  %s1163_s17 = smov %s905_s19 }
 0x168   : > { %s1164_s18 = smov %s909_s20  ;;  %s1165_s19 = smov %s1168_s22 }
 0x169   : > { %s1166_s20 = smov %s1172_s23  ;;  %15 = sbr.rel (!%p13_p9) target bundleno = 6 (0x6), region = 132 }
 0x170   :  { %549 = vsyncpa [#allocation5], 1 }
 0x171   :  { %551 = vsyncpa [#allocation5 + $0x1], 1 }

// kernel: regnet_forward.116
= control target key start
LH: loop header
LB: loop body
LE: loop exit
PB: predicated region body
PF: predicated region fallthrough
CT: control target
= control target key end

     0   :  { %s799_s12 = smov 0   ;;  %s801_s13 = smov 0   ;;  %s931_s0 = inlined_call_operand.vmem [shape: bf16[8,256], index: 0, kind: input, shape index: {}]   ;;  %s932_s1 = inlined_call_operand.vmem [shape: bf16[256,512], index: 1, kind: input, shape index: {}]   ;;  %s933_s2 = inlined_call_operand.vmem [shape: f32[1,512], index: 2, kind: input, shape index: {}]   ;;  %s934_s3 = inlined_call_operand.vmem [shape: bf16[8,512], index: 3, kind: output, shape index: {}]  }
   0x1   :  { %s803_s14 = smov 0   ;;  %s805_s15 = smov 0  }
   0x2   :  { %s807_s16 = smov 0   ;;  %s809_s17 = smov 0  }
   0x3   :  { %s811_s18 = smov 0  }
   0x4 LB: > { %s25_s19 = sadd.s32 1, %s766_s16  ;;  %s28_s20 = sadd.s32 1, %s770_s17  ;;  %s774_s18 = sphi %s811_s18, %s13_s18   ;;  %s770_s17 = sphi %s809_s17, %s940_s17   ;;  %s766_s16 = sphi %s807_s16, %s939_s16   ;;  %s762_s15 = sphi %s805_s15, %s938_s15   ;;  %s758_s14 = sphi %s803_s14, %s937_s14   ;;  %s754_s13 = sphi %s801_s13, %s936_s13   ;;  %s750_s12 = sphi %s799_s12, %s935_s12  }
   0x5   : > { %p26_p0 = scmp.ge.s32.totalorder %s25_s19, 2  ;;  %p76_p1 = scmp.ne.s32.totalorder %s754_s13, %s750_s12 }
   0x6   : > { %p77_p2 = scmp.eq.s32.totalorder %s774_s18, 0  ;;  %s69_s24 = sadd.s32 1, %s754_s13 }
   0x7   : > { %s942_s19 = smov (%p26_p0, %s25_s19), 0  ;;  %s944_s20 = smov (!%p26_p0, %s28_s20), %s770_s17 }
   0x8   : > { %p78_p3 = por %p77_p2, %p76_p1  ;;  %p30_p4 = scmp.ge.s32.totalorder %s944_s20, 4 }
   0x9   : > { %s64_s21 = ssub.s32 %s766_s16, %s942_s19  ;;  %p601_p6 = scmp.ge.s32.totalorder %s774_s18, 8 }
   0xa   : > { %s946_s20 = smov (%p30_p4, %s944_s20), 0 }
   0xb   : > { %s65_s22 = ssub.s32 %s770_s17, %s946_s20  ;;  %156 = sbr.rel (%p601_p6) target bundleno = 35 (0x23), region = 16 }
   0xc   : > { %s66_s23 = sor.u32 %s65_s22, %s64_s21 }
   0xd   : > { %p67_p5 = scmp.eq.s32.totalorder %s66_s23, 0 }
   0xf   : > { %s850_s25 = scalar_select %p67_p5, %s754_s13, %s69_s24  }
  0x12   : > { %170 = sbr.rel (!%p78_p3) target bundleno = 35 (0x23), region = 24  ;;  %s172_s26 = sand.u32 (%p78_p3), 1, %s754_s13  }
  0x13   : > { %s623_s27 = sshll.u32 (%p78_p3), %s766_s16, 6  ;;  %s602_s28 = sshll.u32 (%p78_p3), %s172_s26, 6 }
  0x14   : > { %s177_s29 = sadd.s32 (%p78_p3), %s770_s17, %s623_s27  ;;  %s174_s7 = scalar_lea.vmem (%p78_p3), [#allocation3], %s602_s28 }
  0x15   : > { %s605_s30 = sshll.u32 (%p78_p3), %s177_s29, 2 }
  0x16   : > { %s859_s6 = scalar_lea.vmem (%p78_p3), %s932_s1, %s605_s30 }
  0x17   : > { %v195_v0 = vld [vmem:[%s859_s6] sm:$0xf] (%p78_p3)  ;;  %v197_v1 = vld [vmem:[%s859_s6 + $0x10] sm:$0xf] (%p78_p3) }
  0x18   : > { %v199_v2 = vld [vmem:[%s859_s6 + $0x20] sm:$0xf] (%p78_p3)  ;;  %196 = vst [vmem:[%s174_s7] sm:$0xf] (%p78_p3), %v195_v0  ;;  %198 = vst [vmem:[%s174_s7 + $0x4] sm:$0xf] (%p78_p3), %v197_v1 }
  0x19   : > { %200 = vst [vmem:[%s174_s7 + $0x8] sm:$0xf] %v199_v2  ;;  %v201_v3 = vld [vmem:[%s859_s6 + $0x30] sm:$0xf]  ;;  %v203_v4 = vld [vmem:[%s859_s6 + $0x40] sm:$0xf] }
  0x1a   : > { %v205_v5 = vld [vmem:[%s859_s6 + $0x50] sm:$0xf]  ;;  %202 = vst [vmem:[%s174_s7 + $0xc] sm:$0xf] %v201_v3  ;;  %204 = vst [vmem:[%s174_s7 + $0x10] sm:$0xf] %v203_v4 }
  0x1b   : > { %206 = vst [vmem:[%s174_s7 + $0x14] sm:$0xf] %v205_v5  ;;  %v207_v6 = vld [vmem:[%s859_s6 + $0x60] sm:$0xf]  ;;  %v209_v7 = vld [vmem:[%s859_s6 + $0x70] sm:$0xf] }
  0x1c   : > { %v211_v8 = vld [vmem:[%s859_s6 + $0x80] sm:$0xf]  ;;  %208 = vst [vmem:[%s174_s7 + $0x18] sm:$0xf] %v207_v6  ;;  %210 = vst [vmem:[%s174_s7 + $0x1c] sm:$0xf] %v209_v7 }
  0x1d   : > { %212 = vst [vmem:[%s174_s7 + $0x20] sm:$0xf] %v211_v8  ;;  %v213_v9 = vld [vmem:[%s859_s6 + $0x90] sm:$0xf]  ;;  %v215_v10 = vld [vmem:[%s859_s6 + $0xa0] sm:$0xf] }
  0x1e   : > { %v217_v11 = vld [vmem:[%s859_s6 + $0xb0] sm:$0xf]  ;;  %214 = vst [vmem:[%s174_s7 + $0x24] sm:$0xf] %v213_v9  ;;  %216 = vst [vmem:[%s174_s7 + $0x28] sm:$0xf] %v215_v10 }
  0x1f   : > { %218 = vst [vmem:[%s174_s7 + $0x2c] sm:$0xf] %v217_v11  ;;  %v219_v12 = vld [vmem:[%s859_s6 + $0xc0] sm:$0xf]  ;;  %v221_v13 = vld [vmem:[%s859_s6 + $0xd0] sm:$0xf] }
  0x20   : > { %v223_v14 = vld [vmem:[%s859_s6 + $0xe0] sm:$0xf]  ;;  %220 = vst [vmem:[%s174_s7 + $0x30] sm:$0xf] %v219_v12  ;;  %222 = vst [vmem:[%s174_s7 + $0x34] sm:$0xf] %v221_v13 }
  0x21   : > { %224 = vst [vmem:[%s174_s7 + $0x38] sm:$0xf] %v223_v14  ;;  %v225_v15 = vld [vmem:[%s859_s6 + $0xf0] sm:$0xf] }
  0x22   : > { %226 = vst [vmem:[%s174_s7 + $0x3c] sm:$0xf] %v225_v15 }
  0x23 PF: > { %p606_p7 = scmp.ge.s32.totalorder %s774_s18, 1  ;;  %p286_p8 = scmp.lt.s32.totalorder %s774_s18, 9 }
  0x25   : > { %p287_p9 = pnand %p606_p7, %p286_p8 }
  0x26   : > { %s293_s8 = sand.u32 (!%p287_p9), 1, %s750_s12   ;;  %p332_p10 = scmp.lt.s32.totalorder (!%p287_p9), %s758_s14, 1 }
  0x27   : > { %290 = sbr.rel (%p287_p9) target bundleno = 316 (0x13c), region = 69  ;;  %s607_s9 = sshll.u32 (!%p287_p9), %s293_s8, 6 }
  0x28   : > { %p339_p11 = scmp.lt.s32.totalorder (!%p287_p9), %s762_s15, 3  ;;  %s295_s4 = scalar_lea.vmem (!%p287_p9), [#allocation3], %s607_s9 }
  0x29   : > { %p610_p12 = scmp.ne.s32.totalorder (!%p287_p9), %s758_s14, 0 }
  0x2e   : > { %s333_s10 = scalar_select %p332_p10, %s758_s14, 1 }
  0x2f   : > { %s948_s15 = smov (!%p339_p11, %s762_s15), 3  ;;  %354 = sbr.rel (%p610_p12) target bundleno = 54 (0x36), region = 77 }
  0x30   : > { %s608_s11 = sshll.u32 %s333_s10, 2  ;;  %s341_s27 = scalar_lea.vmem %s933_s2, %s948_s15  ;;  %v776_v16 = vmov (!%p610_p12), 0.0  }
  0x31   : > { %s889_s23 = scalar_lea.vmem %s931_s0, %s608_s11  ;;  %s609_s28 = sshll.u32 %s948_s15, 2  ;;  %355 = vst [vmem:[#allocation2] sm:$0xff] (!%p610_p12), %v776_v16 }
  0x32   : > { %s899_s30 = scalar_lea.vmem %s934_s3, %s609_s28 }
  0x36 PF: > { %v712_v17 = vld [vmem:[%s295_s4] sm:$0xff]   ;;  %v777_v18 = vmov 0.0   ;;  %v713_v19 = vld [vmem:[%s295_s4 + $0x8] sm:$0xff]   ;;  %vm778_vm0 = vmmov 0   ;;  %v714_v20 = vld [vmem:[%s295_s4 + $0x10] sm:$0xff]   ;;  %p619_p13 = scmp.ne.s32.totalorder %s758_s14, 1 }
  0x37   : > { %633 = vmatprep.subr.bf16.mxu0 %v777_v18  ;;  %649 = vmatprep.mubr.msk.bf16.mxu0 %vm778_vm0, %v777_v18  ;;  %v715_v21 = vld [vmem:[%s295_s4 + $0x18] sm:$0xff]   ;;  %v716_v22 = vld [vmem:[%s295_s4 + $0x20] sm:$0xff]   ;;  %v717_v23 = vld [vmem:[%s295_s4 + $0x28] sm:$0xff]  }
  0x38   : > { %634 = vmatpush3.bf16.msra.mxu0 %v712_v17  ;;  %v718_v24 = vld [vmem:[%s295_s4 + $0x30] sm:$0xff]   ;;  %v719_v25 = vld [vmem:[%s295_s4 + $0x38] sm:$0xff]  }
  0x39   : > { %635 = vmatprep.subr.bf16.mxu0 %v777_v18  ;;  %v357_v26 = vld [vmem:[%s889_s23] sm:$0xf] }
  0x3a   : > { %v356_v27 = vld [vmem:[#allocation2] sm:$0xff] }
  0x3b   : > { %v620_v34 = vld [vmem:[%s341_s27] ss:$0 sm:$0xff] (!%p619_p13) }
  0x3c   : > { %636 = vmatpush3.bf16.msra.mxu0 %v713_v19 }
  0x3d   : > { %637 = vmatprep.subr.bf16.mxu0 %v777_v18 }
  0x40   : > { %638 = vmatpush3.bf16.msra.mxu0 %v714_v20 }
  0x41   : > { %639 = vmatprep.subr.bf16.mxu0 %v777_v18 }
  0x44   : > { %640 = vmatpush3.bf16.msra.mxu0 %v715_v21 }
  0x45   : > { %641 = vmatprep.subr.bf16.mxu0 %v777_v18 }
  0x48   : > { %642 = vmatpush3.bf16.msra.mxu0 %v716_v22 }
  0x49   : > { %643 = vmatprep.subr.bf16.mxu0 %v777_v18 }
  0x4c   : > { %644 = vmatpush3.bf16.msra.mxu0 %v717_v23 }
  0x4d   : > { %645 = vmatprep.subr.bf16.mxu0 %v777_v18 }
  0x50   : > { %646 = vmatpush3.bf16.msra.mxu0 %v718_v24 }
  0x51   : > { %647 = vmatprep.subr.bf16.mxu0 %v777_v18 }
  0x54   : > { %648 = vmatpush3.bf16.msra.mxu0 %v719_v25 }
  0x57   : > { %650 = vmatmul.mubr.bf16.vlgmr.msra.gmra.mrb[0].mxu0 %v357_v26 }
 0x127   : > { %467 = sbr.rel (%p619_p13) target bundleno = 316 (0x13c), region = 81 }
 0x12a   : > { %v456_v28 = vpop.f32.mrb[0].mxu0 }
 0x12b   : > { %v462_v29 = vadd.f32 %v456_v28, %v356_v27  ;;  %v651_v30 = vpop.f32.mrb[1].mxu0 }
 0x12c   : > { %v459_v31 = vpop.f32.mrb[2].mxu0 }
 0x12d   : > { %463 = vst [vmem:[#allocation2] sm:$0xff] %v462_v29  ;;  %v652_v32 = vpop.f32.mrb[3].mxu0 }
 0x134   : > { %v468_v33 = vld [vmem:[#allocation2] sm:$0xff] }
 0x135   : > { %v476_v35 = vadd.f32 %v620_v34, %v468_v33 }
 0x137   : > { %v477_v36 = vmax.f32 %v476_v35, 0.0 }
 0x139   : > { %v478_v37 = vpack.c.bf16 %v477_v36, %v477_v36 }
 0x13b   : > { %479 = vst [vmem:[%s899_s30] sm:$0xf] %v478_v37 }
 0x13c PF: > { %s13_s18 = sadd.s32 1, %s774_s18   ;;  %s935_s12 = smov %s754_s13 }
 0x13d   : > { %p10_p0 = scmp.ge.s32.totalorder %s13_s18, 10   ;;  %s936_s13 = smov %s850_s25 }
 0x13e   : > { %s937_s14 = smov %s766_s16  ;;  %s938_s15 = smov %s770_s17 }
 0x13f   : > { %s939_s16 = smov %s942_s19  ;;  %s940_s17 = smov %s946_s20 }
 0x140   :  { %12 = sbr.rel (!%p10_p0) target bundleno = 4 (0x4), region = 122 }

// kernel: regnet_forward.117
= control target key start
LH: loop header
LB: loop body
LE: loop exit
PB: predicated region body
PF: predicated region fallthrough
CT: control target
= control target key end

     0   :  { %s823_s12 = smov 0   ;;  %s825_s13 = smov 0   ;;  %s956_s0 = inlined_call_operand.vmem [shape: bf16[8,4608], index: 0, kind: input, shape index: {}]   ;;  %s957_s1 = inlined_call_operand.vmem [shape: bf16[4608,512], index: 1, kind: input, shape index: {}]   ;;  %s958_s2 = inlined_call_operand.vmem [shape: f32[1,512], index: 2, kind: input, shape index: {}]   ;;  %s959_s3 = inlined_call_operand.vmem [shape: bf16[8,512], index: 3, kind: output, shape index: {}]  }
   0x1   :  { %s827_s14 = smov 0   ;;  %s829_s15 = smov 0  }
   0x2   :  { %s831_s16 = smov 0   ;;  %s833_s17 = smov 0  }
   0x3   :  { %s835_s18 = smov 0  }
   0x4 LB: > { %s25_s19 = sadd.s32 1, %s790_s16  ;;  %s28_s20 = sadd.s32 1, %s794_s17  ;;  %s798_s18 = sphi %s835_s18, %s13_s18   ;;  %s794_s17 = sphi %s833_s17, %s965_s17   ;;  %s790_s16 = sphi %s831_s16, %s964_s16   ;;  %s786_s15 = sphi %s829_s15, %s963_s15   ;;  %s782_s14 = sphi %s827_s14, %s962_s14   ;;  %s778_s13 = sphi %s825_s13, %s961_s13   ;;  %s774_s12 = sphi %s823_s12, %s960_s12  }
   0x5   : > { %p26_p0 = scmp.ge.s32.totalorder %s25_s19, 9  ;;  %p84_p1 = scmp.ne.s32.totalorder %s778_s13, %s774_s12 }
   0x6   : > { %p85_p2 = scmp.eq.s32.totalorder %s798_s18, 0  ;;  %s68_s21 = smul.u32 9, %s794_s17 }
   0x7   : > { %s967_s19 = smov (%p26_p0, %s25_s19), 0  ;;  %s969_s20 = smov (!%p26_p0, %s28_s20), %s794_s17 }
   0x8   : > { %p30_p3 = scmp.ge.s32.totalorder %s969_s20, 4  ;;  %p86_p4 = por %p85_p2, %p84_p1 }
   0x9   : > { %s69_s22 = sadd.s32 %s790_s16, %s68_s21  ;;  %s77_s28 = sadd.s32 1, %s778_s13 }
   0xa   : > { %s971_s20 = smov (%p30_p3, %s969_s20), 0  ;;  %p625_p6 = scmp.ge.s32.totalorder %s798_s18, 36 }
   0xb   : > { %s70_s23 = smul.u32 9, %s971_s20  ;;  %s73_s24 = ssub.s32 %s794_s17, %s971_s20 }
   0xc   : > { %164 = sbr.rel (%p625_p6) target bundleno = 36 (0x24), region = 16 }
   0xd   : > { %s71_s25 = sadd.s32 %s70_s23, %s967_s19 }
   0xe   : > { %s72_s26 = ssub.s32 %s69_s22, %s71_s25 }
   0xf   : > { %s74_s27 = sor.u32 %s73_s24, %s72_s26 }
  0x10   : > { %p75_p5 = scmp.eq.s32.totalorder %s74_s27, 0 }
  0x12   : > { %s876_s29 = scalar_select %p75_p5, %s778_s13, %s77_s28  }
  0x13   : > { %182 = sbr.rel (!%p86_p4) target bundleno = 36 (0x24), region = 24  ;;  %s184_s30 = sand.u32 (%p86_p4), 1, %s778_s13  }
  0x14   : > { %s647_s4 = sshll.u32 (%p86_p4), %s69_s22, 6  ;;  %s626_s5 = sshll.u32 (%p86_p4), %s184_s30, 6 }
  0x15   : > { %s191_s6 = sadd.s32 (%p86_p4), %s794_s17, %s647_s4  ;;  %s186_s11 = scalar_lea.vmem (%p86_p4), [#allocation3], %s626_s5 }
  0x16   : > { %s629_s7 = sshll.u32 (%p86_p4), %s191_s6, 2 }
  0x17   : > { %s884_s10 = scalar_lea.vmem (%p86_p4), %s957_s1, %s629_s7 }
  0x18   : > { %v209_v0 = vld [vmem:[%s884_s10] sm:$0xf] (%p86_p4)  ;;  %v211_v1 = vld [vmem:[%s884_s10 + $0x10] sm:$0xf] (%p86_p4) }
  0x19   : > { %v213_v2 = vld [vmem:[%s884_s10 + $0x20] sm:$0xf] (%p86_p4)  ;;  %210 = vst [vmem:[%s186_s11] sm:$0xf] (%p86_p4), %v209_v0  ;;  %212 = vst [vmem:[%s186_s11 + $0x4] sm:$0xf] (%p86_p4), %v211_v1 }
  0x1a   : > { %214 = vst [vmem:[%s186_s11 + $0x8] sm:$0xf] %v213_v2  ;;  %v215_v3 = vld [vmem:[%s884_s10 + $0x30] sm:$0xf]  ;;  %v217_v4 = vld [vmem:[%s884_s10 + $0x40] sm:$0xf] }
  0x1b   : > { %v219_v5 = vld [vmem:[%s884_s10 + $0x50] sm:$0xf]  ;;  %216 = vst [vmem:[%s186_s11 + $0xc] sm:$0xf] %v215_v3  ;;  %218 = vst [vmem:[%s186_s11 + $0x10] sm:$0xf] %v217_v4 }
  0x1c   : > { %220 = vst [vmem:[%s186_s11 + $0x14] sm:$0xf] %v219_v5  ;;  %v221_v6 = vld [vmem:[%s884_s10 + $0x60] sm:$0xf]  ;;  %v223_v7 = vld [vmem:[%s884_s10 + $0x70] sm:$0xf] }
  0x1d   : > { %v225_v8 = vld [vmem:[%s884_s10 + $0x80] sm:$0xf]  ;;  %222 = vst [vmem:[%s186_s11 + $0x18] sm:$0xf] %v221_v6  ;;  %224 = vst [vmem:[%s186_s11 + $0x1c] sm:$0xf] %v223_v7 }
  0x1e   : > { %226 = vst [vmem:[%s186_s11 + $0x20] sm:$0xf] %v225_v8  ;;  %v227_v9 = vld [vmem:[%s884_s10 + $0x90] sm:$0xf]  ;;  %v229_v10 = vld [vmem:[%s884_s10 + $0xa0] sm:$0xf] }
  0x1f   : > { %v231_v11 = vld [vmem:[%s884_s10 + $0xb0] sm:$0xf]  ;;  %228 = vst [vmem:[%s186_s11 + $0x24] sm:$0xf] %v227_v9  ;;  %230 = vst [vmem:[%s186_s11 + $0x28] sm:$0xf] %v229_v10 }
  0x20   : > { %232 = vst [vmem:[%s186_s11 + $0x2c] sm:$0xf] %v231_v11  ;;  %v233_v12 = vld [vmem:[%s884_s10 + $0xc0] sm:$0xf]  ;;  %v235_v13 = vld [vmem:[%s884_s10 + $0xd0] sm:$0xf] }
  0x21   : > { %v237_v14 = vld [vmem:[%s884_s10 + $0xe0] sm:$0xf]  ;;  %234 = vst [vmem:[%s186_s11 + $0x30] sm:$0xf] %v233_v12  ;;  %236 = vst [vmem:[%s186_s11 + $0x34] sm:$0xf] %v235_v13 }
  0x22   : > { %238 = vst [vmem:[%s186_s11 + $0x38] sm:$0xf] %v237_v14  ;;  %v239_v15 = vld [vmem:[%s884_s10 + $0xf0] sm:$0xf] }
  0x23   : > { %240 = vst [vmem:[%s186_s11 + $0x3c] sm:$0xf] %v239_v15 }
  0x24 PF: > { %p630_p7 = scmp.ge.s32.totalorder %s798_s18, 1  ;;  %p300_p8 = scmp.lt.s32.totalorder %s798_s18, 37 }
  0x26   : > { %p301_p9 = pnand %p630_p7, %p300_p8 }
  0x27   : > { %s307_s21 = sand.u32 (!%p301_p9), 1, %s774_s12   ;;  %s346_s22 = smul.u32 (!%p301_p9), 9, %s786_s15 }
  0x28   : > { %304 = sbr.rel (%p301_p9) target bundleno = 319 (0x13f), region = 69  ;;  %s631_s23 = sshll.u32 (!%p301_p9), %s307_s21, 6 }
  0x29   : > { %p361_p10 = scmp.lt.s32.totalorder (!%p301_p9), %s786_s15, 3  ;;  %s347_s24 = sadd.s32 (!%p301_p9), %s782_s14, %s346_s22 }
  0x2a   : > { %p350_p11 = scmp.lt.s32.totalorder (!%p301_p9), %s347_s24, 35  ;;  %s309_s9 = scalar_lea.vmem (!%p301_p9), [#allocation3], %s631_s23 }
  0x2b   : > { %p634_p12 = scmp.ne.s32.totalorder (!%p301_p9), %s782_s14, 0 }
  0x2f   : > { %s973_s15 = smov (!%p361_p10, %s786_s15), 3  ;;  %s975_s24 = smov (!%p350_p11, %s347_s24), 35 }
  0x30   : > { %s363_s27 = scalar_lea.vmem %s958_s2, %s973_s15  ;;  %s633_s28 = sshll.u32 %s973_s15, 2  ;;  %v800_v16 = vmov (!%p634_p12), 0.0  }
  0x31   : > { %s632_s30 = sshll.u32 %s975_s24, 2  ;;  %s919_s12 = scalar_lea.vmem %s959_s3, %s633_s28  ;;  %377 = vst [vmem:[#allocation2] sm:$0xff] (!%p634_p12), %v800_v16 }
  0x32   : > { %s924_s8 = scalar_lea.vmem %s956_s0, %s632_s30  ;;  %376 = sbr.rel (%p634_p12) target bundleno = 57 (0x39), region = 77 }
  0x39 PF: > { %v736_v17 = vld [vmem:[%s309_s9] sm:$0xff]   ;;  %v801_v18 = vmov 0.0   ;;  %v737_v19 = vld [vmem:[%s309_s9 + $0x8] sm:$0xff]   ;;  %vm802_vm0 = vmmov 0   ;;  %v738_v20 = vld [vmem:[%s309_s9 + $0x10] sm:$0xff]   ;;  %p643_p13 = scmp.ne.s32.totalorder %s782_s14, 8 }
  0x3a   : > { %657 = vmatprep.subr.bf16.mxu0 %v801_v18  ;;  %673 = vmatprep.mubr.msk.bf16.mxu0 %vm802_vm0, %v801_v18  ;;  %v739_v21 = vld [vmem:[%s309_s9 + $0x18] sm:$0xff]   ;;  %v740_v22 = vld [vmem:[%s309_s9 + $0x20] sm:$0xff]   ;;  %v741_v23 = vld [vmem:[%s309_s9 + $0x28] sm:$0xff]  }
  0x3b   : > { %658 = vmatpush3.bf16.msra.mxu0 %v736_v17  ;;  %v742_v24 = vld [vmem:[%s309_s9 + $0x30] sm:$0xff]   ;;  %v743_v25 = vld [vmem:[%s309_s9 + $0x38] sm:$0xff]  }
  0x3c   : > { %659 = vmatprep.subr.bf16.mxu0 %v801_v18  ;;  %v379_v26 = vld [vmem:[%s924_s8] sm:$0xf] }
  0x3d   : > { %v378_v27 = vld [vmem:[#allocation2] sm:$0xff] }
  0x3e   : > { %v644_v34 = vld [vmem:[%s363_s27] ss:$0 sm:$0xff] (!%p643_p13) }
  0x3f   : > { %660 = vmatpush3.bf16.msra.mxu0 %v737_v19 }
  0x40   : > { %661 = vmatprep.subr.bf16.mxu0 %v801_v18 }
  0x43   : > { %662 = vmatpush3.bf16.msra.mxu0 %v738_v20 }
  0x44   : > { %663 = vmatprep.subr.bf16.mxu0 %v801_v18 }
  0x47   : > { %664 = vmatpush3.bf16.msra.mxu0 %v739_v21 }
  0x48   : > { %665 = vmatprep.subr.bf16.mxu0 %v801_v18 }
  0x4b   : > { %666 = vmatpush3.bf16.msra.mxu0 %v740_v22 }
  0x4c   : > { %667 = vmatprep.subr.bf16.mxu0 %v801_v18 }
  0x4f   : > { %668 = vmatpush3.bf16.msra.mxu0 %v741_v23 }
  0x50   : > { %669 = vmatprep.subr.bf16.mxu0 %v801_v18 }
  0x53   : > { %670 = vmatpush3.bf16.msra.mxu0 %v742_v24 }
  0x54   : > { %671 = vmatprep.subr.bf16.mxu0 %v801_v18 }
  0x57   : > { %672 = vmatpush3.bf16.msra.mxu0 %v743_v25 }
  0x5a   : > { %674 = vmatmul.mubr.bf16.vlgmr.msra.gmra.mrb[0].mxu0 %v379_v26 }
 0x12a   : > { %489 = sbr.rel (%p643_p13) target bundleno = 319 (0x13f), region = 81 }
 0x12d   : > { %v478_v28 = vpop.f32.mrb[0].mxu0 }
 0x12e   : > { %v484_v29 = vadd.f32 %v478_v28, %v378_v27  ;;  %v675_v30 = vpop.f32.mrb[1].mxu0 }
 0x12f   : > { %v481_v31 = vpop.f32.mrb[2].mxu0 }
 0x130   : > { %485 = vst [vmem:[#allocation2] sm:$0xff] %v484_v29  ;;  %v676_v32 = vpop.f32.mrb[3].mxu0 }
 0x137   : > { %v490_v33 = vld [vmem:[#allocation2] sm:$0xff] }
 0x138   : > { %v498_v35 = vadd.f32 %v644_v34, %v490_v33 }
 0x13a   : > { %v499_v36 = vmax.f32 %v498_v35, 0.0 }
 0x13c   : > { %v500_v37 = vpack.c.bf16 %v499_v36, %v499_v36 }
 0x13e   : > { %501 = vst [vmem:[%s919_s12] sm:$0xf] %v500_v37 }
 0x13f PF: > { %s13_s18 = sadd.s32 1, %s798_s18   ;;  %s960_s12 = smov %s778_s13 }
 0x140   : > { %p10_p0 = scmp.ge.s32.totalorder %s13_s18, 38   ;;  %s961_s13 = smov %s876_s29 }
 0x141   : > { %s962_s14 = smov %s790_s16  ;;  %s963_s15 = smov %s794_s17 }
 0x142   : > { %s964_s16 = smov %s967_s19  ;;  %s965_s17 = smov %s971_s20 }
 0x143   :  { %12 = sbr.rel (!%p10_p0) target bundleno = 4 (0x4), region = 122 }

// kernel: regnet_forward.118
= control target key start
LH: loop header
LB: loop body
LE: loop exit
PB: predicated region body
PF: predicated region fallthrough
CT: control target
= control target key end

     0   :  { %s1288_s18 = smov 0   ;;  %s1534_s0 = inlined_call_operand.vmem [shape: bf16[2,8,512], index: 0, kind: input, shape index: {}]   ;;  %s1535_s1 = inlined_call_operand.vmem [shape: bf16[512,128], index: 1, kind: input, shape index: {}]   ;;  %s1536_s2 = inlined_call_operand.vmem [shape: f32[1,128], index: 2, kind: input, shape index: {}]   ;;  %s1537_s3 = inlined_call_operand.vmem [shape: bf16[128,512], index: 3, kind: input, shape index: {}]   ;;  %s1538_s4 = inlined_call_operand.vmem [shape: f32[1,512], index: 4, kind: input, shape index: {}]   ;;  %s1539_s5 = inlined_call_operand.vmem [shape: bf16[2,8,512], index: 5, kind: output, shape index: {}]  }
   0x1 LB: > { %s1018_s19 = sadd.s32 4294967295, %s1255_s18   ;;  %p1022_p0 = scmp.ge.s32.totalorder %s1255_s18, 1  ;;  %s1255_s18 = sphi %s1288_s18, %s15_s18  }
   0x2   : > { %p187_p1 = scmp.lt.s32.totalorder %s1255_s18, 3 }
   0x4   : > { %p188_p2 = pnand %p1022_p0, %p187_p1 }
   0x5   : > { %v1153_v0 = vld [vmem:[%s1535_s1 + $0x40] sm:$0xff] (!%p188_p2)   ;;  %v1157_v4 = vld [vmem:[%s1535_s1 + $0x48] sm:$0xff] (!%p188_p2)   ;;  %v1161_v8 = vld [vmem:[%s1535_s1 + $0x50] sm:$0xff] (!%p188_p2)   ;;  %p215_p3 = scmp.lt.s32.totalorder (!%p188_p2), %s1018_s19, 1 }
   0x6   : > { %191 = sbr.rel (%p188_p2) target bundleno = 514 (0x202), region = 40  ;;  %v1154_v1 = vld [vmem:[%s1535_s1 + $0xc0] sm:$0xff] (!%p188_p2)   ;;  %1100 = vmatprep.subr.bf16.mxu0 (!%p188_p2), %v1153_v0  ;;  %v1158_v5 = vld [vmem:[%s1535_s1 + $0xc8] sm:$0xff] (!%p188_p2)   ;;  %v1162_v9 = vld [vmem:[%s1535_s1 + $0xd0] sm:$0xff] (!%p188_p2)  }
   0x7   : > { %v1155_v2 = vld [vmem:[%s1535_s1] sm:$0xff] (!%p188_p2)   ;;  %1122 = vmatprep.subr.bf16.mxu1 (!%p188_p2), %v1154_v1  ;;  %v1159_v6 = vld [vmem:[%s1535_s1 + $0x8] sm:$0xff] (!%p188_p2)   ;;  %v1163_v10 = vld [vmem:[%s1535_s1 + $0x10] sm:$0xff] (!%p188_p2)  }
   0x8   : > { %v1156_v3 = vld [vmem:[%s1535_s1 + $0x80] sm:$0xff] (!%p188_p2)   ;;  %1101 = vmatpush3.bf16.msra.mxu0 (!%p188_p2), %v1155_v2  ;;  %v1160_v7 = vld [vmem:[%s1535_s1 + $0x88] sm:$0xff] (!%p188_p2)   ;;  %v1164_v11 = vld [vmem:[%s1535_s1 + $0x90] sm:$0xff] (!%p188_p2)  }
   0x9   : > { %1123 = vmatpush3.bf16.msra.mxu1 (!%p188_p2), %v1156_v3  ;;  %1102 = vmatprep.subr.bf16.mxu0 (!%p188_p2), %v1157_v4  ;;  %v1165_v12 = vld [vmem:[%s1535_s1 + $0x58] sm:$0xff] (!%p188_p2)   ;;  %v1169_v16 = vld [vmem:[%s1535_s1 + $0x60] sm:$0xff] (!%p188_p2)   ;;  %v1173_v20 = vld [vmem:[%s1535_s1 + $0x68] sm:$0xff] (!%p188_p2)  }
   0xa   : > { %1124 = vmatprep.subr.bf16.mxu1 (!%p188_p2), %v1158_v5  ;;  %v1166_v13 = vld [vmem:[%s1535_s1 + $0xd8] sm:$0xff] (!%p188_p2)   ;;  %v1170_v17 = vld [vmem:[%s1535_s1 + $0xe0] sm:$0xff] (!%p188_p2)   ;;  %v1174_v21 = vld [vmem:[%s1535_s1 + $0xe8] sm:$0xff] (!%p188_p2)  }
   0xb   : > { %v1167_v14 = vld [vmem:[%s1535_s1 + $0x18] sm:$0xff] (!%p188_p2)   ;;  %v1171_v18 = vld [vmem:[%s1535_s1 + $0x20] sm:$0xff] (!%p188_p2)   ;;  %v1175_v22 = vld [vmem:[%s1535_s1 + $0x28] sm:$0xff] (!%p188_p2)  }
   0xc   : > { %1103 = vmatpush3.bf16.msra.mxu0 (!%p188_p2), %v1159_v6  ;;  %v1168_v15 = vld [vmem:[%s1535_s1 + $0x98] sm:$0xff] (!%p188_p2)   ;;  %v1172_v19 = vld [vmem:[%s1535_s1 + $0xa0] sm:$0xff] (!%p188_p2)   ;;  %v1176_v23 = vld [vmem:[%s1535_s1 + $0xa8] sm:$0xff] (!%p188_p2)  }
   0xd   : > { %1125 = vmatpush3.bf16.msra.mxu1 %v1160_v7  ;;  %1104 = vmatprep.subr.bf16.mxu0 %v1161_v8  ;;  %s1541_s19 = smov (!%p215_p3, %s1018_s19), 1  ;;  %v1177_v24 = vld [vmem:[%s1535_s1 + $0x70] sm:$0xff]   ;;  %v1181_v28 = vld [vmem:[%s1535_s1 + $0x78] sm:$0xff]  }
   0xe   : > { %1126 = vmatprep.subr.bf16.mxu1 %v1162_v9  ;;  %v1178_v25 = vld [vmem:[%s1535_s1 + $0xf0] sm:$0xff]   ;;  %s1096_s28 = sshll.u32 %s1541_s19, 4  ;;  %v1182_v29 = vld [vmem:[%s1535_s1 + $0xf8] sm:$0xff]  }
   0xf   : > { %v1179_v26 = vld [vmem:[%s1535_s1 + $0x30] sm:$0xff]   ;;  %s219_s12 = scalar_lea.vmem %s1534_s0, %s1096_s28  ;;  %v1183_v30 = vld [vmem:[%s1535_s1 + $0x38] sm:$0xff]   ;;  %s224_s23 = scalar_lea.vmem %s1539_s5, %s1096_s28 }
  0x10   : > { %1105 = vmatpush3.bf16.msra.mxu0 %v1163_v10  ;;  %v1180_v27 = vld [vmem:[%s1535_s1 + $0xb0] sm:$0xff]   ;;  %v1184_v31 = vld [vmem:[%s1535_s1 + $0xb8] sm:$0xff]   ;;  %v226_v32 = vld [vmem:[%s219_s12] sm:$0xff] }
  0x11   : > { %1127 = vmatpush3.bf16.msra.mxu1 %v1164_v11  ;;  %1106 = vmatprep.subr.bf16.mxu0 %v1165_v12  ;;  %v227_v33 = vld [vmem:[%s219_s12 + $0x8] sm:$0xff]  ;;  %v1404_v34 = vunpack.c.l.bf16 %v226_v32  ;;  %v1406_v35 = vunpack.c.h.bf16 %v226_v32  ;;  %v1187_v38 = vld [vmem:[%s1537_s3 + $0x4] ss:$16 sps:$4 sm:$0xff]   ;;  %v1185_v0 = vld [vmem:[%s1537_s3] ss:$16 sps:$4 sm:$0xff]  }
  0x12   : > { %1128 = vmatprep.subr.bf16.mxu1 %v1166_v13  ;;  %v1408_v36 = vunpack.c.l.bf16 %v227_v33  ;;  %v1410_v37 = vunpack.c.h.bf16 %v227_v33  ;;  %v1190_v43 = vld [vmem:[%s1537_s3 + $0xc] ss:$16 sps:$4 sm:$0xff]   ;;  %v1188_v1 = vld [vmem:[%s1537_s3 + $0x8] ss:$16 sps:$4 sm:$0xff]   ;;  %v1193_v2 = vld [vmem:[%s1537_s3 + $0x24] ss:$16 sps:$4 sm:$0xff]  }
  0x13   : > { %v238_v39 = vrot.slane %v1406_v35, 4  ;;  %v232_v41 = vrot.slane %v1404_v34, 4  ;;  %v1196_v7 = vld [vmem:[%s1537_s3 + $0x2c] ss:$16 sps:$4 sm:$0xff]   ;;  %v1191_v8 = vld [vmem:[%s1537_s3 + $0x20] ss:$16 sps:$4 sm:$0xff]  }
  0x14   : > { %1107 = vmatpush3.bf16.msra.mxu0 %v1167_v14  ;;  %v250_v40 = vrot.slane %v1410_v37, 4  ;;  %v244_v42 = vrot.slane %v1408_v36, 4  ;;  %v1194_v9 = vld [vmem:[%s1537_s3 + $0x28] ss:$16 sps:$4 sm:$0xff]   ;;  %v1199_v10 = vld [vmem:[%s1537_s3 + $0x44] ss:$16 sps:$4 sm:$0xff]  }
  0x15   : > { %1129 = vmatpush3.bf16.msra.mxu1 %v1168_v15  ;;  %1108 = vmatprep.subr.bf16.mxu0 %v1169_v16  ;;  %v239_v44 = vadd.f32 %v238_v39, %v1406_v35  ;;  %v233_v46 = vadd.f32 %v232_v41, %v1404_v34  ;;  %v1202_v11 = vld [vmem:[%s1537_s3 + $0x4c] ss:$16 sps:$4 sm:$0xff]   ;;  %v1197_v12 = vld [vmem:[%s1537_s3 + $0x40] ss:$16 sps:$4 sm:$0xff]   ;;  %v1200_v13 = vld [vmem:[%s1537_s3 + $0x48] ss:$16 sps:$4 sm:$0xff]  }
  0x16   : > { %1130 = vmatprep.subr.bf16.mxu1 %v1170_v17  ;;  %v251_v45 = vadd.f32 %v250_v40, %v1410_v37  ;;  %v245_v47 = vadd.f32 %v244_v42, %v1408_v36  ;;  %v1205_v14 = vld [vmem:[%s1537_s3 + $0x64] ss:$16 sps:$4 sm:$0xff]   ;;  %v1208_v15 = vld [vmem:[%s1537_s3 + $0x6c] ss:$16 sps:$4 sm:$0xff]   ;;  %v1203_v16 = vld [vmem:[%s1537_s3 + $0x60] ss:$16 sps:$4 sm:$0xff]  }
  0x17   : > { %v240_v48 = vrot.slane %v239_v44, 2  ;;  %v234_v50 = vrot.slane %v233_v46, 2  ;;  %v1206_v17 = vld [vmem:[%s1537_s3 + $0x68] ss:$16 sps:$4 sm:$0xff]   ;;  %v1227_v32 = vld [vmem:[%s1537_s3 + $0xe0] ss:$16 sps:$4 sm:$0xff]  }
  0x18   : > { %1109 = vmatpush3.bf16.msra.mxu0 %v1171_v18  ;;  %v252_v49 = vrot.slane %v251_v45, 2  ;;  %v246_v51 = vrot.slane %v245_v47, 2  ;;  %v1211_v18 = vld [vmem:[%s1537_s3 + $0x84] ss:$16 sps:$4 sm:$0xff]   ;;  %v1230_v33 = vld [vmem:[%s1537_s3 + $0xe8] ss:$16 sps:$4 sm:$0xff]  }
  0x19   : > { %1131 = vmatpush3.bf16.msra.mxu1 %v1172_v19  ;;  %1110 = vmatprep.subr.bf16.mxu0 %v1173_v20  ;;  %v241_v52 = vadd.f32 %v240_v48, %v239_v44  ;;  %v235_v54 = vadd.f32 %v234_v50, %v233_v46  ;;  %v1214_v19 = vld [vmem:[%s1537_s3 + $0x8c] ss:$16 sps:$4 sm:$0xff]   ;;  %v1209_v20 = vld [vmem:[%s1537_s3 + $0x80] ss:$16 sps:$4 sm:$0xff]  }
  0x1a   : > { %1132 = vmatprep.subr.bf16.mxu1 %v1174_v21  ;;  %v253_v53 = vadd.f32 %v252_v49, %v251_v45  ;;  %v247_v55 = vadd.f32 %v246_v51, %v245_v47  ;;  %v1212_v21 = vld [vmem:[%s1537_s3 + $0x88] ss:$16 sps:$4 sm:$0xff]   ;;  %v1027_v41 = vld [vmem:[%s1536_s2] ss:$0 sm:$0xff] }
  0x1b   : > { %v242_v56 = vrot.slane %v241_v52, 1  ;;  %v236_v58 = vrot.slane %v235_v54, 1 }
  0x1c   : > { %1111 = vmatpush3.bf16.msra.mxu0 %v1175_v22  ;;  %v254_v57 = vrot.slane %v253_v53, 1  ;;  %v248_v59 = vrot.slane %v247_v55, 1  ;;  %v1217_v22 = vld [vmem:[%s1537_s3 + $0xa4] ss:$16 sps:$4 sm:$0xff]  }
  0x1d   : > { %1133 = vmatpush3.bf16.msra.mxu1 %v1176_v23  ;;  %1112 = vmatprep.subr.bf16.mxu0 %v1177_v24  ;;  %v243_v60 = vadd.f32 %v242_v56, %v241_v52  ;;  %v237_v62 = vadd.f32 %v236_v58, %v235_v54  ;;  %v1220_v23 = vld [vmem:[%s1537_s3 + $0xac] ss:$16 sps:$4 sm:$0xff]   ;;  %v1215_v24 = vld [vmem:[%s1537_s3 + $0xa0] ss:$16 sps:$4 sm:$0xff]   ;;  %v639_v54 = vlaneseq }
  0x1e   : > { %1134 = vmatprep.subr.bf16.mxu1 %v1178_v25  ;;  %v255_v61 = vadd.f32 %v254_v57, %v253_v53  ;;  %v249_v63 = vadd.f32 %v248_v59, %v247_v55  ;;  %v1218_v25 = vld [vmem:[%s1537_s3 + $0xa8] ss:$16 sps:$4 sm:$0xff]   ;;  %v637_v58 = vld [vmem:[%s1538_s4] sm:$0xf] }
  0x1f   : > { %v257_v3 = vpack.c.bf16 %v243_v60, %v243_v60  ;;  %v256_v5 = vpack.c.bf16 %v237_v62, %v237_v62  ;;  %v640_v55 = vshrl.u32 %v639_v54, 7 }
  0x20   : > { %1113 = vmatpush3.bf16.msra.mxu0 %v1179_v26  ;;  %v259_v4 = vpack.c.bf16 %v255_v61, %v255_v61  ;;  %v258_v6 = vpack.c.bf16 %v249_v63, %v249_v63  ;;  %v1223_v26 = vld [vmem:[%s1537_s3 + $0xc4] ss:$16 sps:$4 sm:$0xff]  }
  0x21   : > { %1135 = vmatpush3.bf16.msra.mxu1 %v1180_v27  ;;  %1114 = vmatprep.subr.bf16.mxu0 %v1181_v28  ;;  %v1226_v27 = vld [vmem:[%s1537_s3 + $0xcc] ss:$16 sps:$4 sm:$0xff]   ;;  %v1221_v28 = vld [vmem:[%s1537_s3 + $0xc0] ss:$16 sps:$4 sm:$0xff]   ;;  %v641_v56 = vsub.s32 0, %v640_v55  ;;  %v649_v57 = vsub.s32 2, %v640_v55 }
  0x22   : > { %1136 = vmatprep.subr.bf16.mxu1 %v1182_v29  ;;  %555 = vmatprep.mubr.bf16.mxu0 %v257_v3  ;;  %v1224_v29 = vld [vmem:[%s1537_s3 + $0xc8] ss:$16 sps:$4 sm:$0xff]   ;;  %v645_v59 = vsub.s32 1, %v640_v55  ;;  %v653_v60 = vsub.s32 3, %v640_v55 }
  0x23   : > { %595 = vmatprep.mubr.bf16.mxu1 %v259_v4  ;;  %v642_v61 = vrot.slane %v637_v58, %v641_v56  ;;  %v650_v62 = vrot.slane %v637_v58, %v649_v57 }
  0x24   : > { %1115 = vmatpush3.bf16.msra.mxu0 %v1183_v30  ;;  %v1229_v30 = vld [vmem:[%s1537_s3 + $0xe4] ss:$16 sps:$4 sm:$0xff]   ;;  %v646_v63 = vrot.slane %v637_v58, %v645_v59 }
  0x25   : > { %1137 = vmatpush3.bf16.msra.mxu1 %v1184_v31  ;;  %819 = vmatprep.subr.bf16.mxu0 %v1187_v38  ;;  %v1232_v31 = vld [vmem:[%s1537_s3 + $0xec] ss:$16 sps:$4 sm:$0xff]   ;;  %v1257_v38 = vmov 0  }
  0x26   : > { %860 = vmatprep.subr.bf16.mxu1 %v1190_v43 }
  0x27   : > { %556 = vmatmul.mubr.bf16.vlgmr.msra.gmra.mrb[0].mxu0 %v256_v5 }
  0x28   : > { %596 = vmatmul.mubr.bf16.vlgmr.msra.gmra.mrb[0].mxu1 %v258_v6  ;;  %820 = vmatpush1.bf16.msra.mxu0 %v1185_v0  ;;  %v654_v0 = vrot.slane %v637_v58, %v653_v60 }
  0x29   : > { %861 = vmatpush1.bf16.msra.mxu1 %v1188_v1  ;;  %821 = vmatprep.subr.bf16.mxu0 %v1193_v2 }
  0x2a   : > { %862 = vmatprep.subr.bf16.mxu1 %v1196_v7  ;;  %851 = vmatprep.mubr.bf16.mxu0 %v1257_v38 }
  0x2b   : > { %892 = vmatprep.mubr.bf16.mxu1 %v1257_v38 }
  0x2c   : > { %822 = vmatpush1.bf16.msra.mxu0 %v1191_v8 }
  0x2d   : > { %863 = vmatpush1.bf16.msra.mxu1 %v1194_v9  ;;  %823 = vmatprep.subr.bf16.mxu0 %v1199_v10 }
  0x2e   : > { %864 = vmatprep.subr.bf16.mxu1 %v1202_v11 }
  0x30   : > { %824 = vmatpush1.bf16.msra.mxu0 %v1197_v12 }
  0x31   : > { %865 = vmatpush1.bf16.msra.mxu1 %v1200_v13  ;;  %825 = vmatprep.subr.bf16.mxu0 %v1205_v14 }
  0x32   : > { %866 = vmatprep.subr.bf16.mxu1 %v1208_v15 }
  0x34   : > { %826 = vmatpush1.bf16.msra.mxu0 %v1203_v16 }
  0x35   : > { %867 = vmatpush1.bf16.msra.mxu1 %v1206_v17  ;;  %827 = vmatprep.subr.bf16.mxu0 %v1211_v18 }
  0x36   : > { %868 = vmatprep.subr.bf16.mxu1 %v1214_v19 }
  0x38   : > { %828 = vmatpush1.bf16.msra.mxu0 %v1209_v20 }
  0x39   : > { %869 = vmatpush1.bf16.msra.mxu1 %v1212_v21  ;;  %829 = vmatprep.subr.bf16.mxu0 %v1217_v22 }
  0x3a   : > { %870 = vmatprep.subr.bf16.mxu1 %v1220_v23 }
  0x3c   : > { %830 = vmatpush1.bf16.msra.mxu0 %v1215_v24 }
  0x3d   : > { %871 = vmatpush1.bf16.msra.mxu1 %v1218_v25  ;;  %831 = vmatprep.subr.bf16.mxu0 %v1223_v26 }
  0x3e   : > { %872 = vmatprep.subr.bf16.mxu1 %v1226_v27 }
  0x40   : > { %832 = vmatpush1.bf16.msra.mxu0 %v1221_v28 }
  0x41   : > { %873 = vmatpush1.bf16.msra.mxu1 %v1224_v29  ;;  %833 = vmatprep.subr.bf16.mxu0 %v1229_v30 }
  0x42   : > { %874 = vmatprep.subr.bf16.mxu1 %v1232_v31 }
  0x44   : > { %834 = vmatpush1.bf16.msra.mxu0 %v1227_v32 }
  0x45   : > { %875 = vmatpush1.bf16.msra.mxu1 %v1230_v33 }
  0xfa   : > { %v1116_v39 = vpop.f32.mrb[0].mxu0 }
  0xfb   : > { %v1138_v40 = vpop.f32.mrb[0].mxu1  ;;  %v1117_v42 = vpop.f32.mrb[1].mxu0 }
  0xfc   : > { %v1139_v43 = vpop.f32.mrb[1].mxu1  ;;  %v1118_v44 = vadd.f32 %v1117_v42, %v1116_v39  ;;  %v1119_v46 = vpop.f32.mrb[2].mxu0 }
  0xfd   : > { %v1140_v45 = vadd.f32 %v1139_v43, %v1138_v40  ;;  %v1141_v47 = vpop.f32.mrb[2].mxu1  ;;  %v1120_v48 = vpop.f32.mrb[3].mxu0 }
  0xfe   : > { %v1142_v49 = vpop.f32.mrb[3].mxu1  ;;  %v558_v50 = vadd.f32 %v1118_v44, %v1027_v41 }
 0x100   : > { %v598_v51 = vadd.f32 %v1140_v45, %v558_v50 }
 0x102   : > { %v603_v52 = vmax.f32 %v598_v51, 0.0 }
 0x104   : > { %v604_v53 = vpack.c.bf16 %v603_v52, %v603_v52 }
 0x106   : > { %852 = vmatmul.mubr.bf16.vlgmr.msra.gmra.mrb[4].mxu0 %v604_v53  ;;  %893 = vmatmul.mubr.bf16.vlgmr.msra.gmra.mrb[4].mxu1 %v604_v53 }
 0x1d9   : > { %v853_v1 = vpop.f32.mrb[4].mxu0  ;;  %v894_v2 = vpop.f32.mrb[4].mxu1 }
 0x1da   : > { %v854_v3 = vadd.f32 %v853_v1, %v642_v61  ;;  %v895_v4 = vadd.f32 %v894_v2, %v650_v62  ;;  %v855_v5 = vpop.f32.mrb[5].mxu0  ;;  %v896_v6 = vpop.f32.mrb[5].mxu1 }
 0x1db   : > { %v856_v7 = vadd.f32 %v855_v5, %v646_v63  ;;  %v897_v8 = vadd.f32 %v896_v6, %v654_v0  ;;  %v857_v9 = vpop.f32.mrb[6].mxu0  ;;  %v898_v10 = vpop.f32.mrb[6].mxu1 }
 0x1dc   : > { %v901_v11 = vsub.f32 0.0, %v854_v3  ;;  %v903_v12 = vsub.f32 0.0, %v895_v4  ;;  %v858_v13 = vpop.f32.mrb[7].mxu0  ;;  %v899_v14 = vpop.f32.mrb[7].mxu1 }
 0x1dd   : > { %v902_v15 = vsub.f32 0.0, %v856_v7  ;;  %v904_v16 = vsub.f32 0.0, %v897_v8 }
 0x1de   : > { %v905_v17 = vmul.f32 1.442695, %v901_v11  ;;  %v909_v18 = vmul.f32 1.442695, %v903_v12 }
 0x1df   : > { %v907_v19 = vmul.f32 1.442695, %v902_v15  ;;  %v911_v20 = vmul.f32 1.442695, %v904_v16 }
 0x1e0   : > { %1233 = vpow2.f32 %v905_v17 }
 0x1e1   : > { %1235 = vpow2.f32 %v909_v18 }
 0x1e2   : > { %1237 = vpow2.f32 %v907_v19 }
 0x1e3   : > { %1239 = vpow2.f32 %v911_v20 }
 0x1ea   : > { %v1234_v21 = vpop.eup %1233 }
 0x1eb   : > { %v1236_v22 = vpop.eup %1235  ;;  %v913_v23 = vadd.f32 1.0, %v1234_v21 }
 0x1ec   : > { %v1238_v24 = vpop.eup %1237  ;;  %v915_v25 = vadd.f32 1.0, %v1236_v22 }
 0x1ed   : > { %v1240_v26 = vpop.eup %1239  ;;  %1241 = vrcp.f32 %v913_v23  ;;  %v914_v27 = vadd.f32 1.0, %v1238_v24 }
 0x1ee   : > { %1243 = vrcp.f32 %v915_v25  ;;  %v916_v28 = vadd.f32 1.0, %v1240_v26 }
 0x1ef   : > { %1245 = vrcp.f32 %v914_v27 }
 0x1f0   : > { %1247 = vrcp.f32 %v916_v28 }
 0x1f7   : > { %v1242_v29 = vpop.eup %1241 }
 0x1f8   : > { %v1244_v30 = vpop.eup %1243  ;;  %v928_v31 = vrot.slane %v1242_v29, %v641_v56 }
 0x1f9   : > { %v1246_v32 = vpop.eup %1245  ;;  %v936_v33 = vrot.slane %v1244_v30, %v641_v56 }
 0x1fa   : > { %v1248_v38 = vpop.eup %1247  ;;  %v941_v39 = vmul.f32 %v928_v31, %v1404_v34  ;;  %v932_v40 = vrot.slane %v1246_v32, %v641_v56 }
 0x1fb   : > { %v943_v41 = vmul.f32 %v936_v33, %v1408_v36  ;;  %v940_v42 = vrot.slane %v1248_v38, %v641_v56 }
 0x1fc   : > { %v942_v43 = vmul.f32 %v932_v40, %v1406_v35 }
 0x1fd   : > { %v944_v44 = vmul.f32 %v940_v42, %v1410_v37 }
 0x1fe   : > { %v1098_v45 = vpack.c.bf16 %v942_v43, %v941_v39 }
 0x1ff   : > { %v1099_v46 = vpack.c.bf16 %v944_v44, %v943_v41 }
 0x200   : > { %961 = vst [vmem:[%s224_s23] sm:$0xff] %v1098_v45 }
 0x201   : > { %962 = vst [vmem:[%s224_s23 + $0x8] sm:$0xff] %v1099_v46 }
 0x202 PF: > { %s15_s18 = sadd.s32 1, %s1255_s18  }
 0x203   : > { %p12_p4 = scmp.ge.s32.totalorder %s15_s18, 4  }
 0x205   :  { %14 = sbr.rel (!%p12_p4) target bundleno = 1 (0x1), region = 70 }

// kernel: regnet_forward.115
= control target key start
LH: loop header
LB: loop body
LE: loop exit
PB: predicated region body
PF: predicated region fallthrough
CT: control target
= control target key end

     0   :  { %s798_s12 = smov 0   ;;  %s800_s13 = smov 0   ;;  %s930_s0 = inlined_call_operand.vmem [shape: bf16[8,256], index: 0, kind: input, shape index: {}]   ;;  %s931_s1 = inlined_call_operand.vmem [shape: bf16[256,512], index: 1, kind: input, shape index: {}]   ;;  %s932_s2 = inlined_call_operand.vmem [shape: f32[1,512], index: 2, kind: input, shape index: {}]   ;;  %s933_s3 = inlined_call_operand.vmem [shape: bf16[8,512], index: 3, kind: output, shape index: {}]  }
   0x1   :  { %s802_s14 = smov 0   ;;  %s804_s15 = smov 0  }
   0x2   :  { %s806_s16 = smov 0   ;;  %s808_s17 = smov 0  }
   0x3   :  { %s810_s18 = smov 0  }
   0x4 LB: > { %s25_s19 = sadd.s32 1, %s765_s16  ;;  %s28_s20 = sadd.s32 1, %s769_s17  ;;  %s773_s18 = sphi %s810_s18, %s13_s18   ;;  %s769_s17 = sphi %s808_s17, %s939_s17   ;;  %s765_s16 = sphi %s806_s16, %s938_s16   ;;  %s761_s15 = sphi %s804_s15, %s937_s15   ;;  %s757_s14 = sphi %s802_s14, %s936_s14   ;;  %s753_s13 = sphi %s800_s13, %s935_s13   ;;  %s749_s12 = sphi %s798_s12, %s934_s12  }
   0x5   : > { %p26_p0 = scmp.ge.s32.totalorder %s25_s19, 2  ;;  %p76_p1 = scmp.ne.s32.totalorder %s753_s13, %s749_s12 }
   0x6   : > { %p77_p2 = scmp.eq.s32.totalorder %s773_s18, 0  ;;  %s69_s24 = sadd.s32 1, %s753_s13 }
   0x7   : > { %s941_s19 = smov (%p26_p0, %s25_s19), 0  ;;  %s943_s20 = smov (!%p26_p0, %s28_s20), %s769_s17 }
   0x8   : > { %p78_p3 = por %p77_p2, %p76_p1  ;;  %p30_p4 = scmp.ge.s32.totalorder %s943_s20, 4 }
   0x9   : > { %s64_s21 = ssub.s32 %s765_s16, %s941_s19  ;;  %p600_p6 = scmp.ge.s32.totalorder %s773_s18, 8 }
   0xa   : > { %s945_s20 = smov (%p30_p4, %s943_s20), 0 }
   0xb   : > { %s65_s22 = ssub.s32 %s769_s17, %s945_s20  ;;  %156 = sbr.rel (%p600_p6) target bundleno = 35 (0x23), region = 16 }
   0xc   : > { %s66_s23 = sor.u32 %s65_s22, %s64_s21 }
   0xd   : > { %p67_p5 = scmp.eq.s32.totalorder %s66_s23, 0 }
   0xf   : > { %s849_s25 = scalar_select %p67_p5, %s753_s13, %s69_s24  }
  0x12   : > { %170 = sbr.rel (!%p78_p3) target bundleno = 35 (0x23), region = 24  ;;  %s172_s26 = sand.u32 (%p78_p3), 1, %s753_s13  }
  0x13   : > { %s622_s27 = sshll.u32 (%p78_p3), %s765_s16, 6  ;;  %s601_s28 = sshll.u32 (%p78_p3), %s172_s26, 6 }
  0x14   : > { %s177_s29 = sadd.s32 (%p78_p3), %s769_s17, %s622_s27  ;;  %s174_s7 = scalar_lea.vmem (%p78_p3), [#allocation3], %s601_s28 }
  0x15   : > { %s604_s30 = sshll.u32 (%p78_p3), %s177_s29, 2 }
  0x16   : > { %s858_s6 = scalar_lea.vmem (%p78_p3), %s931_s1, %s604_s30 }
  0x17   : > { %v195_v0 = vld [vmem:[%s858_s6] sm:$0xf] (%p78_p3)  ;;  %v197_v1 = vld [vmem:[%s858_s6 + $0x10] sm:$0xf] (%p78_p3) }
  0x18   : > { %v199_v2 = vld [vmem:[%s858_s6 + $0x20] sm:$0xf] (%p78_p3)  ;;  %196 = vst [vmem:[%s174_s7] sm:$0xf] (%p78_p3), %v195_v0  ;;  %198 = vst [vmem:[%s174_s7 + $0x4] sm:$0xf] (%p78_p3), %v197_v1 }
  0x19   : > { %200 = vst [vmem:[%s174_s7 + $0x8] sm:$0xf] %v199_v2  ;;  %v201_v3 = vld [vmem:[%s858_s6 + $0x30] sm:$0xf]  ;;  %v203_v4 = vld [vmem:[%s858_s6 + $0x40] sm:$0xf] }
  0x1a   : > { %v205_v5 = vld [vmem:[%s858_s6 + $0x50] sm:$0xf]  ;;  %202 = vst [vmem:[%s174_s7 + $0xc] sm:$0xf] %v201_v3  ;;  %204 = vst [vmem:[%s174_s7 + $0x10] sm:$0xf] %v203_v4 }
  0x1b   : > { %206 = vst [vmem:[%s174_s7 + $0x14] sm:$0xf] %v205_v5  ;;  %v207_v6 = vld [vmem:[%s858_s6 + $0x60] sm:$0xf]  ;;  %v209_v7 = vld [vmem:[%s858_s6 + $0x70] sm:$0xf] }
  0x1c   : > { %v211_v8 = vld [vmem:[%s858_s6 + $0x80] sm:$0xf]  ;;  %208 = vst [vmem:[%s174_s7 + $0x18] sm:$0xf] %v207_v6  ;;  %210 = vst [vmem:[%s174_s7 + $0x1c] sm:$0xf] %v209_v7 }
  0x1d   : > { %212 = vst [vmem:[%s174_s7 + $0x20] sm:$0xf] %v211_v8  ;;  %v213_v9 = vld [vmem:[%s858_s6 + $0x90] sm:$0xf]  ;;  %v215_v10 = vld [vmem:[%s858_s6 + $0xa0] sm:$0xf] }
  0x1e   : > { %v217_v11 = vld [vmem:[%s858_s6 + $0xb0] sm:$0xf]  ;;  %214 = vst [vmem:[%s174_s7 + $0x24] sm:$0xf] %v213_v9  ;;  %216 = vst [vmem:[%s174_s7 + $0x28] sm:$0xf] %v215_v10 }
  0x1f   : > { %218 = vst [vmem:[%s174_s7 + $0x2c] sm:$0xf] %v217_v11  ;;  %v219_v12 = vld [vmem:[%s858_s6 + $0xc0] sm:$0xf]  ;;  %v221_v13 = vld [vmem:[%s858_s6 + $0xd0] sm:$0xf] }
  0x20   : > { %v223_v14 = vld [vmem:[%s858_s6 + $0xe0] sm:$0xf]  ;;  %220 = vst [vmem:[%s174_s7 + $0x30] sm:$0xf] %v219_v12  ;;  %222 = vst [vmem:[%s174_s7 + $0x34] sm:$0xf] %v221_v13 }
  0x21   : > { %224 = vst [vmem:[%s174_s7 + $0x38] sm:$0xf] %v223_v14  ;;  %v225_v15 = vld [vmem:[%s858_s6 + $0xf0] sm:$0xf] }
  0x22   : > { %226 = vst [vmem:[%s174_s7 + $0x3c] sm:$0xf] %v225_v15 }
  0x23 PF: > { %p605_p7 = scmp.ge.s32.totalorder %s773_s18, 1  ;;  %p286_p8 = scmp.lt.s32.totalorder %s773_s18, 9 }
  0x25   : > { %p287_p9 = pnand %p605_p7, %p286_p8 }
  0x26   : > { %s293_s8 = sand.u32 (!%p287_p9), 1, %s749_s12   ;;  %p332_p10 = scmp.lt.s32.totalorder (!%p287_p9), %s757_s14, 1 }
  0x27   : > { %290 = sbr.rel (%p287_p9) target bundleno = 314 (0x13a), region = 69  ;;  %s606_s9 = sshll.u32 (!%p287_p9), %s293_s8, 6 }
  0x28   : > { %p339_p11 = scmp.lt.s32.totalorder (!%p287_p9), %s761_s15, 3  ;;  %s295_s4 = scalar_lea.vmem (!%p287_p9), [#allocation3], %s606_s9 }
  0x29   : > { %p609_p12 = scmp.ne.s32.totalorder (!%p287_p9), %s757_s14, 0 }
  0x2e   : > { %s333_s10 = scalar_select %p332_p10, %s757_s14, 1 }
  0x2f   : > { %s947_s15 = smov (!%p339_p11, %s761_s15), 3  ;;  %354 = sbr.rel (%p609_p12) target bundleno = 54 (0x36), region = 77 }
  0x30   : > { %s607_s11 = sshll.u32 %s333_s10, 2  ;;  %s341_s27 = scalar_lea.vmem %s932_s2, %s947_s15  ;;  %v775_v16 = vmov (!%p609_p12), 0.0  }
  0x31   : > { %s888_s23 = scalar_lea.vmem %s930_s0, %s607_s11  ;;  %s608_s28 = sshll.u32 %s947_s15, 2  ;;  %355 = vst [vmem:[#allocation2] sm:$0xff] (!%p609_p12), %v775_v16 }
  0x32   : > { %s898_s30 = scalar_lea.vmem %s933_s3, %s608_s28 }
  0x36 PF: > { %v711_v17 = vld [vmem:[%s295_s4] sm:$0xff]   ;;  %v776_v18 = vmov 0.0   ;;  %v712_v19 = vld [vmem:[%s295_s4 + $0x8] sm:$0xff]   ;;  %vm777_vm0 = vmmov 0   ;;  %v713_v20 = vld [vmem:[%s295_s4 + $0x10] sm:$0xff]   ;;  %p618_p13 = scmp.ne.s32.totalorder %s757_s14, 1 }
  0x37   : > { %632 = vmatprep.subr.bf16.mxu0 %v776_v18  ;;  %648 = vmatprep.mubr.msk.bf16.mxu0 %vm777_vm0, %v776_v18  ;;  %v714_v21 = vld [vmem:[%s295_s4 + $0x18] sm:$0xff]   ;;  %v715_v22 = vld [vmem:[%s295_s4 + $0x20] sm:$0xff]   ;;  %v716_v23 = vld [vmem:[%s295_s4 + $0x28] sm:$0xff]  }
  0x38   : > { %633 = vmatpush3.bf16.msra.mxu0 %v711_v17  ;;  %v717_v24 = vld [vmem:[%s295_s4 + $0x30] sm:$0xff]   ;;  %v718_v25 = vld [vmem:[%s295_s4 + $0x38] sm:$0xff]  }
  0x39   : > { %634 = vmatprep.subr.bf16.mxu0 %v776_v18  ;;  %v357_v26 = vld [vmem:[%s888_s23] sm:$0xf] }
  0x3a   : > { %v356_v27 = vld [vmem:[#allocation2] sm:$0xff] }
  0x3b   : > { %v619_v34 = vld [vmem:[%s341_s27] ss:$0 sm:$0xff] (!%p618_p13) }
  0x3c   : > { %635 = vmatpush3.bf16.msra.mxu0 %v712_v19 }
  0x3d   : > { %636 = vmatprep.subr.bf16.mxu0 %v776_v18 }
  0x40   : > { %637 = vmatpush3.bf16.msra.mxu0 %v713_v20 }
  0x41   : > { %638 = vmatprep.subr.bf16.mxu0 %v776_v18 }
  0x44   : > { %639 = vmatpush3.bf16.msra.mxu0 %v714_v21 }
  0x45   : > { %640 = vmatprep.subr.bf16.mxu0 %v776_v18 }
  0x48   : > { %641 = vmatpush3.bf16.msra.mxu0 %v715_v22 }
  0x49   : > { %642 = vmatprep.subr.bf16.mxu0 %v776_v18 }
  0x4c   : > { %643 = vmatpush3.bf16.msra.mxu0 %v716_v23 }
  0x4d   : > { %644 = vmatprep.subr.bf16.mxu0 %v776_v18 }
  0x50   : > { %645 = vmatpush3.bf16.msra.mxu0 %v717_v24 }
  0x51   : > { %646 = vmatprep.subr.bf16.mxu0 %v776_v18 }
  0x54   : > { %647 = vmatpush3.bf16.msra.mxu0 %v718_v25 }
  0x57   : > { %649 = vmatmul.mubr.bf16.vlgmr.msra.gmra.mrb[0].mxu0 %v357_v26 }
 0x127   : > { %467 = sbr.rel (%p618_p13) target bundleno = 314 (0x13a), region = 81 }
 0x12a   : > { %v456_v28 = vpop.f32.mrb[0].mxu0 }
 0x12b   : > { %v462_v29 = vadd.f32 %v456_v28, %v356_v27  ;;  %v650_v30 = vpop.f32.mrb[1].mxu0 }
 0x12c   : > { %v459_v31 = vpop.f32.mrb[2].mxu0 }
 0x12d   : > { %463 = vst [vmem:[#allocation2] sm:$0xff] %v462_v29  ;;  %v651_v32 = vpop.f32.mrb[3].mxu0 }
 0x134   : > { %v468_v33 = vld [vmem:[#allocation2] sm:$0xff] }
 0x135   : > { %v476_v35 = vadd.f32 %v619_v34, %v468_v33 }
 0x137   : > { %v477_v36 = vpack.c.bf16 %v476_v35, %v476_v35 }
 0x139   : > { %478 = vst [vmem:[%s898_s30] sm:$0xf] %v477_v36 }
 0x13a PF: > { %s13_s18 = sadd.s32 1, %s773_s18   ;;  %s934_s12 = smov %s753_s13 }
 0x13b   : > { %p10_p0 = scmp.ge.s32.totalorder %s13_s18, 10   ;;  %s935_s13 = smov %s849_s25 }
 0x13c   : > { %s936_s14 = smov %s765_s16  ;;  %s937_s15 = smov %s769_s17 }
 0x13d   : > { %s938_s16 = smov %s941_s19  ;;  %s939_s17 = smov %s945_s20 }
 0x13e   :  { %12 = sbr.rel (!%p10_p0) target bundleno = 4 (0x4), region = 122 }

// kernel: regnet_forward.119
= control target key start
LH: loop header
LB: loop body
LE: loop exit
PB: predicated region body
PF: predicated region fallthrough
CT: control target
= control target key end

     0   :  { %s884_s15 = smov 0   ;;  %s886_s16 = smov 0   ;;  %s1022_s0 = inlined_call_operand.vmem [shape: bf16[8,512], index: 0, kind: input, shape index: {}]   ;;  %s1023_s1 = inlined_call_operand.vmem [shape: bf16[512,512], index: 1, kind: input, shape index: {}]   ;;  %s1024_s2 = inlined_call_operand.vmem [shape: f32[1,512], index: 2, kind: input, shape index: {}]   ;;  %s1025_s3 = inlined_call_operand.vmem [shape: bf16[8,512], index: 3, kind: input, shape index: {}]   ;;  %s1026_s4 = inlined_call_operand.vmem [shape: bf16[8,512], index: 4, kind: output, shape index: {}]  }
   0x1   :  { %s888_s17 = smov 0   ;;  %s890_s18 = smov 0  }
   0x2   :  { %s892_s19 = smov 0   ;;  %s894_s20 = smov 0  }
   0x3   :  { %s896_s21 = smov 0  }
   0x4 LB: > { %s26_s22 = sadd.s32 1, %s846_s19  ;;  %s29_s23 = sadd.s32 1, %s850_s20  ;;  %s854_s21 = sphi %s896_s21, %s14_s21   ;;  %s850_s20 = sphi %s894_s20, %s1032_s20   ;;  %s846_s19 = sphi %s892_s19, %s1031_s19   ;;  %s842_s18 = sphi %s890_s18, %s1030_s18   ;;  %s838_s17 = sphi %s888_s17, %s1029_s17   ;;  %s834_s16 = sphi %s886_s16, %s1028_s16   ;;  %s830_s15 = sphi %s884_s15, %s1027_s15  }
   0x5   : > { %p27_p0 = scmp.ge.s32.totalorder %s26_s22, 4  ;;  %p77_p1 = scmp.ne.s32.totalorder %s834_s16, %s830_s15 }
   0x6   : > { %p78_p2 = scmp.eq.s32.totalorder %s854_s21, 0  ;;  %s70_s27 = sadd.s32 1, %s834_s16 }
   0x7   : > { %s1034_s22 = smov (%p27_p0, %s26_s22), 0  ;;  %s1036_s23 = smov (!%p27_p0, %s29_s23), %s850_s20 }
   0x8   : > { %p79_p3 = por %p78_p2, %p77_p1  ;;  %p31_p4 = scmp.ge.s32.totalorder %s1036_s23, 4 }
   0x9   : > { %s65_s24 = ssub.s32 %s846_s19, %s1034_s22  ;;  %p680_p6 = scmp.ge.s32.totalorder %s854_s21, 16 }
   0xa   : > { %s1038_s23 = smov (%p31_p4, %s1036_s23), 0 }
   0xb   : > { %s66_s25 = ssub.s32 %s850_s20, %s1038_s23  ;;  %185 = sbr.rel (%p680_p6) target bundleno = 35 (0x23), region = 16 }
   0xc   : > { %s67_s26 = sor.u32 %s66_s25, %s65_s24 }
   0xd   : > { %p68_p5 = scmp.eq.s32.totalorder %s67_s26, 0 }
   0xf   : > { %s935_s28 = scalar_select %p68_p5, %s834_s16, %s70_s27  }
  0x12   : > { %199 = sbr.rel (!%p79_p3) target bundleno = 35 (0x23), region = 24  ;;  %s201_s29 = sand.u32 (%p79_p3), 1, %s834_s16  }
  0x13   : > { %s703_s30 = sshll.u32 (%p79_p3), %s846_s19, 6  ;;  %s681_s5 = sshll.u32 (%p79_p3), %s201_s29, 6 }
  0x14   : > { %s206_s6 = sadd.s32 (%p79_p3), %s850_s20, %s703_s30  ;;  %s203_s11 = scalar_lea.vmem (%p79_p3), [#allocation3], %s681_s5 }
  0x15   : > { %s684_s7 = sshll.u32 (%p79_p3), %s206_s6, 2 }
  0x16   : > { %s944_s10 = scalar_lea.vmem (%p79_p3), %s1023_s1, %s684_s7 }
  0x17   : > { %v224_v0 = vld [vmem:[%s944_s10] sm:$0xf] (%p79_p3)  ;;  %v226_v1 = vld [vmem:[%s944_s10 + $0x10] sm:$0xf] (%p79_p3) }
  0x18   : > { %v228_v2 = vld [vmem:[%s944_s10 + $0x20] sm:$0xf] (%p79_p3)  ;;  %225 = vst [vmem:[%s203_s11] sm:$0xf] (%p79_p3), %v224_v0  ;;  %227 = vst [vmem:[%s203_s11 + $0x4] sm:$0xf] (%p79_p3), %v226_v1 }
  0x19   : > { %229 = vst [vmem:[%s203_s11 + $0x8] sm:$0xf] %v228_v2  ;;  %v230_v3 = vld [vmem:[%s944_s10 + $0x30] sm:$0xf]  ;;  %v232_v4 = vld [vmem:[%s944_s10 + $0x40] sm:$0xf] }
  0x1a   : > { %v234_v5 = vld [vmem:[%s944_s10 + $0x50] sm:$0xf]  ;;  %231 = vst [vmem:[%s203_s11 + $0xc] sm:$0xf] %v230_v3  ;;  %233 = vst [vmem:[%s203_s11 + $0x10] sm:$0xf] %v232_v4 }
  0x1b   : > { %235 = vst [vmem:[%s203_s11 + $0x14] sm:$0xf] %v234_v5  ;;  %v236_v6 = vld [vmem:[%s944_s10 + $0x60] sm:$0xf]  ;;  %v238_v7 = vld [vmem:[%s944_s10 + $0x70] sm:$0xf] }
  0x1c   : > { %v240_v8 = vld [vmem:[%s944_s10 + $0x80] sm:$0xf]  ;;  %237 = vst [vmem:[%s203_s11 + $0x18] sm:$0xf] %v236_v6  ;;  %239 = vst [vmem:[%s203_s11 + $0x1c] sm:$0xf] %v238_v7 }
  0x1d   : > { %241 = vst [vmem:[%s203_s11 + $0x20] sm:$0xf] %v240_v8  ;;  %v242_v9 = vld [vmem:[%s944_s10 + $0x90] sm:$0xf]  ;;  %v244_v10 = vld [vmem:[%s944_s10 + $0xa0] sm:$0xf] }
  0x1e   : > { %v246_v11 = vld [vmem:[%s944_s10 + $0xb0] sm:$0xf]  ;;  %243 = vst [vmem:[%s203_s11 + $0x24] sm:$0xf] %v242_v9  ;;  %245 = vst [vmem:[%s203_s11 + $0x28] sm:$0xf] %v244_v10 }
  0x1f   : > { %247 = vst [vmem:[%s203_s11 + $0x2c] sm:$0xf] %v246_v11  ;;  %v248_v12 = vld [vmem:[%s944_s10 + $0xc0] sm:$0xf]  ;;  %v250_v13 = vld [vmem:[%s944_s10 + $0xd0] sm:$0xf] }
  0x20   : > { %v252_v14 = vld [vmem:[%s944_s10 + $0xe0] sm:$0xf]  ;;  %249 = vst [vmem:[%s203_s11 + $0x30] sm:$0xf] %v248_v12  ;;  %251 = vst [vmem:[%s203_s11 + $0x34] sm:$0xf] %v250_v13 }
  0x21   : > { %253 = vst [vmem:[%s203_s11 + $0x38] sm:$0xf] %v252_v14  ;;  %v254_v15 = vld [vmem:[%s944_s10 + $0xf0] sm:$0xf] }
  0x22   : > { %255 = vst [vmem:[%s203_s11 + $0x3c] sm:$0xf] %v254_v15 }
  0x23 PF: > { %p685_p7 = scmp.ge.s32.totalorder %s854_s21, 1  ;;  %p326_p8 = scmp.lt.s32.totalorder %s854_s21, 17 }
  0x25   : > { %p327_p9 = pnand %p685_p7, %p326_p8 }
  0x26   : > { %s333_s12 = sand.u32 (!%p327_p9), 1, %s830_s15   ;;  %p382_p10 = scmp.lt.s32.totalorder (!%p327_p9), %s838_s17, 3 }
  0x27   : > { %330 = sbr.rel (%p327_p9) target bundleno = 318 (0x13e), region = 73  ;;  %s686_s13 = sshll.u32 (!%p327_p9), %s333_s12, 6 }
  0x28   : > { %p389_p11 = scmp.lt.s32.totalorder (!%p327_p9), %s842_s18, 3  ;;  %s335_s12 = scalar_lea.vmem (!%p327_p9), [#allocation3], %s686_s13 }
  0x29   : > { %p690_p12 = scmp.ne.s32.totalorder (!%p327_p9), %s838_s17, 0 }
  0x2e   : > { %s383_s14 = scalar_select %p382_p10, %s838_s17, 3 }
  0x2f   : > { %s1040_s18 = smov (!%p389_p11, %s842_s18), 3  ;;  %412 = sbr.rel (%p690_p12) target bundleno = 54 (0x36), region = 81 }
  0x30   : > { %s687_s24 = sshll.u32 %s383_s14, 2  ;;  %s391_s5 = scalar_lea.vmem %s1024_s2, %s1040_s18  ;;  %v856_v16 = vmov (!%p690_p12), 0.0  }
  0x31   : > { %s974_s27 = scalar_lea.vmem %s1022_s0, %s687_s24  ;;  %s688_s6 = sshll.u32 %s1040_s18, 2  ;;  %413 = vst [vmem:[#allocation2] sm:$0xff] (!%p690_p12), %v856_v16 }
  0x32   : > { %s984_s8 = scalar_lea.vmem %s1025_s3, %s688_s6  ;;  %s989_s11 = scalar_lea.vmem %s1026_s4, %s688_s6 }
  0x36 PF: > { %v792_v17 = vld [vmem:[%s335_s12] sm:$0xff]   ;;  %v857_v18 = vmov 0.0   ;;  %v793_v19 = vld [vmem:[%s335_s12 + $0x8] sm:$0xff]   ;;  %vm858_vm0 = vmmov 0   ;;  %v794_v20 = vld [vmem:[%s335_s12 + $0x10] sm:$0xff]   ;;  %p699_p13 = scmp.ne.s32.totalorder %s838_s17, 3 }
  0x37   : > { %713 = vmatprep.subr.bf16.mxu0 %v857_v18  ;;  %729 = vmatprep.mubr.msk.bf16.mxu0 %vm858_vm0, %v857_v18  ;;  %v795_v21 = vld [vmem:[%s335_s12 + $0x18] sm:$0xff]   ;;  %v796_v22 = vld [vmem:[%s335_s12 + $0x20] sm:$0xff]   ;;  %v797_v23 = vld [vmem:[%s335_s12 + $0x28] sm:$0xff]  }
  0x38   : > { %714 = vmatpush3.bf16.msra.mxu0 %v792_v17  ;;  %v798_v24 = vld [vmem:[%s335_s12 + $0x30] sm:$0xff]   ;;  %v799_v25 = vld [vmem:[%s335_s12 + $0x38] sm:$0xff]  }
  0x39   : > { %715 = vmatprep.subr.bf16.mxu0 %v857_v18  ;;  %v415_v26 = vld [vmem:[%s974_s27] sm:$0xf] }
  0x3a   : > { %v414_v27 = vld [vmem:[#allocation2] sm:$0xff] }
  0x3b   : > { %v700_v34 = vld [vmem:[%s391_s5] ss:$0 sm:$0xff] (!%p699_p13) }
  0x3c   : > { %716 = vmatpush3.bf16.msra.mxu0 %v793_v19  ;;  %v535_v35 = vld [vmem:[%s984_s8] sm:$0xf] (!%p699_p13) }
  0x3d   : > { %717 = vmatprep.subr.bf16.mxu0 %v857_v18  ;;  %v536_v37 = vunpack.c.l.bf16 (!%p699_p13), %v535_v35 }
  0x40   : > { %718 = vmatpush3.bf16.msra.mxu0 %v794_v20 }
  0x41   : > { %719 = vmatprep.subr.bf16.mxu0 %v857_v18 }
  0x44   : > { %720 = vmatpush3.bf16.msra.mxu0 %v795_v21 }
  0x45   : > { %721 = vmatprep.subr.bf16.mxu0 %v857_v18 }
  0x48   : > { %722 = vmatpush3.bf16.msra.mxu0 %v796_v22 }
  0x49   : > { %723 = vmatprep.subr.bf16.mxu0 %v857_v18 }
  0x4c   : > { %724 = vmatpush3.bf16.msra.mxu0 %v797_v23 }
  0x4d   : > { %725 = vmatprep.subr.bf16.mxu0 %v857_v18 }
  0x50   : > { %726 = vmatpush3.bf16.msra.mxu0 %v798_v24 }
  0x51   : > { %727 = vmatprep.subr.bf16.mxu0 %v857_v18 }
  0x54   : > { %728 = vmatpush3.bf16.msra.mxu0 %v799_v25 }
  0x57   : > { %730 = vmatmul.mubr.bf16.vlgmr.msra.gmra.mrb[0].mxu0 %v415_v26 }
 0x127   : > { %525 = sbr.rel (%p699_p13) target bundleno = 318 (0x13e), region = 85 }
 0x12a   : > { %v514_v28 = vpop.f32.mrb[0].mxu0 }
 0x12b   : > { %v520_v29 = vadd.f32 %v514_v28, %v414_v27  ;;  %v731_v30 = vpop.f32.mrb[1].mxu0 }
 0x12c   : > { %v517_v31 = vpop.f32.mrb[2].mxu0 }
 0x12d   : > { %521 = vst [vmem:[#allocation2] sm:$0xff] %v520_v29  ;;  %v732_v32 = vpop.f32.mrb[3].mxu0 }
 0x134   : > { %v526_v33 = vld [vmem:[#allocation2] sm:$0xff] }
 0x135   : > { %v534_v36 = vadd.f32 %v700_v34, %v526_v33 }
 0x137   : > { %v537_v38 = vadd.f32 %v536_v37, %v534_v36 }
 0x139   : > { %v538_v39 = vmax.f32 %v537_v38, 0.0 }
 0x13b   : > { %v539_v40 = vpack.c.bf16 %v538_v39, %v538_v39 }
 0x13d   : > { %540 = vst [vmem:[%s989_s11] sm:$0xf] %v539_v40 }
 0x13e PF: > { %s14_s21 = sadd.s32 1, %s854_s21   ;;  %s1027_s15 = smov %s834_s16 }
 0x13f   : > { %p11_p0 = scmp.ge.s32.totalorder %s14_s21, 18   ;;  %s1028_s16 = smov %s935_s28 }
 0x140   : > { %s1029_s17 = smov %s846_s19  ;;  %s1030_s18 = smov %s850_s20 }
 0x141   : > { %s1031_s19 = smov %s1034_s22  ;;  %s1032_s20 = smov %s1038_s23 }
 0x142   :  { %13 = sbr.rel (!%p11_p0) target bundleno = 4 (0x4), region = 129 }

// kernel: regnet_forward.120
= control target key start
LH: loop header
LB: loop body
LE: loop exit
PB: predicated region body
PF: predicated region fallthrough
CT: control target
= control target key end

     0   :  { %s799_s12 = smov 0   ;;  %s801_s13 = smov 0   ;;  %s931_s0 = inlined_call_operand.vmem [shape: bf16[8,512], index: 0, kind: input, shape index: {}]   ;;  %s932_s1 = inlined_call_operand.vmem [shape: bf16[512,512], index: 1, kind: input, shape index: {}]   ;;  %s933_s2 = inlined_call_operand.vmem [shape: f32[1,512], index: 2, kind: input, shape index: {}]   ;;  %s934_s3 = inlined_call_operand.vmem [shape: bf16[8,512], index: 3, kind: output, shape index: {}]  }
   0x1   :  { %s803_s14 = smov 0   ;;  %s805_s15 = smov 0  }
   0x2   :  { %s807_s16 = smov 0   ;;  %s809_s17 = smov 0  }
   0x3   :  { %s811_s18 = smov 0  }
   0x4 LB: > { %s25_s19 = sadd.s32 1, %s766_s16  ;;  %s28_s20 = sadd.s32 1, %s770_s17  ;;  %s774_s18 = sphi %s811_s18, %s13_s18   ;;  %s770_s17 = sphi %s809_s17, %s940_s17   ;;  %s766_s16 = sphi %s807_s16, %s939_s16   ;;  %s762_s15 = sphi %s805_s15, %s938_s15   ;;  %s758_s14 = sphi %s803_s14, %s937_s14   ;;  %s754_s13 = sphi %s801_s13, %s936_s13   ;;  %s750_s12 = sphi %s799_s12, %s935_s12  }
   0x5   : > { %p26_p0 = scmp.ge.s32.totalorder %s25_s19, 4  ;;  %p76_p1 = scmp.ne.s32.totalorder %s754_s13, %s750_s12 }
   0x6   : > { %p77_p2 = scmp.eq.s32.totalorder %s774_s18, 0  ;;  %s69_s24 = sadd.s32 1, %s754_s13 }
   0x7   : > { %s942_s19 = smov (%p26_p0, %s25_s19), 0  ;;  %s944_s20 = smov (!%p26_p0, %s28_s20), %s770_s17 }
   0x8   : > { %p78_p3 = por %p77_p2, %p76_p1  ;;  %p30_p4 = scmp.ge.s32.totalorder %s944_s20, 4 }
   0x9   : > { %s64_s21 = ssub.s32 %s766_s16, %s942_s19  ;;  %p601_p6 = scmp.ge.s32.totalorder %s774_s18, 16 }
   0xa   : > { %s946_s20 = smov (%p30_p4, %s944_s20), 0 }
   0xb   : > { %s65_s22 = ssub.s32 %s770_s17, %s946_s20  ;;  %156 = sbr.rel (%p601_p6) target bundleno = 35 (0x23), region = 16 }
   0xc   : > { %s66_s23 = sor.u32 %s65_s22, %s64_s21 }
   0xd   : > { %p67_p5 = scmp.eq.s32.totalorder %s66_s23, 0 }
   0xf   : > { %s850_s25 = scalar_select %p67_p5, %s754_s13, %s69_s24  }
  0x12   : > { %170 = sbr.rel (!%p78_p3) target bundleno = 35 (0x23), region = 24  ;;  %s172_s26 = sand.u32 (%p78_p3), 1, %s754_s13  }
  0x13   : > { %s623_s27 = sshll.u32 (%p78_p3), %s766_s16, 6  ;;  %s602_s28 = sshll.u32 (%p78_p3), %s172_s26, 6 }
  0x14   : > { %s177_s29 = sadd.s32 (%p78_p3), %s770_s17, %s623_s27  ;;  %s174_s7 = scalar_lea.vmem (%p78_p3), [#allocation3], %s602_s28 }
  0x15   : > { %s605_s30 = sshll.u32 (%p78_p3), %s177_s29, 2 }
  0x16   : > { %s859_s6 = scalar_lea.vmem (%p78_p3), %s932_s1, %s605_s30 }
  0x17   : > { %v195_v0 = vld [vmem:[%s859_s6] sm:$0xf] (%p78_p3)  ;;  %v197_v1 = vld [vmem:[%s859_s6 + $0x10] sm:$0xf] (%p78_p3) }
  0x18   : > { %v199_v2 = vld [vmem:[%s859_s6 + $0x20] sm:$0xf] (%p78_p3)  ;;  %196 = vst [vmem:[%s174_s7] sm:$0xf] (%p78_p3), %v195_v0  ;;  %198 = vst [vmem:[%s174_s7 + $0x4] sm:$0xf] (%p78_p3), %v197_v1 }
  0x19   : > { %200 = vst [vmem:[%s174_s7 + $0x8] sm:$0xf] %v199_v2  ;;  %v201_v3 = vld [vmem:[%s859_s6 + $0x30] sm:$0xf]  ;;  %v203_v4 = vld [vmem:[%s859_s6 + $0x40] sm:$0xf] }
  0x1a   : > { %v205_v5 = vld [vmem:[%s859_s6 + $0x50] sm:$0xf]  ;;  %202 = vst [vmem:[%s174_s7 + $0xc] sm:$0xf] %v201_v3  ;;  %204 = vst [vmem:[%s174_s7 + $0x10] sm:$0xf] %v203_v4 }
  0x1b   : > { %206 = vst [vmem:[%s174_s7 + $0x14] sm:$0xf] %v205_v5  ;;  %v207_v6 = vld [vmem:[%s859_s6 + $0x60] sm:$0xf]  ;;  %v209_v7 = vld [vmem:[%s859_s6 + $0x70] sm:$0xf] }
  0x1c   : > { %v211_v8 = vld [vmem:[%s859_s6 + $0x80] sm:$0xf]  ;;  %208 = vst [vmem:[%s174_s7 + $0x18] sm:$0xf] %v207_v6  ;;  %210 = vst [vmem:[%s174_s7 + $0x1c] sm:$0xf] %v209_v7 }
  0x1d   : > { %212 = vst [vmem:[%s174_s7 + $0x20] sm:$0xf] %v211_v8  ;;  %v213_v9 = vld [vmem:[%s859_s6 + $0x90] sm:$0xf]  ;;  %v215_v10 = vld [vmem:[%s859_s6 + $0xa0] sm:$0xf] }
  0x1e   : > { %v217_v11 = vld [vmem:[%s859_s6 + $0xb0] sm:$0xf]  ;;  %214 = vst [vmem:[%s174_s7 + $0x24] sm:$0xf] %v213_v9  ;;  %216 = vst [vmem:[%s174_s7 + $0x28] sm:$0xf] %v215_v10 }
  0x1f   : > { %218 = vst [vmem:[%s174_s7 + $0x2c] sm:$0xf] %v217_v11  ;;  %v219_v12 = vld [vmem:[%s859_s6 + $0xc0] sm:$0xf]  ;;  %v221_v13 = vld [vmem:[%s859_s6 + $0xd0] sm:$0xf] }
  0x20   : > { %v223_v14 = vld [vmem:[%s859_s6 + $0xe0] sm:$0xf]  ;;  %220 = vst [vmem:[%s174_s7 + $0x30] sm:$0xf] %v219_v12  ;;  %222 = vst [vmem:[%s174_s7 + $0x34] sm:$0xf] %v221_v13 }
  0x21   : > { %224 = vst [vmem:[%s174_s7 + $0x38] sm:$0xf] %v223_v14  ;;  %v225_v15 = vld [vmem:[%s859_s6 + $0xf0] sm:$0xf] }
  0x22   : > { %226 = vst [vmem:[%s174_s7 + $0x3c] sm:$0xf] %v225_v15 }
  0x23 PF: > { %p606_p7 = scmp.ge.s32.totalorder %s774_s18, 1  ;;  %p286_p8 = scmp.lt.s32.totalorder %s774_s18, 17 }
  0x25   : > { %p287_p9 = pnand %p606_p7, %p286_p8 }
  0x26   : > { %s293_s8 = sand.u32 (!%p287_p9), 1, %s750_s12   ;;  %p332_p10 = scmp.lt.s32.totalorder (!%p287_p9), %s758_s14, 3 }
  0x27   : > { %290 = sbr.rel (%p287_p9) target bundleno = 316 (0x13c), region = 69  ;;  %s607_s9 = sshll.u32 (!%p287_p9), %s293_s8, 6 }
  0x28   : > { %p339_p11 = scmp.lt.s32.totalorder (!%p287_p9), %s762_s15, 3  ;;  %s295_s4 = scalar_lea.vmem (!%p287_p9), [#allocation3], %s607_s9 }
  0x29   : > { %p610_p12 = scmp.ne.s32.totalorder (!%p287_p9), %s758_s14, 0 }
  0x2e   : > { %s333_s10 = scalar_select %p332_p10, %s758_s14, 3 }
  0x2f   : > { %s948_s15 = smov (!%p339_p11, %s762_s15), 3  ;;  %354 = sbr.rel (%p610_p12) target bundleno = 54 (0x36), region = 77 }
  0x30   : > { %s608_s11 = sshll.u32 %s333_s10, 2  ;;  %s341_s27 = scalar_lea.vmem %s933_s2, %s948_s15  ;;  %v776_v16 = vmov (!%p610_p12), 0.0  }
  0x31   : > { %s889_s23 = scalar_lea.vmem %s931_s0, %s608_s11  ;;  %s609_s28 = sshll.u32 %s948_s15, 2  ;;  %355 = vst [vmem:[#allocation2] sm:$0xff] (!%p610_p12), %v776_v16 }
  0x32   : > { %s899_s30 = scalar_lea.vmem %s934_s3, %s609_s28 }
  0x36 PF: > { %v712_v17 = vld [vmem:[%s295_s4] sm:$0xff]   ;;  %v777_v18 = vmov 0.0   ;;  %v713_v19 = vld [vmem:[%s295_s4 + $0x8] sm:$0xff]   ;;  %vm778_vm0 = vmmov 0   ;;  %v714_v20 = vld [vmem:[%s295_s4 + $0x10] sm:$0xff]   ;;  %p619_p13 = scmp.ne.s32.totalorder %s758_s14, 3 }
  0x37   : > { %633 = vmatprep.subr.bf16.mxu0 %v777_v18  ;;  %649 = vmatprep.mubr.msk.bf16.mxu0 %vm778_vm0, %v777_v18  ;;  %v715_v21 = vld [vmem:[%s295_s4 + $0x18] sm:$0xff]   ;;  %v716_v22 = vld [vmem:[%s295_s4 + $0x20] sm:$0xff]   ;;  %v717_v23 = vld [vmem:[%s295_s4 + $0x28] sm:$0xff]  }
  0x38   : > { %634 = vmatpush3.bf16.msra.mxu0 %v712_v17  ;;  %v718_v24 = vld [vmem:[%s295_s4 + $0x30] sm:$0xff]   ;;  %v719_v25 = vld [vmem:[%s295_s4 + $0x38] sm:$0xff]  }
  0x39   : > { %635 = vmatprep.subr.bf16.mxu0 %v777_v18  ;;  %v357_v26 = vld [vmem:[%s889_s23] sm:$0xf] }
  0x3a   : > { %v356_v27 = vld [vmem:[#allocation2] sm:$0xff] }
  0x3b   : > { %v620_v34 = vld [vmem:[%s341_s27] ss:$0 sm:$0xff] (!%p619_p13) }
  0x3c   : > { %636 = vmatpush3.bf16.msra.mxu0 %v713_v19 }
  0x3d   : > { %637 = vmatprep.subr.bf16.mxu0 %v777_v18 }
  0x40   : > { %638 = vmatpush3.bf16.msra.mxu0 %v714_v20 }
  0x41   : > { %639 = vmatprep.subr.bf16.mxu0 %v777_v18 }
  0x44   : > { %640 = vmatpush3.bf16.msra.mxu0 %v715_v21 }
  0x45   : > { %641 = vmatprep.subr.bf16.mxu0 %v777_v18 }
  0x48   : > { %642 = vmatpush3.bf16.msra.mxu0 %v716_v22 }
  0x49   : > { %643 = vmatprep.subr.bf16.mxu0 %v777_v18 }
  0x4c   : > { %644 = vmatpush3.bf16.msra.mxu0 %v717_v23 }
  0x4d   : > { %645 = vmatprep.subr.bf16.mxu0 %v777_v18 }
  0x50   : > { %646 = vmatpush3.bf16.msra.mxu0 %v718_v24 }
  0x51   : > { %647 = vmatprep.subr.bf16.mxu0 %v777_v18 }
  0x54   : > { %648 = vmatpush3.bf16.msra.mxu0 %v719_v25 }
  0x57   : > { %650 = vmatmul.mubr.bf16.vlgmr.msra.gmra.mrb[0].mxu0 %v357_v26 }
 0x127   : > { %467 = sbr.rel (%p619_p13) target bundleno = 316 (0x13c), region = 81 }
 0x12a   : > { %v456_v28 = vpop.f32.mrb[0].mxu0 }
 0x12b   : > { %v462_v29 = vadd.f32 %v456_v28, %v356_v27  ;;  %v651_v30 = vpop.f32.mrb[1].mxu0 }
 0x12c   : > { %v459_v31 = vpop.f32.mrb[2].mxu0 }
 0x12d   : > { %463 = vst [vmem:[#allocation2] sm:$0xff] %v462_v29  ;;  %v652_v32 = vpop.f32.mrb[3].mxu0 }
 0x134   : > { %v468_v33 = vld [vmem:[#allocation2] sm:$0xff] }
 0x135   : > { %v476_v35 = vadd.f32 %v620_v34, %v468_v33 }
 0x137   : > { %v477_v36 = vmax.f32 %v476_v35, 0.0 }
 0x139   : > { %v478_v37 = vpack.c.bf16 %v477_v36, %v477_v36 }
 0x13b   : > { %479 = vst [vmem:[%s899_s30] sm:$0xf] %v478_v37 }
 0x13c PF: > { %s13_s18 = sadd.s32 1, %s774_s18   ;;  %s935_s12 = smov %s754_s13 }
 0x13d   : > { %p10_p0 = scmp.ge.s32.totalorder %s13_s18, 18   ;;  %s936_s13 = smov %s850_s25 }
 0x13e   : > { %s937_s14 = smov %s766_s16  ;;  %s938_s15 = smov %s770_s17 }
 0x13f   : > { %s939_s16 = smov %s942_s19  ;;  %s940_s17 = smov %s946_s20 }
 0x140   :  { %12 = sbr.rel (!%p10_p0) target bundleno = 4 (0x4), region = 122 }

// kernel: regnet_forward.141
= control target key start
LH: loop header
LB: loop body
LE: loop exit
PB: predicated region body
PF: predicated region fallthrough
CT: control target
= control target key end

     0   :  { %s620_s12 = smov 0   ;;  %s622_s13 = smov 0   ;;  %s669_s0 = inlined_call_operand.vmem [shape: bf16[8,512], index: 0, kind: input, shape index: {}]   ;;  %s670_s1 = inlined_call_operand.vmem [shape: bf16[512,128], index: 1, kind: input, shape index: {}]   ;;  %s671_s2 = inlined_call_operand.vmem [shape: f32[1,128], index: 2, kind: input, shape index: {}]   ;;  %s672_s3 = inlined_call_operand.vmem [shape: f32[8,128], index: 3, kind: output, shape index: {}]  }
   0x1   :  { %s624_s14 = smov 0  }
   0x2 LB: > { %s25_s15 = sadd.s32 1, %s591_s13  ;;  %p491_p0 = scmp.ge.s32.totalorder %s595_s14, 1  ;;  %s595_s14 = sphi %s624_s14, %s13_s14   ;;  %s591_s13 = sphi %s622_s13, %s674_s13   ;;  %s587_s12 = sphi %s620_s12, %s673_s12  }
   0x3   : > { %p26_p1 = scmp.ge.s32.totalorder %s25_s15, 4  ;;  %p187_p2 = scmp.lt.s32.totalorder %s595_s14, 5 }
   0x5   : > { %s676_s15 = smov (%p26_p1, %s25_s15), 0  ;;  %p188_p3 = pnand %p491_p0, %p187_p2 }
   0x6   : > { %p229_p4 = scmp.lt.s32.totalorder (!%p188_p3), %s587_s12, 3  ;;  %s493_s16 = sshll.u32 (!%p188_p3), %s587_s12, 4 }
   0x7   : > { %191 = sbr.rel (%p188_p3) target bundleno = 280 (0x118), region = 32  ;;  %p236_p5 = scmp.lt.s32.totalorder (!%p188_p3), %s493_s16, 63 }
   0x8   : > { %p495_p6 = scmp.ne.s32.totalorder (!%p188_p3), %s587_s12, 0 }
   0xe   : > { %s230_s17 = scalar_select %p229_p4, %s587_s12, 3 }
   0xf   : > { %s678_s16 = smov (!%p236_p5, %s493_s16), 63  ;;  %258 = sbr.rel (%p495_p6) target bundleno = 22 (0x16), region = 36 }
  0x10   : > { %s492_s18 = sshll.u32 %s230_s17, 2  ;;  %s494_s22 = sshll.u32 %s678_s16, 2  ;;  %v597_v0 = vmov (!%p495_p6), 0.0  }
  0x11   : > { %s646_s21 = scalar_lea.vmem %s669_s0, %s492_s18  ;;  %s242_s25 = scalar_lea.vmem %s670_s1, %s494_s22  ;;  %259 = vst [vmem:[#allocation2] sm:$0xff] (!%p495_p6), %v597_v0 }
  0x16 PF: > { %v565_v1 = vld [vmem:[%s242_s25] sm:$0xff]   ;;  %v598_v2 = vmov 0.0   ;;  %v566_v3 = vld [vmem:[%s242_s25 + $0x8] sm:$0xff]   ;;  %vm599_vm0 = vmmov 0   ;;  %v567_v4 = vld [vmem:[%s242_s25 + $0x10] sm:$0xff]   ;;  %p504_p7 = scmp.ne.s32.totalorder %s587_s12, 3 }
  0x17   : > { %518 = vmatprep.subr.bf16.mxu0 %v598_v2  ;;  %534 = vmatprep.mubr.msk.bf16.mxu0 %vm599_vm0, %v598_v2  ;;  %v568_v5 = vld [vmem:[%s242_s25 + $0x18] sm:$0xff]   ;;  %v569_v6 = vld [vmem:[%s242_s25 + $0x20] sm:$0xff]   ;;  %v570_v7 = vld [vmem:[%s242_s25 + $0x28] sm:$0xff]  }
  0x18   : > { %519 = vmatpush3.bf16.msra.mxu0 %v565_v1  ;;  %v571_v8 = vld [vmem:[%s242_s25 + $0x30] sm:$0xff]   ;;  %v572_v9 = vld [vmem:[%s242_s25 + $0x38] sm:$0xff]   ;;  %v261_v10 = vld [vmem:[%s646_s21] sm:$0xf] }
  0x19   : > { %520 = vmatprep.subr.bf16.mxu0 %v598_v2  ;;  %v260_v11 = vld [vmem:[#allocation2] sm:$0xff] }
  0x1a   : > { %v505_v18 = vld [vmem:[%s671_s2] ss:$0 sm:$0xff] (!%p504_p7) }
  0x1c   : > { %521 = vmatpush3.bf16.msra.mxu0 %v566_v3 }
  0x1d   : > { %522 = vmatprep.subr.bf16.mxu0 %v598_v2 }
  0x20   : > { %523 = vmatpush3.bf16.msra.mxu0 %v567_v4 }
  0x21   : > { %524 = vmatprep.subr.bf16.mxu0 %v598_v2 }
  0x24   : > { %525 = vmatpush3.bf16.msra.mxu0 %v568_v5 }
  0x25   : > { %526 = vmatprep.subr.bf16.mxu0 %v598_v2 }
  0x28   : > { %527 = vmatpush3.bf16.msra.mxu0 %v569_v6 }
  0x29   : > { %528 = vmatprep.subr.bf16.mxu0 %v598_v2 }
  0x2c   : > { %529 = vmatpush3.bf16.msra.mxu0 %v570_v7 }
  0x2d   : > { %530 = vmatprep.subr.bf16.mxu0 %v598_v2 }
  0x30   : > { %531 = vmatpush3.bf16.msra.mxu0 %v571_v8 }
  0x31   : > { %532 = vmatprep.subr.bf16.mxu0 %v598_v2 }
  0x34   : > { %533 = vmatpush3.bf16.msra.mxu0 %v572_v9 }
  0x37   : > { %535 = vmatmul.mubr.bf16.vlgmr.msra.gmra.mrb[0].mxu0 %v261_v10 }
 0x107   : > { %371 = sbr.rel (%p504_p7) target bundleno = 280 (0x118), region = 40 }
 0x10a   : > { %v360_v12 = vpop.f32.mrb[0].mxu0 }
 0x10b   : > { %v366_v13 = vadd.f32 %v360_v12, %v260_v11  ;;  %v536_v14 = vpop.f32.mrb[1].mxu0 }
 0x10c   : > { %v363_v15 = vpop.f32.mrb[2].mxu0 }
 0x10d   : > { %367 = vst [vmem:[#allocation2] sm:$0xff] %v366_v13  ;;  %v537_v16 = vpop.f32.mrb[3].mxu0 }
 0x114   : > { %v372_v17 = vld [vmem:[#allocation2] sm:$0xff] }
 0x115   : > { %v380_v19 = vadd.f32 %v505_v18, %v372_v17 }
 0x117   : > { %381 = vst [vmem:[%s672_s3] sm:$0xff] %v380_v19 }
 0x118 PF: > { %s13_s14 = sadd.s32 1, %s595_s14   ;;  %s673_s12 = smov %s591_s13 }
 0x119   : > { %p10_p8 = scmp.ge.s32.totalorder %s13_s14, 6   ;;  %s674_s13 = smov %s676_s15 }
 0x11b   :  { %12 = sbr.rel (!%p10_p8) target bundleno = 2 (0x2), region = 76 }

// kernel: regnet_forward.140
= control target key start
LH: loop header
LB: loop body
LE: loop exit
PB: predicated region body
PF: predicated region fallthrough
CT: control target
= control target key end

     0   :  { %v130_v3 = vmov 1983009808   ;;  %v81_v5 = vlaneseq  ;;  %vm115_vm0 = vcmask 1041409   ;;  %vm117_vm1 = vcmask 1043459   ;;  %s159_s0 = inlined_call_operand.vmem [shape: bf16[2,8,512], index: 0, kind: input, shape index: {}]   ;;  %s160_s1 = inlined_call_operand.vmem [shape: f32[2,512], index: 1, kind: output, shape index: {}]  }
   0x1   :  { %v8_v0 = vld [vmem:[%s159_s0] sm:$0xff]  ;;  %v9_v1 = vld [vmem:[%s159_s0 + $0x8] sm:$0xff]  ;;  %v10_v2 = vld [vmem:[%s159_s0 + $0x10] sm:$0xff]  ;;  %v150_v4 = vunpack.c.l.s4 %v130_v3  ;;  %vm119_vm2 = vcmask 1045509   ;;  %vm121_vm3 = vcmask 1047559  }
   0x2   :  { %v11_v6 = vld [vmem:[%s159_s0 + $0x18] sm:$0xff]  ;;  %v12_v7 = vunpack.c.l.bf16 %v8_v0  ;;  %v13_v8 = vunpack.c.h.bf16 %v8_v0  ;;  %v14_v9 = vunpack.c.l.bf16 %v9_v1  ;;  %v15_v10 = vunpack.c.h.bf16 %v9_v1 }
   0x3   :  { %v16_v11 = vunpack.c.l.bf16 %v10_v2  ;;  %v17_v12 = vunpack.c.h.bf16 %v10_v2  ;;  %v18_v13 = vunpack.c.l.bf16 %v11_v6  ;;  %v19_v14 = vunpack.c.h.bf16 %v11_v6 }
   0x4   :  { %v20_v15 = vrot.slane %v12_v7, 4  ;;  %v26_v16 = vrot.slane %v13_v8, 4  ;;  %v32_v17 = vrot.slane %v14_v9, 4  ;;  %v38_v18 = vrot.slane %v15_v10, 4 }
   0x5   :  { %v44_v19 = vrot.slane %v16_v11, 4  ;;  %v50_v20 = vrot.slane %v17_v12, 4  ;;  %v56_v21 = vrot.slane %v18_v13, 4  ;;  %v62_v22 = vrot.slane %v19_v14, 4 }
   0x6   :  { %v21_v23 = vadd.f32 %v20_v15, %v12_v7  ;;  %v27_v24 = vadd.f32 %v26_v16, %v13_v8  ;;  %v33_v25 = vadd.f32 %v32_v17, %v14_v9  ;;  %v39_v26 = vadd.f32 %v38_v18, %v15_v10 }
   0x7   :  { %v45_v27 = vadd.f32 %v44_v19, %v16_v11  ;;  %v51_v28 = vadd.f32 %v50_v20, %v17_v12  ;;  %v57_v29 = vadd.f32 %v56_v21, %v18_v13  ;;  %v63_v30 = vadd.f32 %v62_v22, %v19_v14 }
   0x8   :  { %v22_v31 = vrot.slane %v21_v23, 2  ;;  %v28_v32 = vrot.slane %v27_v24, 2  ;;  %v34_v33 = vrot.slane %v33_v25, 2  ;;  %v40_v34 = vrot.slane %v39_v26, 2 }
   0x9   :  { %v46_v35 = vrot.slane %v45_v27, 2  ;;  %v52_v36 = vrot.slane %v51_v28, 2  ;;  %v58_v37 = vrot.slane %v57_v29, 2  ;;  %v64_v38 = vrot.slane %v63_v30, 2 }
   0xa   :  { %v23_v39 = vadd.f32 %v22_v31, %v21_v23  ;;  %v29_v40 = vadd.f32 %v28_v32, %v27_v24  ;;  %v35_v41 = vadd.f32 %v34_v33, %v33_v25  ;;  %v41_v42 = vadd.f32 %v40_v34, %v39_v26 }
   0xb   :  { %v47_v43 = vadd.f32 %v46_v35, %v45_v27  ;;  %v53_v44 = vadd.f32 %v52_v36, %v51_v28  ;;  %v59_v45 = vadd.f32 %v58_v37, %v57_v29  ;;  %v65_v46 = vadd.f32 %v64_v38, %v63_v30 }
   0xc   :  { %v24_v47 = vrot.slane %v23_v39, 1  ;;  %v30_v48 = vrot.slane %v29_v40, 1  ;;  %v36_v49 = vrot.slane %v35_v41, 1  ;;  %v42_v50 = vrot.slane %v41_v42, 1 }
   0xd   :  { %v48_v51 = vrot.slane %v47_v43, 1  ;;  %v54_v52 = vrot.slane %v53_v44, 1  ;;  %v60_v53 = vrot.slane %v59_v45, 1  ;;  %v66_v54 = vrot.slane %v65_v46, 1 }
   0xe   :  { %v25_v55 = vadd.f32 %v24_v47, %v23_v39  ;;  %v31_v56 = vadd.f32 %v30_v48, %v29_v40  ;;  %v37_v57 = vadd.f32 %v36_v49, %v35_v41  ;;  %v43_v58 = vadd.f32 %v42_v50, %v41_v42 }
   0xf   :  { %v49_v59 = vadd.f32 %v48_v51, %v47_v43  ;;  %v55_v60 = vadd.f32 %v54_v52, %v53_v44  ;;  %v61_v61 = vadd.f32 %v60_v53, %v59_v45  ;;  %v67_v62 = vadd.f32 %v66_v54, %v65_v46 }
  0x10   :  { %v76_v63 = vcombine.low %v25_v55, %v31_v56  ;;  %v77_v0 = vcombine.low %v37_v57, %v43_v58  ;;  %v80_v1 = vunpack.c.0.s8 %v150_v4  ;;  %v82_v2 = vshrl.u32 %v81_v5, 7 }
  0x11   :  { %v93_v3 = vcombine.low %v49_v59, %v55_v60  ;;  %v94_v6 = vcombine.low %v61_v61, %v67_v62 }
  0x12   :  { %v83_v7 = vsub.s32 %v80_v1, %v82_v2 }
  0x14   :  { %v84_v8 = vrot.slane %v76_v63, %v83_v7  ;;  %v91_v9 = vrot.slane %v77_v0, %v83_v7  ;;  %v101_v10 = vrot.slane %v93_v3, %v83_v7  ;;  %v108_v11 = vrot.slane %v94_v6, %v83_v7 }
  0x16   :  { %v92_v12 = vcombine.low %v84_v8, %v91_v9  ;;  %v109_v13 = vcombine.low %v101_v10, %v108_v11 }
  0x18   :  { %v114_v14 = vrot.slane %v109_v13, 7 }
  0x1a   :  { %v116_v15 = vsel %vm115_vm0, %v114_v14, %v92_v12 }
  0x1b   :  { %v118_v16 = vsel %vm117_vm1, %v114_v14, %v116_v15 }
  0x1c   :  { %v120_v17 = vsel %vm119_vm2, %v114_v14, %v118_v16 }
  0x1d   :  { %v122_v18 = vsel %vm121_vm3, %v114_v14, %v120_v17 }
  0x1e   :  { %124 = vst [vmem:[%s160_s1] sm:$0xff] %v122_v18 }

</bundles_post_ra>
